<compile_context>
chip_gen: v7x
topology: tpu7x:2x2x1
jax: 0.10.0
libtpu: 0.0.40
codegen_flags: <defaults>
</compile_context>

<pallas_src>
import jax
import jax.numpy as jnp
from jax.experimental import pallas as pl
from jax.experimental.pallas import tpu as pltpu


# ----------------------------- helpers (glue) -----------------------------

def _round_up(x, m):
    return ((x + m - 1) // m) * m


def _pad2d(x, rows, cols, value=0.0):
    r, c = x.shape
    return jnp.pad(x, ((0, rows - r), (0, cols - c)), constant_values=value)


def _im2col(x, k, stride, pad):
    """NHWC -> (N*Ho*Wo, k*k*C) patches (cheap XLA glue, keeps input dtype)."""
    N, H, W, C = x.shape
    if pad:
        x = jnp.pad(x, ((0, 0), (pad, pad), (pad, pad), (0, 0)))
    Ho = (H + 2 * pad - k) // stride + 1
    Wo = (W + 2 * pad - k) // stride + 1
    cols = []
    for i in range(k):
        for j in range(k):
            cols.append(x[:, i:i + stride * (Ho - 1) + 1:stride,
                             j:j + stride * (Wo - 1) + 1:stride, :])
    patches = jnp.concatenate(cols, axis=-1)          # (N, Ho, Wo, k*k*C)
    return patches.reshape(N * Ho * Wo, k * k * C), Ho, Wo


# ----------------------------- fused matmul kernel -----------------------------

def _make_matmul_kernel(with_bias, with_bn, with_shortcut, dual):
    """out = A@B [+bias] [+shortcut]; optionally act = relu(out*scale+shift)."""

    def kernel(*refs):
        it = iter(refs)
        a_ref = next(it)
        b_ref = next(it)
        bias_ref = next(it) if with_bias else None
        scale_ref = next(it) if with_bn else None
        shift_ref = next(it) if with_bn else None
        sc_ref = next(it) if with_shortcut else None
        if dual:
            y_ref = next(it)
            act_ref = next(it)
        elif with_bn:
            y_ref = None
            act_ref = next(it)
        else:
            y_ref = next(it)
            act_ref = None
        acc_ref = next(it)

        k = pl.program_id(2)

        @pl.when(k == 0)
        def _init():
            acc_ref[...] = jnp.zeros_like(acc_ref)

        acc_ref[...] += jnp.dot(a_ref[...], b_ref[...],
                                preferred_element_type=jnp.float32)

        @pl.when(k == pl.num_programs(2) - 1)
        def _finalize():
            y = acc_ref[...]
            if with_bias:
                y = y + bias_ref[...]
            if with_shortcut:
                y = y + sc_ref[...]
            if y_ref is not None:
                y_ref[...] = y.astype(y_ref.dtype)
            if with_bn:
                act = jnp.maximum(y * scale_ref[...] + shift_ref[...], 0.0)
                act_ref[...] = act.astype(act_ref.dtype)

    return kernel


def fused_matmul(a, b, *, bias=None, scale=None, shift=None, shortcut=None,
                 dual=False, out_dtype=jnp.float32, act_dtype=jnp.bfloat16):
    """(M,K)@(K,N) on the MXU in bf16 with f32 accumulation + fused epilogue.

    Epilogue (all f32): + bias, + shortcut, and optionally
    act = relu(out * scale + shift).  dual=True emits (out f32, act bf16).
    """
    M, K = a.shape
    K2, N = b.shape
    assert K == K2
    with_bias = bias is not None
    with_bn = scale is not None
    with_shortcut = shortcut is not None
    if dual:
        assert with_bn

    # M tiling: keep a big tile (pad M up) rather than shrinking it.
    Mp8 = _round_up(max(M, 8), 8)
    tm = 256 if Mp8 >= 256 else Mp8
    Mp = _round_up(Mp8, tm)
    # N tiling: lane-dense 128/256-wide output tiles.
    Np128 = _round_up(max(N, 128), 128)
    tn = 256 if Np128 >= 256 else Np128
    Np = _round_up(Np128, tn)
    # K tiling: ~512-wide reduction steps (bounds VMEM, keeps pipelining).
    Kp128 = _round_up(max(K, 128), 128)
    nk = -(-Kp128 // 512)
    tk = _round_up(-(-Kp128 // nk), 128)
    Kp = tk * nk

    a_p = _pad2d(a, Mp, Kp).astype(jnp.bfloat16)
    b_p = _pad2d(b, Kp, Np).astype(jnp.bfloat16)

    inputs = [a_p, b_p]
    in_specs = [pl.BlockSpec((tm, tk), lambda i, j, k: (i, k)),
                pl.BlockSpec((tk, tn), lambda i, j, k: (k, j))]
    if with_bias:
        inputs.append(jnp.pad(bias.astype(jnp.float32), (0, Np - N)).reshape(1, Np))
        in_specs.append(pl.BlockSpec((1, tn), lambda i, j, k: (0, j)))
    if with_bn:
        inputs.append(jnp.pad(scale.astype(jnp.float32), (0, Np - N)).reshape(1, Np))
        in_specs.append(pl.BlockSpec((1, tn), lambda i, j, k: (0, j)))
        inputs.append(jnp.pad(shift.astype(jnp.float32), (0, Np - N)).reshape(1, Np))
        in_specs.append(pl.BlockSpec((1, tn), lambda i, j, k: (0, j)))
    if with_shortcut:
        inputs.append(_pad2d(shortcut.astype(jnp.float32), Mp, Np))
        in_specs.append(pl.BlockSpec((tm, tn), lambda i, j, k: (i, j)))

    out_spec = pl.BlockSpec((tm, tn), lambda i, j, k: (i, j))
    if dual:
        out_shape = (jax.ShapeDtypeStruct((Mp, Np), out_dtype),
                     jax.ShapeDtypeStruct((Mp, Np), act_dtype))
        out_specs = (out_spec, out_spec)
    elif with_bn:
        out_shape = jax.ShapeDtypeStruct((Mp, Np), act_dtype)
        out_specs = out_spec
    else:
        out_shape = jax.ShapeDtypeStruct((Mp, Np), out_dtype)
        out_specs = out_spec

    res = pl.pallas_call(
        _make_matmul_kernel(with_bias, with_bn, with_shortcut, dual),
        out_shape=out_shape,
        grid_spec=pltpu.PrefetchScalarGridSpec(
            num_scalar_prefetch=0,
            grid=(Mp // tm, Np // tn, Kp // tk),
            in_specs=in_specs,
            out_specs=out_specs,
            scratch_shapes=[pltpu.VMEM((tm, tn), jnp.float32)]),
        compiler_params=pltpu.CompilerParams(
            dimension_semantics=("parallel", "parallel", "arbitrary")),
    )(*inputs)

    if dual:
        y, act = res
        return y[:M, :N], act[:M, :N]
    return res[:M, :N]


# ----------------------------- maxpool (+ fused BN1/ReLU) kernel -----------------------------

def _pool_bn_kernel(p00_ref, p01_ref, p10_ref, p11_ref, s_ref, t_ref,
                    y_ref, a_ref):
    # 3x3 / stride-2 / pad-1 max pool, expressed over the 4 even/odd phase
    # views of the padded input (no k*k stacked copy in HBM).
    Ho = y_ref.shape[1]
    Wo = y_ref.shape[2]

    def win(ref, dy, dx):
        return ref[:, dy:dy + Ho, dx:dx + Wo, :]

    m = win(p00_ref, 0, 0)
    for t in (win(p00_ref, 0, 1), win(p00_ref, 1, 0), win(p00_ref, 1, 1),
              win(p01_ref, 0, 0), win(p01_ref, 1, 0),
              win(p10_ref, 0, 0), win(p10_ref, 0, 1),
              win(p11_ref, 0, 0)):
        m = jnp.maximum(m, t)
    y_ref[...] = m
    # fused pre-activation of the consumer block: relu(bn1(pooled))
    a_ref[...] = jnp.maximum(m * s_ref[...] + t_ref[...], 0.0).astype(a_ref.dtype)


def maxpool_bn_relu(x, scale, shift):
    """MaxPool2d(k=3, s=2, p=1) with the first block's BN1+ReLU fused.

    Returns (pooled f32, relu(bn1(pooled)) bf16)."""
    N, H, W, C = x.shape
    assert H % 2 == 0 and W % 2 == 0
    fmin = float(jnp.finfo(jnp.float32).min)
    xp = jnp.pad(x, ((0, 0), (1, 1), (1, 1), (0, 0)), constant_values=fmin)
    # even/odd phase views: p[dy][dx][n, u, v, c] = xp[n, 2u+dy, 2v+dx, c]
    phases = [xp[:, dy::2, dx::2, :] for dy in (0, 1) for dx in (0, 1)]
    Hh, Wh = H // 2 + 1, W // 2 + 1
    Ho, Wo = H // 2, W // 2
    s4 = scale.astype(jnp.float32).reshape(1, 1, 1, C)
    t4 = shift.astype(jnp.float32).reshape(1, 1, 1, C)

    phase_spec = pl.BlockSpec((1, Hh, Wh, C), lambda n: (n, 0, 0, 0))
    param_spec = pl.BlockSpec((1, 1, 1, C), lambda n: (0, 0, 0, 0))
    out_spec = pl.BlockSpec((1, Ho, Wo, C), lambda n: (n, 0, 0, 0))

    y, a = pl.pallas_call(
        _pool_bn_kernel,
        out_shape=(jax.ShapeDtypeStruct((N, Ho, Wo, C), jnp.float32),
                   jax.ShapeDtypeStruct((N, Ho, Wo, C), jnp.bfloat16)),
        grid_spec=pltpu.PrefetchScalarGridSpec(
            num_scalar_prefetch=0,
            grid=(N,),
            in_specs=[phase_spec, phase_spec, phase_spec, phase_spec,
                      param_spec, param_spec],
            out_specs=(out_spec, out_spec),
        ),
        compiler_params=pltpu.CompilerParams(dimension_semantics=("parallel",)),
    )(*phases, s4, t4)
    return y, a


# ----------------------------- decoder head kernel -----------------------------

def _head_kernel(x_ref, w_ref, b_ref, o_ref):
    # x_ref: (HW, N, C); global average pool over HW, then linear + softmax.
    pooled = jnp.mean(x_ref[...], axis=0)                          # (N, C)
    logits = jnp.dot(pooled, w_ref[...],
                     preferred_element_type=jnp.float32) + b_ref[...]
    logits = logits - jnp.max(logits, axis=-1, keepdims=True)
    e = jnp.exp(logits)
    o_ref[...] = e / jnp.sum(e, axis=-1, keepdims=True)


def decoder_head(x_nhwc, w, b, num_classes):
    """global_avg_pool2d + Flatten + Linear + Softmax, fused in one kernel."""
    N, H, W, C = x_nhwc.shape
    HW = H * W
    x3d = x_nhwc.reshape(N, HW, C).transpose(1, 0, 2)   # (HW, N, C)
    Np = _round_up(max(N, 8), 8)
    Cp = _round_up(max(C, 128), 128)
    NCp = _round_up(max(num_classes, 128), 128)
    x_p = jnp.pad(x3d, ((0, 0), (0, Np - N), (0, Cp - C)))
    w_p = _pad2d(w, Cp, NCp)
    # Padded class columns get a huge negative bias so softmax gives them ~0.
    # NOTE: the head stays f32 on purpose (-1e30 would overflow in bf16).
    b_p = jnp.concatenate(
        [b, jnp.full((NCp - num_classes,), -1e30, jnp.float32)]).reshape(1, NCp)
    out = pl.pallas_call(
        _head_kernel,
        out_shape=jax.ShapeDtypeStruct((Np, NCp), jnp.float32),
        grid_spec=pltpu.PrefetchScalarGridSpec(
            num_scalar_prefetch=0,
            grid=(1,),
            in_specs=[
                pl.BlockSpec((HW, Np, Cp), lambda i: (0, 0, 0)),
                pl.BlockSpec((Cp, NCp), lambda i: (0, 0)),
                pl.BlockSpec((1, NCp), lambda i: (0, 0)),
            ],
            out_specs=pl.BlockSpec((Np, NCp), lambda i: (0, 0)),
        ),
    )(x_p, w_p, b_p)
    return out[:N, :num_classes]


# ----------------------------- model -----------------------------

def _init_params(key, num_blocks, num_classes, init_channels=3):
    keys = iter(jax.random.split(key, 512))

    def nk():
        return next(keys)

    def conv_w(kh, kw, cin, cout):
        fan_in = kh * kw * cin
        return (jax.random.normal(nk(), (kh, kw, cin, cout), jnp.float32)
                * (1.0 / jnp.sqrt(fan_in)))

    params = {
        "init_w": conv_w(7, 7, init_channels, 64),
        "init_b": 0.01 * jax.random.normal(nk(), (64,), jnp.float32),
    }
    blocks = []
    in_c = 64
    for nb, out_c, stride in zip(num_blocks, (64, 128, 256, 512), (1, 2, 2, 2)):
        strides = [stride] + [1] * (nb - 1)
        for s in strides:
            blk = {
                "stride": s,
                "bn1_scale": 1.0 + 0.01 * jax.random.normal(nk(), (in_c,), jnp.float32),
                "bn1_shift": 0.01 * jax.random.normal(nk(), (in_c,), jnp.float32),
                "conv1_w": conv_w(3, 3, in_c, out_c),
                "bn2_scale": 1.0 + 0.01 * jax.random.normal(nk(), (out_c,), jnp.float32),
                "bn2_shift": 0.01 * jax.random.normal(nk(), (out_c,), jnp.float32),
                "conv2_w": conv_w(3, 3, out_c, out_c),
            }
            if s != 1 or in_c != out_c:
                blk["short_w"] = conv_w(1, 1, in_c, out_c)
            blocks.append(blk)
            in_c = out_c   # expansion = 1
    params["blocks"] = blocks
    params["fc_w"] = (jax.random.normal(nk(), (512, num_classes), jnp.float32)
                      * (1.0 / jnp.sqrt(512.0)))
    params["fc_b"] = jnp.zeros((num_classes,), jnp.float32)
    return params


def preact_block(y, a, blk, next_bn):
    """Pre-activation BasicBlock as exactly two fused matmul pallas_calls.

    y : residual stream, (N,H,W,Cin) f32
    a : relu(bn1(y)),     (N,H,W,Cin) bf16 (produced by the previous call)
    next_bn : (scale, shift) of the NEXT block's bn1 (fused into this block's
              conv2 epilogue), or None for the last block.
    """
    N, H, W, Cin = y.shape
    s = blk["stride"]
    w1 = blk["conv1_w"]
    Cout = w1.shape[-1]

    # conv1 (3x3, stride s, pad 1) with fused BN2+ReLU epilogue -> bf16 act.
    a1, Ho, Wo = _im2col(a, 3, s, 1)
    h = fused_matmul(a1, w1.reshape(9 * Cin, Cout),
                     scale=blk["bn2_scale"], shift=blk["bn2_shift"])
    h4 = h.reshape(N, Ho, Wo, Cout)

    # conv2 (3x3, stride 1, pad 1).  The 1x1 downsample shortcut conv is folded
    # into the same matmul as extra K columns; identity shortcut is a fused add.
    a2, _, _ = _im2col(h4, 3, 1, 1)
    w2 = blk["conv2_w"].reshape(9 * Cout, Cout)
    if "short_w" in blk:
        sub = a[:, ::s, ::s, :].reshape(N * Ho * Wo, Cin)
        a2 = jnp.concatenate([a2, sub], axis=1)
        w2 = jnp.concatenate([w2, blk["short_w"].reshape(Cin, Cout)], axis=0)
        shortcut = None
    else:
        shortcut = y.reshape(N * H * W, Cin)

    if next_bn is None:
        y2 = fused_matmul(a2, w2, shortcut=shortcut)
        a_next = None
    else:
        y2, a_next = fused_matmul(a2, w2, shortcut=shortcut,
                                  scale=next_bn[0], shift=next_bn[1], dual=True)
        a_next = a_next.reshape(N, Ho, Wo, Cout)
    return y2.reshape(N, Ho, Wo, Cout), a_next


def resnet_preact_forward(params, x_nchw, num_classes):
    # layout: input is NCHW (PyTorch convention); compute in NHWC.
    x = jnp.transpose(x_nchw, (0, 2, 3, 1)).astype(jnp.float32)
    N, _, _, Cin = x.shape

    # init: Conv2d(k=7, pad=3, stride=2) + MaxPool2d(k=3, pad=1, stride=2)
    a0, Ho, Wo = _im2col(x, 7, 2, 3)
    y = fused_matmul(a0, params["init_w"].reshape(49 * Cin, 64),
                     bias=params["init_b"]).reshape(N, Ho, Wo, 64)

    blocks = params["blocks"]
    # maxpool fused with block 0's BN1+ReLU pre-activation.
    y, a = maxpool_bn_relu(y, blocks[0]["bn1_scale"], blocks[0]["bn1_shift"])

    # encoder
    for i, blk in enumerate(blocks):
        nxt = blocks[i + 1] if i + 1 < len(blocks) else None
        nb = (nxt["bn1_scale"], nxt["bn1_shift"]) if nxt is not None else None
        y, a = preact_block(y, a, blk, nb)

    # decoder: global_avg_pool2d + Flatten + Linear + Softmax
    return decoder_head(y, params["fc_w"], params["fc_b"], num_classes)


# ----------------------------- main -----------------------------

if __name__ == "__main__":
    key = jax.random.PRNGKey(0)
    pkey, xkey = jax.random.split(key)

    num_blocks = [1, 1, 1, 1]     # one pre-act block per stage (small config)
    num_classes = 10
    params = _init_params(pkey, num_blocks, num_classes, init_channels=3)

    # NCHW input, like the PyTorch module.
    x = jax.random.normal(xkey, (2, 3, 32, 32), jnp.float32)

    fwd = jax.jit(lambda inp: resnet_preact_forward(params, inp, num_classes))
    probs = jax.block_until_ready(fwd(x))

    assert probs.shape == (2, num_classes)
    assert bool(jnp.all(jnp.isfinite(probs)))
    assert bool(jnp.allclose(jnp.sum(probs, axis=-1), 1.0, atol=1e-4))
    print("KERNEL_OK")
</pallas_src>

<mosaic_0001>
module attributes {stable_mosaic.version = 11 : i64} {
  func.func @kernel(%arg0: i32, %arg1: i32, %arg2: i32, %arg3: memref<256x256xbf16, #tpu.memory_space<vmem>>, %arg4: memref<256x128xbf16, #tpu.memory_space<vmem>>, %arg5: memref<1x128xf32, #tpu.memory_space<vmem>>, %arg6: memref<256x128xf32, #tpu.memory_space<vmem>>, %arg7: memref<256x128xf32, #tpu.memory_space<vmem>>) attributes {dimension_semantics = [#tpu.dimension_semantics<parallel>, #tpu.dimension_semantics<parallel>, #tpu.dimension_semantics<arbitrary>], iteration_bounds = array<i64: 2, 1, 1>, scalar_prefetch = 0 : i64, scratch_operands = 1 : i64, tpu.core_type = #tpu.core_type<tc>, window_params = [{transform_indices = @transform_0, window_bounds = array<i64: 256, 256>}, {transform_indices = @transform_1, window_bounds = array<i64: 256, 128>}, {transform_indices = @transform_2, window_bounds = array<i64: 1, 128>}, {transform_indices = @transform_3, window_bounds = array<i64: 256, 128>}]} {
    %c0_i32 = arith.constant 0 : i32
    %0 = arith.cmpi eq, %arg2, %c0_i32 : i32
    %1 = arith.extui %0 : i1 to i32
    %c0_i32_0 = arith.constant 0 : i32
    %2 = arith.cmpi ne, %1, %c0_i32_0 : i32
    scf.if %2 {
      %cst_10 = arith.constant 0.000000e+00 : f32
      %12 = vector.broadcast %cst_10 : f32 to vector<256x128xf32>
      %c0_11 = arith.constant 0 : index
      %c0_12 = arith.constant 0 : index
      %13 = vector.load %arg7[%c0_11, %c0_12] : memref<256x128xf32, #tpu.memory_space<vmem>>, vector<256x128xf32>
      tpu.vector_store %arg7[%c0_11, %c0_12], %12 {strides = array<i32>} : memref<256x128xf32, #tpu.memory_space<vmem>>, vector<256x128xf32>,
    } else {
    }
    %c0 = arith.constant 0 : index
    %c0_1 = arith.constant 0 : index
    %3 = vector.load %arg7[%c0, %c0_1] : memref<256x128xf32, #tpu.memory_space<vmem>>, vector<256x128xf32>
    %c0_2 = arith.constant 0 : index
    %c0_3 = arith.constant 0 : index
    %4 = vector.load %arg3[%c0_2, %c0_3] : memref<256x256xbf16, #tpu.memory_space<vmem>>, vector<256x256xbf16>
    %c0_4 = arith.constant 0 : index
    %c0_5 = arith.constant 0 : index
    %5 = vector.load %arg4[%c0_4, %c0_5] : memref<256x128xbf16, #tpu.memory_space<vmem>>, vector<256x128xbf16>
    %cst = arith.constant dense<0.000000e+00> : vector<256x128xf32>
    %6 = tpu.matmul %4, %5, %cst {dimension_numbers = #tpu.dot_dimension_numbers<[1], [0], [0], [1], [0, 0, 1, 1], [], []>} : vector<256x256xbf16>, vector<256x128xbf16>, vector<256x128xf32> -> vector<256x128xf32>
    %7 = arith.addf %3, %6 : vector<256x128xf32>
    %c0_6 = arith.constant 0 : index
    %c0_7 = arith.constant 0 : index
    %8 = vector.load %arg7[%c0_6, %c0_7] : memref<256x128xf32, #tpu.memory_space<vmem>>, vector<256x128xf32>
    tpu.vector_store %arg7[%c0_6, %c0_7], %7 {strides = array<i32>} : memref<256x128xf32, #tpu.memory_space<vmem>>, vector<256x128xf32>,
    %c0_i32_8 = arith.constant 0 : i32
    %9 = arith.cmpi eq, %arg2, %c0_i32_8 : i32
    %10 = arith.extui %9 : i1 to i32
    %c0_i32_9 = arith.constant 0 : i32
    %11 = arith.cmpi ne, %10, %c0_i32_9 : i32
    scf.if %11 {
      %c0_10 = arith.constant 0 : index
      %c0_11 = arith.constant 0 : index
      %12 = vector.load %arg7[%c0_10, %c0_11] : memref<256x128xf32, #tpu.memory_space<vmem>>, vector<256x128xf32>
      %c0_12 = arith.constant 0 : index
      %c0_13 = arith.constant 0 : index
      %13 = vector.load %arg5[%c0_12, %c0_13] : memref<1x128xf32, #tpu.memory_space<vmem>>, vector<1x128xf32>
      %14 = vector.broadcast %13 : vector<1x128xf32> to vector<256x128xf32>
      %15 = arith.addf %12, %14 : vector<256x128xf32>
      %c0_14 = arith.constant 0 : index
      %c0_15 = arith.constant 0 : index
      %16 = vector.load %arg6[%c0_14, %c0_15] : memref<256x128xf32, #tpu.memory_space<vmem>>, vector<256x128xf32>
      tpu.vector_store %arg6[%c0_14, %c0_15], %15 {strides = array<i32>} : memref<256x128xf32, #tpu.memory_space<vmem>>, vector<256x128xf32>,
    } else {
    }
    return
  }
  func.func @transform_0(%arg0: i32, %arg1: i32, %arg2: i32) -> (i32, i32) {
    %c0_i32 = arith.constant 0 : i32
    return %arg0, %arg2 : i32, i32
  }
  func.func @transform_1(%arg0: i32, %arg1: i32, %arg2: i32) -> (i32, i32) {
    %c0_i32 = arith.constant 0 : i32
    return %arg2, %arg1 : i32, i32
  }
  func.func @transform_2(%arg0: i32, %arg1: i32, %arg2: i32) -> (i32, i32) {
    %c0_i32 = arith.constant 0 : i32
    %c0_i32_0 = arith.constant 0 : i32
    return %c0_i32, %arg1 : i32, i32
  }
  func.func @transform_3(%arg0: i32, %arg1: i32, %arg2: i32) -> (i32, i32) {
    %c0_i32 = arith.constant 0 : i32
    return %arg0, %arg1 : i32, i32
  }
}

module attributes {stable_mosaic.version = 11 : i64} {
  func.func @_pool_bn_kernel(%arg0: i32, %arg1: memref<1x9x9x64xf32, #tpu.memory_space<vmem>>, %arg2: memref<1x9x9x64xf32, #tpu.memory_space<vmem>>, %arg3: memref<1x9x9x64xf32, #tpu.memory_space<vmem>>, %arg4: memref<1x9x9x64xf32, #tpu.memory_space<vmem>>, %arg5: memref<1x1x1x64xf32, #tpu.memory_space<vmem>>, %arg6: memref<1x1x1x64xf32, #tpu.memory_space<vmem>>, %arg7: memref<1x8x8x64xf32, #tpu.memory_space<vmem>>, %arg8: memref<1x8x8x64xbf16, #tpu.memory_space<vmem>>) attributes {dimension_semantics = [#tpu.dimension_semantics<parallel>], iteration_bounds = array<i64: 2>, scalar_prefetch = 0 : i64, scratch_operands = 0 : i64, tpu.core_type = #tpu.core_type<tc>, window_params = [{transform_indices = @transform_0, window_bounds = array<i64: 1, 9, 9, 64>}, {transform_indices = @transform_1, window_bounds = array<i64: 1, 9, 9, 64>}, {transform_indices = @transform_2, window_bounds = array<i64: 1, 9, 9, 64>}, {transform_indices = @transform_3, window_bounds = array<i64: 1, 9, 9, 64>}, {pipeline_mode = #tpu.pipeline_mode<synchronous>, transform_indices = @transform_4, window_bounds = array<i64: 1, 1, 1, 64>}, {pipeline_mode = #tpu.pipeline_mode<synchronous>, transform_indices = @transform_5, window_bounds = array<i64: 1, 1, 1, 64>}, {transform_indices = @transform_6, window_bounds = array<i64: 1, 8, 8, 64>}, {transform_indices = @transform_7, window_bounds = array<i64: 1, 8, 8, 64>}]} {
    %c0 = arith.constant 0 : index
    %c0_0 = arith.constant 0 : index
    %c0_1 = arith.constant 0 : index
    %c0_2 = arith.constant 0 : index
    %0 = vector.load %arg1[%c0, %c0_0, %c0_1, %c0_2] : memref<1x9x9x64xf32, #tpu.memory_space<vmem>>, vector<1x8x8x64xf32>
    %c0_3 = arith.constant 0 : index
    %c0_4 = arith.constant 0 : index
    %c1 = arith.constant 1 : index
    %c0_5 = arith.constant 0 : index
    %1 = vector.load %arg1[%c0_3, %c0_4, %c1, %c0_5] : memref<1x9x9x64xf32, #tpu.memory_space<vmem>>, vector<1x8x8x64xf32>
    %c0_6 = arith.constant 0 : index
    %c1_7 = arith.constant 1 : index
    %c0_8 = arith.constant 0 : index
    %c0_9 = arith.constant 0 : index
    %2 = vector.load %arg1[%c0_6, %c1_7, %c0_8, %c0_9] : memref<1x9x9x64xf32, #tpu.memory_space<vmem>>, vector<1x8x8x64xf32>
    %c0_10 = arith.constant 0 : index
    %c1_11 = arith.constant 1 : index
    %c1_12 = arith.constant 1 : index
    %c0_13 = arith.constant 0 : index
    %3 = vector.load %arg1[%c0_10, %c1_11, %c1_12, %c0_13] : memref<1x9x9x64xf32, #tpu.memory_space<vmem>>, vector<1x8x8x64xf32>
    %c0_14 = arith.constant 0 : index
    %c0_15 = arith.constant 0 : index
    %c0_16 = arith.constant 0 : index
    %c0_17 = arith.constant 0 : index
    %4 = vector.load %arg2[%c0_14, %c0_15, %c0_16, %c0_17] : memref<1x9x9x64xf32, #tpu.memory_space<vmem>>, vector<1x8x8x64xf32>
    %c0_18 = arith.constant 0 : index
    %c1_19 = arith.constant 1 : index
    %c0_20 = arith.constant 0 : index
    %c0_21 = arith.constant 0 : index
    %5 = vector.load %arg2[%c0_18, %c1_19, %c0_20, %c0_21] : memref<1x9x9x64xf32, #tpu.memory_space<vmem>>, vector<1x8x8x64xf32>
    %c0_22 = arith.constant 0 : index
    %c0_23 = arith.constant 0 : index
    %c0_24 = arith.constant 0 : index
    %c0_25 = arith.constant 0 : index
    %6 = vector.load %arg3[%c0_22, %c0_23, %c0_24, %c0_25] : memref<1x9x9x64xf32, #tpu.memory_space<vmem>>, vector<1x8x8x64xf32>
    %c0_26 = arith.constant 0 : index
    %c0_27 = arith.constant 0 : index
    %c1_28 = arith.constant 1 : index
    %c0_29 = arith.constant 0 : index
    %7 = vector.load %arg3[%c0_26, %c0_27, %c1_28, %c0_29] : memref<1x9x9x64xf32, #tpu.memory_space<vmem>>, vector<1x8x8x64xf32>
    %c0_30 = arith.constant 0 : index
    %c0_31 = arith.constant 0 : index
    %c0_32 = arith.constant 0 : index
    %c0_33 = arith.constant 0 : index
    %8 = vector.load %arg4[%c0_30, %c0_31, %c0_32, %c0_33] : memref<1x9x9x64xf32, #tpu.memory_space<vmem>>, vector<1x8x8x64xf32>
    %9 = arith.maximumf %0, %1 : vector<1x8x8x64xf32>
    %10 = arith.maximumf %9, %2 : vector<1x8x8x64xf32>
    %11 = arith.maximumf %10, %3 : vector<1x8x8x64xf32>
    %12 = arith.maximumf %11, %4 : vector<1x8x8x64xf32>
    %13 = arith.maximumf %12, %5 : vector<1x8x8x64xf32>
    %14 = arith.maximumf %13, %6 : vector<1x8x8x64xf32>
    %15 = arith.maximumf %14, %7 : vector<1x8x8x64xf32>
    %16 = arith.maximumf %15, %8 : vector<1x8x8x64xf32>
    %c0_34 = arith.constant 0 : index
    %c0_35 = arith.constant 0 : index
    %c0_36 = arith.constant 0 : index
    %c0_37 = arith.constant 0 : index
    %17 = vector.load %arg7[%c0_34, %c0_35, %c0_36, %c0_37] : memref<1x8x8x64xf32, #tpu.memory_space<vmem>>, vector<1x8x8x64xf32>
    tpu.vector_store %arg7[%c0_34, %c0_35, %c0_36, %c0_37], %16 {strides = array<i32>} : memref<1x8x8x64xf32, #tpu.memory_space<vmem>>, vector<1x8x8x64xf32>,
    %c0_38 = arith.constant 0 : index
    %c0_39 = arith.constant 0 : index
    %c0_40 = arith.constant 0 : index
    %c0_41 = arith.constant 0 : index
    %18 = vector.load %arg5[%c0_38, %c0_39, %c0_40, %c0_41] : memref<1x1x1x64xf32, #tpu.memory_space<vmem>>, vector<1x1x1x64xf32>
    %19 = vector.broadcast %18 : vector<1x1x1x64xf32> to vector<1x8x8x64xf32>
    %20 = arith.mulf %16, %19 : vector<1x8x8x64xf32>
    %c0_42 = arith.constant 0 : index
    %c0_43 = arith.constant 0 : index
    %c0_44 = arith.constant 0 : index
    %c0_45 = arith.constant 0 : index
    %21 = vector.load %arg6[%c0_42, %c0_43, %c0_44, %c0_45] : memref<1x1x1x64xf32, #tpu.memory_space<vmem>>, vector<1x1x1x64xf32>
    %22 = vector.broadcast %21 : vector<1x1x1x64xf32> to vector<1x8x8x64xf32>
    %23 = arith.addf %20, %22 : vector<1x8x8x64xf32>
    %cst = arith.constant 0.000000e+00 : f32
    %24 = vector.broadcast %cst : f32 to vector<1x8x8x64xf32>
    %25 = arith.maximumf %23, %24 : vector<1x8x8x64xf32>
    %26 = arith.truncf %25 : vector<1x8x8x64xf32> to vector<1x8x8x64xbf16>
    %c0_46 = arith.constant 0 : index
    %c0_47 = arith.constant 0 : index
    %c0_48 = arith.constant 0 : index
    %c0_49 = arith.constant 0 : index
    %27 = vector.load %arg8[%c0_46, %c0_47, %c0_48, %c0_49] : memref<1x8x8x64xbf16, #tpu.memory_space<vmem>>, vector<1x8x8x64xbf16>
    tpu.vector_store %arg8[%c0_46, %c0_47, %c0_48, %c0_49], %26 {strides = array<i32>} : memref<1x8x8x64xbf16, #tpu.memory_space<vmem>>, vector<1x8x8x64xbf16>,
    return
  }
  func.func @transform_0(%arg0: i32) -> (i32, i32, i32, i32) {
    %c0_i32 = arith.constant 0 : i32
    %c0_i32_0 = arith.constant 0 : i32
    %c0_i32_1 = arith.constant 0 : i32
    %c0_i32_2 = arith.constant 0 : i32
    return %arg0, %c0_i32, %c0_i32_0, %c0_i32_1 : i32, i32, i32, i32
  }
  func.func @transform_1(%arg0: i32) -> (i32, i32, i32, i32) {
    %c0_i32 = arith.constant 0 : i32
    %c0_i32_0 = arith.constant 0 : i32
    %c0_i32_1 = arith.constant 0 : i32
    %c0_i32_2 = arith.constant 0 : i32
    return %arg0, %c0_i32, %c0_i32_0, %c0_i32_1 : i32, i32, i32, i32
  }
  func.func @transform_2(%arg0: i32) -> (i32, i32, i32, i32) {
    %c0_i32 = arith.constant 0 : i32
    %c0_i32_0 = arith.constant 0 : i32
    %c0_i32_1 = arith.constant 0 : i32
    %c0_i32_2 = arith.constant 0 : i32
    return %arg0, %c0_i32, %c0_i32_0, %c0_i32_1 : i32, i32, i32, i32
  }
  func.func @transform_3(%arg0: i32) -> (i32, i32, i32, i32) {
    %c0_i32 = arith.constant 0 : i32
    %c0_i32_0 = arith.constant 0 : i32
    %c0_i32_1 = arith.constant 0 : i32
    %c0_i32_2 = arith.constant 0 : i32
    return %arg0, %c0_i32, %c0_i32_0, %c0_i32_1 : i32, i32, i32, i32
  }
  func.func @transform_4(%arg0: i32) -> (i32, i32, i32, i32) {
    %c0_i32 = arith.constant 0 : i32
    %c0_i32_0 = arith.constant 0 : i32
    %c0_i32_1 = arith.constant 0 : i32
    %c0_i32_2 = arith.constant 0 : i32
    %c0_i32_3 = arith.constant 0 : i32
    return %c0_i32, %c0_i32_0, %c0_i32_1, %c0_i32_2 : i32, i32, i32, i32
  }
  func.func @transform_5(%arg0: i32) -> (i32, i32, i32, i32) {
    %c0_i32 = arith.constant 0 : i32
    %c0_i32_0 = arith.constant 0 : i32
    %c0_i32_1 = arith.constant 0 : i32
    %c0_i32_2 = arith.constant 0 : i32
    %c0_i32_3 = arith.constant 0 : i32
    return %c0_i32, %c0_i32_0, %c0_i32_1, %c0_i32_2 : i32, i32, i32, i32
  }
  func.func @transform_6(%arg0: i32) -> (i32, i32, i32, i32) {
    %c0_i32 = arith.constant 0 : i32
    %c0_i32_0 = arith.constant 0 : i32
    %c0_i32_1 = arith.constant 0 : i32
    %c0_i32_2 = arith.constant 0 : i32
    return %arg0, %c0_i32, %c0_i32_0, %c0_i32_1 : i32, i32, i32, i32
  }
  func.func @transform_7(%arg0: i32) -> (i32, i32, i32, i32) {
    %c0_i32 = arith.constant 0 : i32
    %c0_i32_0 = arith.constant 0 : i32
    %c0_i32_1 = arith.constant 0 : i32
    %c0_i32_2 = arith.constant 0 : i32
    return %arg0, %c0_i32, %c0_i32_0, %c0_i32_1 : i32, i32, i32, i32
  }
}

module attributes {stable_mosaic.version = 11 : i64} {
  func.func @kernel(%arg0: i32, %arg1: i32, %arg2: i32, %arg3: memref<128x384xbf16, #tpu.memory_space<vmem>>, %arg4: memref<384x128xbf16, #tpu.memory_space<vmem>>, %arg5: memref<1x128xf32, #tpu.memory_space<vmem>>, %arg6: memref<1x128xf32, #tpu.memory_space<vmem>>, %arg7: memref<128x128xbf16, #tpu.memory_space<vmem>>, %arg8: memref<128x128xf32, #tpu.memory_space<vmem>>) attributes {dimension_semantics = [#tpu.dimension_semantics<parallel>, #tpu.dimension_semantics<parallel>, #tpu.dimension_semantics<arbitrary>], iteration_bounds = array<i64: 1, 1, 2>, scalar_prefetch = 0 : i64, scratch_operands = 1 : i64, tpu.core_type = #tpu.core_type<tc>, window_params = [{transform_indices = @transform_0, window_bounds = array<i64: 128, 384>}, {transform_indices = @transform_1, window_bounds = array<i64: 384, 128>}, {transform_indices = @transform_2, window_bounds = array<i64: 1, 128>}, {transform_indices = @transform_3, window_bounds = array<i64: 1, 128>}, {transform_indices = @transform_4, window_bounds = array<i64: 128, 128>}]} {
    %c0_i32 = arith.constant 0 : i32
    %0 = arith.cmpi eq, %arg2, %c0_i32 : i32
    %1 = arith.extui %0 : i1 to i32
    %c0_i32_0 = arith.constant 0 : i32
    %2 = arith.cmpi ne, %1, %c0_i32_0 : i32
    scf.if %2 {
      %cst_9 = arith.constant 0.000000e+00 : f32
      %12 = vector.broadcast %cst_9 : f32 to vector<128x128xf32>
      %c0_10 = arith.constant 0 : index
      %c0_11 = arith.constant 0 : index
      %13 = vector.load %arg8[%c0_10, %c0_11] : memref<128x128xf32, #tpu.memory_space<vmem>>, vector<128x128xf32>
      tpu.vector_store %arg8[%c0_10, %c0_11], %12 {strides = array<i32>} : memref<128x128xf32, #tpu.memory_space<vmem>>, vector<128x128xf32>,
    } else {
    }
    %c0 = arith.constant 0 : index
    %c0_1 = arith.constant 0 : index
    %3 = vector.load %arg8[%c0, %c0_1] : memref<128x128xf32, #tpu.memory_space<vmem>>, vector<128x128xf32>
    %c0_2 = arith.constant 0 : index
    %c0_3 = arith.constant 0 : index
    %4 = vector.load %arg3[%c0_2, %c0_3] : memref<128x384xbf16, #tpu.memory_space<vmem>>, vector<128x384xbf16>
    %c0_4 = arith.constant 0 : index
    %c0_5 = arith.constant 0 : index
    %5 = vector.load %arg4[%c0_4, %c0_5] : memref<384x128xbf16, #tpu.memory_space<vmem>>, vector<384x128xbf16>
    %cst = arith.constant dense<0.000000e+00> : vector<128x128xf32>
    %6 = tpu.matmul %4, %5, %cst {dimension_numbers = #tpu.dot_dimension_numbers<[1], [0], [0], [1], [0, 0, 1, 1], [], []>} : vector<128x384xbf16>, vector<384x128xbf16>, vector<128x128xf32> -> vector<128x128xf32>
    %7 = arith.addf %3, %6 : vector<128x128xf32>
    %c0_6 = arith.constant 0 : index
    %c0_7 = arith.constant 0 : index
    %8 = vector.load %arg8[%c0_6, %c0_7] : memref<128x128xf32, #tpu.memory_space<vmem>>, vector<128x128xf32>
    tpu.vector_store %arg8[%c0_6, %c0_7], %7 {strides = array<i32>} : memref<128x128xf32, #tpu.memory_space<vmem>>, vector<128x128xf32>,
    %c1_i32 = arith.constant 1 : i32
    %9 = arith.cmpi eq, %arg2, %c1_i32 : i32
    %10 = arith.extui %9 : i1 to i32
    %c0_i32_8 = arith.constant 0 : i32
    %11 = arith.cmpi ne, %10, %c0_i32_8 : i32
    scf.if %11 {
      %c0_9 = arith.constant 0 : index
      %c0_10 = arith.constant 0 : index
      %12 = vector.load %arg8[%c0_9, %c0_10] : memref<128x128xf32, #tpu.memory_space<vmem>>, vector<128x128xf32>
      %c0_11 = arith.constant 0 : index
      %c0_12 = arith.constant 0 : index
      %13 = vector.load %arg5[%c0_11, %c0_12] : memref<1x128xf32, #tpu.memory_space<vmem>>, vector<1x128xf32>
      %14 = vector.broadcast %13 : vector<1x128xf32> to vector<128x128xf32>
      %15 = arith.mulf %12, %14 : vector<128x128xf32>
      %c0_13 = arith.constant 0 : index
      %c0_14 = arith.constant 0 : index
      %16 = vector.load %arg6[%c0_13, %c0_14] : memref<1x128xf32, #tpu.memory_space<vmem>>, vector<1x128xf32>
      %17 = vector.broadcast %16 : vector<1x128xf32> to vector<128x128xf32>
      %18 = arith.addf %15, %17 : vector<128x128xf32>
      %cst_15 = arith.constant 0.000000e+00 : f32
      %19 = vector.broadcast %cst_15 : f32 to vector<128x128xf32>
      %20 = arith.maximumf %18, %19 : vector<128x128xf32>
      %21 = arith.truncf %20 : vector<128x128xf32> to vector<128x128xbf16>
      %c0_16 = arith.constant 0 : index
      %c0_17 = arith.constant 0 : index
      %22 = vector.load %arg7[%c0_16, %c0_17] : memref<128x128xbf16, #tpu.memory_space<vmem>>, vector<128x128xbf16>
      tpu.vector_store %arg7[%c0_16, %c0_17], %21 {strides = array<i32>} : memref<128x128xbf16, #tpu.memory_space<vmem>>, vector<128x128xbf16>,
    } else {
    }
    return
  }
  func.func @transform_0(%arg0: i32, %arg1: i32, %arg2: i32) -> (i32, i32) {
    %c0_i32 = arith.constant 0 : i32
    return %arg0, %arg2 : i32, i32
  }
  func.func @transform_1(%arg0: i32, %arg1: i32, %arg2: i32) -> (i32, i32) {
    %c0_i32 = arith.constant 0 : i32
    return %arg2, %arg1 : i32, i32
  }
  func.func @transform_2(%arg0: i32, %arg1: i32, %arg2: i32) -> (i32, i32) {
    %c0_i32 = arith.constant 0 : i32
    %c0_i32_0 = arith.constant 0 : i32
    return %c0_i32, %arg1 : i32, i32
  }
  func.func @transform_3(%arg0: i32, %arg1: i32, %arg2: i32) -> (i32, i32) {
    %c0_i32 = arith.constant 0 : i32
    %c0_i32_0 = arith.constant 0 : i32
    return %c0_i32, %arg1 : i32, i32
  }
  func.func @transform_4(%arg0: i32, %arg1: i32, %arg2: i32) -> (i32, i32) {
    %c0_i32 = arith.constant 0 : i32
    return %arg0, %arg1 : i32, i32
  }
}

module attributes {stable_mosaic.version = 11 : i64} {
  func.func @kernel(%arg0: i32, %arg1: i32, %arg2: i32, %arg3: memref<128x384xbf16, #tpu.memory_space<vmem>>, %arg4: memref<384x128xbf16, #tpu.memory_space<vmem>>, %arg5: memref<1x128xf32, #tpu.memory_space<vmem>>, %arg6: memref<1x128xf32, #tpu.memory_space<vmem>>, %arg7: memref<128x128xf32, #tpu.memory_space<vmem>>, %arg8: memref<128x128xf32, #tpu.memory_space<vmem>>, %arg9: memref<128x128xbf16, #tpu.memory_space<vmem>>, %arg10: memref<128x128xf32, #tpu.memory_space<vmem>>) attributes {dimension_semantics = [#tpu.dimension_semantics<parallel>, #tpu.dimension_semantics<parallel>, #tpu.dimension_semantics<arbitrary>], iteration_bounds = array<i64: 1, 1, 2>, scalar_prefetch = 0 : i64, scratch_operands = 1 : i64, tpu.core_type = #tpu.core_type<tc>, window_params = [{transform_indices = @transform_0, window_bounds = array<i64: 128, 384>}, {transform_indices = @transform_1, window_bounds = array<i64: 384, 128>}, {transform_indices = @transform_2, window_bounds = array<i64: 1, 128>}, {transform_indices = @transform_3, window_bounds = array<i64: 1, 128>}, {transform_indices = @transform_4, window_bounds = array<i64: 128, 128>}, {transform_indices = @transform_5, window_bounds = array<i64: 128, 128>}, {transform_indices = @transform_6, window_bounds = array<i64: 128, 128>}]} {
    %c0_i32 = arith.constant 0 : i32
    %0 = arith.cmpi eq, %arg2, %c0_i32 : i32
    %1 = arith.extui %0 : i1 to i32
    %c0_i32_0 = arith.constant 0 : i32
    %2 = arith.cmpi ne, %1, %c0_i32_0 : i32
    scf.if %2 {
      %cst_9 = arith.constant 0.000000e+00 : f32
      %12 = vector.broadcast %cst_9 : f32 to vector<128x128xf32>
      %c0_10 = arith.constant 0 : index
      %c0_11 = arith.constant 0 : index
      %13 = vector.load %arg10[%c0_10, %c0_11] : memref<128x128xf32, #tpu.memory_space<vmem>>, vector<128x128xf32>
      tpu.vector_store %arg10[%c0_10, %c0_11], %12 {strides = array<i32>} : memref<128x128xf32, #tpu.memory_space<vmem>>, vector<128x128xf32>,
    } else {
    }
    %c0 = arith.constant 0 : index
    %c0_1 = arith.constant 0 : index
    %3 = vector.load %arg10[%c0, %c0_1] : memref<128x128xf32, #tpu.memory_space<vmem>>, vector<128x128xf32>
    %c0_2 = arith.constant 0 : index
    %c0_3 = arith.constant 0 : index
    %4 = vector.load %arg3[%c0_2, %c0_3] : memref<128x384xbf16, #tpu.memory_space<vmem>>, vector<128x384xbf16>
    %c0_4 = arith.constant 0 : index
    %c0_5 = arith.constant 0 : index
    %5 = vector.load %arg4[%c0_4, %c0_5] : memref<384x128xbf16, #tpu.memory_space<vmem>>, vector<384x128xbf16>
    %cst = arith.constant dense<0.000000e+00> : vector<128x128xf32>
    %6 = tpu.matmul %4, %5, %cst {dimension_numbers = #tpu.dot_dimension_numbers<[1], [0], [0], [1], [0, 0, 1, 1], [], []>} : vector<128x384xbf16>, vector<384x128xbf16>, vector<128x128xf32> -> vector<128x128xf32>
    %7 = arith.addf %3, %6 : vector<128x128xf32>
    %c0_6 = arith.constant 0 : index
    %c0_7 = arith.constant 0 : index
    %8 = vector.load %arg10[%c0_6, %c0_7] : memref<128x128xf32, #tpu.memory_space<vmem>>, vector<128x128xf32>
    tpu.vector_store %arg10[%c0_6, %c0_7], %7 {strides = array<i32>} : memref<128x128xf32, #tpu.memory_space<vmem>>, vector<128x128xf32>,
    %c1_i32 = arith.constant 1 : i32
    %9 = arith.cmpi eq, %arg2, %c1_i32 : i32
    %10 = arith.extui %9 : i1 to i32
    %c0_i32_8 = arith.constant 0 : i32
    %11 = arith.cmpi ne, %10, %c0_i32_8 : i32
    scf.if %11 {
      %c0_9 = arith.constant 0 : index
      %c0_10 = arith.constant 0 : index
      %12 = vector.load %arg10[%c0_9, %c0_10] : memref<128x128xf32, #tpu.memory_space<vmem>>, vector<128x128xf32>
      %c0_11 = arith.constant 0 : index
      %c0_12 = arith.constant 0 : index
      %13 = vector.load %arg7[%c0_11, %c0_12] : memref<128x128xf32, #tpu.memory_space<vmem>>, vector<128x128xf32>
      %14 = arith.addf %12, %13 : vector<128x128xf32>
      %c0_13 = arith.constant 0 : index
      %c0_14 = arith.constant 0 : index
      %15 = vector.load %arg8[%c0_13, %c0_14] : memref<128x128xf32, #tpu.memory_space<vmem>>, vector<128x128xf32>
      tpu.vector_store %arg8[%c0_13, %c0_14], %14 {strides = array<i32>} : memref<128x128xf32, #tpu.memory_space<vmem>>, vector<128x128xf32>,
      %c0_15 = arith.constant 0 : index
      %c0_16 = arith.constant 0 : index
      %16 = vector.load %arg5[%c0_15, %c0_16] : memref<1x128xf32, #tpu.memory_space<vmem>>, vector<1x128xf32>
      %17 = vector.broadcast %16 : vector<1x128xf32> to vector<128x128xf32>
      %18 = arith.mulf %14, %17 : vector<128x128xf32>
      %c0_17 = arith.constant 0 : index
      %c0_18 = arith.constant 0 : index
      %19 = vector.load %arg6[%c0_17, %c0_18] : memref<1x128xf32, #tpu.memory_space<vmem>>, vector<1x128xf32>
      %20 = vector.broadcast %19 : vector<1x128xf32> to vector<128x128xf32>
      %21 = arith.addf %18, %20 : vector<128x128xf32>
      %cst_19 = arith.constant 0.000000e+00 : f32
      %22 = vector.broadcast %cst_19 : f32 to vector<128x128xf32>
      %23 = arith.maximumf %21, %22 : vector<128x128xf32>
      %24 = arith.truncf %23 : vector<128x128xf32> to vector<128x128xbf16>
      %c0_20 = arith.constant 0 : index
      %c0_21 = arith.constant 0 : index
      %25 = vector.load %arg9[%c0_20, %c0_21] : memref<128x128xbf16, #tpu.memory_space<vmem>>, vector<128x128xbf16>
      tpu.vector_store %arg9[%c0_20, %c0_21], %24 {strides = array<i32>} : memref<128x128xbf16, #tpu.memory_space<vmem>>, vector<128x128xbf16>,
    } else {
    }
    return
  }
  func.func @transform_0(%arg0: i32, %arg1: i32, %arg2: i32) -> (i32, i32) {
    %c0_i32 = arith.constant 0 : i32
    return %arg0, %arg2 : i32, i32
  }
  func.func @transform_1(%arg0: i32, %arg1: i32, %arg2: i32) -> (i32, i32) {
    %c0_i32 = arith.constant 0 : i32
    return %arg2, %arg1 : i32, i32
  }
  func.func @transform_2(%arg0: i32, %arg1: i32, %arg2: i32) -> (i32, i32) {
    %c0_i32 = arith.constant 0 : i32
    %c0_i32_0 = arith.constant 0 : i32
    return %c0_i32, %arg1 : i32, i32
  }
  func.func @transform_3(%arg0: i32, %arg1: i32, %arg2: i32) -> (i32, i32) {
    %c0_i32 = arith.constant 0 : i32
    %c0_i32_0 = arith.constant 0 : i32
    return %c0_i32, %arg1 : i32, i32
  }
  func.func @transform_4(%arg0: i32, %arg1: i32, %arg2: i32) -> (i32, i32) {
    %c0_i32 = arith.constant 0 : i32
    return %arg0, %arg1 : i32, i32
  }
  func.func @transform_5(%arg0: i32, %arg1: i32, %arg2: i32) -> (i32, i32) {
    %c0_i32 = arith.constant 0 : i32
    return %arg0, %arg1 : i32, i32
  }
  func.func @transform_6(%arg0: i32, %arg1: i32, %arg2: i32) -> (i32, i32) {
    %c0_i32 = arith.constant 0 : i32
    return %arg0, %arg1 : i32, i32
  }
}

module attributes {stable_mosaic.version = 11 : i64} {
  func.func @kernel(%arg0: i32, %arg1: i32, %arg2: i32, %arg3: memref<32x384xbf16, #tpu.memory_space<vmem>>, %arg4: memref<384x128xbf16, #tpu.memory_space<vmem>>, %arg5: memref<1x128xf32, #tpu.memory_space<vmem>>, %arg6: memref<1x128xf32, #tpu.memory_space<vmem>>, %arg7: memref<32x128xbf16, #tpu.memory_space<vmem>>, %arg8: memref<32x128xf32, #tpu.memory_space<vmem>>) attributes {dimension_semantics = [#tpu.dimension_semantics<parallel>, #tpu.dimension_semantics<parallel>, #tpu.dimension_semantics<arbitrary>], iteration_bounds = array<i64: 1, 1, 2>, scalar_prefetch = 0 : i64, scratch_operands = 1 : i64, tpu.core_type = #tpu.core_type<tc>, window_params = [{transform_indices = @transform_0, window_bounds = array<i64: 32, 384>}, {transform_indices = @transform_1, window_bounds = array<i64: 384, 128>}, {transform_indices = @transform_2, window_bounds = array<i64: 1, 128>}, {transform_indices = @transform_3, window_bounds = array<i64: 1, 128>}, {transform_indices = @transform_4, window_bounds = array<i64: 32, 128>}]} {
    %c0_i32 = arith.constant 0 : i32
    %0 = arith.cmpi eq, %arg2, %c0_i32 : i32
    %1 = arith.extui %0 : i1 to i32
    %c0_i32_0 = arith.constant 0 : i32
    %2 = arith.cmpi ne, %1, %c0_i32_0 : i32
    scf.if %2 {
      %cst_9 = arith.constant 0.000000e+00 : f32
      %12 = vector.broadcast %cst_9 : f32 to vector<32x128xf32>
      %c0_10 = arith.constant 0 : index
      %c0_11 = arith.constant 0 : index
      %13 = vector.load %arg8[%c0_10, %c0_11] : memref<32x128xf32, #tpu.memory_space<vmem>>, vector<32x128xf32>
      tpu.vector_store %arg8[%c0_10, %c0_11], %12 {strides = array<i32>} : memref<32x128xf32, #tpu.memory_space<vmem>>, vector<32x128xf32>,
    } else {
    }
    %c0 = arith.constant 0 : index
    %c0_1 = arith.constant 0 : index
    %3 = vector.load %arg8[%c0, %c0_1] : memref<32x128xf32, #tpu.memory_space<vmem>>, vector<32x128xf32>
    %c0_2 = arith.constant 0 : index
    %c0_3 = arith.constant 0 : index
    %4 = vector.load %arg3[%c0_2, %c0_3] : memref<32x384xbf16, #tpu.memory_space<vmem>>, vector<32x384xbf16>
    %c0_4 = arith.constant 0 : index
    %c0_5 = arith.constant 0 : index
    %5 = vector.load %arg4[%c0_4, %c0_5] : memref<384x128xbf16, #tpu.memory_space<vmem>>, vector<384x128xbf16>
    %cst = arith.constant dense<0.000000e+00> : vector<32x128xf32>
    %6 = tpu.matmul %4, %5, %cst {dimension_numbers = #tpu.dot_dimension_numbers<[1], [0], [0], [1], [0, 0, 1, 1], [], []>} : vector<32x384xbf16>, vector<384x128xbf16>, vector<32x128xf32> -> vector<32x128xf32>
    %7 = arith.addf %3, %6 : vector<32x128xf32>
    %c0_6 = arith.constant 0 : index
    %c0_7 = arith.constant 0 : index
    %8 = vector.load %arg8[%c0_6, %c0_7] : memref<32x128xf32, #tpu.memory_space<vmem>>, vector<32x128xf32>
    tpu.vector_store %arg8[%c0_6, %c0_7], %7 {strides = array<i32>} : memref<32x128xf32, #tpu.memory_space<vmem>>, vector<32x128xf32>,
    %c1_i32 = arith.constant 1 : i32
    %9 = arith.cmpi eq, %arg2, %c1_i32 : i32
    %10 = arith.extui %9 : i1 to i32
    %c0_i32_8 = arith.constant 0 : i32
    %11 = arith.cmpi ne, %10, %c0_i32_8 : i32
    scf.if %11 {
      %c0_9 = arith.constant 0 : index
      %c0_10 = arith.constant 0 : index
      %12 = vector.load %arg8[%c0_9, %c0_10] : memref<32x128xf32, #tpu.memory_space<vmem>>, vector<32x128xf32>
      %c0_11 = arith.constant 0 : index
      %c0_12 = arith.constant 0 : index
      %13 = vector.load %arg5[%c0_11, %c0_12] : memref<1x128xf32, #tpu.memory_space<vmem>>, vector<1x128xf32>
      %14 = vector.broadcast %13 : vector<1x128xf32> to vector<32x128xf32>
      %15 = arith.mulf %12, %14 : vector<32x128xf32>
      %c0_13 = arith.constant 0 : index
      %c0_14 = arith.constant 0 : index
      %16 = vector.load %arg6[%c0_13, %c0_14] : memref<1x128xf32, #tpu.memory_space<vmem>>, vector<1x128xf32>
      %17 = vector.broadcast %16 : vector<1x128xf32> to vector<32x128xf32>
      %18 = arith.addf %15, %17 : vector<32x128xf32>
      %cst_15 = arith.constant 0.000000e+00 : f32
      %19 = vector.broadcast %cst_15 : f32 to vector<32x128xf32>
      %20 = arith.maximumf %18, %19 : vector<32x128xf32>
      %21 = arith.truncf %20 : vector<32x128xf32> to vector<32x128xbf16>
      %c0_16 = arith.constant 0 : index
      %c0_17 = arith.constant 0 : index
      %22 = vector.load %arg7[%c0_16, %c0_17] : memref<32x128xbf16, #tpu.memory_space<vmem>>, vector<32x128xbf16>
      tpu.vector_store %arg7[%c0_16, %c0_17], %21 {strides = array<i32>} : memref<32x128xbf16, #tpu.memory_space<vmem>>, vector<32x128xbf16>,
    } else {
    }
    return
  }
  func.func @transform_0(%arg0: i32, %arg1: i32, %arg2: i32) -> (i32, i32) {
    %c0_i32 = arith.constant 0 : i32
    return %arg0, %arg2 : i32, i32
  }
  func.func @transform_1(%arg0: i32, %arg1: i32, %arg2: i32) -> (i32, i32) {
    %c0_i32 = arith.constant 0 : i32
    return %arg2, %arg1 : i32, i32
  }
  func.func @transform_2(%arg0: i32, %arg1: i32, %arg2: i32) -> (i32, i32) {
    %c0_i32 = arith.constant 0 : i32
    %c0_i32_0 = arith.constant 0 : i32
    return %c0_i32, %arg1 : i32, i32
  }
  func.func @transform_3(%arg0: i32, %arg1: i32, %arg2: i32) -> (i32, i32) {
    %c0_i32 = arith.constant 0 : i32
    %c0_i32_0 = arith.constant 0 : i32
    return %c0_i32, %arg1 : i32, i32
  }
  func.func @transform_4(%arg0: i32, %arg1: i32, %arg2: i32) -> (i32, i32) {
    %c0_i32 = arith.constant 0 : i32
    return %arg0, %arg1 : i32, i32
  }
}

module attributes {stable_mosaic.version = 11 : i64} {
  func.func @kernel(%arg0: i32, %arg1: i32, %arg2: i32, %arg3: memref<32x512xbf16, #tpu.memory_space<vmem>>, %arg4: memref<512x128xbf16, #tpu.memory_space<vmem>>, %arg5: memref<1x128xf32, #tpu.memory_space<vmem>>, %arg6: memref<1x128xf32, #tpu.memory_space<vmem>>, %arg7: memref<32x128xf32, #tpu.memory_space<vmem>>, %arg8: memref<32x128xbf16, #tpu.memory_space<vmem>>, %arg9: memref<32x128xf32, #tpu.memory_space<vmem>>) attributes {dimension_semantics = [#tpu.dimension_semantics<parallel>, #tpu.dimension_semantics<parallel>, #tpu.dimension_semantics<arbitrary>], iteration_bounds = array<i64: 1, 1, 3>, scalar_prefetch = 0 : i64, scratch_operands = 1 : i64, tpu.core_type = #tpu.core_type<tc>, window_params = [{transform_indices = @transform_0, window_bounds = array<i64: 32, 512>}, {transform_indices = @transform_1, window_bounds = array<i64: 512, 128>}, {transform_indices = @transform_2, window_bounds = array<i64: 1, 128>}, {transform_indices = @transform_3, window_bounds = array<i64: 1, 128>}, {transform_indices = @transform_4, window_bounds = array<i64: 32, 128>}, {transform_indices = @transform_5, window_bounds = array<i64: 32, 128>}]} {
    %c0_i32 = arith.constant 0 : i32
    %0 = arith.cmpi eq, %arg2, %c0_i32 : i32
    %1 = arith.extui %0 : i1 to i32
    %c0_i32_0 = arith.constant 0 : i32
    %2 = arith.cmpi ne, %1, %c0_i32_0 : i32
    scf.if %2 {
      %cst_9 = arith.constant 0.000000e+00 : f32
      %12 = vector.broadcast %cst_9 : f32 to vector<32x128xf32>
      %c0_10 = arith.constant 0 : index
      %c0_11 = arith.constant 0 : index
      %13 = vector.load %arg9[%c0_10, %c0_11] : memref<32x128xf32, #tpu.memory_space<vmem>>, vector<32x128xf32>
      tpu.vector_store %arg9[%c0_10, %c0_11], %12 {strides = array<i32>} : memref<32x128xf32, #tpu.memory_space<vmem>>, vector<32x128xf32>,
    } else {
    }
    %c0 = arith.constant 0 : index
    %c0_1 = arith.constant 0 : index
    %3 = vector.load %arg9[%c0, %c0_1] : memref<32x128xf32, #tpu.memory_space<vmem>>, vector<32x128xf32>
    %c0_2 = arith.constant 0 : index
    %c0_3 = arith.constant 0 : index
    %4 = vector.load %arg3[%c0_2, %c0_3] : memref<32x512xbf16, #tpu.memory_space<vmem>>, vector<32x512xbf16>
    %c0_4 = arith.constant 0 : index
    %c0_5 = arith.constant 0 : index
    %5 = vector.load %arg4[%c0_4, %c0_5] : memref<512x128xbf16, #tpu.memory_space<vmem>>, vector<512x128xbf16>
    %cst = arith.constant dense<0.000000e+00> : vector<32x128xf32>
    %6 = tpu.matmul %4, %5, %cst {dimension_numbers = #tpu.dot_dimension_numbers<[1], [0], [0], [1], [0, 0, 1, 1], [], []>} : vector<32x512xbf16>, vector<512x128xbf16>, vector<32x128xf32> -> vector<32x128xf32>
    %7 = arith.addf %3, %6 : vector<32x128xf32>
    %c0_6 = arith.constant 0 : index
    %c0_7 = arith.constant 0 : index
    %8 = vector.load %arg9[%c0_6, %c0_7] : memref<32x128xf32, #tpu.memory_space<vmem>>, vector<32x128xf32>
    tpu.vector_store %arg9[%c0_6, %c0_7], %7 {strides = array<i32>} : memref<32x128xf32, #tpu.memory_space<vmem>>, vector<32x128xf32>,
    %c2_i32 = arith.constant 2 : i32
    %9 = arith.cmpi eq, %arg2, %c2_i32 : i32
    %10 = arith.extui %9 : i1 to i32
    %c0_i32_8 = arith.constant 0 : i32
    %11 = arith.cmpi ne, %10, %c0_i32_8 : i32
    scf.if %11 {
      %c0_9 = arith.constant 0 : index
      %c0_10 = arith.constant 0 : index
      %12 = vector.load %arg9[%c0_9, %c0_10] : memref<32x128xf32, #tpu.memory_space<vmem>>, vector<32x128xf32>
      %c0_11 = arith.constant 0 : index
      %c0_12 = arith.constant 0 : index
      %13 = vector.load %arg7[%c0_11, %c0_12] : memref<32x128xf32, #tpu.memory_space<vmem>>, vector<32x128xf32>
      tpu.vector_store %arg7[%c0_11, %c0_12], %12 {strides = array<i32>} : memref<32x128xf32, #tpu.memory_space<vmem>>, vector<32x128xf32>,
      %c0_13 = arith.constant 0 : index
      %c0_14 = arith.constant 0 : index
      %14 = vector.load %arg5[%c0_13, %c0_14] : memref<1x128xf32, #tpu.memory_space<vmem>>, vector<1x128xf32>
      %15 = vector.broadcast %14 : vector<1x128xf32> to vector<32x128xf32>
      %16 = arith.mulf %12, %15 : vector<32x128xf32>
      %c0_15 = arith.constant 0 : index
      %c0_16 = arith.constant 0 : index
      %17 = vector.load %arg6[%c0_15, %c0_16] : memref<1x128xf32, #tpu.memory_space<vmem>>, vector<1x128xf32>
      %18 = vector.broadcast %17 : vector<1x128xf32> to vector<32x128xf32>
      %19 = arith.addf %16, %18 : vector<32x128xf32>
      %cst_17 = arith.constant 0.000000e+00 : f32
      %20 = vector.broadcast %cst_17 : f32 to vector<32x128xf32>
      %21 = arith.maximumf %19, %20 : vector<32x128xf32>
      %22 = arith.truncf %21 : vector<32x128xf32> to vector<32x128xbf16>
      %c0_18 = arith.constant 0 : index
      %c0_19 = arith.constant 0 : index
      %23 = vector.load %arg8[%c0_18, %c0_19] : memref<32x128xbf16, #tpu.memory_space<vmem>>, vector<32x128xbf16>
      tpu.vector_store %arg8[%c0_18, %c0_19], %22 {strides = array<i32>} : memref<32x128xbf16, #tpu.memory_space<vmem>>, vector<32x128xbf16>,
    } else {
    }
    return
  }
  func.func @transform_0(%arg0: i32, %arg1: i32, %arg2: i32) -> (i32, i32) {
    %c0_i32 = arith.constant 0 : i32
    return %arg0, %arg2 : i32, i32
  }
  func.func @transform_1(%arg0: i32, %arg1: i32, %arg2: i32) -> (i32, i32) {
    %c0_i32 = arith.constant 0 : i32
    return %arg2, %arg1 : i32, i32
  }
  func.func @transform_2(%arg0: i32, %arg1: i32, %arg2: i32) -> (i32, i32) {
    %c0_i32 = arith.constant 0 : i32
    %c0_i32_0 = arith.constant 0 : i32
    return %c0_i32, %arg1 : i32, i32
  }
  func.func @transform_3(%arg0: i32, %arg1: i32, %arg2: i32) -> (i32, i32) {
    %c0_i32 = arith.constant 0 : i32
    %c0_i32_0 = arith.constant 0 : i32
    return %c0_i32, %arg1 : i32, i32
  }
  func.func @transform_4(%arg0: i32, %arg1: i32, %arg2: i32) -> (i32, i32) {
    %c0_i32 = arith.constant 0 : i32
    return %arg0, %arg1 : i32, i32
  }
  func.func @transform_5(%arg0: i32, %arg1: i32, %arg2: i32) -> (i32, i32) {
    %c0_i32 = arith.constant 0 : i32
    return %arg0, %arg1 : i32, i32
  }
}

module attributes {stable_mosaic.version = 11 : i64} {
  func.func @kernel(%arg0: i32, %arg1: i32, %arg2: i32, %arg3: memref<8x384xbf16, #tpu.memory_space<vmem>>, %arg4: memref<384x256xbf16, #tpu.memory_space<vmem>>, %arg5: memref<1x256xf32, #tpu.memory_space<vmem>>, %arg6: memref<1x256xf32, #tpu.memory_space<vmem>>, %arg7: memref<8x256xbf16, #tpu.memory_space<vmem>>, %arg8: memref<8x256xf32, #tpu.memory_space<vmem>>) attributes {dimension_semantics = [#tpu.dimension_semantics<parallel>, #tpu.dimension_semantics<parallel>, #tpu.dimension_semantics<arbitrary>], iteration_bounds = array<i64: 1, 1, 3>, scalar_prefetch = 0 : i64, scratch_operands = 1 : i64, tpu.core_type = #tpu.core_type<tc>, window_params = [{transform_indices = @transform_0, window_bounds = array<i64: 8, 384>}, {transform_indices = @transform_1, window_bounds = array<i64: 384, 256>}, {transform_indices = @transform_2, window_bounds = array<i64: 1, 256>}, {transform_indices = @transform_3, window_bounds = array<i64: 1, 256>}, {transform_indices = @transform_4, window_bounds = array<i64: 8, 256>}]} {
    %c0_i32 = arith.constant 0 : i32
    %0 = arith.cmpi eq, %arg2, %c0_i32 : i32
    %1 = arith.extui %0 : i1 to i32
    %c0_i32_0 = arith.constant 0 : i32
    %2 = arith.cmpi ne, %1, %c0_i32_0 : i32
    scf.if %2 {
      %cst_9 = arith.constant 0.000000e+00 : f32
      %12 = vector.broadcast %cst_9 : f32 to vector<8x256xf32>
      %c0_10 = arith.constant 0 : index
      %c0_11 = arith.constant 0 : index
      %13 = vector.load %arg8[%c0_10, %c0_11] : memref<8x256xf32, #tpu.memory_space<vmem>>, vector<8x256xf32>
      tpu.vector_store %arg8[%c0_10, %c0_11], %12 {strides = array<i32>} : memref<8x256xf32, #tpu.memory_space<vmem>>, vector<8x256xf32>,
    } else {
    }
    %c0 = arith.constant 0 : index
    %c0_1 = arith.constant 0 : index
    %3 = vector.load %arg8[%c0, %c0_1] : memref<8x256xf32, #tpu.memory_space<vmem>>, vector<8x256xf32>
    %c0_2 = arith.constant 0 : index
    %c0_3 = arith.constant 0 : index
    %4 = vector.load %arg3[%c0_2, %c0_3] : memref<8x384xbf16, #tpu.memory_space<vmem>>, vector<8x384xbf16>
    %c0_4 = arith.constant 0 : index
    %c0_5 = arith.constant 0 : index
    %5 = vector.load %arg4[%c0_4, %c0_5] : memref<384x256xbf16, #tpu.memory_space<vmem>>, vector<384x256xbf16>
    %cst = arith.constant dense<0.000000e+00> : vector<8x256xf32>
    %6 = tpu.matmul %4, %5, %cst {dimension_numbers = #tpu.dot_dimension_numbers<[1], [0], [0], [1], [0, 0, 1, 1], [], []>} : vector<8x384xbf16>, vector<384x256xbf16>, vector<8x256xf32> -> vector<8x256xf32>
    %7 = arith.addf %3, %6 : vector<8x256xf32>
    %c0_6 = arith.constant 0 : index
    %c0_7 = arith.constant 0 : index
    %8 = vector.load %arg8[%c0_6, %c0_7] : memref<8x256xf32, #tpu.memory_space<vmem>>, vector<8x256xf32>
    tpu.vector_store %arg8[%c0_6, %c0_7], %7 {strides = array<i32>} : memref<8x256xf32, #tpu.memory_space<vmem>>, vector<8x256xf32>,
    %c2_i32 = arith.constant 2 : i32
    %9 = arith.cmpi eq, %arg2, %c2_i32 : i32
    %10 = arith.extui %9 : i1 to i32
    %c0_i32_8 = arith.constant 0 : i32
    %11 = arith.cmpi ne, %10, %c0_i32_8 : i32
    scf.if %11 {
      %c0_9 = arith.constant 0 : index
      %c0_10 = arith.constant 0 : index
      %12 = vector.load %arg8[%c0_9, %c0_10] : memref<8x256xf32, #tpu.memory_space<vmem>>, vector<8x256xf32>
      %c0_11 = arith.constant 0 : index
      %c0_12 = arith.constant 0 : index
      %13 = vector.load %arg5[%c0_11, %c0_12] : memref<1x256xf32, #tpu.memory_space<vmem>>, vector<1x256xf32>
      %14 = vector.broadcast %13 : vector<1x256xf32> to vector<8x256xf32>
      %15 = arith.mulf %12, %14 : vector<8x256xf32>
      %c0_13 = arith.constant 0 : index
      %c0_14 = arith.constant 0 : index
      %16 = vector.load %arg6[%c0_13, %c0_14] : memref<1x256xf32, #tpu.memory_space<vmem>>, vector<1x256xf32>
      %17 = vector.broadcast %16 : vector<1x256xf32> to vector<8x256xf32>
      %18 = arith.addf %15, %17 : vector<8x256xf32>
      %cst_15 = arith.constant 0.000000e+00 : f32
      %19 = vector.broadcast %cst_15 : f32 to vector<8x256xf32>
      %20 = arith.maximumf %18, %19 : vector<8x256xf32>
      %21 = arith.truncf %20 : vector<8x256xf32> to vector<8x256xbf16>
      %c0_16 = arith.constant 0 : index
      %c0_17 = arith.constant 0 : index
      %22 = vector.load %arg7[%c0_16, %c0_17] : memref<8x256xbf16, #tpu.memory_space<vmem>>, vector<8x256xbf16>
      tpu.vector_store %arg7[%c0_16, %c0_17], %21 {strides = array<i32>} : memref<8x256xbf16, #tpu.memory_space<vmem>>, vector<8x256xbf16>,
    } else {
    }
    return
  }
  func.func @transform_0(%arg0: i32, %arg1: i32, %arg2: i32) -> (i32, i32) {
    %c0_i32 = arith.constant 0 : i32
    return %arg0, %arg2 : i32, i32
  }
  func.func @transform_1(%arg0: i32, %arg1: i32, %arg2: i32) -> (i32, i32) {
    %c0_i32 = arith.constant 0 : i32
    return %arg2, %arg1 : i32, i32
  }
  func.func @transform_2(%arg0: i32, %arg1: i32, %arg2: i32) -> (i32, i32) {
    %c0_i32 = arith.constant 0 : i32
    %c0_i32_0 = arith.constant 0 : i32
    return %c0_i32, %arg1 : i32, i32
  }
  func.func @transform_3(%arg0: i32, %arg1: i32, %arg2: i32) -> (i32, i32) {
    %c0_i32 = arith.constant 0 : i32
    %c0_i32_0 = arith.constant 0 : i32
    return %c0_i32, %arg1 : i32, i32
  }
  func.func @transform_4(%arg0: i32, %arg1: i32, %arg2: i32) -> (i32, i32) {
    %c0_i32 = arith.constant 0 : i32
    return %arg0, %arg1 : i32, i32
  }
}

module attributes {stable_mosaic.version = 11 : i64} {
  func.func @kernel(%arg0: i32, %arg1: i32, %arg2: i32, %arg3: memref<8x512xbf16, #tpu.memory_space<vmem>>, %arg4: memref<512x256xbf16, #tpu.memory_space<vmem>>, %arg5: memref<1x256xf32, #tpu.memory_space<vmem>>, %arg6: memref<1x256xf32, #tpu.memory_space<vmem>>, %arg7: memref<8x256xf32, #tpu.memory_space<vmem>>, %arg8: memref<8x256xbf16, #tpu.memory_space<vmem>>, %arg9: memref<8x256xf32, #tpu.memory_space<vmem>>) attributes {dimension_semantics = [#tpu.dimension_semantics<parallel>, #tpu.dimension_semantics<parallel>, #tpu.dimension_semantics<arbitrary>], iteration_bounds = array<i64: 1, 1, 5>, scalar_prefetch = 0 : i64, scratch_operands = 1 : i64, tpu.core_type = #tpu.core_type<tc>, window_params = [{transform_indices = @transform_0, window_bounds = array<i64: 8, 512>}, {transform_indices = @transform_1, window_bounds = array<i64: 512, 256>}, {transform_indices = @transform_2, window_bounds = array<i64: 1, 256>}, {transform_indices = @transform_3, window_bounds = array<i64: 1, 256>}, {transform_indices = @transform_4, window_bounds = array<i64: 8, 256>}, {transform_indices = @transform_5, window_bounds = array<i64: 8, 256>}]} {
    %c0_i32 = arith.constant 0 : i32
    %0 = arith.cmpi eq, %arg2, %c0_i32 : i32
    %1 = arith.extui %0 : i1 to i32
    %c0_i32_0 = arith.constant 0 : i32
    %2 = arith.cmpi ne, %1, %c0_i32_0 : i32
    scf.if %2 {
      %cst_9 = arith.constant 0.000000e+00 : f32
      %12 = vector.broadcast %cst_9 : f32 to vector<8x256xf32>
      %c0_10 = arith.constant 0 : index
      %c0_11 = arith.constant 0 : index
      %13 = vector.load %arg9[%c0_10, %c0_11] : memref<8x256xf32, #tpu.memory_space<vmem>>, vector<8x256xf32>
      tpu.vector_store %arg9[%c0_10, %c0_11], %12 {strides = array<i32>} : memref<8x256xf32, #tpu.memory_space<vmem>>, vector<8x256xf32>,
    } else {
    }
    %c0 = arith.constant 0 : index
    %c0_1 = arith.constant 0 : index
    %3 = vector.load %arg9[%c0, %c0_1] : memref<8x256xf32, #tpu.memory_space<vmem>>, vector<8x256xf32>
    %c0_2 = arith.constant 0 : index
    %c0_3 = arith.constant 0 : index
    %4 = vector.load %arg3[%c0_2, %c0_3] : memref<8x512xbf16, #tpu.memory_space<vmem>>, vector<8x512xbf16>
    %c0_4 = arith.constant 0 : index
    %c0_5 = arith.constant 0 : index
    %5 = vector.load %arg4[%c0_4, %c0_5] : memref<512x256xbf16, #tpu.memory_space<vmem>>, vector<512x256xbf16>
    %cst = arith.constant dense<0.000000e+00> : vector<8x256xf32>
    %6 = tpu.matmul %4, %5, %cst {dimension_numbers = #tpu.dot_dimension_numbers<[1], [0], [0], [1], [0, 0, 1, 1], [], []>} : vector<8x512xbf16>, vector<512x256xbf16>, vector<8x256xf32> -> vector<8x256xf32>
    %7 = arith.addf %3, %6 : vector<8x256xf32>
    %c0_6 = arith.constant 0 : index
    %c0_7 = arith.constant 0 : index
    %8 = vector.load %arg9[%c0_6, %c0_7] : memref<8x256xf32, #tpu.memory_space<vmem>>, vector<8x256xf32>
    tpu.vector_store %arg9[%c0_6, %c0_7], %7 {strides = array<i32>} : memref<8x256xf32, #tpu.memory_space<vmem>>, vector<8x256xf32>,
    %c4_i32 = arith.constant 4 : i32
    %9 = arith.cmpi eq, %arg2, %c4_i32 : i32
    %10 = arith.extui %9 : i1 to i32
    %c0_i32_8 = arith.constant 0 : i32
    %11 = arith.cmpi ne, %10, %c0_i32_8 : i32
    scf.if %11 {
      %c0_9 = arith.constant 0 : index
      %c0_10 = arith.constant 0 : index
      %12 = vector.load %arg9[%c0_9, %c0_10] : memref<8x256xf32, #tpu.memory_space<vmem>>, vector<8x256xf32>
      %c0_11 = arith.constant 0 : index
      %c0_12 = arith.constant 0 : index
      %13 = vector.load %arg7[%c0_11, %c0_12] : memref<8x256xf32, #tpu.memory_space<vmem>>, vector<8x256xf32>
      tpu.vector_store %arg7[%c0_11, %c0_12], %12 {strides = array<i32>} : memref<8x256xf32, #tpu.memory_space<vmem>>, vector<8x256xf32>,
      %c0_13 = arith.constant 0 : index
      %c0_14 = arith.constant 0 : index
      %14 = vector.load %arg5[%c0_13, %c0_14] : memref<1x256xf32, #tpu.memory_space<vmem>>, vector<1x256xf32>
      %15 = vector.broadcast %14 : vector<1x256xf32> to vector<8x256xf32>
      %16 = arith.mulf %12, %15 : vector<8x256xf32>
      %c0_15 = arith.constant 0 : index
      %c0_16 = arith.constant 0 : index
      %17 = vector.load %arg6[%c0_15, %c0_16] : memref<1x256xf32, #tpu.memory_space<vmem>>, vector<1x256xf32>
      %18 = vector.broadcast %17 : vector<1x256xf32> to vector<8x256xf32>
      %19 = arith.addf %16, %18 : vector<8x256xf32>
      %cst_17 = arith.constant 0.000000e+00 : f32
      %20 = vector.broadcast %cst_17 : f32 to vector<8x256xf32>
      %21 = arith.maximumf %19, %20 : vector<8x256xf32>
      %22 = arith.truncf %21 : vector<8x256xf32> to vector<8x256xbf16>
      %c0_18 = arith.constant 0 : index
      %c0_19 = arith.constant 0 : index
      %23 = vector.load %arg8[%c0_18, %c0_19] : memref<8x256xbf16, #tpu.memory_space<vmem>>, vector<8x256xbf16>
      tpu.vector_store %arg8[%c0_18, %c0_19], %22 {strides = array<i32>} : memref<8x256xbf16, #tpu.memory_space<vmem>>, vector<8x256xbf16>,
    } else {
    }
    return
  }
  func.func @transform_0(%arg0: i32, %arg1: i32, %arg2: i32) -> (i32, i32) {
    %c0_i32 = arith.constant 0 : i32
    return %arg0, %arg2 : i32, i32
  }
  func.func @transform_1(%arg0: i32, %arg1: i32, %arg2: i32) -> (i32, i32) {
    %c0_i32 = arith.constant 0 : i32
    return %arg2, %arg1 : i32, i32
  }
  func.func @transform_2(%arg0: i32, %arg1: i32, %arg2: i32) -> (i32, i32) {
    %c0_i32 = arith.constant 0 : i32
    %c0_i32_0 = arith.constant 0 : i32
    return %c0_i32, %arg1 : i32, i32
  }
  func.func @transform_3(%arg0: i32, %arg1: i32, %arg2: i32) -> (i32, i32) {
    %c0_i32 = arith.constant 0 : i32
    %c0_i32_0 = arith.constant 0 : i32
    return %c0_i32, %arg1 : i32, i32
  }
  func.func @transform_4(%arg0: i32, %arg1: i32, %arg2: i32) -> (i32, i32) {
    %c0_i32 = arith.constant 0 : i32
    return %arg0, %arg1 : i32, i32
  }
  func.func @transform_5(%arg0: i32, %arg1: i32, %arg2: i32) -> (i32, i32) {
    %c0_i32 = arith.constant 0 : i32
    return %arg0, %arg1 : i32, i32
  }
}

module attributes {stable_mosaic.version = 11 : i64} {
  func.func @kernel(%arg0: i32, %arg1: i32, %arg2: i32, %arg3: memref<8x512xbf16, #tpu.memory_space<vmem>>, %arg4: memref<512x256xbf16, #tpu.memory_space<vmem>>, %arg5: memref<1x256xf32, #tpu.memory_space<vmem>>, %arg6: memref<1x256xf32, #tpu.memory_space<vmem>>, %arg7: memref<8x256xbf16, #tpu.memory_space<vmem>>, %arg8: memref<8x256xf32, #tpu.memory_space<vmem>>) attributes {dimension_semantics = [#tpu.dimension_semantics<parallel>, #tpu.dimension_semantics<parallel>, #tpu.dimension_semantics<arbitrary>], iteration_bounds = array<i64: 1, 2, 5>, scalar_prefetch = 0 : i64, scratch_operands = 1 : i64, tpu.core_type = #tpu.core_type<tc>, window_params = [{transform_indices = @transform_0, window_bounds = array<i64: 8, 512>}, {transform_indices = @transform_1, window_bounds = array<i64: 512, 256>}, {transform_indices = @transform_2, window_bounds = array<i64: 1, 256>}, {transform_indices = @transform_3, window_bounds = array<i64: 1, 256>}, {transform_indices = @transform_4, window_bounds = array<i64: 8, 256>}]} {
    %c0_i32 = arith.constant 0 : i32
    %0 = arith.cmpi eq, %arg2, %c0_i32 : i32
    %1 = arith.extui %0 : i1 to i32
    %c0_i32_0 = arith.constant 0 : i32
    %2 = arith.cmpi ne, %1, %c0_i32_0 : i32
    scf.if %2 {
      %cst_9 = arith.constant 0.000000e+00 : f32
      %12 = vector.broadcast %cst_9 : f32 to vector<8x256xf32>
      %c0_10 = arith.constant 0 : index
      %c0_11 = arith.constant 0 : index
      %13 = vector.load %arg8[%c0_10, %c0_11] : memref<8x256xf32, #tpu.memory_space<vmem>>, vector<8x256xf32>
      tpu.vector_store %arg8[%c0_10, %c0_11], %12 {strides = array<i32>} : memref<8x256xf32, #tpu.memory_space<vmem>>, vector<8x256xf32>,
    } else {
    }
    %c0 = arith.constant 0 : index
    %c0_1 = arith.constant 0 : index
    %3 = vector.load %arg8[%c0, %c0_1] : memref<8x256xf32, #tpu.memory_space<vmem>>, vector<8x256xf32>
    %c0_2 = arith.constant 0 : index
    %c0_3 = arith.constant 0 : index
    %4 = vector.load %arg3[%c0_2, %c0_3] : memref<8x512xbf16, #tpu.memory_space<vmem>>, vector<8x512xbf16>
    %c0_4 = arith.constant 0 : index
    %c0_5 = arith.constant 0 : index
    %5 = vector.load %arg4[%c0_4, %c0_5] : memref<512x256xbf16, #tpu.memory_space<vmem>>, vector<512x256xbf16>
    %cst = arith.constant dense<0.000000e+00> : vector<8x256xf32>
    %6 = tpu.matmul %4, %5, %cst {dimension_numbers = #tpu.dot_dimension_numbers<[1], [0], [0], [1], [0, 0, 1, 1], [], []>} : vector<8x512xbf16>, vector<512x256xbf16>, vector<8x256xf32> -> vector<8x256xf32>
    %7 = arith.addf %3, %6 : vector<8x256xf32>
    %c0_6 = arith.constant 0 : index
    %c0_7 = arith.constant 0 : index
    %8 = vector.load %arg8[%c0_6, %c0_7] : memref<8x256xf32, #tpu.memory_space<vmem>>, vector<8x256xf32>
    tpu.vector_store %arg8[%c0_6, %c0_7], %7 {strides = array<i32>} : memref<8x256xf32, #tpu.memory_space<vmem>>, vector<8x256xf32>,
    %c4_i32 = arith.constant 4 : i32
    %9 = arith.cmpi eq, %arg2, %c4_i32 : i32
    %10 = arith.extui %9 : i1 to i32
    %c0_i32_8 = arith.constant 0 : i32
    %11 = arith.cmpi ne, %10, %c0_i32_8 : i32
    scf.if %11 {
      %c0_9 = arith.constant 0 : index
      %c0_10 = arith.constant 0 : index
      %12 = vector.load %arg8[%c0_9, %c0_10] : memref<8x256xf32, #tpu.memory_space<vmem>>, vector<8x256xf32>
      %c0_11 = arith.constant 0 : index
      %c0_12 = arith.constant 0 : index
      %13 = vector.load %arg5[%c0_11, %c0_12] : memref<1x256xf32, #tpu.memory_space<vmem>>, vector<1x256xf32>
      %14 = vector.broadcast %13 : vector<1x256xf32> to vector<8x256xf32>
      %15 = arith.mulf %12, %14 : vector<8x256xf32>
      %c0_13 = arith.constant 0 : index
      %c0_14 = arith.constant 0 : index
      %16 = vector.load %arg6[%c0_13, %c0_14] : memref<1x256xf32, #tpu.memory_space<vmem>>, vector<1x256xf32>
      %17 = vector.broadcast %16 : vector<1x256xf32> to vector<8x256xf32>
      %18 = arith.addf %15, %17 : vector<8x256xf32>
      %cst_15 = arith.constant 0.000000e+00 : f32
      %19 = vector.broadcast %cst_15 : f32 to vector<8x256xf32>
      %20 = arith.maximumf %18, %19 : vector<8x256xf32>
      %21 = arith.truncf %20 : vector<8x256xf32> to vector<8x256xbf16>
      %c0_16 = arith.constant 0 : index
      %c0_17 = arith.constant 0 : index
      %22 = vector.load %arg7[%c0_16, %c0_17] : memref<8x256xbf16, #tpu.memory_space<vmem>>, vector<8x256xbf16>
      tpu.vector_store %arg7[%c0_16, %c0_17], %21 {strides = array<i32>} : memref<8x256xbf16, #tpu.memory_space<vmem>>, vector<8x256xbf16>,
    } else {
    }
    return
  }
  func.func @transform_0(%arg0: i32, %arg1: i32, %arg2: i32) -> (i32, i32) {
    %c0_i32 = arith.constant 0 : i32
    return %arg0, %arg2 : i32, i32
  }
  func.func @transform_1(%arg0: i32, %arg1: i32, %arg2: i32) -> (i32, i32) {
    %c0_i32 = arith.constant 0 : i32
    return %arg2, %arg1 : i32, i32
  }
  func.func @transform_2(%arg0: i32, %arg1: i32, %arg2: i32) -> (i32, i32) {
    %c0_i32 = arith.constant 0 : i32
    %c0_i32_0 = arith.constant 0 : i32
    return %c0_i32, %arg1 : i32, i32
  }
  func.func @transform_3(%arg0: i32, %arg1: i32, %arg2: i32) -> (i32, i32) {
    %c0_i32 = arith.constant 0 : i32
    %c0_i32_0 = arith.constant 0 : i32
    return %c0_i32, %arg1 : i32, i32
  }
  func.func @transform_4(%arg0: i32, %arg1: i32, %arg2: i32) -> (i32, i32) {
    %c0_i32 = arith.constant 0 : i32
    return %arg0, %arg1 : i32, i32
  }
}

module attributes {stable_mosaic.version = 11 : i64} {
  func.func @kernel(%arg0: i32, %arg1: i32, %arg2: i32, %arg3: memref<8x512xbf16, #tpu.memory_space<vmem>>, %arg4: memref<512x256xbf16, #tpu.memory_space<vmem>>, %arg5: memref<8x256xf32, #tpu.memory_space<vmem>>, %arg6: memref<8x256xf32, #tpu.memory_space<vmem>>) attributes {dimension_semantics = [#tpu.dimension_semantics<parallel>, #tpu.dimension_semantics<parallel>, #tpu.dimension_semantics<arbitrary>], iteration_bounds = array<i64: 1, 2, 10>, scalar_prefetch = 0 : i64, scratch_operands = 1 : i64, tpu.core_type = #tpu.core_type<tc>, window_params = [{transform_indices = @transform_0, window_bounds = array<i64: 8, 512>}, {transform_indices = @transform_1, window_bounds = array<i64: 512, 256>}, {transform_indices = @transform_2, window_bounds = array<i64: 8, 256>}]} {
    %c0_i32 = arith.constant 0 : i32
    %0 = arith.cmpi eq, %arg2, %c0_i32 : i32
    %1 = arith.extui %0 : i1 to i32
    %c0_i32_0 = arith.constant 0 : i32
    %2 = arith.cmpi ne, %1, %c0_i32_0 : i32
    scf.if %2 {
      %cst_9 = arith.constant 0.000000e+00 : f32
      %12 = vector.broadcast %cst_9 : f32 to vector<8x256xf32>
      %c0_10 = arith.constant 0 : index
      %c0_11 = arith.constant 0 : index
      %13 = vector.load %arg6[%c0_10, %c0_11] : memref<8x256xf32, #tpu.memory_space<vmem>>, vector<8x256xf32>
      tpu.vector_store %arg6[%c0_10, %c0_11], %12 {strides = array<i32>} : memref<8x256xf32, #tpu.memory_space<vmem>>, vector<8x256xf32>,
    } else {
    }
    %c0 = arith.constant 0 : index
    %c0_1 = arith.constant 0 : index
    %3 = vector.load %arg6[%c0, %c0_1] : memref<8x256xf32, #tpu.memory_space<vmem>>, vector<8x256xf32>
    %c0_2 = arith.constant 0 : index
    %c0_3 = arith.constant 0 : index
    %4 = vector.load %arg3[%c0_2, %c0_3] : memref<8x512xbf16, #tpu.memory_space<vmem>>, vector<8x512xbf16>
    %c0_4 = arith.constant 0 : index
    %c0_5 = arith.constant 0 : index
    %5 = vector.load %arg4[%c0_4, %c0_5] : memref<512x256xbf16, #tpu.memory_space<vmem>>, vector<512x256xbf16>
    %cst = arith.constant dense<0.000000e+00> : vector<8x256xf32>
    %6 = tpu.matmul %4, %5, %cst {dimension_numbers = #tpu.dot_dimension_numbers<[1], [0], [0], [1], [0, 0, 1, 1], [], []>} : vector<8x512xbf16>, vector<512x256xbf16>, vector<8x256xf32> -> vector<8x256xf32>
    %7 = arith.addf %3, %6 : vector<8x256xf32>
    %c0_6 = arith.constant 0 : index
    %c0_7 = arith.constant 0 : index
    %8 = vector.load %arg6[%c0_6, %c0_7] : memref<8x256xf32, #tpu.memory_space<vmem>>, vector<8x256xf32>
    tpu.vector_store %arg6[%c0_6, %c0_7], %7 {strides = array<i32>} : memref<8x256xf32, #tpu.memory_space<vmem>>, vector<8x256xf32>,
    %c9_i32 = arith.constant 9 : i32
    %9 = arith.cmpi eq, %arg2, %c9_i32 : i32
    %10 = arith.extui %9 : i1 to i32
    %c0_i32_8 = arith.constant 0 : i32
    %11 = arith.cmpi ne, %10, %c0_i32_8 : i32
    scf.if %11 {
      %c0_9 = arith.constant 0 : index
      %c0_10 = arith.constant 0 : index
      %12 = vector.load %arg6[%c0_9, %c0_10] : memref<8x256xf32, #tpu.memory_space<vmem>>, vector<8x256xf32>
      %c0_11 = arith.constant 0 : index
      %c0_12 = arith.constant 0 : index
      %13 = vector.load %arg5[%c0_11, %c0_12] : memref<8x256xf32, #tpu.memory_space<vmem>>, vector<8x256xf32>
      tpu.vector_store %arg5[%c0_11, %c0_12], %12 {strides = array<i32>} : memref<8x256xf32, #tpu.memory_space<vmem>>, vector<8x256xf32>,
    } else {
    }
    return
  }
  func.func @transform_0(%arg0: i32, %arg1: i32, %arg2: i32) -> (i32, i32) {
    %c0_i32 = arith.constant 0 : i32
    return %arg0, %arg2 : i32, i32
  }
  func.func @transform_1(%arg0: i32, %arg1: i32, %arg2: i32) -> (i32, i32) {
    %c0_i32 = arith.constant 0 : i32
    return %arg2, %arg1 : i32, i32
  }
  func.func @transform_2(%arg0: i32, %arg1: i32, %arg2: i32) -> (i32, i32) {
    %c0_i32 = arith.constant 0 : i32
    return %arg0, %arg1 : i32, i32
  }
}

module attributes {stable_mosaic.version = 11 : i64} {
  func.func @_head_kernel(%arg0: i32, %arg1: memref<1x8x512xf32, #tpu.memory_space<vmem>>, %arg2: memref<512x128xf32, #tpu.memory_space<vmem>>, %arg3: memref<1x128xf32, #tpu.memory_space<vmem>>, %arg4: memref<8x128xf32, #tpu.memory_space<vmem>>) attributes {dimension_semantics = [#tpu.dimension_semantics<arbitrary>], iteration_bounds = array<i64: 1>, scalar_prefetch = 0 : i64, scratch_operands = 0 : i64, tpu.core_type = #tpu.core_type<tc>, window_params = [{pipeline_mode = #tpu.pipeline_mode<synchronous>, transform_indices = @transform_0, window_bounds = array<i64: 1, 8, 512>}, {pipeline_mode = #tpu.pipeline_mode<synchronous>, transform_indices = @transform_1, window_bounds = array<i64: 512, 128>}, {pipeline_mode = #tpu.pipeline_mode<synchronous>, transform_indices = @transform_2, window_bounds = array<i64: 1, 128>}, {pipeline_mode = #tpu.pipeline_mode<synchronous>, transform_indices = @transform_3, window_bounds = array<i64: 8, 128>}]} {
    %c0 = arith.constant 0 : index
    %c0_0 = arith.constant 0 : index
    %c0_1 = arith.constant 0 : index
    %0 = vector.load %arg1[%c0, %c0_0, %c0_1] : memref<1x8x512xf32, #tpu.memory_space<vmem>>, vector<1x8x512xf32>
    %cst = arith.constant dense<0.000000e+00> : vector<8x512xf32>
    %1 = vector.multi_reduction <add>, %0, %cst [0] : vector<1x8x512xf32> to vector<8x512xf32>
    %cst_2 = arith.constant 1.000000e+00 : f32
    %2 = vector.broadcast %cst_2 : f32 to vector<8x512xf32>
    %3 = arith.divf %1, %2 : vector<8x512xf32>
    %c0_3 = arith.constant 0 : index
    %c0_4 = arith.constant 0 : index
    %4 = vector.load %arg2[%c0_3, %c0_4] : memref<512x128xf32, #tpu.memory_space<vmem>>, vector<512x128xf32>
    %cst_5 = arith.constant dense<0.000000e+00> : vector<8x128xf32>
    %5 = tpu.matmul %3, %4, %cst_5 {dimension_numbers = #tpu.dot_dimension_numbers<[1], [0], [0], [1], [0, 0, 1, 1], [], []>} : vector<8x512xf32>, vector<512x128xf32>, vector<8x128xf32> -> vector<8x128xf32>
    %c0_6 = arith.constant 0 : index
    %c0_7 = arith.constant 0 : index
    %6 = vector.load %arg3[%c0_6, %c0_7] : memref<1x128xf32, #tpu.memory_space<vmem>>, vector<1x128xf32>
    %7 = vector.broadcast %6 : vector<1x128xf32> to vector<8x128xf32>
    %8 = arith.addf %5, %7 : vector<8x128xf32>
    %cst_8 = arith.constant dense<0xFF800000> : vector<8xf32>
    %9 = vector.multi_reduction <maximumf>, %8, %cst_8 [1] : vector<8x128xf32> to vector<8xf32>
    %10 = vector.shape_cast %9 : vector<8xf32> to vector<8x1xf32>
    %11 = vector.broadcast %10 : vector<8x1xf32> to vector<8x128xf32>
    %12 = arith.subf %8, %11 : vector<8x128xf32>
    %13 = math.exp %12 : vector<8x128xf32>
    %cst_9 = arith.constant dense<0.000000e+00> : vector<8xf32>
    %14 = vector.multi_reduction <add>, %13, %cst_9 [1] : vector<8x128xf32> to vector<8xf32>
    %15 = vector.shape_cast %14 : vector<8xf32> to vector<8x1xf32>
    %16 = vector.broadcast %15 : vector<8x1xf32> to vector<8x128xf32>
    %17 = arith.divf %13, %16 : vector<8x128xf32>
    %c0_10 = arith.constant 0 : index
    %c0_11 = arith.constant 0 : index
    %18 = vector.load %arg4[%c0_10, %c0_11] : memref<8x128xf32, #tpu.memory_space<vmem>>, vector<8x128xf32>
    tpu.vector_store %arg4[%c0_10, %c0_11], %17 {strides = array<i32>} : memref<8x128xf32, #tpu.memory_space<vmem>>, vector<8x128xf32>,
    return
  }
  func.func @transform_0(%arg0: i32) -> (i32, i32, i32) {
    %c0_i32 = arith.constant 0 : i32
    %c0_i32_0 = arith.constant 0 : i32
    %c0_i32_1 = arith.constant 0 : i32
    %c0_i32_2 = arith.constant 0 : i32
    return %c0_i32, %c0_i32_0, %c0_i32_1 : i32, i32, i32
  }
  func.func @transform_1(%arg0: i32) -> (i32, i32) {
    %c0_i32 = arith.constant 0 : i32
    %c0_i32_0 = arith.constant 0 : i32
    %c0_i32_1 = arith.constant 0 : i32
    return %c0_i32, %c0_i32_0 : i32, i32
  }
  func.func @transform_2(%arg0: i32) -> (i32, i32) {
    %c0_i32 = arith.constant 0 : i32
    %c0_i32_0 = arith.constant 0 : i32
    %c0_i32_1 = arith.constant 0 : i32
    return %c0_i32, %c0_i32_0 : i32, i32
  }
  func.func @transform_3(%arg0: i32) -> (i32, i32) {
    %c0_i32 = arith.constant 0 : i32
    %c0_i32_0 = arith.constant 0 : i32
    %c0_i32_1 = arith.constant 0 : i32
    return %c0_i32, %c0_i32_0 : i32, i32
  }
}

</mosaic_0001>

<bundles_post_ra>
// kernel: _lambda_.11
= control target key start
LH: loop header
LB: loop body
LE: loop exit
PB: predicated region body
PF: predicated region fallthrough
CT: control target
= control target key end

     0   :  { %s1425_s12 = smov 0   ;;  %s1427_s13 = smov 0   ;;  %s1618_s0 = inlined_call_operand.vmem [shape: bf16[512,256], index: 0, kind: input, shape index: {}]   ;;  %s1619_s1 = inlined_call_operand.vmem [shape: bf16[256,128], index: 1, kind: input, shape index: {}]   ;;  %s1620_s2 = inlined_call_operand.vmem [shape: f32[1,128], index: 2, kind: input, shape index: {}]   ;;  %s1621_s3 = inlined_call_operand.vmem [shape: f32[512,128], index: 3, kind: output, shape index: {}]  }
   0x1   :  { %s1429_s14 = smov 0  }
   0x2 LB: > { %s32_s15 = sadd.s32 1, %s1399_s13  ;;  %p1107_p0 = scmp.ge.s32.totalorder %s1403_s14, 1  ;;  %s1403_s14 = sphi %s1429_s14, %s13_s14   ;;  %s1399_s13 = sphi %s1427_s13, %s1623_s13   ;;  %s1395_s12 = sphi %s1425_s12, %s1622_s12  }
   0x3   : > { %p34_p1 = scmp.ge.s32.totalorder %s32_s15, 2  ;;  %p191_p2 = scmp.lt.s32.totalorder %s1403_s14, 3 }
   0x5   : > { %s1625_s15 = smov (%p34_p1, %s32_s15), 0  ;;  %p192_p3 = pnand %p1107_p0, %p191_p2 }
   0x6   : > { %v1317_v0 = vld [vmem:[%s1619_s1 + $0x40] sm:$0xff] (!%p192_p3)   ;;  %s1108_s18 = sshll.u32 (!%p192_p3), %s1395_s12, 5  ;;  %v1319_v2 = vld [vmem:[%s1619_s1 + $0x48] sm:$0xff] (!%p192_p3)   ;;  %v1321_v4 = vld [vmem:[%s1619_s1 + $0x50] sm:$0xff] (!%p192_p3)  }
   0x7   : > { %195 = sbr.rel (%p192_p3) target bundleno = 315 (0x13b), region = 32  ;;  %v1318_v1 = vld [vmem:[%s1619_s1] sm:$0xff] (!%p192_p3)   ;;  %1165 = vmatprep.subr.bf16.mxu0 (!%p192_p3), %v1317_v0  ;;  %1277 = vmatprep.subr.bf16.mxu1 (!%p192_p3), %v1317_v0  ;;  %v1320_v3 = vld [vmem:[%s1619_s1 + $0x8] sm:$0xff] (!%p192_p3)   ;;  %p236_p4 = scmp.lt.s32.totalorder (!%p192_p3), %s1108_s18, 63  ;;  %v1322_v5 = vld [vmem:[%s1619_s1 + $0x10] sm:$0xff] (!%p192_p3)  }
   0x8   : > { %1166 = vmatpush3.bf16.msra.mxu0 (!%p192_p3), %v1318_v1  ;;  %1285 = vmatpush3.bf16.msra.mxu1 (!%p192_p3), %v1318_v1  ;;  %v1323_v6 = vld [vmem:[%s1619_s1 + $0x58] sm:$0xff] (!%p192_p3)   ;;  %v1325_v8 = vld [vmem:[%s1619_s1 + $0x60] sm:$0xff] (!%p192_p3)   ;;  %v1327_v10 = vld [vmem:[%s1619_s1 + $0x68] sm:$0xff] (!%p192_p3)  }
   0x9   : > { %1167 = vmatprep.subr.bf16.mxu0 (!%p192_p3), %v1319_v2  ;;  %1278 = vmatprep.subr.bf16.mxu1 (!%p192_p3), %v1319_v2  ;;  %v1324_v7 = vld [vmem:[%s1619_s1 + $0x18] sm:$0xff] (!%p192_p3)   ;;  %v1326_v9 = vld [vmem:[%s1619_s1 + $0x20] sm:$0xff] (!%p192_p3)   ;;  %v1328_v13 = vld [vmem:[%s1619_s1 + $0x28] sm:$0xff] (!%p192_p3)  }
   0xa   : > { %v1329_v14 = vld [vmem:[%s1619_s1 + $0x70] sm:$0xff] (!%p192_p3)   ;;  %v1331_v16 = vld [vmem:[%s1619_s1 + $0x78] sm:$0xff] (!%p192_p3)   ;;  %v1536_v51 = vld [vmem:[%s1620_s2] ss:$0 sm:$0xff] (!%p192_p3) }
   0xb   : > { %v1330_v15 = vld [vmem:[%s1619_s1 + $0x30] sm:$0xff] (!%p192_p3)   ;;  %v1332_v17 = vld [vmem:[%s1619_s1 + $0x38] sm:$0xff] (!%p192_p3)  }
   0xc   : > { %1168 = vmatpush3.bf16.msra.mxu0 (!%p192_p3), %v1320_v3  ;;  %1286 = vmatpush3.bf16.msra.mxu1 (!%p192_p3), %v1320_v3 }
   0xd   : > { %1169 = vmatprep.subr.bf16.mxu0 (!%p192_p3), %v1321_v4  ;;  %1279 = vmatprep.subr.bf16.mxu1 (!%p192_p3), %v1321_v4 }
   0xe   : > { %s1627_s18 = smov (!%p236_p4, %s1108_s18), 63 }
   0xf   : > { %s1164_s6 = sshll.u32 %s1627_s18, 3 }
  0x10   : > { %1170 = vmatpush3.bf16.msra.mxu0 %v1322_v5  ;;  %1287 = vmatpush3.bf16.msra.mxu1 %v1322_v5  ;;  %s1478_s11 = scalar_lea.vmem %s1618_s0, %s1164_s6  ;;  %s1543_s8 = scalar_lea.vmem %s1621_s3, %s1164_s6 }
  0x11   : > { %1171 = vmatprep.subr.bf16.mxu0 %v1323_v6  ;;  %1280 = vmatprep.subr.bf16.mxu1 %v1323_v6  ;;  %v1335_v11 = vld [vmem:[%s1478_s11 + $0x4] ss:$8 sps:$4 sm:$0xff]   ;;  %v1333_v18 = vld [vmem:[%s1478_s11] ss:$8 sps:$4 sm:$0xff]   ;;  %v1339_v20 = vld [vmem:[%s1478_s11 + $0x14] ss:$8 sps:$4 sm:$0xff]  }
  0x12   : > { %v1338_v12 = vld [vmem:[%s1478_s11 + $0x84] ss:$8 sps:$4 sm:$0xff]   ;;  %688 = vmatprep.mubr.bf16.mxu0 %v1335_v11  ;;  %v1336_v19 = vld [vmem:[%s1478_s11 + $0x80] ss:$8 sps:$4 sm:$0xff]   ;;  %v1341_v21 = vld [vmem:[%s1478_s11 + $0x94] ss:$8 sps:$4 sm:$0xff]  }
  0x13   : > { %752 = vmatprep.mubr.bf16.mxu1 %v1338_v12  ;;  %v1343_v22 = vld [vmem:[%s1478_s11 + $0x10] ss:$8 sps:$4 sm:$0xff]   ;;  %v1345_v24 = vld [vmem:[%s1478_s11 + $0x24] ss:$8 sps:$4 sm:$0xff]   ;;  %v1349_v26 = vld [vmem:[%s1478_s11 + $0x20] ss:$8 sps:$4 sm:$0xff]  }
  0x14   : > { %1172 = vmatpush3.bf16.msra.mxu0 %v1324_v7  ;;  %1288 = vmatpush3.bf16.msra.mxu1 %v1324_v7  ;;  %v1344_v23 = vld [vmem:[%s1478_s11 + $0x90] ss:$8 sps:$4 sm:$0xff]   ;;  %v1347_v25 = vld [vmem:[%s1478_s11 + $0xa4] ss:$8 sps:$4 sm:$0xff]   ;;  %v1350_v27 = vld [vmem:[%s1478_s11 + $0xa0] ss:$8 sps:$4 sm:$0xff]  }
  0x15   : > { %1173 = vmatprep.subr.bf16.mxu0 %v1325_v8  ;;  %1281 = vmatprep.subr.bf16.mxu1 %v1325_v8  ;;  %v1351_v28 = vld [vmem:[%s1478_s11 + $0x34] ss:$8 sps:$4 sm:$0xff]   ;;  %v1355_v30 = vld [vmem:[%s1478_s11 + $0x30] ss:$8 sps:$4 sm:$0xff]   ;;  %v1357_v32 = vld [vmem:[%s1478_s11 + $0x44] ss:$8 sps:$4 sm:$0xff]  }
  0x16   : > { %v1353_v29 = vld [vmem:[%s1478_s11 + $0xb4] ss:$8 sps:$4 sm:$0xff]   ;;  %v1356_v31 = vld [vmem:[%s1478_s11 + $0xb0] ss:$8 sps:$4 sm:$0xff]   ;;  %v1359_v33 = vld [vmem:[%s1478_s11 + $0xc4] ss:$8 sps:$4 sm:$0xff]  }
  0x17   : > { %v1361_v34 = vld [vmem:[%s1478_s11 + $0x40] ss:$8 sps:$4 sm:$0xff]   ;;  %v1363_v36 = vld [vmem:[%s1478_s11 + $0x54] ss:$8 sps:$4 sm:$0xff]   ;;  %v1367_v38 = vld [vmem:[%s1478_s11 + $0x50] ss:$8 sps:$4 sm:$0xff]  }
  0x18   : > { %1174 = vmatpush3.bf16.msra.mxu0 %v1326_v9  ;;  %1289 = vmatpush3.bf16.msra.mxu1 %v1326_v9  ;;  %v1362_v35 = vld [vmem:[%s1478_s11 + $0xc0] ss:$8 sps:$4 sm:$0xff]   ;;  %v1365_v37 = vld [vmem:[%s1478_s11 + $0xd4] ss:$8 sps:$4 sm:$0xff]   ;;  %v1368_v39 = vld [vmem:[%s1478_s11 + $0xd0] ss:$8 sps:$4 sm:$0xff]  }
  0x19   : > { %1175 = vmatprep.subr.bf16.mxu0 %v1327_v10  ;;  %1282 = vmatprep.subr.bf16.mxu1 %v1327_v10  ;;  %v1369_v40 = vld [vmem:[%s1478_s11 + $0x64] ss:$8 sps:$4 sm:$0xff]   ;;  %v1373_v42 = vld [vmem:[%s1478_s11 + $0x60] ss:$8 sps:$4 sm:$0xff]   ;;  %v1375_v44 = vld [vmem:[%s1478_s11 + $0x74] ss:$8 sps:$4 sm:$0xff]  }
  0x1a   : > { %v1371_v41 = vld [vmem:[%s1478_s11 + $0xe4] ss:$8 sps:$4 sm:$0xff]   ;;  %v1374_v43 = vld [vmem:[%s1478_s11 + $0xe0] ss:$8 sps:$4 sm:$0xff]   ;;  %v1377_v45 = vld [vmem:[%s1478_s11 + $0xf4] ss:$8 sps:$4 sm:$0xff]  }
  0x1b   : > { %v1379_v46 = vld [vmem:[%s1478_s11 + $0x70] ss:$8 sps:$4 sm:$0xff]  }
  0x1c   : > { %1176 = vmatpush3.bf16.msra.mxu0 %v1328_v13  ;;  %1290 = vmatpush3.bf16.msra.mxu1 %v1328_v13  ;;  %v1380_v47 = vld [vmem:[%s1478_s11 + $0xf0] ss:$8 sps:$4 sm:$0xff]  }
  0x1d   : > { %1177 = vmatprep.subr.bf16.mxu0 %v1329_v14  ;;  %1283 = vmatprep.subr.bf16.mxu1 %v1329_v14 }
  0x20   : > { %1178 = vmatpush3.bf16.msra.mxu0 %v1330_v15  ;;  %1291 = vmatpush3.bf16.msra.mxu1 %v1330_v15 }
  0x21   : > { %1179 = vmatprep.subr.bf16.mxu0 %v1331_v16  ;;  %1284 = vmatprep.subr.bf16.mxu1 %v1331_v16 }
  0x24   : > { %1180 = vmatpush3.bf16.msra.mxu0 %v1332_v17  ;;  %1292 = vmatpush3.bf16.msra.mxu1 %v1332_v17 }
  0x27   : > { %689 = vmatmul.mubr.bf16.vlgmr.msra.gmra.mrb[0].mxu0 %v1333_v18  ;;  %753 = vmatmul.mubr.bf16.vlgmr.msra.gmra.mrb[0].mxu1 %v1336_v19 }
  0x28   : > { %696 = vmatprep.mubr.bf16.mxu0 %v1339_v20  ;;  %760 = vmatprep.mubr.bf16.mxu1 %v1341_v21 }
  0x2f   : > { %697 = vmatmul.mubr.bf16.gmra.mrb[4].mxu0 %v1343_v22  ;;  %761 = vmatmul.mubr.bf16.gmra.mrb[4].mxu1 %v1344_v23 }
  0x30   : > { %704 = vmatprep.mubr.bf16.mxu0 %v1345_v24  ;;  %768 = vmatprep.mubr.bf16.mxu1 %v1347_v25 }
  0x37   : > { %705 = vmatmul.mubr.bf16.gmra.mrb[8].mxu0 %v1349_v26  ;;  %769 = vmatmul.mubr.bf16.gmra.mrb[8].mxu1 %v1350_v27 }
  0x38   : > { %712 = vmatprep.mubr.bf16.mxu0 %v1351_v28  ;;  %776 = vmatprep.mubr.bf16.mxu1 %v1353_v29 }
  0x3f   : > { %713 = vmatmul.mubr.bf16.gmra.mrb[12].mxu0 %v1355_v30  ;;  %777 = vmatmul.mubr.bf16.gmra.mrb[12].mxu1 %v1356_v31 }
  0x40   : > { %720 = vmatprep.mubr.bf16.mxu0 %v1357_v32  ;;  %784 = vmatprep.mubr.bf16.mxu1 %v1359_v33 }
  0x47   : > { %721 = vmatmul.mubr.bf16.gmra.mrb[16].mxu0 %v1361_v34  ;;  %785 = vmatmul.mubr.bf16.gmra.mrb[16].mxu1 %v1362_v35 }
  0x48   : > { %728 = vmatprep.mubr.bf16.mxu0 %v1363_v36  ;;  %792 = vmatprep.mubr.bf16.mxu1 %v1365_v37 }
  0x4f   : > { %729 = vmatmul.mubr.bf16.gmra.mrb[20].mxu0 %v1367_v38  ;;  %793 = vmatmul.mubr.bf16.gmra.mrb[20].mxu1 %v1368_v39 }
  0x50   : > { %736 = vmatprep.mubr.bf16.mxu0 %v1369_v40  ;;  %800 = vmatprep.mubr.bf16.mxu1 %v1371_v41 }
  0x57   : > { %737 = vmatmul.mubr.bf16.gmra.mrb[24].mxu0 %v1373_v42  ;;  %801 = vmatmul.mubr.bf16.gmra.mrb[24].mxu1 %v1374_v43 }
  0x58   : > { %744 = vmatprep.mubr.bf16.mxu0 %v1375_v44  ;;  %808 = vmatprep.mubr.bf16.mxu1 %v1377_v45 }
  0x5f   : > { %745 = vmatmul.mubr.bf16.gmra.mrb[28].mxu0 %v1379_v46  ;;  %809 = vmatmul.mubr.bf16.gmra.mrb[28].mxu1 %v1380_v47 }
  0xfa   : > { %v1181_v48 = vpop.f32.mrb[0].mxu0  ;;  %v1229_v49 = vpop.f32.mrb[0].mxu1 }
  0xfb   : > { %v1182_v50 = vpop.f32.mrb[1].mxu0  ;;  %v1230_v52 = vpop.f32.mrb[1].mxu1 }
  0xfc   : > { %v1183_v53 = vadd.f32 %v1182_v50, %v1181_v48  ;;  %v1231_v54 = vadd.f32 %v1230_v52, %v1229_v49  ;;  %v1184_v55 = vpop.f32.mrb[2].mxu0  ;;  %v1232_v56 = vpop.f32.mrb[2].mxu1 }
  0xfd   : > { %v1185_v57 = vpop.f32.mrb[3].mxu0  ;;  %v1233_v58 = vpop.f32.mrb[3].mxu1 }
  0xfe   : > { %v923_v59 = vadd.f32 %v1183_v53, %v1536_v51  ;;  %v939_v60 = vadd.f32 %v1231_v54, %v1536_v51  ;;  %v1186_v61 = vadd.f32 %v1185_v57, %v1184_v55  ;;  %v1234_v62 = vadd.f32 %v1233_v58, %v1232_v56 }
 0x100   : > { %955 = vst [vmem:[%s1543_s8] sm:$0xff] %v923_v59  ;;  %971 = vst [vmem:[%s1543_s8 + $0x80] sm:$0xff] %v939_v60  ;;  %v924_v63 = vadd.f32 %v1186_v61, %v1536_v51  ;;  %v940_v0 = vadd.f32 %v1234_v62, %v1536_v51 }
 0x102   : > { %956 = vst [vmem:[%s1543_s8 + $0x8] sm:$0xff] %v924_v63  ;;  %972 = vst [vmem:[%s1543_s8 + $0x88] sm:$0xff] %v940_v0  ;;  %v1187_v1 = vpop.f32.mrb[4].mxu0  ;;  %v1235_v2 = vpop.f32.mrb[4].mxu1 }
 0x103   : > { %v1188_v3 = vpop.f32.mrb[5].mxu0  ;;  %v1236_v4 = vpop.f32.mrb[5].mxu1 }
 0x104   : > { %v1189_v5 = vadd.f32 %v1188_v3, %v1187_v1  ;;  %v1237_v6 = vadd.f32 %v1236_v4, %v1235_v2  ;;  %v1190_v7 = vpop.f32.mrb[6].mxu0  ;;  %v1238_v8 = vpop.f32.mrb[6].mxu1 }
 0x105   : > { %v1191_v9 = vpop.f32.mrb[7].mxu0  ;;  %v1239_v10 = vpop.f32.mrb[7].mxu1 }
 0x106   : > { %v925_v11 = vadd.f32 %v1189_v5, %v1536_v51  ;;  %v941_v12 = vadd.f32 %v1237_v6, %v1536_v51  ;;  %v1192_v13 = vadd.f32 %v1191_v9, %v1190_v7  ;;  %v1240_v14 = vadd.f32 %v1239_v10, %v1238_v8 }
 0x108   : > { %957 = vst [vmem:[%s1543_s8 + $0x10] sm:$0xff] %v925_v11  ;;  %973 = vst [vmem:[%s1543_s8 + $0x90] sm:$0xff] %v941_v12  ;;  %v926_v15 = vadd.f32 %v1192_v13, %v1536_v51  ;;  %v942_v16 = vadd.f32 %v1240_v14, %v1536_v51 }
 0x10a   : > { %958 = vst [vmem:[%s1543_s8 + $0x18] sm:$0xff] %v926_v15  ;;  %974 = vst [vmem:[%s1543_s8 + $0x98] sm:$0xff] %v942_v16  ;;  %v1193_v17 = vpop.f32.mrb[8].mxu0  ;;  %v1241_v18 = vpop.f32.mrb[8].mxu1 }
 0x10b   : > { %v1194_v19 = vpop.f32.mrb[9].mxu0  ;;  %v1242_v20 = vpop.f32.mrb[9].mxu1 }
 0x10c   : > { %v1195_v21 = vadd.f32 %v1194_v19, %v1193_v17  ;;  %v1243_v22 = vadd.f32 %v1242_v20, %v1241_v18  ;;  %v1196_v23 = vpop.f32.mrb[10].mxu0  ;;  %v1244_v24 = vpop.f32.mrb[10].mxu1 }
 0x10d   : > { %v1197_v25 = vpop.f32.mrb[11].mxu0  ;;  %v1245_v26 = vpop.f32.mrb[11].mxu1 }
 0x10e   : > { %v927_v27 = vadd.f32 %v1195_v21, %v1536_v51  ;;  %v943_v28 = vadd.f32 %v1243_v22, %v1536_v51  ;;  %v1198_v29 = vadd.f32 %v1197_v25, %v1196_v23  ;;  %v1246_v30 = vadd.f32 %v1245_v26, %v1244_v24 }
 0x110   : > { %959 = vst [vmem:[%s1543_s8 + $0x20] sm:$0xff] %v927_v27  ;;  %975 = vst [vmem:[%s1543_s8 + $0xa0] sm:$0xff] %v943_v28  ;;  %v928_v31 = vadd.f32 %v1198_v29, %v1536_v51  ;;  %v944_v32 = vadd.f32 %v1246_v30, %v1536_v51 }
 0x112   : > { %960 = vst [vmem:[%s1543_s8 + $0x28] sm:$0xff] %v928_v31  ;;  %976 = vst [vmem:[%s1543_s8 + $0xa8] sm:$0xff] %v944_v32  ;;  %v1199_v33 = vpop.f32.mrb[12].mxu0  ;;  %v1247_v34 = vpop.f32.mrb[12].mxu1 }
 0x113   : > { %v1200_v35 = vpop.f32.mrb[13].mxu0  ;;  %v1248_v36 = vpop.f32.mrb[13].mxu1 }
 0x114   : > { %v1201_v37 = vadd.f32 %v1200_v35, %v1199_v33  ;;  %v1249_v38 = vadd.f32 %v1248_v36, %v1247_v34  ;;  %v1202_v39 = vpop.f32.mrb[14].mxu0  ;;  %v1250_v40 = vpop.f32.mrb[14].mxu1 }
 0x115   : > { %v1203_v41 = vpop.f32.mrb[15].mxu0  ;;  %v1251_v42 = vpop.f32.mrb[15].mxu1 }
 0x116   : > { %v929_v43 = vadd.f32 %v1201_v37, %v1536_v51  ;;  %v945_v44 = vadd.f32 %v1249_v38, %v1536_v51  ;;  %v1204_v45 = vadd.f32 %v1203_v41, %v1202_v39  ;;  %v1252_v46 = vadd.f32 %v1251_v42, %v1250_v40 }
 0x118   : > { %961 = vst [vmem:[%s1543_s8 + $0x30] sm:$0xff] %v929_v43  ;;  %977 = vst [vmem:[%s1543_s8 + $0xb0] sm:$0xff] %v945_v44  ;;  %v930_v47 = vadd.f32 %v1204_v45, %v1536_v51  ;;  %v946_v48 = vadd.f32 %v1252_v46, %v1536_v51 }
 0x11a   : > { %962 = vst [vmem:[%s1543_s8 + $0x38] sm:$0xff] %v930_v47  ;;  %978 = vst [vmem:[%s1543_s8 + $0xb8] sm:$0xff] %v946_v48  ;;  %v1205_v49 = vpop.f32.mrb[16].mxu0  ;;  %v1253_v50 = vpop.f32.mrb[16].mxu1 }
 0x11b   : > { %v1206_v52 = vpop.f32.mrb[17].mxu0  ;;  %v1254_v53 = vpop.f32.mrb[17].mxu1 }
 0x11c   : > { %v1207_v54 = vadd.f32 %v1206_v52, %v1205_v49  ;;  %v1255_v55 = vadd.f32 %v1254_v53, %v1253_v50  ;;  %v1208_v56 = vpop.f32.mrb[18].mxu0  ;;  %v1256_v57 = vpop.f32.mrb[18].mxu1 }
 0x11d   : > { %v1209_v58 = vpop.f32.mrb[19].mxu0  ;;  %v1257_v59 = vpop.f32.mrb[19].mxu1 }
 0x11e   : > { %v931_v60 = vadd.f32 %v1207_v54, %v1536_v51  ;;  %v947_v61 = vadd.f32 %v1255_v55, %v1536_v51  ;;  %v1210_v62 = vadd.f32 %v1209_v58, %v1208_v56  ;;  %v1258_v63 = vadd.f32 %v1257_v59, %v1256_v57 }
 0x120   : > { %963 = vst [vmem:[%s1543_s8 + $0x40] sm:$0xff] %v931_v60  ;;  %979 = vst [vmem:[%s1543_s8 + $0xc0] sm:$0xff] %v947_v61  ;;  %v932_v0 = vadd.f32 %v1210_v62, %v1536_v51  ;;  %v948_v1 = vadd.f32 %v1258_v63, %v1536_v51 }
 0x122   : > { %964 = vst [vmem:[%s1543_s8 + $0x48] sm:$0xff] %v932_v0  ;;  %980 = vst [vmem:[%s1543_s8 + $0xc8] sm:$0xff] %v948_v1  ;;  %v1211_v2 = vpop.f32.mrb[20].mxu0  ;;  %v1259_v3 = vpop.f32.mrb[20].mxu1 }
 0x123   : > { %v1212_v4 = vpop.f32.mrb[21].mxu0  ;;  %v1260_v5 = vpop.f32.mrb[21].mxu1 }
 0x124   : > { %v1213_v6 = vadd.f32 %v1212_v4, %v1211_v2  ;;  %v1261_v7 = vadd.f32 %v1260_v5, %v1259_v3  ;;  %v1214_v8 = vpop.f32.mrb[22].mxu0  ;;  %v1262_v9 = vpop.f32.mrb[22].mxu1 }
 0x125   : > { %v1215_v10 = vpop.f32.mrb[23].mxu0  ;;  %v1263_v11 = vpop.f32.mrb[23].mxu1 }
 0x126   : > { %v933_v12 = vadd.f32 %v1213_v6, %v1536_v51  ;;  %v949_v13 = vadd.f32 %v1261_v7, %v1536_v51  ;;  %v1216_v14 = vadd.f32 %v1215_v10, %v1214_v8  ;;  %v1264_v15 = vadd.f32 %v1263_v11, %v1262_v9 }
 0x128   : > { %965 = vst [vmem:[%s1543_s8 + $0x50] sm:$0xff] %v933_v12  ;;  %981 = vst [vmem:[%s1543_s8 + $0xd0] sm:$0xff] %v949_v13  ;;  %v934_v16 = vadd.f32 %v1216_v14, %v1536_v51  ;;  %v950_v17 = vadd.f32 %v1264_v15, %v1536_v51 }
 0x12a   : > { %966 = vst [vmem:[%s1543_s8 + $0x58] sm:$0xff] %v934_v16  ;;  %982 = vst [vmem:[%s1543_s8 + $0xd8] sm:$0xff] %v950_v17  ;;  %v1217_v18 = vpop.f32.mrb[24].mxu0  ;;  %v1265_v19 = vpop.f32.mrb[24].mxu1 }
 0x12b   : > { %v1218_v20 = vpop.f32.mrb[25].mxu0  ;;  %v1266_v21 = vpop.f32.mrb[25].mxu1 }
 0x12c   : > { %v1219_v22 = vadd.f32 %v1218_v20, %v1217_v18  ;;  %v1267_v23 = vadd.f32 %v1266_v21, %v1265_v19  ;;  %v1220_v24 = vpop.f32.mrb[26].mxu0  ;;  %v1268_v25 = vpop.f32.mrb[26].mxu1 }
 0x12d   : > { %v1221_v26 = vpop.f32.mrb[27].mxu0  ;;  %v1269_v27 = vpop.f32.mrb[27].mxu1 }
 0x12e   : > { %v935_v28 = vadd.f32 %v1219_v22, %v1536_v51  ;;  %v951_v29 = vadd.f32 %v1267_v23, %v1536_v51  ;;  %v1222_v30 = vadd.f32 %v1221_v26, %v1220_v24  ;;  %v1270_v31 = vadd.f32 %v1269_v27, %v1268_v25 }
 0x130   : > { %967 = vst [vmem:[%s1543_s8 + $0x60] sm:$0xff] %v935_v28  ;;  %983 = vst [vmem:[%s1543_s8 + $0xe0] sm:$0xff] %v951_v29  ;;  %v936_v32 = vadd.f32 %v1222_v30, %v1536_v51  ;;  %v952_v33 = vadd.f32 %v1270_v31, %v1536_v51 }
 0x132   : > { %968 = vst [vmem:[%s1543_s8 + $0x68] sm:$0xff] %v936_v32  ;;  %984 = vst [vmem:[%s1543_s8 + $0xe8] sm:$0xff] %v952_v33  ;;  %v1223_v34 = vpop.f32.mrb[28].mxu0  ;;  %v1271_v35 = vpop.f32.mrb[28].mxu1 }
 0x133   : > { %v1224_v36 = vpop.f32.mrb[29].mxu0  ;;  %v1272_v37 = vpop.f32.mrb[29].mxu1 }
 0x134   : > { %v1225_v38 = vadd.f32 %v1224_v36, %v1223_v34  ;;  %v1273_v39 = vadd.f32 %v1272_v37, %v1271_v35  ;;  %v1226_v40 = vpop.f32.mrb[30].mxu0  ;;  %v1274_v41 = vpop.f32.mrb[30].mxu1 }
 0x135   : > { %v1227_v42 = vpop.f32.mrb[31].mxu0  ;;  %v1275_v43 = vpop.f32.mrb[31].mxu1 }
 0x136   : > { %v937_v44 = vadd.f32 %v1225_v38, %v1536_v51  ;;  %v953_v45 = vadd.f32 %v1273_v39, %v1536_v51  ;;  %v1228_v46 = vadd.f32 %v1227_v42, %v1226_v40  ;;  %v1276_v47 = vadd.f32 %v1275_v43, %v1274_v41 }
 0x138   : > { %969 = vst [vmem:[%s1543_s8 + $0x70] sm:$0xff] %v937_v44  ;;  %985 = vst [vmem:[%s1543_s8 + $0xf0] sm:$0xff] %v953_v45  ;;  %v938_v48 = vadd.f32 %v1228_v46, %v1536_v51  ;;  %v954_v49 = vadd.f32 %v1276_v47, %v1536_v51 }
 0x13a   : > { %970 = vst [vmem:[%s1543_s8 + $0x78] sm:$0xff] %v938_v48  ;;  %986 = vst [vmem:[%s1543_s8 + $0xf8] sm:$0xff] %v954_v49 }
 0x13b PF: > { %s13_s14 = sadd.s32 1, %s1403_s14   ;;  %s1622_s12 = smov %s1399_s13 }
 0x13c   : > { %p10_p5 = scmp.ge.s32.totalorder %s13_s14, 4   ;;  %s1623_s13 = smov %s1625_s15 }
 0x13e   :  { %12 = sbr.rel (!%p10_p5) target bundleno = 2 (0x2), region = 76 }

// kernel: _lambda_.12
= control target key start
LH: loop header
LB: loop body
LE: loop exit
PB: predicated region body
PF: predicated region fallthrough
CT: control target
= control target key end

     0   :  { %s778_s24 = smov 0   ;;  %s939_s0 = inlined_call_operand.vmem [shape: f32[2,9,9,64], index: 0, kind: input, shape index: {}]   ;;  %s940_s1 = inlined_call_operand.vmem [shape: f32[2,9,9,64], index: 1, kind: input, shape index: {}]   ;;  %s941_s2 = inlined_call_operand.vmem [shape: f32[2,9,9,64], index: 2, kind: input, shape index: {}]   ;;  %s942_s3 = inlined_call_operand.vmem [shape: f32[2,9,9,64], index: 3, kind: input, shape index: {}]   ;;  %s943_s4 = inlined_call_operand.vmem [shape: f32[1,1,1,64], index: 4, kind: input, shape index: {}]   ;;  %s944_s5 = inlined_call_operand.vmem [shape: f32[1,1,1,64], index: 5, kind: input, shape index: {}]   ;;  %s945_s6 = inlined_call_operand.vmem [shape: f32[2,8,8,64], index: 6, kind: output, shape index: {0}]   ;;  %s946_s7 = inlined_call_operand.vmem [shape: bf16[2,8,8,64], index: 7, kind: output, shape index: {1}]  }
   0x1 LB: > { %s678_s25 = sadd.s32 4294967295, %s736_s24   ;;  %p682_p0 = scmp.ge.s32.totalorder %s736_s24, 1  ;;  %s736_s24 = sphi %s778_s24, %s18_s24  }
   0x2   : > { %p270_p1 = scmp.lt.s32.totalorder %s736_s24, 3 }
   0x4   : > { %p271_p2 = pnand %p682_p0, %p270_p1 }
   0x5   : > { %p322_p3 = scmp.lt.s32.totalorder (!%p271_p2), %s678_s25, 1  ;;  %vm490_vm0 = vcmask (!%p271_p2), 523264   ;;  %v854_v58 = vld [vmem:[%s943_s4] ss:$0 sm:$0xff] (!%p271_p2)  ;;  %vm545_vm1 = vcmask (!%p271_p2), 519168  }
   0x6   : > { %274 = sbr.rel (%p271_p2) target bundleno = 59 (0x3b), region = 44 }
   0xd   : > { %s948_s25 = smov (!%p322_p3, %s678_s25), 1 }
   0xe   : > { %s789_s26 = smul.u32 144, %s948_s25  ;;  %s719_s16 = sshll.u32 %s948_s25, 6 }
   0xf   : > { %s849_s19 = scalar_lea.vmem %s945_s6, %s719_s16 }
  0x10   : > { %s795_s29 = scalar_lea.vmem %s939_s0, %s789_s26  ;;  %s804_s9 = scalar_lea.vmem %s940_s1, %s789_s26 }
  0x11   : > { %v352_v0 = vld [vmem:[%s795_s29] sm:$0xff]  ;;  %v691_v2 = vld [vmem:[%s795_s29 + $0x10] sm:$0xff]  ;;  %s814_s12 = scalar_lea.vmem %s941_s2, %s789_s26  ;;  %s828_s15 = scalar_lea.vmem %s942_s3, %s789_s26 }
  0x12   : > { %v360_v1 = vld [vmem:[%s795_s29 + $0x1] sm:$0xff]  ;;  %v699_v3 = vld [vmem:[%s795_s29 + $0x11] sm:$0xff]  ;;  %s720_s26 = sshll.u32 %s948_s25, 5 }
  0x13   : > { %v426_v4 = vmax.f32 %v352_v0, %v360_v1  ;;  %v427_v5 = vmax.f32 %v691_v2, %v699_v3  ;;  %v692_v7 = vld [vmem:[%s795_s29 + $0x20] sm:$0xff]  ;;  %v707_v12 = vld [vmem:[%s804_s9 + $0x10] sm:$0xff]  ;;  %s897_s28 = scalar_lea.vmem %s946_s7, %s720_s26 }
  0x14   : > { %v700_v8 = vld [vmem:[%s795_s29 + $0x21] sm:$0xff]  ;;  %v693_v14 = vld [vmem:[%s795_s29 + $0x30] sm:$0xff] }
  0x15   : > { %v434_v6 = vmax.f32 %v426_v4, %v691_v2  ;;  %v385_v9 = vld [vmem:[%s804_s9] sm:$0xff]  ;;  %v435_v10 = vmax.f32 %v427_v5, %v692_v7  ;;  %v428_v11 = vmax.f32 %v692_v7, %v700_v8  ;;  %v701_v15 = vld [vmem:[%s795_s29 + $0x31] sm:$0xff] }
  0x16   : > { %v429_v18 = vmax.f32 %v693_v14, %v701_v15  ;;  %v708_v20 = vld [vmem:[%s804_s9 + $0x20] sm:$0xff]  ;;  %v403_v24 = vld [vmem:[%s814_s12 + $0x10] sm:$0xff] }
  0x17   : > { %v442_v13 = vmax.f32 %v434_v6, %v699_v3  ;;  %v443_v16 = vmax.f32 %v435_v10, %v700_v8  ;;  %v436_v17 = vmax.f32 %v428_v11, %v693_v14  ;;  %v694_v21 = vld [vmem:[%s795_s29 + $0x40] sm:$0xff]  ;;  %v709_v30 = vld [vmem:[%s804_s9 + $0x30] sm:$0xff] }
  0x18   : > { %v702_v22 = vld [vmem:[%s795_s29 + $0x41] sm:$0xff]  ;;  %v437_v27 = vmax.f32 %v429_v18, %v694_v21  ;;  %v695_v31 = vld [vmem:[%s795_s29 + $0x50] sm:$0xff]  ;;  %v866_v14 = vld [vmem:[%s944_s5] ss:$0 sm:$0xff] }
  0x19   : > { %v450_v19 = vmax.f32 %v442_v13, %v385_v9  ;;  %v402_v23 = vld [vmem:[%s814_s12] sm:$0xff]  ;;  %v451_v25 = vmax.f32 %v443_v16, %v707_v12  ;;  %v444_v26 = vmax.f32 %v436_v17, %v701_v15  ;;  %v430_v28 = vmax.f32 %v694_v21, %v702_v22  ;;  %v703_v32 = vld [vmem:[%s795_s29 + $0x51] sm:$0xff] }
  0x1a   : > { %v410_v33 = vld [vmem:[%s814_s12 + $0x1] sm:$0xff]  ;;  %v411_v34 = vld [vmem:[%s814_s12 + $0x11] sm:$0xff]  ;;  %v445_v38 = vmax.f32 %v437_v27, %v702_v22  ;;  %v431_v44 = vmax.f32 %v695_v31, %v703_v32 }
  0x1b   : > { %v458_v29 = vmax.f32 %v450_v19, %v707_v12  ;;  %v459_v35 = vmax.f32 %v451_v25, %v708_v20  ;;  %v404_v36 = vld [vmem:[%s814_s12 + $0x20] sm:$0xff]  ;;  %v452_v37 = vmax.f32 %v444_v26, %v708_v20  ;;  %v438_v39 = vmax.f32 %v430_v28, %v695_v31  ;;  %v419_v46 = vld [vmem:[%s828_s15 + $0x10] sm:$0xff] }
  0x1c   : > { %v710_v41 = vld [vmem:[%s804_s9 + $0x40] sm:$0xff]  ;;  %v453_v50 = vmax.f32 %v445_v38, %v709_v30  ;;  %v405_v53 = vld [vmem:[%s814_s12 + $0x30] sm:$0xff] }
  0x1d   : > { %v466_v40 = vmax.f32 %v458_v29, %v402_v23  ;;  %v696_v42 = vld [vmem:[%s795_s29 + $0x60] sm:$0xff]  ;;  %v467_v47 = vmax.f32 %v459_v35, %v403_v24  ;;  %v460_v49 = vmax.f32 %v452_v37, %v709_v30  ;;  %v446_v51 = vmax.f32 %v438_v39, %v703_v32  ;;  %v697_v55 = vld [vmem:[%s795_s29 + $0x70] sm:$0xff] }
  0x1e   : > { %v704_v43 = vld [vmem:[%s795_s29 + $0x61] sm:$0xff]  ;;  %v439_v54 = vmax.f32 %v431_v44, %v696_v42  ;;  %v705_v56 = vld [vmem:[%s795_s29 + $0x71] sm:$0xff]  ;;  %v461_v62 = vmax.f32 %v453_v50, %v710_v41 }
  0x1f   : > { %v418_v45 = vld [vmem:[%s828_s15] sm:$0xff]  ;;  %v474_v52 = vmax.f32 %v466_v40, %v410_v33  ;;  %v432_v57 = vmax.f32 %v696_v42, %v704_v43  ;;  %v475_v59 = vmax.f32 %v467_v47, %v411_v34  ;;  %v468_v61 = vmax.f32 %v460_v49, %v404_v36  ;;  %v711_v63 = vld [vmem:[%s804_s9 + $0x50] sm:$0xff] }
  0x20   : > { %v412_v48 = vld [vmem:[%s814_s12 + $0x21] sm:$0xff]  ;;  %v454_v0 = vmax.f32 %v446_v51, %v710_v41  ;;  %v413_v2 = vld [vmem:[%s814_s12 + $0x31] sm:$0xff]  ;;  %v447_v4 = vmax.f32 %v439_v54, %v704_v43  ;;  %v433_v7 = vmax.f32 %v697_v55, %v705_v56  ;;  %v469_v10 = vmax.f32 %v461_v62, %v405_v53 }
  0x21   : > { %v420_v60 = vld [vmem:[%s828_s15 + $0x20] sm:$0xff]  ;;  %v482_v1 = vmax.f32 %v474_v52, %v418_v45  ;;  %v440_v5 = vmax.f32 %v432_v57, %v697_v55  ;;  %v483_v8 = vmax.f32 %v475_v59, %v419_v46  ;;  %v476_v9 = vmax.f32 %v468_v61, %v412_v48  ;;  %v421_v16 = vld [vmem:[%s828_s15 + $0x30] sm:$0xff] }
  0x22   : > { %v406_v3 = vld [vmem:[%s814_s12 + $0x40] sm:$0xff]  ;;  %v462_v11 = vmax.f32 %v454_v0, %v711_v63  ;;  %v455_v18 = vmax.f32 %v447_v4, %v711_v63  ;;  %v477_v23 = vmax.f32 %v469_v10, %v413_v2  ;;  %v407_v25 = vld [vmem:[%s814_s12 + $0x50] sm:$0xff] }
  0x23   : > { %v698_v6 = vld [vmem:[%s795_s29 + $0x80] sm:$0xff]  ;;  %491 = vst.msk [vmem:[%s849_s19] sm:$0xff] %vm490_vm0, %v482_v1  ;;  %v506_v15 = vmul.f32 %v854_v58, %v482_v1  ;;  %v448_v19 = vmax.f32 %v440_v5, %v705_v56  ;;  %492 = vst.msk [vmem:[%s849_s19 + $0x8] sm:$0xff] %vm490_vm0, %v483_v8  ;;  %v507_v21 = vmul.f32 %v854_v58, %v483_v8  ;;  %v713_v26 = vld [vmem:[%s804_s9 + $0x70] sm:$0xff] }
  0x24   : > { %v712_v12 = vld [vmem:[%s804_s9 + $0x60] sm:$0xff]  ;;  %v441_v20 = vmax.f32 %v433_v7, %v698_v6  ;;  %v484_v22 = vmax.f32 %v476_v9, %v420_v60  ;;  %v470_v24 = vmax.f32 %v462_v11, %v406_v3  ;;  %v485_v33 = vmax.f32 %v477_v23, %v421_v16  ;;  %v415_v35 = vld [vmem:[%s814_s12 + $0x51] sm:$0xff] }
  0x25   : > { %v706_v13 = vld [vmem:[%s795_s29 + $0x81] sm:$0xff]  ;;  %v463_v28 = vmax.f32 %v455_v18, %v712_v12  ;;  %v456_v29 = vmax.f32 %v448_v19, %v712_v12  ;;  %v521_v31 = vadd.f32 %v866_v14, %v506_v15  ;;  %v522_v38 = vadd.f32 %v866_v14, %v507_v21  ;;  %v423_v45 = vld [vmem:[%s828_s15 + $0x50] sm:$0xff] }
  0x26   : > { %v414_v17 = vld [vmem:[%s814_s12 + $0x41] sm:$0xff]  ;;  %v449_v30 = vmax.f32 %v441_v20, %v706_v13  ;;  %493 = vst.msk [vmem:[%s849_s19 + $0x10] sm:$0xff] %vm490_vm0, %v484_v22  ;;  %v508_v32 = vmul.f32 %v854_v58, %v484_v22  ;;  %494 = vst.msk [vmem:[%s849_s19 + $0x18] sm:$0xff] %vm490_vm0, %v485_v33  ;;  %v509_v43 = vmul.f32 %v854_v58, %v485_v33  ;;  %v409_v47 = vld [vmem:[%s814_s12 + $0x70] sm:$0xff] }
  0x27   : > { %v422_v27 = vld [vmem:[%s828_s15 + $0x40] sm:$0xff]  ;;  %v478_v34 = vmax.f32 %v470_v24, %v414_v17  ;;  %v471_v39 = vmax.f32 %v463_v28, %v407_v25  ;;  %v464_v40 = vmax.f32 %v456_v29, %v713_v26  ;;  %v529_v42 = vmax.f32 %v521_v31, 0.0  ;;  %v417_v56 = vld [vmem:[%s814_s12 + $0x71] sm:$0xff] }
  0x28   : > { %v408_v36 = vld [vmem:[%s814_s12 + $0x60] sm:$0xff]  ;;  %v457_v41 = vmax.f32 %v449_v30, %v713_v26  ;;  %v530_v48 = vmax.f32 %v522_v38, 0.0  ;;  %v523_v49 = vadd.f32 %v866_v14, %v508_v32  ;;  %v524_v60 = vadd.f32 %v866_v14, %v509_v43  ;;  %v425_v0 = vld [vmem:[%s828_s15 + $0x70] sm:$0xff] }
  0x29   : > { %v714_v37 = vld [vmem:[%s804_s9 + $0x80] sm:$0xff]  ;;  %v486_v44 = vmax.f32 %v478_v34, %v422_v27  ;;  %v479_v50 = vmax.f32 %v471_v39, %v415_v35  ;;  %v472_v51 = vmax.f32 %v464_v40, %v408_v36  ;;  %v537_v53 = vpack.c.bf16 %v529_v42, %v529_v42 }
  0x2a   : > { %v416_v46 = vld [vmem:[%s814_s12 + $0x61] sm:$0xff]  ;;  %v465_v52 = vmax.f32 %v457_v41, %v714_v37  ;;  %v538_v57 = vpack.c.bf16 %v530_v48, %v530_v48  ;;  %v531_v59 = vmax.f32 %v523_v49, 0.0  ;;  %v532_v2 = vmax.f32 %v524_v60, 0.0 }
  0x2b   : > { %495 = vst.msk [vmem:[%s849_s19 + $0x20] sm:$0xff] %vm490_vm0, %v486_v44  ;;  %v510_v54 = vmul.f32 %v854_v58, %v486_v44  ;;  %v424_v55 = vld [vmem:[%s828_s15 + $0x60] sm:$0xff]  ;;  %v487_v61 = vmax.f32 %v479_v50, %v423_v45  ;;  %v480_v62 = vmax.f32 %v472_v51, %v416_v46 }
  0x2c   : > { %v473_v63 = vmax.f32 %v465_v52, %v409_v47  ;;  %546 = vst.msk [vmem:[%s897_s28] sm:$0xf] %vm545_vm1, %v537_v53  ;;  %547 = vst.msk [vmem:[%s897_s28 + $0x4] sm:$0xf] %vm545_vm1, %v538_v57  ;;  %v539_v1 = vpack.c.bf16 %v531_v59, %v531_v59  ;;  %v540_v7 = vpack.c.bf16 %v532_v2, %v532_v2 }
  0x2d   : > { %v525_v3 = vadd.f32 %v866_v14, %v510_v54  ;;  %496 = vst.msk [vmem:[%s849_s19 + $0x28] sm:$0xff] %vm490_vm0, %v487_v61  ;;  %v511_v4 = vmul.f32 %v854_v58, %v487_v61  ;;  %v488_v5 = vmax.f32 %v480_v62, %v424_v55 }
  0x2e   : > { %v481_v6 = vmax.f32 %v473_v63, %v417_v56  ;;  %548 = vst.msk [vmem:[%s897_s28 + $0x8] sm:$0xf] %vm545_vm1, %v539_v1  ;;  %549 = vst.msk [vmem:[%s897_s28 + $0xc] sm:$0xf] %vm545_vm1, %v540_v7 }
  0x2f   : > { %v533_v8 = vmax.f32 %v525_v3, 0.0  ;;  %497 = vst.msk [vmem:[%s849_s19 + $0x30] sm:$0xff] %vm490_vm0, %v488_v5  ;;  %v512_v9 = vmul.f32 %v854_v58, %v488_v5  ;;  %v526_v11 = vadd.f32 %v866_v14, %v511_v4 }
  0x30   : > { %v489_v10 = vmax.f32 %v481_v6, %v425_v0 }
  0x31   : > { %v541_v12 = vpack.c.bf16 %v533_v8, %v533_v8  ;;  %v534_v15 = vmax.f32 %v526_v11, 0.0  ;;  %v527_v16 = vadd.f32 %v866_v14, %v512_v9 }
  0x32   : > { %498 = vst.msk [vmem:[%s849_s19 + $0x38] sm:$0xff] %vm490_vm0, %v489_v10  ;;  %v513_v13 = vmul.f32 %v854_v58, %v489_v10 }
  0x33   : > { %550 = vst.msk [vmem:[%s897_s28 + $0x10] sm:$0xf] %vm545_vm1, %v541_v12  ;;  %v542_v17 = vpack.c.bf16 %v534_v15, %v534_v15  ;;  %v535_v18 = vmax.f32 %v527_v16, 0.0 }
  0x34   : > { %v528_v19 = vadd.f32 %v866_v14, %v513_v13 }
  0x35   : > { %551 = vst.msk [vmem:[%s897_s28 + $0x14] sm:$0xf] %vm545_vm1, %v542_v17  ;;  %v543_v20 = vpack.c.bf16 %v535_v18, %v535_v18 }
  0x36   : > { %v536_v21 = vmax.f32 %v528_v19, 0.0 }
  0x37   : > { %552 = vst.msk [vmem:[%s897_s28 + $0x18] sm:$0xf] %vm545_vm1, %v543_v20 }
  0x38   : > { %v544_v22 = vpack.c.bf16 %v536_v21, %v536_v21 }
  0x3a   : > { %553 = vst.msk [vmem:[%s897_s28 + $0x1c] sm:$0xf] %vm545_vm1, %v544_v22 }
  0x3b PF: > { %s18_s24 = sadd.s32 1, %s736_s24  }
  0x3c   : > { %p15_p4 = scmp.ge.s32.totalorder %s18_s24, 4  }
  0x3e   :  { %17 = sbr.rel (!%p15_p4) target bundleno = 1 (0x1), region = 97 }

// kernel: _lambda_.13
= control target key start
LH: loop header
LB: loop body
LE: loop exit
PB: predicated region body
PF: predicated region fallthrough
CT: control target
= control target key end

     0   :  { %s1742_s15 = smov 0   ;;  %s1744_s16 = smov 0   ;;  %s1995_s0 = inlined_call_operand.vmem [shape: bf16[128,768], index: 0, kind: input, shape index: {}]   ;;  %s1996_s1 = inlined_call_operand.vmem [shape: bf16[768,128], index: 1, kind: input, shape index: {}]   ;;  %s1997_s2 = inlined_call_operand.vmem [shape: f32[1,128], index: 2, kind: input, shape index: {}]   ;;  %s1998_s3 = inlined_call_operand.vmem [shape: f32[1,128], index: 3, kind: input, shape index: {}]   ;;  %s1999_s4 = inlined_call_operand.vmem [shape: bf16[128,128], index: 4, kind: output, shape index: {}]  }
   0x1   :  { %s1746_s17 = smov 0   ;;  %s1748_s18 = smov 0  }
   0x2   :  { %s1750_s19 = smov 0  }
   0x3 LB: > { %s26_s20 = sadd.s32 1, %s1710_s18  ;;  %p49_p1 = scmp.ne.s32.totalorder %s1702_s16, %s1698_s15  ;;  %s1714_s19 = sphi %s1750_s19, %s14_s19   ;;  %s1710_s18 = sphi %s1748_s18, %s2003_s18   ;;  %s1706_s17 = sphi %s1746_s17, %s2002_s17   ;;  %s1702_s16 = sphi %s1744_s16, %s2001_s16   ;;  %s1698_s15 = sphi %s1742_s15, %s2000_s15  }
   0x4   : > { %p27_p0 = scmp.ge.s32.totalorder %s26_s20, 2  ;;  %p50_p2 = scmp.eq.s32.totalorder %s1714_s19, 0 }
   0x5   : > { %s42_s22 = sadd.s32 1, %s1702_s16  ;;  %p1293_p5 = scmp.ge.s32.totalorder %s1714_s19, 2 }
   0x6   : > { %s2005_s20 = smov (%p27_p0, %s26_s20), 0  ;;  %p51_p3 = por %p50_p2, %p49_p1 }
   0x7   : > { %s38_s21 = ssub.s32 %s1710_s18, %s2005_s20  ;;  %195 = sbr.rel (%p1293_p5) target bundleno = 37 (0x25), region = 24 }
   0x8   : > { %p40_p4 = scmp.eq.s32.totalorder %s38_s21, 0 }
   0xa   : > { %s1777_s23 = scalar_select %p40_p4, %s1702_s16, %s42_s22  }
   0xe   : > { %198 = sbr.rel (!%p51_p3) target bundleno = 37 (0x25), region = 28  ;;  %s200_s24 = sand.u32 (%p51_p3), 1, %s1702_s16  }
   0xf   : > { %s1401_s25 = smul.u32 (%p51_p3), 12, %s1710_s18 }
  0x10   : > { %s1577_s26 = smul.u32 (%p51_p3), 192, %s200_s24 }
  0x11   : > { %s1785_s29 = scalar_lea.vmem (%p51_p3), %s1995_s0, %s1401_s25 }
  0x12   : > { %v223_v0 = vld [vmem:[%s1785_s29] sm:$0xff] (%p51_p3)  ;;  %v225_v1 = vld [vmem:[%s1785_s29 + $0x18] sm:$0xff] (%p51_p3)  ;;  %v227_v2 = vld [vmem:[%s1785_s29 + $0x30] sm:$0xff] (%p51_p3)  ;;  %s1790_s30 = scalar_lea.vmem (%p51_p3), [#allocation3], %s1577_s26 }
  0x13   : > { %224 = vst [vmem:[%s1790_s30] sm:$0xff] (%p51_p3), %v223_v0  ;;  %226 = vst [vmem:[%s1790_s30 + $0xc] sm:$0xff] (%p51_p3), %v225_v1  ;;  %v229_v3 = vld [vmem:[%s1785_s29 + $0x48] sm:$0xff] (%p51_p3)  ;;  %v231_v4 = vld [vmem:[%s1785_s29 + $0x60] sm:$0xff] (%p51_p3) }
  0x14   : > { %228 = vst [vmem:[%s1790_s30 + $0x18] sm:$0xff] (%p51_p3), %v227_v2  ;;  %v233_v5 = vld [vmem:[%s1785_s29 + $0x78] sm:$0xff] (%p51_p3)  ;;  %230 = vst [vmem:[%s1790_s30 + $0x24] sm:$0xff] (%p51_p3), %v229_v3  ;;  %v235_v6 = vld [vmem:[%s1785_s29 + $0x90] sm:$0xff] (%p51_p3) }
  0x15   : > { %232 = vst [vmem:[%s1790_s30 + $0x30] sm:$0xff] %v231_v4  ;;  %234 = vst [vmem:[%s1790_s30 + $0x3c] sm:$0xff] %v233_v5  ;;  %v237_v7 = vld [vmem:[%s1785_s29 + $0xa8] sm:$0xff]  ;;  %v239_v8 = vld [vmem:[%s1785_s29 + $0xc0] sm:$0xff] }
  0x16   : > { %236 = vst [vmem:[%s1790_s30 + $0x48] sm:$0xff] %v235_v6  ;;  %238 = vst [vmem:[%s1790_s30 + $0x54] sm:$0xff] %v237_v7  ;;  %v241_v9 = vld [vmem:[%s1785_s29 + $0xd8] sm:$0xff]  ;;  %v243_v10 = vld [vmem:[%s1785_s29 + $0xf0] sm:$0xff] }
  0x17   : > { %240 = vst [vmem:[%s1790_s30 + $0x60] sm:$0xff] %v239_v8  ;;  %v245_v11 = vld [vmem:[%s1785_s29 + $0x108] sm:$0xff]  ;;  %242 = vst [vmem:[%s1790_s30 + $0x6c] sm:$0xff] %v241_v9  ;;  %v247_v12 = vld [vmem:[%s1785_s29 + $0x120] sm:$0xff] }
  0x18   : > { %244 = vst [vmem:[%s1790_s30 + $0x78] sm:$0xff] %v243_v10  ;;  %246 = vst [vmem:[%s1790_s30 + $0x84] sm:$0xff] %v245_v11  ;;  %v249_v13 = vld [vmem:[%s1785_s29 + $0x138] sm:$0xff]  ;;  %v251_v14 = vld [vmem:[%s1785_s29 + $0x150] sm:$0xff] }
  0x19   : > { %248 = vst [vmem:[%s1790_s30 + $0x90] sm:$0xff] %v247_v12  ;;  %250 = vst [vmem:[%s1790_s30 + $0x9c] sm:$0xff] %v249_v13  ;;  %v253_v15 = vld [vmem:[%s1785_s29 + $0x168] sm:$0xff]  ;;  %v1297_v17 = vld [vmem:[%s1785_s29 + $0x20] sm:$0xf] }
  0x1a   : > { %252 = vst [vmem:[%s1790_s30 + $0xa8] sm:$0xff] %v251_v14  ;;  %v1295_v16 = vld [vmem:[%s1785_s29 + $0x8] sm:$0xf]  ;;  %254 = vst [vmem:[%s1790_s30 + $0xb4] sm:$0xff] %v253_v15  ;;  %v1299_v18 = vld [vmem:[%s1785_s29 + $0x38] sm:$0xf] }
  0x1b   : > { %1296 = vst [vmem:[%s1790_s30 + $0x8] sm:$0xf] %v1295_v16  ;;  %1298 = vst [vmem:[%s1790_s30 + $0x14] sm:$0xf] %v1297_v17  ;;  %v1301_v19 = vld [vmem:[%s1785_s29 + $0x50] sm:$0xf] }
  0x1c   : > { %v1303_v20 = vld [vmem:[%s1785_s29 + $0x68] sm:$0xf]  ;;  %1300 = vst [vmem:[%s1790_s30 + $0x20] sm:$0xf] %v1299_v18  ;;  %1302 = vst [vmem:[%s1790_s30 + $0x2c] sm:$0xf] %v1301_v19 }
  0x1d   : > { %1304 = vst [vmem:[%s1790_s30 + $0x38] sm:$0xf] %v1303_v20  ;;  %v1305_v21 = vld [vmem:[%s1785_s29 + $0x80] sm:$0xf]  ;;  %v1307_v22 = vld [vmem:[%s1785_s29 + $0x98] sm:$0xf] }
  0x1e   : > { %v1309_v23 = vld [vmem:[%s1785_s29 + $0xb0] sm:$0xf]  ;;  %1306 = vst [vmem:[%s1790_s30 + $0x44] sm:$0xf] %v1305_v21  ;;  %1308 = vst [vmem:[%s1790_s30 + $0x50] sm:$0xf] %v1307_v22 }
  0x1f   : > { %1310 = vst [vmem:[%s1790_s30 + $0x5c] sm:$0xf] %v1309_v23  ;;  %v1311_v24 = vld [vmem:[%s1785_s29 + $0xc8] sm:$0xf]  ;;  %v1313_v25 = vld [vmem:[%s1785_s29 + $0xe0] sm:$0xf] }
  0x20   : > { %v1315_v26 = vld [vmem:[%s1785_s29 + $0xf8] sm:$0xf]  ;;  %1312 = vst [vmem:[%s1790_s30 + $0x68] sm:$0xf] %v1311_v24  ;;  %1314 = vst [vmem:[%s1790_s30 + $0x74] sm:$0xf] %v1313_v25 }
  0x21   : > { %1316 = vst [vmem:[%s1790_s30 + $0x80] sm:$0xf] %v1315_v26  ;;  %v1317_v27 = vld [vmem:[%s1785_s29 + $0x110] sm:$0xf]  ;;  %v1319_v28 = vld [vmem:[%s1785_s29 + $0x128] sm:$0xf] }
  0x22   : > { %v1321_v29 = vld [vmem:[%s1785_s29 + $0x140] sm:$0xf]  ;;  %1318 = vst [vmem:[%s1790_s30 + $0x8c] sm:$0xf] %v1317_v27  ;;  %1320 = vst [vmem:[%s1790_s30 + $0x98] sm:$0xf] %v1319_v28 }
  0x23   : > { %1322 = vst [vmem:[%s1790_s30 + $0xa4] sm:$0xf] %v1321_v29  ;;  %v1323_v30 = vld [vmem:[%s1785_s29 + $0x158] sm:$0xf]  ;;  %v1325_v31 = vld [vmem:[%s1785_s29 + $0x170] sm:$0xf] }
  0x24   : > { %1324 = vst [vmem:[%s1790_s30 + $0xb0] sm:$0xf] %v1323_v30  ;;  %1326 = vst [vmem:[%s1790_s30 + $0xbc] sm:$0xf] %v1325_v31 }
  0x25 PF: > { %p1327_p6 = scmp.ge.s32.totalorder %s1714_s19, 1  ;;  %p310_p7 = scmp.lt.s32.totalorder %s1714_s19, 3 }
  0x27   : > { %p311_p8 = pnand %p1327_p6, %p310_p7 }
  0x28   : > { %s317_s5 = sand.u32 (!%p311_p8), 1, %s1698_s15   ;;  %s361_s6 = smul.u32 (!%p311_p8), 48, %s1706_s17 }
  0x29   : > { %314 = sbr.rel (%p311_p8) target bundleno = 385 (0x181), region = 58  ;;  %p1329_p10 = scmp.ne.s32.totalorder (!%p311_p8), %s1706_s17, 0 }
  0x2a   : > { %s1578_s7 = smul.u32 (!%p311_p8), 192, %s317_s5  ;;  %p362_p9 = scmp.lt.s32.totalorder (!%p311_p8), %s361_s6, 95 }
  0x2c   : > { %s1862_s12 = scalar_lea.vmem (!%p311_p8), [#allocation3], %s1578_s7 }
  0x30   : > { %s2007_s6 = smov (!%p362_p9, %s361_s6), 95  ;;  %389 = sbr.rel (%p1329_p10) target bundleno = 58 (0x3a), region = 66 }
  0x31   : > { %s1328_s8 = sshll.u32 %s2007_s6, 2  ;;  %v1716_v32 = vmov (!%p1329_p10), 0.0  }
  0x32   : > { %s1860_s11 = scalar_lea.vmem %s1996_s1, %s1328_s8  ;;  %390 = vst [vmem:[#allocation2] sm:$0xff] (!%p1329_p10), %v1716_v32  ;;  %391 = vst [vmem:[#allocation2 + $0x8] sm:$0xff] (!%p1329_p10), %v1716_v32 }
  0x33   : > { %392 = vst [vmem:[#allocation2 + $0x10] sm:$0xff] (!%p1329_p10), %v1716_v32  ;;  %393 = vst [vmem:[#allocation2 + $0x18] sm:$0xff] (!%p1329_p10), %v1716_v32 }
  0x34   : > { %394 = vst [vmem:[#allocation2 + $0x20] sm:$0xff] (!%p1329_p10), %v1716_v32  ;;  %395 = vst [vmem:[#allocation2 + $0x28] sm:$0xff] (!%p1329_p10), %v1716_v32 }
  0x35   : > { %396 = vst [vmem:[#allocation2 + $0x30] sm:$0xff] (!%p1329_p10), %v1716_v32  ;;  %397 = vst [vmem:[#allocation2 + $0x38] sm:$0xff] (!%p1329_p10), %v1716_v32 }
  0x36   : > { %398 = vst [vmem:[#allocation2 + $0x40] sm:$0xff] (!%p1329_p10), %v1716_v32  ;;  %399 = vst [vmem:[#allocation2 + $0x48] sm:$0xff] (!%p1329_p10), %v1716_v32 }
  0x37   : > { %400 = vst [vmem:[#allocation2 + $0x50] sm:$0xff] %v1716_v32  ;;  %401 = vst [vmem:[#allocation2 + $0x58] sm:$0xff] %v1716_v32 }
  0x38   : > { %402 = vst [vmem:[#allocation2 + $0x60] sm:$0xff] %v1716_v32  ;;  %403 = vst [vmem:[#allocation2 + $0x68] sm:$0xff] %v1716_v32 }
  0x39   : > { %404 = vst [vmem:[#allocation2 + $0x70] sm:$0xff] %v1716_v32  ;;  %405 = vst [vmem:[#allocation2 + $0x78] sm:$0xff] %v1716_v32 }
  0x3a PF: > { %v1620_v33 = vld [vmem:[%s1860_s11 + $0x40] sm:$0xff]   ;;  %v1623_v36 = vld [vmem:[%s1860_s11 + $0x48] sm:$0xff]   ;;  %v1626_v39 = vld [vmem:[%s1860_s11 + $0x50] sm:$0xff]   ;;  %p1378_p11 = scmp.ne.s32.totalorder %s1706_s17, 1 }
  0x3b   : > { %v1621_v34 = vld [vmem:[%s1860_s11] sm:$0xff]   ;;  %1465 = vmatprep.subr.bf16.mxu0 %v1620_v33  ;;  %v1624_v37 = vld [vmem:[%s1860_s11 + $0x8] sm:$0xff]   ;;  %v1627_v40 = vld [vmem:[%s1860_s11 + $0x10] sm:$0xff]  }
  0x3c   : > { %v1622_v35 = vld [vmem:[%s1860_s11 + $0x80] sm:$0xff]   ;;  %1466 = vmatpush3.bf16.msra.mxu0 %v1621_v34  ;;  %v1625_v38 = vld [vmem:[%s1860_s11 + $0x88] sm:$0xff]   ;;  %v1628_v41 = vld [vmem:[%s1860_s11 + $0x90] sm:$0xff]  }
  0x3d   : > { %1545 = vmatprep.subr.bf16.mxu1 %v1622_v35  ;;  %1467 = vmatprep.subr.bf16.mxu0 %v1623_v36  ;;  %v1629_v42 = vld [vmem:[%s1860_s11 + $0x58] sm:$0xff]   ;;  %v1632_v45 = vld [vmem:[%s1860_s11 + $0x60] sm:$0xff]   ;;  %v1635_v48 = vld [vmem:[%s1860_s11 + $0x68] sm:$0xff]  }
  0x3e   : > { %1546 = vmatpush3.bf16.msra.mxu1 %v1622_v35  ;;  %v1630_v43 = vld [vmem:[%s1860_s11 + $0x18] sm:$0xff]   ;;  %v1634_v46 = vld [vmem:[%s1860_s11 + $0xa0] sm:$0xff]   ;;  %v1637_v49 = vld [vmem:[%s1860_s11 + $0xa8] sm:$0xff]  }
  0x3f   : > { %1547 = vmatprep.subr.bf16.mxu1 %v1625_v38  ;;  %v1631_v44 = vld [vmem:[%s1860_s11 + $0x98] sm:$0xff]   ;;  %v1633_v47 = vld [vmem:[%s1860_s11 + $0x20] sm:$0xff]   ;;  %v1636_v50 = vld [vmem:[%s1860_s11 + $0x28] sm:$0xff]  }
  0x40   : > { %1468 = vmatpush3.bf16.msra.mxu0 %v1624_v37  ;;  %v1638_v51 = vld [vmem:[%s1860_s11 + $0x70] sm:$0xff]   ;;  %v1641_v54 = vld [vmem:[%s1860_s11 + $0x78] sm:$0xff]   ;;  %v1644_v59 = vld [vmem:[%s1862_s12] ss:$12 sps:$4 sm:$0xff]  }
  0x41   : > { %1469 = vmatprep.subr.bf16.mxu0 %v1626_v39  ;;  %v1639_v52 = vld [vmem:[%s1860_s11 + $0x30] sm:$0xff]   ;;  %v1643_v55 = vld [vmem:[%s1860_s11 + $0xb8] sm:$0xff]   ;;  %v1648_v61 = vld [vmem:[%s1862_s12 + $0x20] ss:$12 sps:$4 sm:$0xff]  }
  0x42   : > { %1548 = vmatpush3.bf16.msra.mxu1 %v1625_v38  ;;  %v1640_v53 = vld [vmem:[%s1860_s11 + $0xb0] sm:$0xff]   ;;  %v1642_v58 = vld [vmem:[%s1860_s11 + $0x38] sm:$0xff]   ;;  %v1664_v5 = vld [vmem:[%s1862_s12 + $0x80] ss:$12 sps:$4 sm:$0xff]  }
  0x43   : > { %1549 = vmatprep.subr.bf16.mxu1 %v1628_v41  ;;  %v1646_v56 = vld [vmem:[%s1862_s12 + $0x4] ss:$12 sps:$4 sm:$0xff]   ;;  %v1647_v57 = vld [vmem:[%s1862_s12 + $0x8] ss:$12 sps:$4 sm:$0xff]   ;;  %v1657_v4 = vld [vmem:[%s1862_s12 + $0x4c] ss:$12 sps:$4 sm:$0xff]  }
  0x44   : > { %1470 = vmatpush3.bf16.msra.mxu0 %v1627_v40  ;;  %806 = vmatprep.mubr.bf16.mxu0 %v1646_v56  ;;  %v1649_v60 = vld [vmem:[%s1862_s12 + $0x1c] ss:$12 sps:$4 sm:$0xff]   ;;  %v1655_v62 = vld [vmem:[%s1862_s12 + $0x38] ss:$12 sps:$4 sm:$0xff]   ;;  %v1652_v0 = vld [vmem:[%s1862_s12 + $0x34] ss:$12 sps:$4 sm:$0xff]  }
  0x45   : > { %1471 = vmatprep.subr.bf16.mxu0 %v1629_v42  ;;  %1561 = vmatprep.mubr.bf16.mxu1 %v1647_v57  ;;  %v1651_v63 = vld [vmem:[%s1862_s12 + $0x18] ss:$12 sps:$4 sm:$0xff]   ;;  %v1656_v1 = vld [vmem:[%s1862_s12 + $0x50] ss:$12 sps:$4 sm:$0xff]   ;;  %v1663_v2 = vld [vmem:[%s1862_s12 + $0x68] ss:$12 sps:$4 sm:$0xff]  }
  0x46   : > { %1550 = vmatpush3.bf16.msra.mxu1 %v1628_v41  ;;  %v1654_v3 = vld [vmem:[%s1862_s12 + $0x30] ss:$12 sps:$4 sm:$0xff]   ;;  %v1671_v6 = vld [vmem:[%s1862_s12 + $0x98] ss:$12 sps:$4 sm:$0xff]   ;;  %v1659_v7 = vld [vmem:[%s1862_s12 + $0x48] ss:$12 sps:$4 sm:$0xff]  }
  0x47   : > { %1551 = vmatprep.subr.bf16.mxu1 %v1631_v44  ;;  %v1660_v8 = vld [vmem:[%s1862_s12 + $0x64] ss:$12 sps:$4 sm:$0xff]   ;;  %v1662_v10 = vld [vmem:[%s1862_s12 + $0x60] ss:$12 sps:$4 sm:$0xff]   ;;  %v1665_v11 = vld [vmem:[%s1862_s12 + $0x7c] ss:$12 sps:$4 sm:$0xff]  }
  0x48   : > { %1472 = vmatpush3.bf16.msra.mxu0 %v1630_v43  ;;  %v1672_v9 = vld [vmem:[%s1862_s12 + $0xb0] ss:$12 sps:$4 sm:$0xff]   ;;  %v1667_v12 = vld [vmem:[%s1862_s12 + $0x78] ss:$12 sps:$4 sm:$0xff]   ;;  %v1668_v13 = vld [vmem:[%s1862_s12 + $0x94] ss:$12 sps:$4 sm:$0xff]  }
  0x49   : > { %1473 = vmatprep.subr.bf16.mxu0 %v1632_v45  ;;  %v1670_v14 = vld [vmem:[%s1862_s12 + $0x90] ss:$12 sps:$4 sm:$0xff]   ;;  %v1673_v15 = vld [vmem:[%s1862_s12 + $0xac] ss:$12 sps:$4 sm:$0xff]   ;;  %v1675_v16 = vld [vmem:[%s1862_s12 + $0xa8] ss:$12 sps:$4 sm:$0xff]  }
  0x4a   : > { %1552 = vmatpush3.bf16.msra.mxu1 %v1631_v44  ;;  %v406_v23 = vld [vmem:[#allocation2] sm:$0xff]  ;;  %v407_v28 = vld [vmem:[#allocation2 + $0x8] sm:$0xff]  ;;  %v408_v38 = vld [vmem:[#allocation2 + $0x10] sm:$0xff] }
  0x4b   : > { %1553 = vmatprep.subr.bf16.mxu1 %v1634_v46  ;;  %v409_v44 = vld [vmem:[#allocation2 + $0x18] sm:$0xff] }
  0x4c   : > { %1474 = vmatpush3.bf16.msra.mxu0 %v1633_v47 }
  0x4d   : > { %1475 = vmatprep.subr.bf16.mxu0 %v1635_v48 }
  0x4e   : > { %1554 = vmatpush3.bf16.msra.mxu1 %v1634_v46 }
  0x4f   : > { %1555 = vmatprep.subr.bf16.mxu1 %v1637_v49 }
  0x50   : > { %1476 = vmatpush3.bf16.msra.mxu0 %v1636_v50 }
  0x51   : > { %1477 = vmatprep.subr.bf16.mxu0 %v1638_v51 }
  0x52   : > { %1556 = vmatpush3.bf16.msra.mxu1 %v1637_v49 }
  0x53   : > { %1557 = vmatprep.subr.bf16.mxu1 %v1640_v53 }
  0x54   : > { %1478 = vmatpush3.bf16.msra.mxu0 %v1639_v52 }
  0x55   : > { %1479 = vmatprep.subr.bf16.mxu0 %v1641_v54 }
  0x56   : > { %1558 = vmatpush3.bf16.msra.mxu1 %v1640_v53 }
  0x57   : > { %1559 = vmatprep.subr.bf16.mxu1 %v1643_v55 }
  0x58   : > { %1480 = vmatpush3.bf16.msra.mxu0 %v1642_v58 }
  0x5a   : > { %1560 = vmatpush3.bf16.msra.mxu1 %v1643_v55  ;;  %v410_v55 = vld [vmem:[#allocation2 + $0x20] sm:$0xff] }
  0x5b   : > { %807 = vmatmul.mubr.bf16.vlgmr.msra.gmra.mrb[0].mxu0 %v1644_v59 }
  0x5c   : > { %814 = vmatprep.mubr.bf16.mxu0 %v1649_v60  ;;  %v411_v60 = vld [vmem:[#allocation2 + $0x28] sm:$0xff] }
  0x5d   : > { %1562 = vmatmul.mubr.bf16.vlgmr.msra.gmra.mrb[0].mxu1 %v1648_v61 }
  0x5e   : > { %1565 = vmatprep.mubr.bf16.mxu1 %v1655_v62 }
  0x63   : > { %815 = vmatmul.mubr.bf16.gmra.mrb[4].mxu0 %v1651_v63 }
  0x64   : > { %822 = vmatprep.mubr.bf16.mxu0 %v1652_v0 }
  0x65   : > { %1566 = vmatmul.mubr.bf16.gmra.mrb[4].mxu1 %v1656_v1 }
  0x66   : > { %1569 = vmatprep.mubr.bf16.mxu1 %v1663_v2 }
  0x6b   : > { %823 = vmatmul.mubr.bf16.gmra.mrb[8].mxu0 %v1654_v3 }
  0x6c   : > { %830 = vmatprep.mubr.bf16.mxu0 %v1657_v4 }
  0x6d   : > { %1570 = vmatmul.mubr.bf16.gmra.mrb[8].mxu1 %v1664_v5 }
  0x6e   : > { %1573 = vmatprep.mubr.bf16.mxu1 %v1671_v6  ;;  %v412_v6 = vld [vmem:[#allocation2 + $0x30] sm:$0xff] }
  0x73   : > { %831 = vmatmul.mubr.bf16.gmra.mrb[12].mxu0 %v1659_v7 }
  0x74   : > { %838 = vmatprep.mubr.bf16.mxu0 %v1660_v8 }
  0x75   : > { %1574 = vmatmul.mubr.bf16.gmra.mrb[12].mxu1 %v1672_v9 }
  0x7b   : > { %839 = vmatmul.mubr.bf16.gmra.mrb[16].mxu0 %v1662_v10 }
  0x7c   : > { %846 = vmatprep.mubr.bf16.mxu0 %v1665_v11 }
  0x83   : > { %847 = vmatmul.mubr.bf16.gmra.mrb[20].mxu0 %v1667_v12  ;;  %v413_v12 = vld [vmem:[#allocation2 + $0x38] sm:$0xff] }
  0x84   : > { %854 = vmatprep.mubr.bf16.mxu0 %v1668_v13 }
  0x8b   : > { %855 = vmatmul.mubr.bf16.gmra.mrb[24].mxu0 %v1670_v14 }
  0x8c   : > { %862 = vmatprep.mubr.bf16.mxu0 %v1673_v15 }
  0x93   : > { %863 = vmatmul.mubr.bf16.gmra.mrb[28].mxu0 %v1675_v16 }
 0x12e   : > { %v1481_v17 = vpop.f32.mrb[0].mxu0 }
 0x12f   : > { %v1482_v18 = vpop.f32.mrb[1].mxu0 }
 0x130   : > { %v1483_v19 = vadd.f32 %v1482_v18, %v1481_v17  ;;  %v1484_v20 = vpop.f32.mrb[2].mxu0  ;;  %v1563_v21 = vpop.f32.mrb[0].mxu1 }
 0x131   : > { %v1485_v22 = vpop.f32.mrb[3].mxu0  ;;  %v905_v24 = vpop.f32.mrb[1].mxu1 }
 0x132   : > { %v1486_v25 = vadd.f32 %v1485_v22, %v1484_v20  ;;  %v906_v26 = vadd.f32 %v1483_v19, %v905_v24  ;;  %v1564_v27 = vpop.f32.mrb[2].mxu1  ;;  %v414_v22 = vld [vmem:[#allocation2 + $0x40] sm:$0xff] }
 0x133   : > { %v908_v29 = vpop.f32.mrb[3].mxu1 }
 0x134   : > { %v968_v30 = vadd.f32 %v906_v26, %v406_v23  ;;  %v909_v31 = vadd.f32 %v1486_v25, %v908_v29  ;;  %v415_v25 = vld [vmem:[#allocation2 + $0x48] sm:$0xff] }
 0x136   : > { %984 = vst [vmem:[#allocation2] sm:$0xff] %v968_v30  ;;  %v969_v32 = vadd.f32 %v909_v31, %v407_v28  ;;  %v1487_v33 = vpop.f32.mrb[4].mxu0 }
 0x137   : > { %v1488_v34 = vpop.f32.mrb[5].mxu0 }
 0x138   : > { %985 = vst [vmem:[#allocation2 + $0x8] sm:$0xff] %v969_v32  ;;  %v1489_v35 = vadd.f32 %v1488_v34, %v1487_v33  ;;  %v1490_v36 = vpop.f32.mrb[6].mxu0  ;;  %v1567_v37 = vpop.f32.mrb[4].mxu1  ;;  %v416_v33 = vld [vmem:[#allocation2 + $0x50] sm:$0xff] }
 0x139   : > { %v1491_v39 = vpop.f32.mrb[7].mxu0  ;;  %v921_v40 = vpop.f32.mrb[5].mxu1 }
 0x13a   : > { %v914_v41 = vadd.f32 %v1563_v21, %v1489_v35  ;;  %v1492_v42 = vadd.f32 %v1491_v39, %v1490_v36  ;;  %v1568_v43 = vpop.f32.mrb[6].mxu1 }
 0x13b   : > { %v924_v45 = vpop.f32.mrb[7].mxu1 }
 0x13c   : > { %v970_v46 = vadd.f32 %v914_v41, %v408_v38  ;;  %v917_v47 = vadd.f32 %v1564_v27, %v1492_v42 }
 0x13e   : > { %986 = vst [vmem:[#allocation2 + $0x10] sm:$0xff] %v970_v46  ;;  %v971_v48 = vadd.f32 %v917_v47, %v409_v44  ;;  %v1493_v49 = vpop.f32.mrb[8].mxu0  ;;  %v418_v46 = vld [vmem:[#allocation2 + $0x60] sm:$0xff] }
 0x13f   : > { %v1494_v50 = vpop.f32.mrb[9].mxu0 }
 0x140   : > { %987 = vst [vmem:[#allocation2 + $0x18] sm:$0xff] %v971_v48  ;;  %v1495_v51 = vadd.f32 %v1494_v50, %v1493_v49  ;;  %v1496_v52 = vpop.f32.mrb[10].mxu0  ;;  %v1571_v53 = vpop.f32.mrb[8].mxu1  ;;  %v419_v49 = vld [vmem:[#allocation2 + $0x68] sm:$0xff] }
 0x141   : > { %v1497_v54 = vpop.f32.mrb[11].mxu0  ;;  %v937_v56 = vpop.f32.mrb[9].mxu1 }
 0x142   : > { %v1498_v57 = vadd.f32 %v1497_v54, %v1496_v52  ;;  %v922_v58 = vadd.f32 %v1495_v51, %v921_v40  ;;  %v1572_v59 = vpop.f32.mrb[10].mxu1 }
 0x143   : > { %v940_v61 = vpop.f32.mrb[11].mxu1 }
 0x144   : > { %v972_v62 = vadd.f32 %v922_v58, %v410_v55  ;;  %v925_v63 = vadd.f32 %v1498_v57, %v924_v45  ;;  %v420_v57 = vld [vmem:[#allocation2 + $0x70] sm:$0xff] }
 0x146   : > { %988 = vst [vmem:[#allocation2 + $0x20] sm:$0xff] %v972_v62  ;;  %v973_v0 = vadd.f32 %v925_v63, %v411_v60  ;;  %v1499_v1 = vpop.f32.mrb[12].mxu0 }
 0x147   : > { %v1500_v2 = vpop.f32.mrb[13].mxu0 }
 0x148   : > { %989 = vst [vmem:[#allocation2 + $0x28] sm:$0xff] %v973_v0  ;;  %v1501_v3 = vadd.f32 %v1500_v2, %v1499_v1  ;;  %v1502_v4 = vpop.f32.mrb[14].mxu0  ;;  %v1575_v5 = vpop.f32.mrb[12].mxu1  ;;  %v1004_v1 = vld [vmem:[#allocation2] sm:$0xff] (!%p1378_p11)  ;;  %v1005_v2 = vld [vmem:[#allocation2 + $0x8] sm:$0xff] (!%p1378_p11) }
 0x149   : > { %v1503_v7 = vpop.f32.mrb[15].mxu0  ;;  %v953_v8 = vpop.f32.mrb[13].mxu1 }
 0x14a   : > { %v930_v9 = vadd.f32 %v1567_v37, %v1501_v3  ;;  %v1504_v10 = vadd.f32 %v1503_v7, %v1502_v4  ;;  %v1576_v11 = vpop.f32.mrb[14].mxu1  ;;  %v417_v37 = vld [vmem:[#allocation2 + $0x58] sm:$0xff]  ;;  %v1917_v3 = vld [vmem:[%s1997_s2] ss:$0 sm:$0xff] (!%p1378_p11)  ;;  %v1006_v7 = vld [vmem:[#allocation2 + $0x10] sm:$0xff] (!%p1378_p11) }
 0x14b   : > { %v956_v13 = vpop.f32.mrb[15].mxu1  ;;  %v1027_v4 = vmul.f32 (!%p1378_p11), %v1917_v3, %v1004_v1 }
 0x14c   : > { %v974_v14 = vadd.f32 %v930_v9, %v412_v6  ;;  %v933_v15 = vadd.f32 %v1568_v43, %v1504_v10  ;;  %v1924_v6 = vld [vmem:[%s1998_s3] ss:$0 sm:$0xff] (!%p1378_p11)  ;;  %v1029_v9 = vmul.f32 (!%p1378_p11), %v1917_v3, %v1006_v7 }
 0x14e   : > { %990 = vst [vmem:[#allocation2 + $0x30] sm:$0xff] %v974_v14  ;;  %v975_v16 = vadd.f32 %v933_v15, %v413_v12  ;;  %v1505_v17 = vpop.f32.mrb[16].mxu0  ;;  %v1050_v14 = vadd.f32 (!%p1378_p11), %v1924_v6, %v1027_v4 }
 0x14f   : > { %v1506_v18 = vpop.f32.mrb[17].mxu0  ;;  %v1009_v12 = vld [vmem:[#allocation2 + $0x28] sm:$0xff] (!%p1378_p11) }
 0x150   : > { %991 = vst [vmem:[#allocation2 + $0x38] sm:$0xff] %v975_v16  ;;  %v1507_v19 = vadd.f32 %v1506_v18, %v1505_v17  ;;  %v1508_v20 = vpop.f32.mrb[18].mxu0  ;;  %v1032_v17 = vmul.f32 (!%p1378_p11), %v1917_v3, %v1009_v12 }
 0x151   : > { %v1509_v21 = vpop.f32.mrb[19].mxu0 }
 0x152   : > { %v1510_v23 = vadd.f32 %v1509_v21, %v1508_v20  ;;  %v938_v24 = vadd.f32 %v1507_v19, %v937_v56  ;;  %v1052_v19 = vadd.f32 (!%p1378_p11), %v1924_v6, %v1029_v9 }
 0x154   : > { %v976_v26 = vadd.f32 %v938_v24, %v414_v22  ;;  %v941_v27 = vadd.f32 %v1510_v23, %v940_v61  ;;  %v421_v61 = vld [vmem:[#allocation2 + $0x78] sm:$0xff]  ;;  %v1066_v24 = vmax.f32 (!%p1378_p11), %v1050_v14, 0.0 }
 0x156   : > { %992 = vst [vmem:[#allocation2 + $0x40] sm:$0xff] %v976_v26  ;;  %v977_v28 = vadd.f32 %v941_v27, %v415_v25  ;;  %v1511_v29 = vpop.f32.mrb[20].mxu0  ;;  %v1055_v27 = vadd.f32 (!%p1378_p11), %v1924_v6, %v1032_v17 }
 0x157   : > { %v1512_v30 = vpop.f32.mrb[21].mxu0  ;;  %v1011_v18 = vld [vmem:[#allocation2 + $0x38] sm:$0xff] (!%p1378_p11) }
 0x158   : > { %993 = vst [vmem:[#allocation2 + $0x48] sm:$0xff] %v977_v28  ;;  %v1513_v31 = vadd.f32 %v1512_v30, %v1511_v29  ;;  %v1514_v32 = vpop.f32.mrb[22].mxu0  ;;  %v1034_v22 = vmul.f32 (!%p1378_p11), %v1917_v3, %v1011_v18  ;;  %v1068_v29 = vmax.f32 (!%p1378_p11), %v1052_v19, 0.0 }
 0x159   : > { %v1515_v34 = vpop.f32.mrb[23].mxu0 }
 0x15a   : > { %v946_v35 = vadd.f32 %v1571_v53, %v1513_v31  ;;  %v1516_v36 = vadd.f32 %v1515_v34, %v1514_v32  ;;  %v1057_v32 = vadd.f32 (!%p1378_p11), %v1924_v6, %v1034_v22 }
 0x15c   : > { %v978_v38 = vadd.f32 %v946_v35, %v416_v33  ;;  %v949_v39 = vadd.f32 %v1572_v59, %v1516_v36 }
 0x15d   : > { %v1012_v23 = vld [vmem:[#allocation2 + $0x40] sm:$0xff] (!%p1378_p11) }
 0x15e   : > { %994 = vst [vmem:[#allocation2 + $0x50] sm:$0xff] %v978_v38  ;;  %v979_v40 = vadd.f32 %v949_v39, %v417_v37  ;;  %v1517_v41 = vpop.f32.mrb[24].mxu0  ;;  %v1071_v37 = vmax.f32 (!%p1378_p11), %v1055_v27, 0.0  ;;  %v1035_v38 = vmul.f32 (!%p1378_p11), %v1917_v3, %v1012_v23 }
 0x15f   : > { %v1518_v42 = vpop.f32.mrb[25].mxu0  ;;  %v1013_v28 = vld [vmem:[#allocation2 + $0x48] sm:$0xff] (!%p1378_p11) }
 0x160   : > { %995 = vst [vmem:[#allocation2 + $0x58] sm:$0xff] %v979_v40  ;;  %v1519_v43 = vadd.f32 %v1518_v42, %v1517_v41  ;;  %v1520_v44 = vpop.f32.mrb[26].mxu0 }
 0x161   : > { %v1521_v45 = vpop.f32.mrb[27].mxu0 }
 0x162   : > { %v1522_v47 = vadd.f32 %v1521_v45, %v1520_v44  ;;  %v954_v48 = vadd.f32 %v1519_v43, %v953_v8  ;;  %v1007_v8 = vld [vmem:[#allocation2 + $0x18] sm:$0xff] (!%p1378_p11)  ;;  %v1073_v43 = vmax.f32 (!%p1378_p11), %v1057_v32, 0.0  ;;  %v1036_v44 = vmul.f32 (!%p1378_p11), %v1917_v3, %v1013_v28 }
 0x163   : > { %v1030_v10 = vmul.f32 (!%p1378_p11), %v1917_v3, %v1007_v8 }
 0x164   : > { %v980_v50 = vadd.f32 %v954_v48, %v418_v46  ;;  %v957_v51 = vadd.f32 %v1522_v47, %v956_v13  ;;  %v1010_v13 = vld [vmem:[#allocation2 + $0x30] sm:$0xff] (!%p1378_p11)  ;;  %v1058_v47 = vadd.f32 (!%p1378_p11), %v1924_v6, %v1035_v38 }
 0x165   : > { %v1053_v20 = vadd.f32 (!%p1378_p11), %v1924_v6, %v1030_v10  ;;  %v1033_v21 = vmul.f32 (!%p1378_p11), %v1917_v3, %v1010_v13  ;;  %v1014_v33 = vld [vmem:[#allocation2 + $0x50] sm:$0xff] (!%p1378_p11) }
 0x166   : > { %996 = vst [vmem:[#allocation2 + $0x60] sm:$0xff] %v980_v50  ;;  %v981_v52 = vadd.f32 %v957_v51, %v419_v49  ;;  %v1523_v53 = vpop.f32.mrb[28].mxu0  ;;  %v1037_v48 = vmul.f32 (!%p1378_p11), %v1917_v3, %v1014_v33 }
 0x167   : > { %v1524_v54 = vpop.f32.mrb[29].mxu0  ;;  %v1069_v30 = vmax.f32 (!%p1378_p11), %v1053_v20, 0.0  ;;  %v1056_v31 = vadd.f32 (!%p1378_p11), %v1924_v6, %v1033_v21  ;;  %v1015_v34 = vld [vmem:[#allocation2 + $0x58] sm:$0xff] (!%p1378_p11) }
 0x168   : > { %997 = vst [vmem:[#allocation2 + $0x68] sm:$0xff] %v981_v52  ;;  %v1525_v55 = vadd.f32 %v1524_v54, %v1523_v53  ;;  %v1526_v56 = vpop.f32.mrb[30].mxu0  ;;  %v1038_v49 = vmul.f32 (!%p1378_p11), %v1917_v3, %v1015_v34  ;;  %v1059_v52 = vadd.f32 (!%p1378_p11), %v1924_v6, %v1036_v44 }
 0x169   : > { %v1527_v58 = vpop.f32.mrb[31].mxu0  ;;  %v1426_v41 = vpack.c.bf16 (!%p1378_p11), %v1069_v30, %v1068_v29  ;;  %v1072_v42 = vmax.f32 (!%p1378_p11), %v1056_v31, 0.0 }
 0x16a   : > { %v962_v59 = vadd.f32 %v1575_v5, %v1525_v55  ;;  %v1528_v60 = vadd.f32 %v1527_v58, %v1526_v56  ;;  %1003 = sbr.rel (%p1378_p11) target bundleno = 385 (0x181), region = 70  ;;  %v1028_v5 = vmul.f32 (!%p1378_p11), %v1917_v3, %v1005_v2  ;;  %v1074_v55 = vmax.f32 (!%p1378_p11), %v1058_v47, 0.0 }
 0x16b   : > { %1458 = vst [vmem:[%s1999_s4 + $0x8] sm:$0xff] (!%p1378_p11), %v1426_v41   ;;  %v1436_v51 = vpack.c.bf16 (!%p1378_p11), %v1073_v43, %v1072_v42  ;;  %v1060_v56 = vadd.f32 (!%p1378_p11), %v1924_v6, %v1037_v48 }
 0x16c   : > { %v982_v62 = vadd.f32 %v962_v59, %v420_v57  ;;  %v965_v63 = vadd.f32 %v1576_v11, %v1528_v60  ;;  %v1008_v11 = vld [vmem:[#allocation2 + $0x20] sm:$0xff] (!%p1378_p11)  ;;  %v1051_v15 = vadd.f32 (!%p1378_p11), %v1924_v6, %v1028_v5  ;;  %v1061_v57 = vadd.f32 (!%p1378_p11), %v1924_v6, %v1038_v49 }
 0x16d   : > { %v1031_v16 = vmul.f32 (!%p1378_p11), %v1917_v3, %v1008_v11  ;;  %v1016_v39 = vld [vmem:[#allocation2 + $0x60] sm:$0xff] (!%p1378_p11)  ;;  %1460 = vst [vmem:[%s1999_s4 + $0x18] sm:$0xff] (!%p1378_p11), %v1436_v51   ;;  %v1075_v59 = vmax.f32 (!%p1378_p11), %v1059_v52, 0.0 }
 0x16e   : > { %998 = vst [vmem:[#allocation2 + $0x70] sm:$0xff] %v982_v62  ;;  %v983_v0 = vadd.f32 %v965_v63, %v421_v61  ;;  %v1067_v25 = vmax.f32 (!%p1378_p11), %v1051_v15, 0.0  ;;  %v1039_v53 = vmul.f32 (!%p1378_p11), %v1917_v3, %v1016_v39  ;;  %v1076_v63 = vmax.f32 (!%p1378_p11), %v1060_v56, 0.0 }
 0x16f   : > { %v1054_v26 = vadd.f32 (!%p1378_p11), %v1924_v6, %v1031_v16  ;;  %v1017_v40 = vld [vmem:[#allocation2 + $0x68] sm:$0xff] (!%p1378_p11)  ;;  %v1441_v2 = vpack.c.bf16 (!%p1378_p11), %v1075_v59, %v1074_v55 }
 0x170   : > { %999 = vst [vmem:[#allocation2 + $0x78] sm:$0xff] %v983_v0  ;;  %v1421_v35 = vpack.c.bf16 (!%p1378_p11), %v1067_v25, %v1066_v24  ;;  %v1040_v54 = vmul.f32 (!%p1378_p11), %v1917_v3, %v1017_v40  ;;  %v1062_v60 = vadd.f32 (!%p1378_p11), %v1924_v6, %v1039_v53  ;;  %v1077_v0 = vmax.f32 (!%p1378_p11), %v1061_v57, 0.0 }
 0x171   : > { %v1070_v36 = vmax.f32 %v1054_v26, 0.0  ;;  %1461 = vst [vmem:[%s1999_s4 + $0x20] sm:$0xff] %v1441_v2  }
 0x172   : > { %1422 = vst [vmem:[%s1999_s4] sm:$0xff] %v1421_v35   ;;  %v1063_v61 = vadd.f32 %v1924_v6, %v1040_v54  ;;  %v1078_v4 = vmax.f32 %v1062_v60, 0.0  ;;  %v1446_v8 = vpack.c.bf16 %v1077_v0, %v1076_v63 }
 0x173   : > { %v1431_v46 = vpack.c.bf16 %v1071_v37, %v1070_v36 }
 0x174   : > { %v1079_v5 = vmax.f32 %v1063_v61, 0.0  ;;  %1462 = vst [vmem:[%s1999_s4 + $0x28] sm:$0xff] %v1446_v8  }
 0x175   : > { %v1018_v45 = vld [vmem:[#allocation2 + $0x70] sm:$0xff]  ;;  %1459 = vst [vmem:[%s1999_s4 + $0x10] sm:$0xff] %v1431_v46  }
 0x176   : > { %v1041_v58 = vmul.f32 %v1917_v3, %v1018_v45  ;;  %v1451_v10 = vpack.c.bf16 %v1079_v5, %v1078_v4 }
 0x177   : > { %v1019_v50 = vld [vmem:[#allocation2 + $0x78] sm:$0xff] }
 0x178   : > { %v1042_v62 = vmul.f32 %v1917_v3, %v1019_v50  ;;  %v1064_v1 = vadd.f32 %v1924_v6, %v1041_v58  ;;  %1463 = vst [vmem:[%s1999_s4 + $0x30] sm:$0xff] %v1451_v10  }
 0x17a   : > { %v1065_v7 = vadd.f32 %v1924_v6, %v1042_v62  ;;  %v1080_v9 = vmax.f32 %v1064_v1, 0.0 }
 0x17c   : > { %v1081_v11 = vmax.f32 %v1065_v7, 0.0 }
 0x17e   : > { %v1456_v3 = vpack.c.bf16 %v1081_v11, %v1080_v9 }
 0x180   : > { %1464 = vst [vmem:[%s1999_s4 + $0x38] sm:$0xff] %v1456_v3  }
 0x181 PF: > { %s14_s19 = sadd.s32 1, %s1714_s19   ;;  %s2000_s15 = smov %s1702_s16 }
 0x182   : > { %p11_p12 = scmp.ge.s32.totalorder %s14_s19, 4   ;;  %s2001_s16 = smov %s1777_s23 }
 0x183   : > { %s2002_s17 = smov %s1710_s18  ;;  %s2003_s18 = smov %s2005_s20 }
 0x184   :  { %13 = sbr.rel (!%p11_p12) target bundleno = 3 (0x3), region = 120 }

// kernel: _lambda_.14
= control target key start
LH: loop header
LB: loop body
LE: loop exit
PB: predicated region body
PF: predicated region fallthrough
CT: control target
= control target key end

     0   :  { %12 = vsyncpa [#allocation5], 0  ;;  %s1991_s21 = smov 0   ;;  %s1993_s22 = smov 0   ;;  %s2303_s0 = inlined_call_operand.vmem [shape: bf16[128,768], index: 0, kind: input, shape index: {}]   ;;  %s2304_s1 = inlined_call_operand.vmem [shape: bf16[768,128], index: 1, kind: input, shape index: {}]   ;;  %s2305_s2 = inlined_call_operand.vmem [shape: f32[1,128], index: 2, kind: input, shape index: {}]   ;;  %s2306_s3 = inlined_call_operand.vmem [shape: f32[1,128], index: 3, kind: input, shape index: {}]   ;;  %s2307_s4 = inlined_call_operand.vmem [shape: f32[128,128], index: 4, kind: input, shape index: {}]   ;;  %s2308_s5 = inlined_call_operand.hbm [shape: f32[128,128], index: 5, kind: output, shape index: {0}]   ;;  %s2309_s6 = inlined_call_operand.vmem [shape: bf16[128,128], index: 6, kind: output, shape index: {1}]  }
   0x1   :  { %s1995_s23 = smov 0   ;;  %s1997_s24 = smov 0  }
   0x2   :  { %s1999_s25 = smov 0  }
   0x3 LB: > { %s1483_s26 = sadd.s32 4294967295, %s1950_s25   ;;  %s30_s27 = sadd.s32 1, %s1946_s24  ;;  %s1950_s25 = sphi %s1999_s25, %s18_s25   ;;  %s1946_s24 = sphi %s1997_s24, %s2314_s24   ;;  %s1942_s23 = sphi %s1995_s23, %s2313_s23   ;;  %s1938_s22 = sphi %s1993_s22, %s2312_s22   ;;  %s1934_s21 = sphi %s1991_s21, %s2311_s21  }
   0x4   : > { %p31_p0 = scmp.ge.s32.totalorder %s30_s27, 2  ;;  %p53_p1 = scmp.ne.s32.totalorder %s1938_s22, %s1934_s21 }
   0x5   : > { %p54_p2 = scmp.eq.s32.totalorder %s1950_s25, 0  ;;  %s46_s29 = sadd.s32 1, %s1938_s22 }
   0x6   : > { %s2316_s27 = smov (%p31_p0, %s30_s27), 0  ;;  %p1488_p5 = scmp.ge.s32.totalorder %s1950_s25, 2 }
   0x7   : > { %p55_p3 = por %p54_p2, %p53_p1  ;;  %s42_s28 = ssub.s32 %s1946_s24, %s2316_s27 }
   0x8   : > { %p44_p4 = scmp.eq.s32.totalorder %s42_s28, 0  ;;  %267 = sbr.rel (%p1488_p5) target bundleno = 38 (0x26), region = 28 }
   0xa   : > { %s2027_s30 = scalar_select %p44_p4, %s1938_s22, %s46_s29  }
   0xf   : > { %270 = sbr.rel (!%p55_p3) target bundleno = 38 (0x26), region = 32  ;;  %s272_s7 = sand.u32 (%p55_p3), 1, %s1938_s22  }
  0x10   : > { %s1598_s8 = smul.u32 (%p55_p3), 12, %s1946_s24 }
  0x11   : > { %s1774_s9 = smul.u32 (%p55_p3), 192, %s272_s7 }
  0x12   : > { %s2035_s12 = scalar_lea.vmem (%p55_p3), %s2303_s0, %s1598_s8 }
  0x13   : > { %v295_v0 = vld [vmem:[%s2035_s12] sm:$0xff] (%p55_p3)  ;;  %v297_v1 = vld [vmem:[%s2035_s12 + $0x18] sm:$0xff] (%p55_p3)  ;;  %v299_v2 = vld [vmem:[%s2035_s12 + $0x30] sm:$0xff] (%p55_p3)  ;;  %s2040_s13 = scalar_lea.vmem (%p55_p3), [#allocation3], %s1774_s9 }
  0x14   : > { %296 = vst [vmem:[%s2040_s13] sm:$0xff] (%p55_p3), %v295_v0  ;;  %298 = vst [vmem:[%s2040_s13 + $0xc] sm:$0xff] (%p55_p3), %v297_v1  ;;  %v301_v3 = vld [vmem:[%s2035_s12 + $0x48] sm:$0xff] (%p55_p3)  ;;  %v303_v4 = vld [vmem:[%s2035_s12 + $0x60] sm:$0xff] (%p55_p3) }
  0x15   : > { %300 = vst [vmem:[%s2040_s13 + $0x18] sm:$0xff] (%p55_p3), %v299_v2  ;;  %v305_v5 = vld [vmem:[%s2035_s12 + $0x78] sm:$0xff] (%p55_p3)  ;;  %302 = vst [vmem:[%s2040_s13 + $0x24] sm:$0xff] (%p55_p3), %v301_v3  ;;  %v307_v6 = vld [vmem:[%s2035_s12 + $0x90] sm:$0xff] (%p55_p3) }
  0x16   : > { %304 = vst [vmem:[%s2040_s13 + $0x30] sm:$0xff] %v303_v4  ;;  %306 = vst [vmem:[%s2040_s13 + $0x3c] sm:$0xff] %v305_v5  ;;  %v309_v7 = vld [vmem:[%s2035_s12 + $0xa8] sm:$0xff]  ;;  %v311_v8 = vld [vmem:[%s2035_s12 + $0xc0] sm:$0xff] }
  0x17   : > { %308 = vst [vmem:[%s2040_s13 + $0x48] sm:$0xff] %v307_v6  ;;  %310 = vst [vmem:[%s2040_s13 + $0x54] sm:$0xff] %v309_v7  ;;  %v313_v9 = vld [vmem:[%s2035_s12 + $0xd8] sm:$0xff]  ;;  %v315_v10 = vld [vmem:[%s2035_s12 + $0xf0] sm:$0xff] }
  0x18   : > { %312 = vst [vmem:[%s2040_s13 + $0x60] sm:$0xff] %v311_v8  ;;  %v317_v11 = vld [vmem:[%s2035_s12 + $0x108] sm:$0xff]  ;;  %314 = vst [vmem:[%s2040_s13 + $0x6c] sm:$0xff] %v313_v9  ;;  %v319_v12 = vld [vmem:[%s2035_s12 + $0x120] sm:$0xff] }
  0x19   : > { %316 = vst [vmem:[%s2040_s13 + $0x78] sm:$0xff] %v315_v10  ;;  %318 = vst [vmem:[%s2040_s13 + $0x84] sm:$0xff] %v317_v11  ;;  %v321_v13 = vld [vmem:[%s2035_s12 + $0x138] sm:$0xff]  ;;  %v323_v14 = vld [vmem:[%s2035_s12 + $0x150] sm:$0xff] }
  0x1a   : > { %320 = vst [vmem:[%s2040_s13 + $0x90] sm:$0xff] %v319_v12  ;;  %322 = vst [vmem:[%s2040_s13 + $0x9c] sm:$0xff] %v321_v13  ;;  %v325_v15 = vld [vmem:[%s2035_s12 + $0x168] sm:$0xff]  ;;  %v1492_v17 = vld [vmem:[%s2035_s12 + $0x20] sm:$0xf] }
  0x1b   : > { %324 = vst [vmem:[%s2040_s13 + $0xa8] sm:$0xff] %v323_v14  ;;  %v1490_v16 = vld [vmem:[%s2035_s12 + $0x8] sm:$0xf]  ;;  %326 = vst [vmem:[%s2040_s13 + $0xb4] sm:$0xff] %v325_v15  ;;  %v1494_v18 = vld [vmem:[%s2035_s12 + $0x38] sm:$0xf] }
  0x1c   : > { %1491 = vst [vmem:[%s2040_s13 + $0x8] sm:$0xf] %v1490_v16  ;;  %1493 = vst [vmem:[%s2040_s13 + $0x14] sm:$0xf] %v1492_v17  ;;  %v1496_v19 = vld [vmem:[%s2035_s12 + $0x50] sm:$0xf] }
  0x1d   : > { %v1498_v20 = vld [vmem:[%s2035_s12 + $0x68] sm:$0xf]  ;;  %1495 = vst [vmem:[%s2040_s13 + $0x20] sm:$0xf] %v1494_v18  ;;  %1497 = vst [vmem:[%s2040_s13 + $0x2c] sm:$0xf] %v1496_v19 }
  0x1e   : > { %1499 = vst [vmem:[%s2040_s13 + $0x38] sm:$0xf] %v1498_v20  ;;  %v1500_v21 = vld [vmem:[%s2035_s12 + $0x80] sm:$0xf]  ;;  %v1502_v22 = vld [vmem:[%s2035_s12 + $0x98] sm:$0xf] }
  0x1f   : > { %v1504_v23 = vld [vmem:[%s2035_s12 + $0xb0] sm:$0xf]  ;;  %1501 = vst [vmem:[%s2040_s13 + $0x44] sm:$0xf] %v1500_v21  ;;  %1503 = vst [vmem:[%s2040_s13 + $0x50] sm:$0xf] %v1502_v22 }
  0x20   : > { %1505 = vst [vmem:[%s2040_s13 + $0x5c] sm:$0xf] %v1504_v23  ;;  %v1506_v24 = vld [vmem:[%s2035_s12 + $0xc8] sm:$0xf]  ;;  %v1508_v25 = vld [vmem:[%s2035_s12 + $0xe0] sm:$0xf] }
  0x21   : > { %v1510_v26 = vld [vmem:[%s2035_s12 + $0xf8] sm:$0xf]  ;;  %1507 = vst [vmem:[%s2040_s13 + $0x68] sm:$0xf] %v1506_v24  ;;  %1509 = vst [vmem:[%s2040_s13 + $0x74] sm:$0xf] %v1508_v25 }
  0x22   : > { %1511 = vst [vmem:[%s2040_s13 + $0x80] sm:$0xf] %v1510_v26  ;;  %v1512_v27 = vld [vmem:[%s2035_s12 + $0x110] sm:$0xf]  ;;  %v1514_v28 = vld [vmem:[%s2035_s12 + $0x128] sm:$0xf] }
  0x23   : > { %v1516_v29 = vld [vmem:[%s2035_s12 + $0x140] sm:$0xf]  ;;  %1513 = vst [vmem:[%s2040_s13 + $0x8c] sm:$0xf] %v1512_v27  ;;  %1515 = vst [vmem:[%s2040_s13 + $0x98] sm:$0xf] %v1514_v28 }
  0x24   : > { %1517 = vst [vmem:[%s2040_s13 + $0xa4] sm:$0xf] %v1516_v29  ;;  %v1518_v30 = vld [vmem:[%s2035_s12 + $0x158] sm:$0xf]  ;;  %v1520_v31 = vld [vmem:[%s2035_s12 + $0x170] sm:$0xf] }
  0x25   : > { %1519 = vst [vmem:[%s2040_s13 + $0xb0] sm:$0xf] %v1518_v30  ;;  %1521 = vst [vmem:[%s2040_s13 + $0xbc] sm:$0xf] %v1520_v31 }
  0x26 PF: > { %p1522_p6 = scmp.ge.s32.totalorder %s1950_s25, 1  ;;  %p382_p7 = scmp.lt.s32.totalorder %s1950_s25, 3 }
  0x28   : > { %p383_p8 = pnand %p1522_p6, %p382_p7 }
  0x29   : > { %s389_s14 = sand.u32 (!%p383_p8), 1, %s1934_s21   ;;  %s445_s15 = smul.u32 (!%p383_p8), 48, %s1942_s23 }
  0x2a   : > { %386 = sbr.rel (%p383_p8) target bundleno = 414 (0x19e), region = 62  ;;  %p1524_p10 = scmp.ne.s32.totalorder (!%p383_p8), %s1942_s23, 0 }
  0x2b   : > { %s1775_s16 = smul.u32 (!%p383_p8), 192, %s389_s14  ;;  %p446_p9 = scmp.lt.s32.totalorder (!%p383_p8), %s445_s15, 95 }
  0x2d   : > { %s2112_s28 = scalar_lea.vmem (!%p383_p8), [#allocation3], %s1775_s16 }
  0x31   : > { %s2318_s15 = smov (!%p446_p9, %s445_s15), 95  ;;  %483 = sbr.rel (%p1524_p10) target bundleno = 59 (0x3b), region = 70 }
  0x32   : > { %s1523_s17 = sshll.u32 %s2318_s15, 2  ;;  %v1952_v32 = vmov (!%p1524_p10), 0.0  }
  0x33   : > { %s2110_s20 = scalar_lea.vmem %s2304_s1, %s1523_s17  ;;  %484 = vst [vmem:[#allocation2] sm:$0xff] (!%p1524_p10), %v1952_v32  ;;  %485 = vst [vmem:[#allocation2 + $0x8] sm:$0xff] (!%p1524_p10), %v1952_v32 }
  0x34   : > { %486 = vst [vmem:[#allocation2 + $0x10] sm:$0xff] (!%p1524_p10), %v1952_v32  ;;  %487 = vst [vmem:[#allocation2 + $0x18] sm:$0xff] (!%p1524_p10), %v1952_v32 }
  0x35   : > { %488 = vst [vmem:[#allocation2 + $0x20] sm:$0xff] (!%p1524_p10), %v1952_v32  ;;  %489 = vst [vmem:[#allocation2 + $0x28] sm:$0xff] (!%p1524_p10), %v1952_v32 }
  0x36   : > { %490 = vst [vmem:[#allocation2 + $0x30] sm:$0xff] (!%p1524_p10), %v1952_v32  ;;  %491 = vst [vmem:[#allocation2 + $0x38] sm:$0xff] (!%p1524_p10), %v1952_v32 }
  0x37   : > { %492 = vst [vmem:[#allocation2 + $0x40] sm:$0xff] (!%p1524_p10), %v1952_v32  ;;  %493 = vst [vmem:[#allocation2 + $0x48] sm:$0xff] (!%p1524_p10), %v1952_v32 }
  0x38   : > { %494 = vst [vmem:[#allocation2 + $0x50] sm:$0xff] %v1952_v32  ;;  %495 = vst [vmem:[#allocation2 + $0x58] sm:$0xff] %v1952_v32 }
  0x39   : > { %496 = vst [vmem:[#allocation2 + $0x60] sm:$0xff] %v1952_v32  ;;  %497 = vst [vmem:[#allocation2 + $0x68] sm:$0xff] %v1952_v32 }
  0x3a   : > { %498 = vst [vmem:[#allocation2 + $0x70] sm:$0xff] %v1952_v32  ;;  %499 = vst [vmem:[#allocation2 + $0x78] sm:$0xff] %v1952_v32 }
  0x3b PF: > { %v1826_v33 = vld [vmem:[%s2110_s20 + $0x40] sm:$0xff]   ;;  %v1829_v36 = vld [vmem:[%s2110_s20 + $0x48] sm:$0xff]   ;;  %v1832_v39 = vld [vmem:[%s2110_s20 + $0x50] sm:$0xff]   ;;  %p1573_p11 = scmp.ne.s32.totalorder %s1942_s23, 1 }
  0x3c   : > { %v1827_v34 = vld [vmem:[%s2110_s20] sm:$0xff]   ;;  %1662 = vmatprep.subr.bf16.mxu0 %v1826_v33  ;;  %v1830_v37 = vld [vmem:[%s2110_s20 + $0x8] sm:$0xff]   ;;  %v1833_v40 = vld [vmem:[%s2110_s20 + $0x10] sm:$0xff]  }
  0x3d   : > { %v1828_v35 = vld [vmem:[%s2110_s20 + $0x80] sm:$0xff]   ;;  %1663 = vmatpush3.bf16.msra.mxu0 %v1827_v34  ;;  %v1831_v38 = vld [vmem:[%s2110_s20 + $0x88] sm:$0xff]   ;;  %v1834_v41 = vld [vmem:[%s2110_s20 + $0x90] sm:$0xff]  }
  0x3e   : > { %1742 = vmatprep.subr.bf16.mxu1 %v1828_v35  ;;  %1664 = vmatprep.subr.bf16.mxu0 %v1829_v36  ;;  %v1835_v42 = vld [vmem:[%s2110_s20 + $0x58] sm:$0xff]   ;;  %v1838_v45 = vld [vmem:[%s2110_s20 + $0x60] sm:$0xff]   ;;  %v1841_v48 = vld [vmem:[%s2110_s20 + $0x68] sm:$0xff]  }
  0x3f   : > { %1743 = vmatpush3.bf16.msra.mxu1 %v1828_v35  ;;  %v1836_v43 = vld [vmem:[%s2110_s20 + $0x18] sm:$0xff]   ;;  %v1840_v46 = vld [vmem:[%s2110_s20 + $0xa0] sm:$0xff]   ;;  %v1843_v49 = vld [vmem:[%s2110_s20 + $0xa8] sm:$0xff]  }
  0x40   : > { %1744 = vmatprep.subr.bf16.mxu1 %v1831_v38  ;;  %v1837_v44 = vld [vmem:[%s2110_s20 + $0x98] sm:$0xff]   ;;  %v1839_v47 = vld [vmem:[%s2110_s20 + $0x20] sm:$0xff]   ;;  %v1842_v50 = vld [vmem:[%s2110_s20 + $0x28] sm:$0xff]  }
  0x41   : > { %1665 = vmatpush3.bf16.msra.mxu0 %v1830_v37  ;;  %v1844_v51 = vld [vmem:[%s2110_s20 + $0x70] sm:$0xff]   ;;  %v1847_v54 = vld [vmem:[%s2110_s20 + $0x78] sm:$0xff]   ;;  %v1850_v59 = vld [vmem:[%s2112_s28] ss:$12 sps:$4 sm:$0xff]  }
  0x42   : > { %1666 = vmatprep.subr.bf16.mxu0 %v1832_v39  ;;  %v1845_v52 = vld [vmem:[%s2110_s20 + $0x30] sm:$0xff]   ;;  %v1849_v55 = vld [vmem:[%s2110_s20 + $0xb8] sm:$0xff]   ;;  %v1854_v61 = vld [vmem:[%s2112_s28 + $0x20] ss:$12 sps:$4 sm:$0xff]  }
  0x43   : > { %1745 = vmatpush3.bf16.msra.mxu1 %v1831_v38  ;;  %v1846_v53 = vld [vmem:[%s2110_s20 + $0xb0] sm:$0xff]   ;;  %v1848_v58 = vld [vmem:[%s2110_s20 + $0x38] sm:$0xff]   ;;  %v1870_v5 = vld [vmem:[%s2112_s28 + $0x80] ss:$12 sps:$4 sm:$0xff]  }
  0x44   : > { %1746 = vmatprep.subr.bf16.mxu1 %v1834_v41  ;;  %v1852_v56 = vld [vmem:[%s2112_s28 + $0x4] ss:$12 sps:$4 sm:$0xff]   ;;  %v1853_v57 = vld [vmem:[%s2112_s28 + $0x8] ss:$12 sps:$4 sm:$0xff]   ;;  %v1863_v4 = vld [vmem:[%s2112_s28 + $0x4c] ss:$12 sps:$4 sm:$0xff]  }
  0x45   : > { %1667 = vmatpush3.bf16.msra.mxu0 %v1833_v40  ;;  %900 = vmatprep.mubr.bf16.mxu0 %v1852_v56  ;;  %v1855_v60 = vld [vmem:[%s2112_s28 + $0x1c] ss:$12 sps:$4 sm:$0xff]   ;;  %v1861_v62 = vld [vmem:[%s2112_s28 + $0x38] ss:$12 sps:$4 sm:$0xff]   ;;  %v1858_v0 = vld [vmem:[%s2112_s28 + $0x34] ss:$12 sps:$4 sm:$0xff]  }
  0x46   : > { %1668 = vmatprep.subr.bf16.mxu0 %v1835_v42  ;;  %1758 = vmatprep.mubr.bf16.mxu1 %v1853_v57  ;;  %v1857_v63 = vld [vmem:[%s2112_s28 + $0x18] ss:$12 sps:$4 sm:$0xff]   ;;  %v1862_v1 = vld [vmem:[%s2112_s28 + $0x50] ss:$12 sps:$4 sm:$0xff]   ;;  %v1869_v2 = vld [vmem:[%s2112_s28 + $0x68] ss:$12 sps:$4 sm:$0xff]  }
  0x47   : > { %1747 = vmatpush3.bf16.msra.mxu1 %v1834_v41  ;;  %v1860_v3 = vld [vmem:[%s2112_s28 + $0x30] ss:$12 sps:$4 sm:$0xff]   ;;  %v1877_v6 = vld [vmem:[%s2112_s28 + $0x98] ss:$12 sps:$4 sm:$0xff]   ;;  %v1865_v7 = vld [vmem:[%s2112_s28 + $0x48] ss:$12 sps:$4 sm:$0xff]  }
  0x48   : > { %1748 = vmatprep.subr.bf16.mxu1 %v1837_v44  ;;  %v1866_v8 = vld [vmem:[%s2112_s28 + $0x64] ss:$12 sps:$4 sm:$0xff]   ;;  %v1868_v10 = vld [vmem:[%s2112_s28 + $0x60] ss:$12 sps:$4 sm:$0xff]   ;;  %v1871_v11 = vld [vmem:[%s2112_s28 + $0x7c] ss:$12 sps:$4 sm:$0xff]  }
  0x49   : > { %1669 = vmatpush3.bf16.msra.mxu0 %v1836_v43  ;;  %v1878_v9 = vld [vmem:[%s2112_s28 + $0xb0] ss:$12 sps:$4 sm:$0xff]   ;;  %v1873_v12 = vld [vmem:[%s2112_s28 + $0x78] ss:$12 sps:$4 sm:$0xff]   ;;  %v1874_v13 = vld [vmem:[%s2112_s28 + $0x94] ss:$12 sps:$4 sm:$0xff]  }
  0x4a   : > { %1670 = vmatprep.subr.bf16.mxu0 %v1838_v45  ;;  %v1876_v14 = vld [vmem:[%s2112_s28 + $0x90] ss:$12 sps:$4 sm:$0xff]   ;;  %v1879_v15 = vld [vmem:[%s2112_s28 + $0xac] ss:$12 sps:$4 sm:$0xff]   ;;  %v1881_v16 = vld [vmem:[%s2112_s28 + $0xa8] ss:$12 sps:$4 sm:$0xff]  }
  0x4b   : > { %1749 = vmatpush3.bf16.msra.mxu1 %v1837_v44  ;;  %v500_v23 = vld [vmem:[#allocation2] sm:$0xff]  ;;  %v501_v28 = vld [vmem:[#allocation2 + $0x8] sm:$0xff]  ;;  %v502_v38 = vld [vmem:[#allocation2 + $0x10] sm:$0xff] }
  0x4c   : > { %1750 = vmatprep.subr.bf16.mxu1 %v1840_v46  ;;  %v503_v44 = vld [vmem:[#allocation2 + $0x18] sm:$0xff] }
  0x4d   : > { %1671 = vmatpush3.bf16.msra.mxu0 %v1839_v47 }
  0x4e   : > { %1672 = vmatprep.subr.bf16.mxu0 %v1841_v48 }
  0x4f   : > { %1751 = vmatpush3.bf16.msra.mxu1 %v1840_v46 }
  0x50   : > { %1752 = vmatprep.subr.bf16.mxu1 %v1843_v49 }
  0x51   : > { %1673 = vmatpush3.bf16.msra.mxu0 %v1842_v50 }
  0x52   : > { %1674 = vmatprep.subr.bf16.mxu0 %v1844_v51 }
  0x53   : > { %1753 = vmatpush3.bf16.msra.mxu1 %v1843_v49 }
  0x54   : > { %1754 = vmatprep.subr.bf16.mxu1 %v1846_v53 }
  0x55   : > { %1675 = vmatpush3.bf16.msra.mxu0 %v1845_v52 }
  0x56   : > { %1676 = vmatprep.subr.bf16.mxu0 %v1847_v54 }
  0x57   : > { %1755 = vmatpush3.bf16.msra.mxu1 %v1846_v53 }
  0x58   : > { %1756 = vmatprep.subr.bf16.mxu1 %v1849_v55 }
  0x59   : > { %1677 = vmatpush3.bf16.msra.mxu0 %v1848_v58 }
  0x5b   : > { %1757 = vmatpush3.bf16.msra.mxu1 %v1849_v55  ;;  %v504_v55 = vld [vmem:[#allocation2 + $0x20] sm:$0xff] }
  0x5c   : > { %901 = vmatmul.mubr.bf16.vlgmr.msra.gmra.mrb[0].mxu0 %v1850_v59 }
  0x5d   : > { %908 = vmatprep.mubr.bf16.mxu0 %v1855_v60  ;;  %v505_v60 = vld [vmem:[#allocation2 + $0x28] sm:$0xff] }
  0x5e   : > { %1759 = vmatmul.mubr.bf16.vlgmr.msra.gmra.mrb[0].mxu1 %v1854_v61 }
  0x5f   : > { %1762 = vmatprep.mubr.bf16.mxu1 %v1861_v62 }
  0x64   : > { %909 = vmatmul.mubr.bf16.gmra.mrb[4].mxu0 %v1857_v63 }
  0x65   : > { %916 = vmatprep.mubr.bf16.mxu0 %v1858_v0 }
  0x66   : > { %1763 = vmatmul.mubr.bf16.gmra.mrb[4].mxu1 %v1862_v1 }
  0x67   : > { %1766 = vmatprep.mubr.bf16.mxu1 %v1869_v2 }
  0x6c   : > { %917 = vmatmul.mubr.bf16.gmra.mrb[8].mxu0 %v1860_v3 }
  0x6d   : > { %924 = vmatprep.mubr.bf16.mxu0 %v1863_v4 }
  0x6e   : > { %1767 = vmatmul.mubr.bf16.gmra.mrb[8].mxu1 %v1870_v5 }
  0x6f   : > { %1770 = vmatprep.mubr.bf16.mxu1 %v1877_v6  ;;  %v506_v6 = vld [vmem:[#allocation2 + $0x30] sm:$0xff] }
  0x74   : > { %925 = vmatmul.mubr.bf16.gmra.mrb[12].mxu0 %v1865_v7 }
  0x75   : > { %932 = vmatprep.mubr.bf16.mxu0 %v1866_v8 }
  0x76   : > { %1771 = vmatmul.mubr.bf16.gmra.mrb[12].mxu1 %v1878_v9 }
  0x7c   : > { %933 = vmatmul.mubr.bf16.gmra.mrb[16].mxu0 %v1868_v10 }
  0x7d   : > { %940 = vmatprep.mubr.bf16.mxu0 %v1871_v11 }
  0x84   : > { %941 = vmatmul.mubr.bf16.gmra.mrb[20].mxu0 %v1873_v12  ;;  %v507_v12 = vld [vmem:[#allocation2 + $0x38] sm:$0xff] }
  0x85   : > { %948 = vmatprep.mubr.bf16.mxu0 %v1874_v13 }
  0x8c   : > { %949 = vmatmul.mubr.bf16.gmra.mrb[24].mxu0 %v1876_v14 }
  0x8d   : > { %956 = vmatprep.mubr.bf16.mxu0 %v1879_v15 }
  0x94   : > { %957 = vmatmul.mubr.bf16.gmra.mrb[28].mxu0 %v1881_v16 }
 0x12f   : > { %v1678_v17 = vpop.f32.mrb[0].mxu0 }
 0x130   : > { %v1679_v18 = vpop.f32.mrb[1].mxu0 }
 0x131   : > { %v1680_v19 = vadd.f32 %v1679_v18, %v1678_v17  ;;  %v1681_v20 = vpop.f32.mrb[2].mxu0  ;;  %v1760_v21 = vpop.f32.mrb[0].mxu1 }
 0x132   : > { %v1682_v22 = vpop.f32.mrb[3].mxu0  ;;  %v999_v24 = vpop.f32.mrb[1].mxu1 }
 0x133   : > { %v1683_v25 = vadd.f32 %v1682_v22, %v1681_v20  ;;  %v1000_v26 = vadd.f32 %v1680_v19, %v999_v24  ;;  %v1761_v27 = vpop.f32.mrb[2].mxu1  ;;  %v508_v22 = vld [vmem:[#allocation2 + $0x40] sm:$0xff] }
 0x134   : > { %v1002_v29 = vpop.f32.mrb[3].mxu1 }
 0x135   : > { %v1062_v30 = vadd.f32 %v1000_v26, %v500_v23  ;;  %v1003_v31 = vadd.f32 %v1683_v25, %v1002_v29  ;;  %v509_v25 = vld [vmem:[#allocation2 + $0x48] sm:$0xff] }
 0x137   : > { %1078 = vst [vmem:[#allocation2] sm:$0xff] %v1062_v30  ;;  %v1063_v32 = vadd.f32 %v1003_v31, %v501_v28  ;;  %v1684_v33 = vpop.f32.mrb[4].mxu0 }
 0x138   : > { %v1685_v34 = vpop.f32.mrb[5].mxu0 }
 0x139   : > { %1079 = vst [vmem:[#allocation2 + $0x8] sm:$0xff] %v1063_v32  ;;  %v1686_v35 = vadd.f32 %v1685_v34, %v1684_v33  ;;  %v1687_v36 = vpop.f32.mrb[6].mxu0  ;;  %v1764_v37 = vpop.f32.mrb[4].mxu1  ;;  %v510_v33 = vld [vmem:[#allocation2 + $0x50] sm:$0xff] }
 0x13a   : > { %v1688_v39 = vpop.f32.mrb[7].mxu0  ;;  %v1015_v40 = vpop.f32.mrb[5].mxu1 }
 0x13b   : > { %v1008_v41 = vadd.f32 %v1760_v21, %v1686_v35  ;;  %v1689_v42 = vadd.f32 %v1688_v39, %v1687_v36  ;;  %v1765_v43 = vpop.f32.mrb[6].mxu1 }
 0x13c   : > { %v1018_v45 = vpop.f32.mrb[7].mxu1 }
 0x13d   : > { %v1064_v46 = vadd.f32 %v1008_v41, %v502_v38  ;;  %v1011_v47 = vadd.f32 %v1761_v27, %v1689_v42 }
 0x13f   : > { %1080 = vst [vmem:[#allocation2 + $0x10] sm:$0xff] %v1064_v46  ;;  %v1065_v48 = vadd.f32 %v1011_v47, %v503_v44  ;;  %v1690_v49 = vpop.f32.mrb[8].mxu0  ;;  %v512_v46 = vld [vmem:[#allocation2 + $0x60] sm:$0xff] }
 0x140   : > { %v1691_v50 = vpop.f32.mrb[9].mxu0 }
 0x141   : > { %1081 = vst [vmem:[#allocation2 + $0x18] sm:$0xff] %v1065_v48  ;;  %v1692_v51 = vadd.f32 %v1691_v50, %v1690_v49  ;;  %v1693_v52 = vpop.f32.mrb[10].mxu0  ;;  %v1768_v53 = vpop.f32.mrb[8].mxu1  ;;  %v513_v49 = vld [vmem:[#allocation2 + $0x68] sm:$0xff] }
 0x142   : > { %v1694_v54 = vpop.f32.mrb[11].mxu0  ;;  %v1031_v56 = vpop.f32.mrb[9].mxu1 }
 0x143   : > { %v1695_v57 = vadd.f32 %v1694_v54, %v1693_v52  ;;  %v1016_v58 = vadd.f32 %v1692_v51, %v1015_v40  ;;  %v1769_v59 = vpop.f32.mrb[10].mxu1 }
 0x144   : > { %v1034_v61 = vpop.f32.mrb[11].mxu1 }
 0x145   : > { %v1066_v62 = vadd.f32 %v1016_v58, %v504_v55  ;;  %v1019_v63 = vadd.f32 %v1695_v57, %v1018_v45  ;;  %v514_v57 = vld [vmem:[#allocation2 + $0x70] sm:$0xff] }
 0x147   : > { %1082 = vst [vmem:[#allocation2 + $0x20] sm:$0xff] %v1066_v62  ;;  %v1067_v0 = vadd.f32 %v1019_v63, %v505_v60  ;;  %v1696_v1 = vpop.f32.mrb[12].mxu0 }
 0x148   : > { %v1697_v2 = vpop.f32.mrb[13].mxu0 }
 0x149   : > { %1083 = vst [vmem:[#allocation2 + $0x28] sm:$0xff] %v1067_v0  ;;  %v1698_v3 = vadd.f32 %v1697_v2, %v1696_v1  ;;  %v1699_v4 = vpop.f32.mrb[14].mxu0  ;;  %v1772_v5 = vpop.f32.mrb[12].mxu1  ;;  %v1098_v1 = vld [vmem:[#allocation2] sm:$0xff] (!%p1573_p11) }
 0x14a   : > { %v1700_v7 = vpop.f32.mrb[15].mxu0  ;;  %v1047_v8 = vpop.f32.mrb[13].mxu1  ;;  %v1114_v2 = vld [vmem:[%s2307_s4] sm:$0xff] (!%p1573_p11) }
 0x14b   : > { %v1024_v9 = vadd.f32 %v1764_v37, %v1698_v3  ;;  %v1701_v10 = vadd.f32 %v1700_v7, %v1699_v4  ;;  %v1773_v11 = vpop.f32.mrb[14].mxu1  ;;  %v511_v37 = vld [vmem:[#allocation2 + $0x58] sm:$0xff]  ;;  %v1130_v3 = vadd.f32 (!%p1573_p11), %v1114_v2, %v1098_v1  ;;  %v2170_v4 = vld [vmem:[%s2305_s2] ss:$0 sm:$0xff] (!%p1573_p11)  ;;  %v1100_v7 = vld [vmem:[#allocation2 + $0x10] sm:$0xff] (!%p1573_p11) }
 0x14c   : > { %v1050_v13 = vpop.f32.mrb[15].mxu1 }
 0x14d   : > { %v1068_v14 = vadd.f32 %v1024_v9, %v506_v6  ;;  %v1027_v15 = vadd.f32 %v1765_v43, %v1701_v10  ;;  %v1115_v6 = vld [vmem:[%s2307_s4 + $0x8] sm:$0xff] (!%p1573_p11)  ;;  %v1116_v9 = vld [vmem:[%s2307_s4 + $0x10] sm:$0xff] (!%p1573_p11)  ;;  %v1101_v10 = vld [vmem:[#allocation2 + $0x18] sm:$0xff] (!%p1573_p11)  ;;  %1146 = vst [vmem:[#allocation4] sm:$0xff] (!%p1573_p11), %v1130_v3 }
 0x14f   : > { %1084 = vst [vmem:[#allocation2 + $0x30] sm:$0xff] %v1068_v14  ;;  %v1069_v16 = vadd.f32 %v1027_v15, %v507_v12  ;;  %v1702_v17 = vpop.f32.mrb[16].mxu0  ;;  %v1132_v12 = vadd.f32 (!%p1573_p11), %v1116_v9, %v1100_v7  ;;  %v1102_v14 = vld [vmem:[#allocation2 + $0x20] sm:$0xff] (!%p1573_p11) }
 0x150   : > { %v1703_v18 = vpop.f32.mrb[17].mxu0  ;;  %v1118_v15 = vld [vmem:[%s2307_s4 + $0x20] sm:$0xff] (!%p1573_p11) }
 0x151   : > { %1085 = vst [vmem:[#allocation2 + $0x38] sm:$0xff] %v1069_v16  ;;  %v1704_v19 = vadd.f32 %v1703_v18, %v1702_v17  ;;  %v1705_v20 = vpop.f32.mrb[18].mxu0  ;;  %v1103_v16 = vld [vmem:[#allocation2 + $0x28] sm:$0xff] (!%p1573_p11)  ;;  %v1134_v17 = vadd.f32 (!%p1573_p11), %v1118_v15, %v1102_v14  ;;  %1148 = vst [vmem:[#allocation4 + $0x10] sm:$0xff] (!%p1573_p11), %v1132_v12 }
 0x152   : > { %v1706_v21 = vpop.f32.mrb[19].mxu0  ;;  %v1119_v18 = vld [vmem:[%s2307_s4 + $0x28] sm:$0xff] (!%p1573_p11) }
 0x153   : > { %v1707_v23 = vadd.f32 %v1706_v21, %v1705_v20  ;;  %v1032_v24 = vadd.f32 %v1704_v19, %v1031_v56  ;;  %v1120_v20 = vld [vmem:[%s2307_s4 + $0x30] sm:$0xff] (!%p1573_p11)  ;;  %v1135_v21 = vadd.f32 (!%p1573_p11), %v1119_v18, %v1103_v16  ;;  %1150 = vst [vmem:[#allocation4 + $0x20] sm:$0xff] (!%p1573_p11), %v1134_v17 }
 0x155   : > { %v1070_v26 = vadd.f32 %v1032_v24, %v508_v22  ;;  %v1035_v27 = vadd.f32 %v1707_v23, %v1034_v61  ;;  %v515_v61 = vld [vmem:[#allocation2 + $0x78] sm:$0xff]  ;;  %1151 = vst [vmem:[#allocation4 + $0x28] sm:$0xff] (!%p1573_p11), %v1135_v21 }
 0x156   : > { %v1104_v19 = vld [vmem:[#allocation2 + $0x30] sm:$0xff] (!%p1573_p11)  ;;  %v1121_v24 = vld [vmem:[%s2307_s4 + $0x38] sm:$0xff] (!%p1573_p11) }
 0x157   : > { %1086 = vst [vmem:[#allocation2 + $0x40] sm:$0xff] %v1070_v26  ;;  %v1071_v28 = vadd.f32 %v1035_v27, %v509_v25  ;;  %v1708_v29 = vpop.f32.mrb[20].mxu0  ;;  %v1136_v22 = vadd.f32 (!%p1573_p11), %v1120_v20, %v1104_v19  ;;  %v1169_v26 = vmul.f32 (!%p1573_p11), %v2170_v4, %v1130_v3 }
 0x158   : > { %v1709_v30 = vpop.f32.mrb[21].mxu0  ;;  %v1105_v23 = vld [vmem:[#allocation2 + $0x38] sm:$0xff] (!%p1573_p11) }
 0x159   : > { %1087 = vst [vmem:[#allocation2 + $0x48] sm:$0xff] %v1071_v28  ;;  %v1710_v31 = vadd.f32 %v1709_v30, %v1708_v29  ;;  %v1711_v32 = vpop.f32.mrb[22].mxu0  ;;  %v1137_v27 = vadd.f32 (!%p1573_p11), %v1121_v24, %v1105_v23  ;;  %v1122_v28 = vld [vmem:[%s2307_s4 + $0x40] sm:$0xff] (!%p1573_p11)  ;;  %v1123_v30 = vld [vmem:[%s2307_s4 + $0x48] sm:$0xff] (!%p1573_p11)  ;;  %1152 = vst [vmem:[#allocation4 + $0x30] sm:$0xff] (!%p1573_p11), %v1136_v22 }
 0x15a   : > { %v1712_v34 = vpop.f32.mrb[23].mxu0 }
 0x15b   : > { %v1040_v35 = vadd.f32 %v1768_v53, %v1710_v31  ;;  %v1713_v36 = vadd.f32 %v1712_v34, %v1711_v32  ;;  %v1171_v32 = vmul.f32 (!%p1573_p11), %v2170_v4, %v1132_v12  ;;  %1153 = vst [vmem:[#allocation4 + $0x38] sm:$0xff] (!%p1573_p11), %v1137_v27 }
 0x15d   : > { %v1072_v38 = vadd.f32 %v1040_v35, %v510_v33  ;;  %v1043_v39 = vadd.f32 %v1769_v59, %v1713_v36  ;;  %v1124_v36 = vld [vmem:[%s2307_s4 + $0x50] sm:$0xff] (!%p1573_p11) }
 0x15e   : > { %v1106_v25 = vld [vmem:[#allocation2 + $0x40] sm:$0xff] (!%p1573_p11) }
 0x15f   : > { %1088 = vst [vmem:[#allocation2 + $0x50] sm:$0xff] %v1072_v38  ;;  %v1073_v40 = vadd.f32 %v1043_v39, %v511_v37  ;;  %v1714_v41 = vpop.f32.mrb[24].mxu0  ;;  %v1138_v33 = vadd.f32 (!%p1573_p11), %v1122_v28, %v1106_v25  ;;  %v1173_v39 = vmul.f32 (!%p1573_p11), %v2170_v4, %v1134_v17 }
 0x160   : > { %v1715_v42 = vpop.f32.mrb[25].mxu0  ;;  %v1107_v29 = vld [vmem:[#allocation2 + $0x48] sm:$0xff] (!%p1573_p11) }
 0x161   : > { %1089 = vst [vmem:[#allocation2 + $0x58] sm:$0xff] %v1073_v40  ;;  %v1716_v43 = vadd.f32 %v1715_v42, %v1714_v41  ;;  %v1717_v44 = vpop.f32.mrb[26].mxu0  ;;  %v1139_v34 = vadd.f32 (!%p1573_p11), %v1123_v30, %v1107_v29  ;;  %v1174_v40 = vmul.f32 (!%p1573_p11), %v2170_v4, %v1135_v21  ;;  %v1125_v42 = vld [vmem:[%s2307_s4 + $0x58] sm:$0xff] (!%p1573_p11)  ;;  %1154 = vst [vmem:[#allocation4 + $0x40] sm:$0xff] (!%p1573_p11), %v1138_v33 }
 0x162   : > { %v1718_v45 = vpop.f32.mrb[27].mxu0 }
 0x163   : > { %v1719_v47 = vadd.f32 %v1718_v45, %v1717_v44  ;;  %v1048_v48 = vadd.f32 %v1716_v43, %v1047_v8  ;;  %v1126_v44 = vld [vmem:[%s2307_s4 + $0x60] sm:$0xff] (!%p1573_p11)  ;;  %v1175_v45 = vmul.f32 (!%p1573_p11), %v2170_v4, %v1136_v22  ;;  %1155 = vst [vmem:[#allocation4 + $0x48] sm:$0xff] (!%p1573_p11), %v1139_v34 }
 0x165   : > { %v1074_v50 = vadd.f32 %v1048_v48, %v512_v46  ;;  %v1051_v51 = vadd.f32 %v1719_v47, %v1050_v13  ;;  %v1176_v46 = vmul.f32 (!%p1573_p11), %v2170_v4, %v1137_v27 }
 0x166   : > { %v1108_v35 = vld [vmem:[#allocation2 + $0x50] sm:$0xff] (!%p1573_p11) }
 0x167   : > { %1090 = vst [vmem:[#allocation2 + $0x60] sm:$0xff] %v1074_v50  ;;  %v1075_v52 = vadd.f32 %v1051_v51, %v513_v49  ;;  %v1720_v53 = vpop.f32.mrb[28].mxu0  ;;  %v1140_v41 = vadd.f32 (!%p1573_p11), %v1124_v36, %v1108_v35  ;;  %v1127_v50 = vld [vmem:[%s2307_s4 + $0x68] sm:$0xff] (!%p1573_p11) }
 0x168   : > { %v1721_v54 = vpop.f32.mrb[29].mxu0  ;;  %v1109_v37 = vld [vmem:[#allocation2 + $0x58] sm:$0xff] (!%p1573_p11) }
 0x169   : > { %1091 = vst [vmem:[#allocation2 + $0x68] sm:$0xff] %v1075_v52  ;;  %v1722_v55 = vadd.f32 %v1721_v54, %v1720_v53  ;;  %v1723_v56 = vpop.f32.mrb[30].mxu0  ;;  %v1141_v47 = vadd.f32 (!%p1573_p11), %v1125_v42, %v1109_v37  ;;  %v1177_v52 = vmul.f32 (!%p1573_p11), %v2170_v4, %v1138_v33  ;;  %v1178_v53 = vmul.f32 (!%p1573_p11), %v2170_v4, %v1139_v34 }
 0x16a   : > { %v1724_v58 = vpop.f32.mrb[31].mxu0  ;;  %1156 = vst [vmem:[#allocation4 + $0x50] sm:$0xff] (!%p1573_p11), %v1140_v41  ;;  %v1179_v54 = vmul.f32 (!%p1573_p11), %v2170_v4, %v1140_v41 }
 0x16b   : > { %v1056_v59 = vadd.f32 %v1772_v5, %v1722_v55  ;;  %v1725_v60 = vadd.f32 %v1724_v58, %v1723_v56  ;;  %1097 = sbr.rel (%p1573_p11) target bundleno = 388 (0x184), region = 74  ;;  %v1099_v5 = vld [vmem:[#allocation2 + $0x8] sm:$0xff] (!%p1573_p11)  ;;  %v1128_v56 = vld [vmem:[%s2307_s4 + $0x70] sm:$0xff] (!%p1573_p11)  ;;  %v1129_v58 = vld [vmem:[%s2307_s4 + $0x78] sm:$0xff] (!%p1573_p11)  ;;  %1157 = vst [vmem:[#allocation4 + $0x58] sm:$0xff] (!%p1573_p11), %v1141_v47 }
 0x16c   : > { %v1131_v8 = vadd.f32 (!%p1573_p11), %v1115_v6, %v1099_v5 }
 0x16d   : > { %v1076_v62 = vadd.f32 %v1056_v59, %v514_v57  ;;  %v1059_v63 = vadd.f32 %v1773_v11, %v1725_v60  ;;  %v1117_v11 = vld [vmem:[%s2307_s4 + $0x18] sm:$0xff] (!%p1573_p11)  ;;  %v1180_v59 = vmul.f32 (!%p1573_p11), %v2170_v4, %v1141_v47 }
 0x16e   : > { %v1133_v13 = vadd.f32 (!%p1573_p11), %v1117_v11, %v1101_v10  ;;  %1147 = vst [vmem:[#allocation4 + $0x8] sm:$0xff] (!%p1573_p11), %v1131_v8  ;;  %v1170_v31 = vmul.f32 (!%p1573_p11), %v2170_v4, %v1131_v8  ;;  %v1110_v43 = vld [vmem:[#allocation2 + $0x60] sm:$0xff] (!%p1573_p11) }
 0x16f   : > { %1092 = vst [vmem:[#allocation2 + $0x70] sm:$0xff] %v1076_v62  ;;  %v1077_v0 = vadd.f32 %v1059_v63, %v515_v61  ;;  %v1142_v48 = vadd.f32 (!%p1573_p11), %v1126_v44, %v1110_v43  ;;  %v1575_v63 = vld [vmem:[%s2306_s3] ss:$0 sm:$0xff] (!%p1573_p11) }
 0x170   : > { %1149 = vst [vmem:[#allocation4 + $0x18] sm:$0xff] (!%p1573_p11), %v1133_v13  ;;  %v1172_v38 = vmul.f32 (!%p1573_p11), %v2170_v4, %v1133_v13  ;;  %v1111_v49 = vld [vmem:[#allocation2 + $0x68] sm:$0xff] (!%p1573_p11)  ;;  %v1192_v1 = vadd.f32 (!%p1573_p11), %v1575_v63, %v1169_v26  ;;  %v1193_v2 = vadd.f32 (!%p1573_p11), %v1575_v63, %v1170_v31  ;;  %v1194_v3 = vadd.f32 (!%p1573_p11), %v1575_v63, %v1171_v32 }
 0x171   : > { %1093 = vst [vmem:[#allocation2 + $0x78] sm:$0xff] %v1077_v0  ;;  %v1143_v55 = vadd.f32 (!%p1573_p11), %v1127_v50, %v1111_v49  ;;  %1158 = vst [vmem:[#allocation4 + $0x60] sm:$0xff] (!%p1573_p11), %v1142_v48  ;;  %v1181_v60 = vmul.f32 (!%p1573_p11), %v2170_v4, %v1142_v48  ;;  %v1196_v8 = vadd.f32 (!%p1573_p11), %v1575_v63, %v1173_v39 }
 0x172   : > { %v1195_v7 = vadd.f32 %v1575_v63, %v1172_v38  ;;  %v1208_v9 = vmax.f32 %v1192_v1, 0.0  ;;  %v1209_v10 = vmax.f32 %v1193_v2, 0.0  ;;  %v1210_v11 = vmax.f32 %v1194_v3, 0.0 }
 0x173   : > { %1159 = vst [vmem:[#allocation4 + $0x68] sm:$0xff] %v1143_v55  ;;  %v1182_v0 = vmul.f32 %v2170_v4, %v1143_v55  ;;  %v1197_v12 = vadd.f32 %v1575_v63, %v1174_v40  ;;  %v1212_v14 = vmax.f32 %v1196_v8, 0.0  ;;  %v1198_v15 = vadd.f32 %v1575_v63, %v1175_v45 }
 0x174   : > { %v1211_v13 = vmax.f32 %v1195_v7, 0.0  ;;  %v1199_v16 = vadd.f32 %v1575_v63, %v1176_v46  ;;  %v1618_v17 = vpack.c.bf16 %v1209_v10, %v1208_v9  ;;  %v1200_v19 = vadd.f32 %v1575_v63, %v1177_v52 }
 0x175   : > { %v1213_v18 = vmax.f32 %v1197_v12, 0.0  ;;  %v1201_v20 = vadd.f32 %v1575_v63, %v1178_v53  ;;  %v1214_v22 = vmax.f32 %v1198_v15, 0.0  ;;  %v1202_v24 = vadd.f32 %v1575_v63, %v1179_v54 }
 0x176   : > { %v1112_v51 = vld [vmem:[#allocation2 + $0x70] sm:$0xff]  ;;  %v1623_v21 = vpack.c.bf16 %v1211_v13, %v1210_v11  ;;  %v1215_v23 = vmax.f32 %v1199_v16, 0.0  ;;  %1619 = vst [vmem:[%s2309_s6] sm:$0xff] %v1618_v17   ;;  %v1216_v25 = vmax.f32 %v1200_v19, 0.0  ;;  %v1203_v27 = vadd.f32 %v1575_v63, %v1180_v59 }
 0x177   : > { %v1144_v61 = vadd.f32 %v1128_v56, %v1112_v51  ;;  %v1217_v26 = vmax.f32 %v1201_v20, 0.0  ;;  %v1218_v29 = vmax.f32 %v1202_v24, 0.0  ;;  %v1204_v30 = vadd.f32 %v1575_v63, %v1181_v60 }
 0x178   : > { %v1113_v57 = vld [vmem:[#allocation2 + $0x78] sm:$0xff]  ;;  %1655 = vst [vmem:[%s2309_s6 + $0x8] sm:$0xff] %v1623_v21   ;;  %v1633_v28 = vpack.c.bf16 %v1215_v23, %v1214_v22  ;;  %v1205_v31 = vadd.f32 %v1575_v63, %v1182_v0  ;;  %v1219_v33 = vmax.f32 %v1203_v27, 0.0 }
 0x179   : > { %v1145_v62 = vadd.f32 %v1129_v58, %v1113_v57  ;;  %1160 = vst [vmem:[#allocation4 + $0x70] sm:$0xff] %v1144_v61  ;;  %v1183_v5 = vmul.f32 %v2170_v4, %v1144_v61  ;;  %v1638_v32 = vpack.c.bf16 %v1217_v26, %v1216_v25  ;;  %v1220_v36 = vmax.f32 %v1204_v30, 0.0 }
 0x17a   : > { %1657 = vst [vmem:[%s2309_s6 + $0x18] sm:$0xff] %v1633_v28   ;;  %v1221_v37 = vmax.f32 %v1205_v31, 0.0  ;;  %v1643_v38 = vpack.c.bf16 %v1219_v33, %v1218_v29 }
 0x17b   : > { %1161 = vst [vmem:[#allocation4 + $0x78] sm:$0xff] %v1145_v62  ;;  %v1184_v6 = vmul.f32 %v2170_v4, %v1145_v62  ;;  %v1628_v4 = vpack.c.bf16 %v1213_v18, %v1212_v14  ;;  %v1206_v34 = vadd.f32 %v1575_v63, %v1183_v5  ;;  %1658 = vst [vmem:[%s2309_s6 + $0x20] sm:$0xff] %v1638_v32  }
 0x17c   : > { %v1648_v41 = vpack.c.bf16 %v1221_v37, %v1220_v36  ;;  %1659 = vst [vmem:[%s2309_s6 + $0x28] sm:$0xff] %v1643_v38  }
 0x17d   : > { %1656 = vst [vmem:[%s2309_s6 + $0x10] sm:$0xff] %v1628_v4   ;;  %v1207_v35 = vadd.f32 %v1575_v63, %v1184_v6  ;;  %v1222_v39 = vmax.f32 %v1206_v34, 0.0 }
 0x17e   : > { %1660 = vst [vmem:[%s2309_s6 + $0x30] sm:$0xff] %v1648_v41  }
 0x17f   : > { %v1223_v40 = vmax.f32 %v1207_v35, 0.0 }
 0x181   : > { %v1653_v42 = vpack.c.bf16 %v1223_v40, %v1222_v39 }
 0x183   : > { %1661 = vst [vmem:[%s2309_s6 + $0x38] sm:$0xff] %v1653_v42  }
 0x184 PF: > { %p2262_p12 = scmp.eq.s32.totalorder %s1483_s26, 1  ;;  %s1953_s28 = smov [#allocation4]  }
 0x185   : > { %s1322_s21 = sshll.u32 %s1953_s28, 4  ;;  %s1323_s21 = int_to_ptr.vmem [resolvable:$true] %s1322_s21 }
 0x186   : > { %s1882_s29 = scalar_lea.vmem %s1323_s21, 2048  ;;  %p1889_p2 = scmp.lt.s32.totalorder %s1323_s21, %s1323_s21 }
 0x187   : > { %p1883_p13 = scmp.ne.s32.totalorder %s1323_s21, %s1882_s29  ;;  %p1890_p3 = scmp.lt.s32.totalorder %s1882_s29, %s1882_s29 }
 0x189   : > { %p1884_p0 = pnand %p1883_p13, %p2262_p12  ;;  %p1891_p4 = por %p1890_p3, %p1889_p2 }
 0x18b   : > { %p1885_p1 = pneg %p1884_p0 }
 0x18d   : > { %p1892_p5 = pnand %p1891_p4, %p1885_p1 }
 0x18f   : > { %1895 = shalt.err (!%p1892_p5)
}
 0x190   : > { %s1896_s26 = scalar_lea.hbm %s2308_s5, 2048 }
 0x191   : > { %p1897_p6 = scmp.ne.s32.totalorder %s2308_s5, %s1896_s26  ;;  %p1902_p9 = scmp.lt.u32.totalorder %s1896_s26, %s2308_s5 }
 0x193   : > { %p1898_p7 = pnand %p1897_p6, %p2262_p12 }
 0x195   : > { %p1899_p8 = pneg %p1898_p7 }
 0x197   : > { %p1904_p10 = pnand %p1902_p9, %p1899_p8 }
 0x199   : > { %1907 = shalt.err (!%p1904_p10)
}
 0x19a   : > { %s1954_s12 = smov 128   ;;  %s1955_s13 = smov 8  }
 0x19b   : > { %1777 = dma.vmem_to_hbm [thread:$0]  (%p2262_p12), %s1323_s21, 2048, %s2308_s5, [#allocation5], %s1954_s12, %s1954_s12, %s1955_s13  }
 0x19c   : > { %1929 = dma.done.wait (%p2262_p12), [#allocation5], 2048  }
 0x19d   : > { %1931 = vsyncadd (%p2262_p12), [#allocation5], 4294965248 }
 0x19e PF: > { %s18_s25 = sadd.s32 1, %s1950_s25   ;;  %s2311_s21 = smov %s1938_s22 }
 0x19f   : > { %p15_p11 = scmp.ge.s32.totalorder %s18_s25, 4   ;;  %s2312_s22 = smov %s2027_s30 }
 0x1a0   : > { %s2313_s23 = smov %s1946_s24  ;;  %s2314_s24 = smov %s2316_s27 }
 0x1a1   :  { %17 = sbr.rel (!%p15_p11) target bundleno = 3 (0x3), region = 137 }
 0x1a8   :  { %1353 = vsyncpa [#allocation5], 1 }
 0x1a9   :  { %1355 = vsyncpa [#allocation5 + $0x1], 1 }

// kernel: _lambda_.15
= control target key start
LH: loop header
LB: loop body
LE: loop exit
PB: predicated region body
PF: predicated region fallthrough
CT: control target
= control target key end

     0   :  { %s1142_s15 = smov 0   ;;  %s1144_s16 = smov 0   ;;  %s1255_s0 = inlined_call_operand.vmem [shape: bf16[32,768], index: 0, kind: input, shape index: {}]   ;;  %s1256_s1 = inlined_call_operand.vmem [shape: bf16[768,128], index: 1, kind: input, shape index: {}]   ;;  %s1257_s2 = inlined_call_operand.vmem [shape: f32[1,128], index: 2, kind: input, shape index: {}]   ;;  %s1258_s3 = inlined_call_operand.vmem [shape: f32[1,128], index: 3, kind: input, shape index: {}]   ;;  %s1259_s4 = inlined_call_operand.vmem [shape: bf16[32,128], index: 4, kind: output, shape index: {}]  }
   0x1   :  { %s1146_s17 = smov 0   ;;  %s1148_s18 = smov 0  }
   0x2   :  { %s1150_s19 = smov 0  }
   0x3 LB: > { %s26_s20 = sadd.s32 1, %s1110_s18  ;;  %p49_p1 = scmp.ne.s32.totalorder %s1102_s16, %s1098_s15  ;;  %s1114_s19 = sphi %s1150_s19, %s14_s19   ;;  %s1110_s18 = sphi %s1148_s18, %s1263_s18   ;;  %s1106_s17 = sphi %s1146_s17, %s1262_s17   ;;  %s1102_s16 = sphi %s1144_s16, %s1261_s16   ;;  %s1098_s15 = sphi %s1142_s15, %s1260_s15  }
   0x4   : > { %p27_p0 = scmp.ge.s32.totalorder %s26_s20, 2  ;;  %p50_p2 = scmp.eq.s32.totalorder %s1114_s19, 0 }
   0x5   : > { %s42_s22 = sadd.s32 1, %s1102_s16  ;;  %p873_p5 = scmp.ge.s32.totalorder %s1114_s19, 2 }
   0x6   : > { %s1265_s20 = smov (%p27_p0, %s26_s20), 0  ;;  %p51_p3 = por %p50_p2, %p49_p1 }
   0x7   : > { %s38_s21 = ssub.s32 %s1110_s18, %s1265_s20  ;;  %195 = sbr.rel (%p873_p5) target bundleno = 23 (0x17), region = 24 }
   0x8   : > { %p40_p4 = scmp.eq.s32.totalorder %s38_s21, 0 }
   0xa   : > { %s1177_s23 = scalar_select %p40_p4, %s1102_s16, %s42_s22  }
   0xe   : > { %198 = sbr.rel (!%p51_p3) target bundleno = 23 (0x17), region = 28  ;;  %s200_s24 = sand.u32 (%p51_p3), 1, %s1102_s16  }
   0xf   : > { %s927_s25 = smul.u32 (%p51_p3), 12, %s1110_s18 }
  0x10   : > { %s1001_s26 = smul.u32 (%p51_p3), 48, %s200_s24 }
  0x11   : > { %s208_s29 = scalar_lea.vmem (%p51_p3), %s1255_s0, %s927_s25 }
  0x12   : > { %v223_v0 = vld [vmem:[%s208_s29] sm:$0xff] (%p51_p3)  ;;  %v225_v1 = vld [vmem:[%s208_s29 + $0x18] sm:$0xff] (%p51_p3)  ;;  %v227_v2 = vld [vmem:[%s208_s29 + $0x30] sm:$0xff] (%p51_p3)  ;;  %s202_s30 = scalar_lea.vmem (%p51_p3), [#allocation3], %s1001_s26 }
  0x13   : > { %224 = vst [vmem:[%s202_s30] sm:$0xff] (%p51_p3), %v223_v0  ;;  %226 = vst [vmem:[%s202_s30 + $0xc] sm:$0xff] (%p51_p3), %v225_v1  ;;  %v229_v3 = vld [vmem:[%s208_s29 + $0x48] sm:$0xff] (%p51_p3)  ;;  %v877_v5 = vld [vmem:[%s208_s29 + $0x20] sm:$0xf] (%p51_p3) }
  0x14   : > { %228 = vst [vmem:[%s202_s30 + $0x18] sm:$0xff] (%p51_p3), %v227_v2  ;;  %v875_v4 = vld [vmem:[%s208_s29 + $0x8] sm:$0xf] (%p51_p3)  ;;  %230 = vst [vmem:[%s202_s30 + $0x24] sm:$0xff] (%p51_p3), %v229_v3  ;;  %v879_v6 = vld [vmem:[%s208_s29 + $0x38] sm:$0xf] (%p51_p3) }
  0x15   : > { %876 = vst [vmem:[%s202_s30 + $0x8] sm:$0xf] %v875_v4  ;;  %878 = vst [vmem:[%s202_s30 + $0x14] sm:$0xf] %v877_v5  ;;  %v881_v7 = vld [vmem:[%s208_s29 + $0x50] sm:$0xf] }
  0x16   : > { %880 = vst [vmem:[%s202_s30 + $0x20] sm:$0xf] %v879_v6  ;;  %882 = vst [vmem:[%s202_s30 + $0x2c] sm:$0xf] %v881_v7 }
  0x17 PF: > { %p883_p6 = scmp.ge.s32.totalorder %s1114_s19, 1  ;;  %p262_p7 = scmp.lt.s32.totalorder %s1114_s19, 3 }
  0x19   : > { %p263_p8 = pnand %p883_p6, %p262_p7 }
  0x1a   : > { %s269_s5 = sand.u32 (!%p263_p8), 1, %s1098_s15   ;;  %s313_s6 = smul.u32 (!%p263_p8), 48, %s1106_s17 }
  0x1b   : > { %266 = sbr.rel (%p263_p8) target bundleno = 320 (0x140), region = 58  ;;  %p885_p10 = scmp.ne.s32.totalorder (!%p263_p8), %s1106_s17, 0 }
  0x1c   : > { %s1002_s7 = smul.u32 (!%p263_p8), 48, %s269_s5  ;;  %p314_p9 = scmp.lt.s32.totalorder (!%p263_p8), %s313_s6, 95 }
  0x1e   : > { %s1194_s12 = scalar_lea.vmem (!%p263_p8), [#allocation3], %s1002_s7 }
  0x22   : > { %s1267_s6 = smov (!%p314_p9, %s313_s6), 95  ;;  %341 = sbr.rel (%p885_p10) target bundleno = 41 (0x29), region = 66 }
  0x23   : > { %s884_s8 = sshll.u32 %s1267_s6, 2  ;;  %v1116_v8 = vmov (!%p885_p10), 0.0  }
  0x24   : > { %s1192_s11 = scalar_lea.vmem %s1256_s1, %s884_s8  ;;  %342 = vst [vmem:[#allocation2] sm:$0xff] (!%p885_p10), %v1116_v8  ;;  %343 = vst [vmem:[#allocation2 + $0x8] sm:$0xff] (!%p885_p10), %v1116_v8 }
  0x25   : > { %344 = vst [vmem:[#allocation2 + $0x10] sm:$0xff] (!%p885_p10), %v1116_v8  ;;  %345 = vst [vmem:[#allocation2 + $0x18] sm:$0xff] (!%p885_p10), %v1116_v8 }
  0x29 PF: > { %v1044_v9 = vld [vmem:[%s1192_s11 + $0x40] sm:$0xff]   ;;  %v1047_v12 = vld [vmem:[%s1192_s11 + $0x48] sm:$0xff]   ;;  %v1050_v15 = vld [vmem:[%s1192_s11 + $0x50] sm:$0xff]   ;;  %p916_p11 = scmp.ne.s32.totalorder %s1106_s17, 1 }
  0x2a   : > { %v1045_v10 = vld [vmem:[%s1192_s11] sm:$0xff]   ;;  %943 = vmatprep.subr.bf16.mxu0 %v1044_v9  ;;  %v1048_v13 = vld [vmem:[%s1192_s11 + $0x8] sm:$0xff]   ;;  %v1051_v16 = vld [vmem:[%s1192_s11 + $0x10] sm:$0xff]  }
  0x2b   : > { %v1046_v11 = vld [vmem:[%s1192_s11 + $0x80] sm:$0xff]   ;;  %944 = vmatpush3.bf16.msra.mxu0 %v1045_v10  ;;  %v1049_v14 = vld [vmem:[%s1192_s11 + $0x88] sm:$0xff]   ;;  %v1052_v17 = vld [vmem:[%s1192_s11 + $0x90] sm:$0xff]  }
  0x2c   : > { %981 = vmatprep.subr.bf16.mxu1 %v1046_v11  ;;  %945 = vmatprep.subr.bf16.mxu0 %v1047_v12  ;;  %v1053_v18 = vld [vmem:[%s1192_s11 + $0x58] sm:$0xff]   ;;  %v1056_v21 = vld [vmem:[%s1192_s11 + $0x60] sm:$0xff]   ;;  %v1059_v24 = vld [vmem:[%s1192_s11 + $0x68] sm:$0xff]  }
  0x2d   : > { %982 = vmatpush3.bf16.msra.mxu1 %v1046_v11  ;;  %v1054_v19 = vld [vmem:[%s1192_s11 + $0x18] sm:$0xff]   ;;  %v1058_v22 = vld [vmem:[%s1192_s11 + $0xa0] sm:$0xff]   ;;  %v1061_v25 = vld [vmem:[%s1192_s11 + $0xa8] sm:$0xff]  }
  0x2e   : > { %983 = vmatprep.subr.bf16.mxu1 %v1049_v14  ;;  %v1055_v20 = vld [vmem:[%s1192_s11 + $0x98] sm:$0xff]   ;;  %v1057_v23 = vld [vmem:[%s1192_s11 + $0x20] sm:$0xff]   ;;  %v1060_v26 = vld [vmem:[%s1192_s11 + $0x28] sm:$0xff]  }
  0x2f   : > { %946 = vmatpush3.bf16.msra.mxu0 %v1048_v13  ;;  %v1062_v27 = vld [vmem:[%s1192_s11 + $0x70] sm:$0xff]   ;;  %v1065_v30 = vld [vmem:[%s1192_s11 + $0x78] sm:$0xff]   ;;  %v346_v45 = vld [vmem:[#allocation2] sm:$0xff] }
  0x30   : > { %947 = vmatprep.subr.bf16.mxu0 %v1050_v15  ;;  %v1063_v28 = vld [vmem:[%s1192_s11 + $0x30] sm:$0xff]   ;;  %v1067_v31 = vld [vmem:[%s1192_s11 + $0xb8] sm:$0xff]   ;;  %v347_v50 = vld [vmem:[#allocation2 + $0x8] sm:$0xff] }
  0x31   : > { %984 = vmatpush3.bf16.msra.mxu1 %v1049_v14  ;;  %v1064_v29 = vld [vmem:[%s1192_s11 + $0xb0] sm:$0xff]   ;;  %v1066_v34 = vld [vmem:[%s1192_s11 + $0x38] sm:$0xff]   ;;  %v917_v5 = vld [vmem:[%s1257_s2] ss:$0 sm:$0xff] (!%p916_p11) }
  0x32   : > { %985 = vmatprep.subr.bf16.mxu1 %v1052_v17  ;;  %v1070_v32 = vld [vmem:[%s1194_s12 + $0x4] ss:$12 sps:$4 sm:$0xff]   ;;  %v1071_v33 = vld [vmem:[%s1194_s12 + $0x8] ss:$12 sps:$4 sm:$0xff]   ;;  %v1068_v35 = vld [vmem:[%s1194_s12] ss:$12 sps:$4 sm:$0xff]  }
  0x33   : > { %948 = vmatpush3.bf16.msra.mxu0 %v1051_v16  ;;  %614 = vmatprep.mubr.bf16.mxu0 %v1070_v32  ;;  %v1073_v36 = vld [vmem:[%s1194_s12 + $0x1c] ss:$12 sps:$4 sm:$0xff]   ;;  %v1072_v37 = vld [vmem:[%s1194_s12 + $0x20] ss:$12 sps:$4 sm:$0xff]   ;;  %v1075_v38 = vld [vmem:[%s1194_s12 + $0x18] ss:$12 sps:$4 sm:$0xff]  }
  0x34   : > { %949 = vmatprep.subr.bf16.mxu0 %v1053_v18  ;;  %997 = vmatprep.mubr.bf16.mxu1 %v1071_v33  ;;  %v348_v59 = vld [vmem:[#allocation2 + $0x10] sm:$0xff]  ;;  %v349_v63 = vld [vmem:[#allocation2 + $0x18] sm:$0xff]  ;;  %v918_v8 = vld [vmem:[%s1258_s3] ss:$0 sm:$0xff] (!%p916_p11) }
  0x35   : > { %986 = vmatpush3.bf16.msra.mxu1 %v1052_v17 }
  0x36   : > { %987 = vmatprep.subr.bf16.mxu1 %v1055_v20 }
  0x37   : > { %950 = vmatpush3.bf16.msra.mxu0 %v1054_v19 }
  0x38   : > { %951 = vmatprep.subr.bf16.mxu0 %v1056_v21 }
  0x39   : > { %988 = vmatpush3.bf16.msra.mxu1 %v1055_v20 }
  0x3a   : > { %989 = vmatprep.subr.bf16.mxu1 %v1058_v22 }
  0x3b   : > { %952 = vmatpush3.bf16.msra.mxu0 %v1057_v23 }
  0x3c   : > { %953 = vmatprep.subr.bf16.mxu0 %v1059_v24 }
  0x3d   : > { %990 = vmatpush3.bf16.msra.mxu1 %v1058_v22 }
  0x3e   : > { %991 = vmatprep.subr.bf16.mxu1 %v1061_v25 }
  0x3f   : > { %954 = vmatpush3.bf16.msra.mxu0 %v1060_v26 }
  0x40   : > { %955 = vmatprep.subr.bf16.mxu0 %v1062_v27 }
  0x41   : > { %992 = vmatpush3.bf16.msra.mxu1 %v1061_v25 }
  0x42   : > { %993 = vmatprep.subr.bf16.mxu1 %v1064_v29 }
  0x43   : > { %956 = vmatpush3.bf16.msra.mxu0 %v1063_v28 }
  0x44   : > { %957 = vmatprep.subr.bf16.mxu0 %v1065_v30 }
  0x45   : > { %994 = vmatpush3.bf16.msra.mxu1 %v1064_v29 }
  0x46   : > { %995 = vmatprep.subr.bf16.mxu1 %v1067_v31 }
  0x47   : > { %958 = vmatpush3.bf16.msra.mxu0 %v1066_v34 }
  0x49   : > { %996 = vmatpush3.bf16.msra.mxu1 %v1067_v31 }
  0x4a   : > { %615 = vmatmul.mubr.bf16.vlgmr.msra.gmra.mrb[0].mxu0 %v1068_v35 }
  0x4b   : > { %622 = vmatprep.mubr.bf16.mxu0 %v1073_v36 }
  0x4c   : > { %998 = vmatmul.mubr.bf16.vlgmr.msra.gmra.mrb[0].mxu1 %v1072_v37 }
  0x52   : > { %623 = vmatmul.mubr.bf16.gmra.mrb[4].mxu0 %v1075_v38 }
 0x11d   : > { %v959_v39 = vpop.f32.mrb[0].mxu0 }
 0x11e   : > { %v960_v40 = vpop.f32.mrb[1].mxu0 }
 0x11f   : > { %v961_v41 = vadd.f32 %v960_v40, %v959_v39  ;;  %v962_v42 = vpop.f32.mrb[2].mxu0  ;;  %v999_v43 = vpop.f32.mrb[0].mxu1 }
 0x120   : > { %v963_v44 = vpop.f32.mrb[3].mxu0  ;;  %v665_v46 = vpop.f32.mrb[1].mxu1 }
 0x121   : > { %v964_v47 = vadd.f32 %v963_v44, %v962_v42  ;;  %v666_v48 = vadd.f32 %v961_v41, %v665_v46  ;;  %v1000_v49 = vpop.f32.mrb[2].mxu1 }
 0x122   : > { %v668_v51 = vpop.f32.mrb[3].mxu1 }
 0x123   : > { %v680_v52 = vadd.f32 %v666_v48, %v346_v45  ;;  %v669_v53 = vadd.f32 %v964_v47, %v668_v51 }
 0x125   : > { %684 = vst [vmem:[#allocation2] sm:$0xff] %v680_v52  ;;  %v681_v54 = vadd.f32 %v669_v53, %v347_v50  ;;  %v965_v55 = vpop.f32.mrb[4].mxu0 }
 0x126   : > { %v966_v56 = vpop.f32.mrb[5].mxu0 }
 0x127   : > { %685 = vst [vmem:[#allocation2 + $0x8] sm:$0xff] %v681_v54  ;;  %v967_v57 = vadd.f32 %v966_v56, %v965_v55  ;;  %v968_v58 = vpop.f32.mrb[6].mxu0 }
 0x128   : > { %v969_v60 = vpop.f32.mrb[7].mxu0 }
 0x129   : > { %v674_v61 = vadd.f32 %v999_v43, %v967_v57  ;;  %v970_v62 = vadd.f32 %v969_v60, %v968_v58  ;;  %691 = sbr.rel (%p916_p11) target bundleno = 320 (0x140), region = 70 }
 0x12b   : > { %v682_v0 = vadd.f32 %v674_v61, %v348_v59  ;;  %v677_v1 = vadd.f32 %v1000_v49, %v970_v62 }
 0x12c   : > { %v692_v3 = vld [vmem:[#allocation2] sm:$0xff] (!%p916_p11) }
 0x12d   : > { %686 = vst [vmem:[#allocation2 + $0x10] sm:$0xff] %v682_v0  ;;  %v683_v2 = vadd.f32 %v677_v1, %v349_v63  ;;  %v703_v6 = vmul.f32 (!%p916_p11), %v917_v5, %v692_v3 }
 0x12e   : > { %v693_v4 = vld [vmem:[#allocation2 + $0x8] sm:$0xff] (!%p916_p11) }
 0x12f   : > { %687 = vst [vmem:[#allocation2 + $0x18] sm:$0xff] %v683_v2  ;;  %v704_v7 = vmul.f32 (!%p916_p11), %v917_v5, %v693_v4  ;;  %v714_v13 = vadd.f32 (!%p916_p11), %v918_v8, %v703_v6 }
 0x131   : > { %v715_v14 = vadd.f32 %v918_v8, %v704_v7  ;;  %v718_v17 = vmax.f32 %v714_v13, 0.0 }
 0x133   : > { %v719_v18 = vmax.f32 %v715_v14, 0.0 }
 0x134   : > { %v694_v9 = vld [vmem:[#allocation2 + $0x10] sm:$0xff] }
 0x135   : > { %v705_v11 = vmul.f32 %v917_v5, %v694_v9  ;;  %v935_v21 = vpack.c.bf16 %v719_v18, %v718_v17 }
 0x136   : > { %v695_v10 = vld [vmem:[#allocation2 + $0x18] sm:$0xff] }
 0x137   : > { %v706_v12 = vmul.f32 %v917_v5, %v695_v10  ;;  %v716_v15 = vadd.f32 %v918_v8, %v705_v11  ;;  %936 = vst [vmem:[%s1259_s4] sm:$0xff] %v935_v21  }
 0x139   : > { %v717_v16 = vadd.f32 %v918_v8, %v706_v12  ;;  %v720_v19 = vmax.f32 %v716_v15, 0.0 }
 0x13b   : > { %v721_v20 = vmax.f32 %v717_v16, 0.0 }
 0x13d   : > { %v940_v22 = vpack.c.bf16 %v721_v20, %v720_v19 }
 0x13f   : > { %942 = vst [vmem:[%s1259_s4 + $0x8] sm:$0xff] %v940_v22  }
 0x140 PF: > { %s14_s19 = sadd.s32 1, %s1114_s19   ;;  %s1260_s15 = smov %s1102_s16 }
 0x141   : > { %p11_p12 = scmp.ge.s32.totalorder %s14_s19, 4   ;;  %s1261_s16 = smov %s1177_s23 }
 0x142   : > { %s1262_s17 = smov %s1110_s18  ;;  %s1263_s18 = smov %s1265_s20 }
 0x143   :  { %13 = sbr.rel (!%p11_p12) target bundleno = 3 (0x3), region = 120 }

// kernel: _lambda_.16
= control target key start
LH: loop header
LB: loop body
LE: loop exit
PB: predicated region body
PF: predicated region fallthrough
CT: control target
= control target key end

     0   :  { %11 = vsyncpa [#allocation5], 0  ;;  %s1336_s18 = smov 0   ;;  %s1338_s19 = smov 0   ;;  %s1488_s0 = inlined_call_operand.vmem [shape: bf16[32,1536], index: 0, kind: input, shape index: {}]   ;;  %s1489_s1 = inlined_call_operand.vmem [shape: bf16[1536,128], index: 1, kind: input, shape index: {}]   ;;  %s1490_s2 = inlined_call_operand.vmem [shape: f32[1,128], index: 2, kind: input, shape index: {}]   ;;  %s1491_s3 = inlined_call_operand.vmem [shape: f32[1,128], index: 3, kind: input, shape index: {}]   ;;  %s1492_s4 = inlined_call_operand.hbm [shape: f32[32,128], index: 4, kind: output, shape index: {0}]   ;;  %s1493_s5 = inlined_call_operand.vmem [shape: bf16[32,128], index: 5, kind: output, shape index: {1}]  }
   0x1   :  { %s1340_s20 = smov 0   ;;  %s1342_s21 = smov 0  }
   0x2   :  { %s1344_s22 = smov 0  }
   0x3 LB: > { %s1000_s23 = sadd.s32 4294967295, %s1300_s22   ;;  %s29_s24 = sadd.s32 1, %s1296_s21  ;;  %s1300_s22 = sphi %s1344_s22, %s17_s22   ;;  %s1296_s21 = sphi %s1342_s21, %s1498_s21   ;;  %s1292_s20 = sphi %s1340_s20, %s1497_s20   ;;  %s1288_s19 = sphi %s1338_s19, %s1496_s19   ;;  %s1284_s18 = sphi %s1336_s18, %s1495_s18  }
   0x4   : > { %p30_p0 = scmp.ge.s32.totalorder %s29_s24, 3  ;;  %p52_p1 = scmp.ne.s32.totalorder %s1288_s19, %s1284_s18 }
   0x5   : > { %p53_p2 = scmp.eq.s32.totalorder %s1300_s22, 0  ;;  %s45_s26 = sadd.s32 1, %s1288_s19 }
   0x6   : > { %s1500_s24 = smov (%p30_p0, %s29_s24), 0  ;;  %p1004_p5 = scmp.ge.s32.totalorder %s1300_s22, 3 }
   0x7   : > { %p54_p3 = por %p53_p2, %p52_p1  ;;  %s41_s25 = ssub.s32 %s1296_s21, %s1500_s24 }
   0x8   : > { %p43_p4 = scmp.eq.s32.totalorder %s41_s25, 0  ;;  %226 = sbr.rel (%p1004_p5) target bundleno = 23 (0x17), region = 24 }
   0xa   : > { %s1372_s27 = scalar_select %p43_p4, %s1288_s19, %s45_s26  }
   0xf   : > { %229 = sbr.rel (!%p54_p3) target bundleno = 23 (0x17), region = 28  ;;  %s231_s28 = sand.u32 (%p54_p3), 1, %s1288_s19  }
  0x10   : > { %s1066_s29 = sshll.u32 (%p54_p3), %s1296_s21, 4  ;;  %s1005_s30 = sshll.u32 (%p54_p3), %s231_s28, 6 }
  0x11   : > { %s239_s8 = scalar_lea.vmem (%p54_p3), %s1488_s0, %s1066_s29  ;;  %s233_s9 = scalar_lea.vmem (%p54_p3), [#allocation3], %s1005_s30 }
  0x12   : > { %v252_v0 = vld [vmem:[%s239_s8] sm:$0xff] (%p54_p3)  ;;  %v254_v1 = vld [vmem:[%s239_s8 + $0x8] sm:$0xff] (%p54_p3)  ;;  %v256_v2 = vld [vmem:[%s239_s8 + $0x30] sm:$0xff] (%p54_p3) }
  0x13   : > { %253 = vst [vmem:[%s233_s9] sm:$0xff] (%p54_p3), %v252_v0  ;;  %255 = vst [vmem:[%s233_s9 + $0x8] sm:$0xff] (%p54_p3), %v254_v1  ;;  %v258_v3 = vld [vmem:[%s239_s8 + $0x38] sm:$0xff] (%p54_p3)  ;;  %v260_v4 = vld [vmem:[%s239_s8 + $0x60] sm:$0xff] (%p54_p3) }
  0x14   : > { %257 = vst [vmem:[%s233_s9 + $0x10] sm:$0xff] (%p54_p3), %v256_v2  ;;  %v262_v5 = vld [vmem:[%s239_s8 + $0x68] sm:$0xff] (%p54_p3)  ;;  %259 = vst [vmem:[%s233_s9 + $0x18] sm:$0xff] (%p54_p3), %v258_v3  ;;  %v264_v6 = vld [vmem:[%s239_s8 + $0x90] sm:$0xff] (%p54_p3) }
  0x15   : > { %261 = vst [vmem:[%s233_s9 + $0x20] sm:$0xff] (%p54_p3), %v260_v4  ;;  %263 = vst [vmem:[%s233_s9 + $0x28] sm:$0xff] (%p54_p3), %v262_v5  ;;  %v266_v7 = vld [vmem:[%s239_s8 + $0x98] sm:$0xff] (%p54_p3) }
  0x16   : > { %265 = vst [vmem:[%s233_s9 + $0x30] sm:$0xff] %v264_v6  ;;  %267 = vst [vmem:[%s233_s9 + $0x38] sm:$0xff] %v266_v7 }
  0x17 PF: > { %p1008_p6 = scmp.ge.s32.totalorder %s1300_s22, 1  ;;  %p284_p7 = scmp.lt.s32.totalorder %s1300_s22, 4 }
  0x19   : > { %p285_p8 = pnand %p1008_p6, %p284_p7 }
  0x1a   : > { %s291_s10 = sand.u32 (!%p285_p8), 1, %s1284_s18   ;;  %s1010_s11 = sshll.u32 (!%p285_p8), %s1292_s20, 6 }
  0x1b   : > { %288 = sbr.rel (%p285_p8) target bundleno = 348 (0x15c), region = 55  ;;  %s1009_s12 = sshll.u32 (!%p285_p8), %s291_s10, 6 }
  0x1c   : > { %p338_p9 = scmp.lt.s32.totalorder (!%p285_p8), %s1010_s11, 191  ;;  %s1389_s17 = scalar_lea.vmem (!%p285_p8), [#allocation3], %s1009_s12 }
  0x1d   : > { %p1012_p10 = scmp.ne.s32.totalorder (!%p285_p8), %s1292_s20, 0 }
  0x22   : > { %s1502_s11 = smov (!%p338_p9, %s1010_s11), 191  ;;  %366 = sbr.rel (%p1012_p10) target bundleno = 41 (0x29), region = 63 }
  0x23   : > { %s1011_s13 = sshll.u32 %s1502_s11, 2  ;;  %v1302_v8 = vmov (!%p1012_p10), 0.0  }
  0x24   : > { %s1387_s16 = scalar_lea.vmem %s1489_s1, %s1011_s13  ;;  %367 = vst [vmem:[#allocation2] sm:$0xff] (!%p1012_p10), %v1302_v8  ;;  %368 = vst [vmem:[#allocation2 + $0x8] sm:$0xff] (!%p1012_p10), %v1302_v8 }
  0x25   : > { %369 = vst [vmem:[#allocation2 + $0x10] sm:$0xff] (!%p1012_p10), %v1302_v8  ;;  %370 = vst [vmem:[#allocation2 + $0x18] sm:$0xff] (!%p1012_p10), %v1302_v8 }
  0x29 PF: > { %v1188_v9 = vld [vmem:[%s1387_s16 + $0x40] sm:$0xff]   ;;  %v1192_v13 = vld [vmem:[%s1387_s16 + $0x48] sm:$0xff]   ;;  %v1196_v17 = vld [vmem:[%s1387_s16 + $0x50] sm:$0xff]   ;;  %p1053_p11 = scmp.ne.s32.totalorder %s1292_s20, 2 }
  0x2a   : > { %v1189_v10 = vld [vmem:[%s1387_s16 + $0xc0] sm:$0xff]   ;;  %1082 = vmatprep.subr.bf16.mxu0 %v1188_v9  ;;  %v1193_v14 = vld [vmem:[%s1387_s16 + $0xc8] sm:$0xff]   ;;  %v1197_v18 = vld [vmem:[%s1387_s16 + $0xd0] sm:$0xff]  }
  0x2b   : > { %v1190_v11 = vld [vmem:[%s1387_s16] sm:$0xff]   ;;  %1110 = vmatprep.subr.bf16.mxu1 %v1189_v10  ;;  %v1194_v15 = vld [vmem:[%s1387_s16 + $0x8] sm:$0xff]   ;;  %v1198_v19 = vld [vmem:[%s1387_s16 + $0x10] sm:$0xff]  }
  0x2c   : > { %v1191_v12 = vld [vmem:[%s1387_s16 + $0x80] sm:$0xff]   ;;  %1083 = vmatpush3.bf16.msra.mxu0 %v1190_v11  ;;  %v1195_v16 = vld [vmem:[%s1387_s16 + $0x88] sm:$0xff]   ;;  %v1199_v20 = vld [vmem:[%s1387_s16 + $0x90] sm:$0xff]  }
  0x2d   : > { %1111 = vmatpush3.bf16.msra.mxu1 %v1191_v12  ;;  %1084 = vmatprep.subr.bf16.mxu0 %v1192_v13  ;;  %v1200_v21 = vld [vmem:[%s1387_s16 + $0x58] sm:$0xff]   ;;  %v1204_v25 = vld [vmem:[%s1387_s16 + $0x60] sm:$0xff]   ;;  %v1208_v29 = vld [vmem:[%s1387_s16 + $0x68] sm:$0xff]  }
  0x2e   : > { %1112 = vmatprep.subr.bf16.mxu1 %v1193_v14  ;;  %v1201_v22 = vld [vmem:[%s1387_s16 + $0xd8] sm:$0xff]   ;;  %v1205_v26 = vld [vmem:[%s1387_s16 + $0xe0] sm:$0xff]   ;;  %v1209_v30 = vld [vmem:[%s1387_s16 + $0xe8] sm:$0xff]  }
  0x2f   : > { %v1202_v23 = vld [vmem:[%s1387_s16 + $0x18] sm:$0xff]   ;;  %v1206_v27 = vld [vmem:[%s1387_s16 + $0x20] sm:$0xff]   ;;  %v1210_v31 = vld [vmem:[%s1387_s16 + $0x28] sm:$0xff]  }
  0x30   : > { %1085 = vmatpush3.bf16.msra.mxu0 %v1194_v15  ;;  %v1203_v24 = vld [vmem:[%s1387_s16 + $0x98] sm:$0xff]   ;;  %v1207_v28 = vld [vmem:[%s1387_s16 + $0xa0] sm:$0xff]   ;;  %v1211_v32 = vld [vmem:[%s1387_s16 + $0xa8] sm:$0xff]  }
  0x31   : > { %1113 = vmatpush3.bf16.msra.mxu1 %v1195_v16  ;;  %1086 = vmatprep.subr.bf16.mxu0 %v1196_v17  ;;  %v1212_v33 = vld [vmem:[%s1387_s16 + $0x70] sm:$0xff]   ;;  %v1216_v37 = vld [vmem:[%s1387_s16 + $0x78] sm:$0xff]   ;;  %v371_v58 = vld [vmem:[#allocation2] sm:$0xff] }
  0x32   : > { %1114 = vmatprep.subr.bf16.mxu1 %v1197_v18  ;;  %v1213_v34 = vld [vmem:[%s1387_s16 + $0xf0] sm:$0xff]   ;;  %v1217_v38 = vld [vmem:[%s1387_s16 + $0xf8] sm:$0xff]   ;;  %v372_v63 = vld [vmem:[#allocation2 + $0x8] sm:$0xff] }
  0x33   : > { %v1214_v35 = vld [vmem:[%s1387_s16 + $0x30] sm:$0xff]   ;;  %v1218_v39 = vld [vmem:[%s1387_s16 + $0x38] sm:$0xff]  }
  0x34   : > { %1087 = vmatpush3.bf16.msra.mxu0 %v1198_v19  ;;  %v1215_v36 = vld [vmem:[%s1387_s16 + $0xb0] sm:$0xff]   ;;  %v1219_v40 = vld [vmem:[%s1387_s16 + $0xb8] sm:$0xff]  }
  0x35   : > { %1115 = vmatpush3.bf16.msra.mxu1 %v1199_v20  ;;  %1088 = vmatprep.subr.bf16.mxu0 %v1200_v21  ;;  %v1220_v41 = vld [vmem:[%s1389_s17] ss:$16 sps:$4 sm:$0xff]   ;;  %v1222_v42 = vld [vmem:[%s1389_s17 + $0x4] ss:$16 sps:$4 sm:$0xff]   ;;  %v1223_v43 = vld [vmem:[%s1389_s17 + $0x8] ss:$16 sps:$4 sm:$0xff]  }
  0x36   : > { %1116 = vmatprep.subr.bf16.mxu1 %v1201_v22  ;;  %v1225_v44 = vld [vmem:[%s1389_s17 + $0xc] ss:$16 sps:$4 sm:$0xff]   ;;  %711 = vmatprep.mubr.bf16.mxu0 %v1222_v42  ;;  %v1226_v45 = vld [vmem:[%s1389_s17 + $0x24] ss:$16 sps:$4 sm:$0xff]   ;;  %v1230_v47 = vld [vmem:[%s1389_s17 + $0x20] ss:$16 sps:$4 sm:$0xff]  }
  0x37   : > { %760 = vmatprep.mubr.bf16.mxu1 %v1225_v44  ;;  %v1228_v46 = vld [vmem:[%s1389_s17 + $0x2c] ss:$16 sps:$4 sm:$0xff]   ;;  %v1231_v48 = vld [vmem:[%s1389_s17 + $0x28] ss:$16 sps:$4 sm:$0xff]   ;;  %v373_v12 = vld [vmem:[#allocation2 + $0x10] sm:$0xff] }
  0x38   : > { %1089 = vmatpush3.bf16.msra.mxu0 %v1202_v23  ;;  %v374_v17 = vld [vmem:[#allocation2 + $0x18] sm:$0xff]  ;;  %v1054_v22 = vld [vmem:[%s1490_s2] ss:$0 sm:$0xff] (!%p1053_p11) }
  0x39   : > { %1117 = vmatpush3.bf16.msra.mxu1 %v1203_v24  ;;  %1090 = vmatprep.subr.bf16.mxu0 %v1204_v25 }
  0x3a   : > { %1118 = vmatprep.subr.bf16.mxu1 %v1205_v26 }
  0x3c   : > { %1091 = vmatpush3.bf16.msra.mxu0 %v1206_v27 }
  0x3d   : > { %1119 = vmatpush3.bf16.msra.mxu1 %v1207_v28  ;;  %1092 = vmatprep.subr.bf16.mxu0 %v1208_v29  ;;  %v1055_v28 = vld [vmem:[%s1491_s3] ss:$0 sm:$0xff] (!%p1053_p11) }
  0x3e   : > { %1120 = vmatprep.subr.bf16.mxu1 %v1209_v30 }
  0x40   : > { %1093 = vmatpush3.bf16.msra.mxu0 %v1210_v31 }
  0x41   : > { %1121 = vmatpush3.bf16.msra.mxu1 %v1211_v32  ;;  %1094 = vmatprep.subr.bf16.mxu0 %v1212_v33 }
  0x42   : > { %1122 = vmatprep.subr.bf16.mxu1 %v1213_v34 }
  0x44   : > { %1095 = vmatpush3.bf16.msra.mxu0 %v1214_v35 }
  0x45   : > { %1123 = vmatpush3.bf16.msra.mxu1 %v1215_v36  ;;  %1096 = vmatprep.subr.bf16.mxu0 %v1216_v37 }
  0x46   : > { %1124 = vmatprep.subr.bf16.mxu1 %v1217_v38 }
  0x48   : > { %1097 = vmatpush3.bf16.msra.mxu0 %v1218_v39 }
  0x49   : > { %1125 = vmatpush3.bf16.msra.mxu1 %v1219_v40 }
  0x4b   : > { %712 = vmatmul.mubr.bf16.vlgmr.msra.gmra.mrb[0].mxu0 %v1220_v41 }
  0x4c   : > { %761 = vmatmul.mubr.bf16.vlgmr.msra.gmra.mrb[0].mxu1 %v1223_v43  ;;  %719 = vmatprep.mubr.bf16.mxu0 %v1226_v45 }
  0x4d   : > { %768 = vmatprep.mubr.bf16.mxu1 %v1228_v46 }
  0x53   : > { %720 = vmatmul.mubr.bf16.gmra.mrb[4].mxu0 %v1230_v47 }
  0x54   : > { %769 = vmatmul.mubr.bf16.gmra.mrb[4].mxu1 %v1231_v48 }
 0x11e   : > { %v1098_v49 = vpop.f32.mrb[0].mxu0 }
 0x11f   : > { %v1126_v50 = vpop.f32.mrb[0].mxu1  ;;  %v1099_v51 = vpop.f32.mrb[1].mxu0 }
 0x120   : > { %v1100_v52 = vadd.f32 %v1099_v51, %v1098_v49  ;;  %v1127_v53 = vpop.f32.mrb[1].mxu1  ;;  %v1101_v54 = vpop.f32.mrb[2].mxu0 }
 0x121   : > { %v1128_v55 = vadd.f32 %v1127_v53, %v1126_v50  ;;  %v1129_v56 = vpop.f32.mrb[2].mxu1  ;;  %v1102_v57 = vpop.f32.mrb[3].mxu0 }
 0x122   : > { %v1103_v59 = vadd.f32 %v1102_v57, %v1101_v54  ;;  %v1130_v60 = vpop.f32.mrb[3].mxu1 }
 0x123   : > { %v763_v61 = vadd.f32 %v1128_v55, %v1100_v52  ;;  %v1131_v62 = vadd.f32 %v1130_v60, %v1129_v56 }
 0x125   : > { %v777_v0 = vadd.f32 %v763_v61, %v371_v58  ;;  %v766_v1 = vadd.f32 %v1131_v62, %v1103_v59 }
 0x126   : > { %v1104_v2 = vpop.f32.mrb[4].mxu0 }
 0x127   : > { %781 = vst [vmem:[#allocation2] sm:$0xff] %v777_v0  ;;  %v778_v3 = vadd.f32 %v766_v1, %v372_v63  ;;  %v1132_v4 = vpop.f32.mrb[4].mxu1  ;;  %v1105_v5 = vpop.f32.mrb[5].mxu0 }
 0x128   : > { %v1106_v6 = vadd.f32 %v1105_v5, %v1104_v2  ;;  %v1133_v7 = vpop.f32.mrb[5].mxu1  ;;  %v1107_v8 = vpop.f32.mrb[6].mxu0 }
 0x129   : > { %782 = vst [vmem:[#allocation2 + $0x8] sm:$0xff] %v778_v3  ;;  %v1134_v9 = vadd.f32 %v1133_v7, %v1132_v4  ;;  %v1135_v10 = vpop.f32.mrb[6].mxu1  ;;  %v1108_v11 = vpop.f32.mrb[7].mxu0 }
 0x12a   : > { %v1109_v13 = vadd.f32 %v1108_v11, %v1107_v8  ;;  %v1136_v14 = vpop.f32.mrb[7].mxu1 }
 0x12b   : > { %v771_v15 = vadd.f32 %v1134_v9, %v1106_v6  ;;  %v1137_v16 = vadd.f32 %v1136_v14, %v1135_v10  ;;  %788 = sbr.rel (%p1053_p11) target bundleno = 322 (0x142), region = 67 }
 0x12d   : > { %v779_v18 = vadd.f32 %v771_v15, %v373_v12  ;;  %v774_v19 = vadd.f32 %v1137_v16, %v1109_v13 }
 0x12e   : > { %v789_v21 = vld [vmem:[#allocation2] sm:$0xff] (!%p1053_p11) }
 0x12f   : > { %783 = vst [vmem:[#allocation2 + $0x10] sm:$0xff] %v779_v18  ;;  %v780_v20 = vadd.f32 %v774_v19, %v374_v17  ;;  %793 = vst [vmem:[#allocation4] sm:$0xff] (!%p1053_p11), %v789_v21  ;;  %v804_v24 = vmul.f32 (!%p1053_p11), %v1054_v22, %v789_v21 }
 0x130   : > { %v790_v23 = vld [vmem:[#allocation2 + $0x8] sm:$0xff] (!%p1053_p11) }
 0x131   : > { %784 = vst [vmem:[#allocation2 + $0x18] sm:$0xff] %v780_v20  ;;  %794 = vst [vmem:[#allocation4 + $0x8] sm:$0xff] (!%p1053_p11), %v790_v23  ;;  %v805_v25 = vmul.f32 (!%p1053_p11), %v1054_v22, %v790_v23  ;;  %v815_v31 = vadd.f32 (!%p1053_p11), %v1055_v28, %v804_v24 }
 0x133   : > { %v816_v32 = vadd.f32 %v1055_v28, %v805_v25  ;;  %v819_v35 = vmax.f32 %v815_v31, 0.0 }
 0x135   : > { %v820_v36 = vmax.f32 %v816_v32, 0.0 }
 0x136   : > { %v791_v26 = vld [vmem:[#allocation2 + $0x10] sm:$0xff] }
 0x137   : > { %795 = vst [vmem:[#allocation4 + $0x10] sm:$0xff] %v791_v26  ;;  %v806_v29 = vmul.f32 %v1054_v22, %v791_v26  ;;  %v1074_v39 = vpack.c.bf16 %v820_v36, %v819_v35 }
 0x138   : > { %v792_v27 = vld [vmem:[#allocation2 + $0x18] sm:$0xff] }
 0x139   : > { %796 = vst [vmem:[#allocation4 + $0x18] sm:$0xff] %v792_v27  ;;  %v807_v30 = vmul.f32 %v1054_v22, %v792_v27  ;;  %v817_v33 = vadd.f32 %v1055_v28, %v806_v29  ;;  %1075 = vst [vmem:[%s1493_s5] sm:$0xff] %v1074_v39  }
 0x13b   : > { %v818_v34 = vadd.f32 %v1055_v28, %v807_v30  ;;  %v821_v37 = vmax.f32 %v817_v33, 0.0 }
 0x13d   : > { %v822_v38 = vmax.f32 %v818_v34, 0.0 }
 0x13f   : > { %v1079_v40 = vpack.c.bf16 %v822_v38, %v821_v37 }
 0x141   : > { %1081 = vst [vmem:[%s1493_s5 + $0x8] sm:$0xff] %v1079_v40  }
 0x142 PF: > { %p1447_p12 = scmp.eq.s32.totalorder %s1000_s23, 2  ;;  %s1303_s8 = smov [#allocation4]  }
 0x143   : > { %s861_s9 = sshll.u32 %s1303_s8, 4  ;;  %s862_s9 = int_to_ptr.vmem [resolvable:$true] %s861_s9 }
 0x144   : > { %s1232_s10 = scalar_lea.vmem %s862_s9, 512  ;;  %p1239_p2 = scmp.lt.s32.totalorder %s862_s9, %s862_s9 }
 0x145   : > { %p1233_p13 = scmp.ne.s32.totalorder %s862_s9, %s1232_s10  ;;  %p1240_p3 = scmp.lt.s32.totalorder %s1232_s10, %s1232_s10 }
 0x147   : > { %p1234_p0 = pnand %p1233_p13, %p1447_p12  ;;  %p1241_p4 = por %p1240_p3, %p1239_p2 }
 0x149   : > { %p1235_p1 = pneg %p1234_p0 }
 0x14b   : > { %p1242_p5 = pnand %p1241_p4, %p1235_p1 }
 0x14d   : > { %1245 = shalt.err (!%p1242_p5)
}
 0x14e   : > { %s1246_s23 = scalar_lea.hbm %s1492_s4, 512 }
 0x14f   : > { %p1247_p6 = scmp.ne.s32.totalorder %s1492_s4, %s1246_s23  ;;  %p1252_p9 = scmp.lt.u32.totalorder %s1246_s23, %s1492_s4 }
 0x151   : > { %p1248_p7 = pnand %p1247_p6, %p1447_p12 }
 0x153   : > { %p1249_p8 = pneg %p1248_p7 }
 0x155   : > { %p1254_p10 = pnand %p1252_p9, %p1249_p8 }
 0x157   : > { %1257 = shalt.err (!%p1254_p10)
}
 0x158   : > { %s1304_s17 = smov 128   ;;  %s1305_s18 = smov 8  }
 0x159   : > { %1139 = dma.vmem_to_hbm [thread:$0]  (%p1447_p12), %s862_s9, 512, %s1492_s4, [#allocation5], %s1304_s17, %s1304_s17, %s1305_s18  }
 0x15a   : > { %1279 = dma.done.wait (%p1447_p12), [#allocation5], 512  }
 0x15b   : > { %1281 = vsyncadd (%p1447_p12), [#allocation5], 4294966784 }
 0x15c PF: > { %s17_s22 = sadd.s32 1, %s1300_s22   ;;  %s1495_s18 = smov %s1288_s19 }
 0x15d   : > { %p14_p11 = scmp.ge.s32.totalorder %s17_s22, 5   ;;  %s1496_s19 = smov %s1372_s27 }
 0x15e   : > { %s1497_s20 = smov %s1296_s21  ;;  %s1498_s21 = smov %s1500_s24 }
 0x15f   :  { %16 = sbr.rel (!%p14_p11) target bundleno = 3 (0x3), region = 121 }
 0x166   :  { %892 = vsyncpa [#allocation5], 1 }
 0x167   :  { %894 = vsyncpa [#allocation5 + $0x1], 1 }

// kernel: _lambda_.17
= control target key start
LH: loop header
LB: loop body
LE: loop exit
PB: predicated region body
PF: predicated region fallthrough
CT: control target
= control target key end

     0   :  { %s1114_s15 = smov 0   ;;  %s1116_s16 = smov 0   ;;  %s1216_s0 = inlined_call_operand.vmem [shape: bf16[8,1152], index: 0, kind: input, shape index: {}]   ;;  %s1217_s1 = inlined_call_operand.vmem [shape: bf16[1152,256], index: 1, kind: input, shape index: {}]   ;;  %s1218_s2 = inlined_call_operand.vmem [shape: f32[1,256], index: 2, kind: input, shape index: {}]   ;;  %s1219_s3 = inlined_call_operand.vmem [shape: f32[1,256], index: 3, kind: input, shape index: {}]   ;;  %s1220_s4 = inlined_call_operand.vmem [shape: bf16[8,256], index: 4, kind: output, shape index: {}]  }
   0x1   :  { %s1118_s17 = smov 0  }
   0x2 LB: > { %s26_s18 = sadd.s32 1, %s1081_s16  ;;  %p898_p0 = scmp.ge.s32.totalorder %s1085_s17, 1  ;;  %s1085_s17 = sphi %s1118_s17, %s14_s17   ;;  %s1081_s16 = sphi %s1116_s16, %s1222_s16   ;;  %s1077_s15 = sphi %s1114_s15, %s1221_s15  }
   0x3   : > { %p27_p1 = scmp.ge.s32.totalorder %s26_s18, 3  ;;  %p229_p2 = scmp.lt.s32.totalorder %s1085_s17, 4 }
   0x5   : > { %s1224_s18 = smov (%p27_p1, %s26_s18), 0  ;;  %p230_p3 = pnand %p898_p0, %p229_p2 }
   0x6   : > { %s281_s19 = smul.u32 (!%p230_p3), 3, %s1077_s15  ;;  %p902_p6 = scmp.ne.s32.totalorder (!%p230_p3), %s1077_s15, 0 }
   0x7   : > { %233 = sbr.rel (%p230_p3) target bundleno = 323 (0x143), region = 36 }
   0x8   : > { %s291_s20 = smul.u32 (!%p230_p3), 48, %s1077_s15  ;;  %p284_p4 = scmp.lt.s32.totalorder (!%p230_p3), %s281_s19, 8 }
   0xa   : > { %p293_p5 = scmp.lt.s32.totalorder (!%p230_p3), %s291_s20, 143 }
   0xe   : > { %s1226_s19 = smov (!%p284_p4, %s281_s19), 8  ;;  %s1228_s20 = smov (!%p293_p5, %s291_s20), 143 }
   0xf   : > { %s899_s21 = sshll.u32 %s1226_s19, 2  ;;  %s960_s25 = sshll.u32 %s1228_s20, 3  ;;  %v1087_v0 = vmov (!%p902_p6), 0.0  }
  0x10   : > { %s1139_s24 = scalar_lea.vmem %s1216_s0, %s899_s21  ;;  %s1144_s28 = scalar_lea.vmem %s1217_s1, %s960_s25  ;;  %328 = vst [vmem:[#allocation2] sm:$0xff] (!%p902_p6), %v1087_v0  ;;  %329 = vst [vmem:[#allocation2 + $0x8] sm:$0xff] (!%p902_p6), %v1087_v0 }
  0x11   : > { %327 = sbr.rel (%p902_p6) target bundleno = 24 (0x18), region = 40 }
  0x18 PF: > { %v988_v1 = vld [vmem:[%s1144_s28 + $0x4] ss:$8 sps:$4 sm:$0xff]   ;;  %v990_v2 = vld [vmem:[%s1144_s28] ss:$8 sps:$4 sm:$0xff]   ;;  %v1088_v3 = vmov 0   ;;  %p954_p7 = scmp.ne.s32.totalorder %s1077_s15, 2 }
  0x19   : > { %706 = vmatprep.mubr.bf16.mxu1 %v1088_v3  ;;  %633 = vmatprep.subr.bf16.mxu0 %v988_v1  ;;  %v991_v4 = vld [vmem:[%s1144_s28 + $0x14] ss:$8 sps:$4 sm:$0xff]   ;;  %v993_v5 = vld [vmem:[%s1144_s28 + $0x10] ss:$8 sps:$4 sm:$0xff]   ;;  %v994_v6 = vld [vmem:[%s1144_s28 + $0x24] ss:$8 sps:$4 sm:$0xff]  }
  0x1a   : > { %634 = vmatpush1.bf16.msra.mxu0 %v990_v2  ;;  %v996_v7 = vld [vmem:[%s1144_s28 + $0x20] ss:$8 sps:$4 sm:$0xff]   ;;  %v997_v8 = vld [vmem:[%s1144_s28 + $0x34] ss:$8 sps:$4 sm:$0xff]   ;;  %v999_v9 = vld [vmem:[%s1144_s28 + $0x30] ss:$8 sps:$4 sm:$0xff]  }
  0x1b   : > { %635 = vmatprep.subr.bf16.mxu0 %v991_v4  ;;  %v1012_v10 = vld [vmem:[%s1144_s28 + $0x104] ss:$8 sps:$4 sm:$0xff]   ;;  %v1014_v11 = vld [vmem:[%s1144_s28 + $0x100] ss:$8 sps:$4 sm:$0xff]   ;;  %v1018_v13 = vld [vmem:[%s1144_s28 + $0x114] ss:$8 sps:$4 sm:$0xff]   ;;  %v727_v4 = vlaneseq (!%p954_p7) }
  0x1c   : > { %v1000_v12 = vld [vmem:[%s1144_s28 + $0x44] ss:$8 sps:$4 sm:$0xff]   ;;  %674 = vmatprep.subr.bf16.mxu1 %v1012_v10  ;;  %v1020_v14 = vld [vmem:[%s1144_s28 + $0x110] ss:$8 sps:$4 sm:$0xff]   ;;  %v1002_v15 = vld [vmem:[%s1144_s28 + $0x40] ss:$8 sps:$4 sm:$0xff]  }
  0x1d   : > { %675 = vmatpush1.bf16.msra.mxu1 %v1014_v11  ;;  %v1003_v16 = vld [vmem:[%s1144_s28 + $0x54] ss:$8 sps:$4 sm:$0xff]   ;;  %v1024_v17 = vld [vmem:[%s1144_s28 + $0x124] ss:$8 sps:$4 sm:$0xff]   ;;  %v1026_v18 = vld [vmem:[%s1144_s28 + $0x120] ss:$8 sps:$4 sm:$0xff]  }
  0x1e   : > { %636 = vmatpush1.bf16.msra.mxu0 %v993_v5  ;;  %676 = vmatprep.subr.bf16.mxu1 %v1018_v13  ;;  %v1005_v19 = vld [vmem:[%s1144_s28 + $0x50] ss:$8 sps:$4 sm:$0xff]   ;;  %v1030_v20 = vld [vmem:[%s1144_s28 + $0x134] ss:$8 sps:$4 sm:$0xff]   ;;  %v1006_v21 = vld [vmem:[%s1144_s28 + $0x64] ss:$8 sps:$4 sm:$0xff]  }
  0x1f   : > { %637 = vmatprep.subr.bf16.mxu0 %v994_v6  ;;  %v1032_v22 = vld [vmem:[%s1144_s28 + $0x130] ss:$8 sps:$4 sm:$0xff]   ;;  %v1008_v23 = vld [vmem:[%s1144_s28 + $0x60] ss:$8 sps:$4 sm:$0xff]   ;;  %v1036_v24 = vld [vmem:[%s1144_s28 + $0x144] ss:$8 sps:$4 sm:$0xff]  }
  0x20   : > { %v1009_v25 = vld [vmem:[%s1144_s28 + $0x74] ss:$8 sps:$4 sm:$0xff]   ;;  %v1038_v26 = vld [vmem:[%s1144_s28 + $0x140] ss:$8 sps:$4 sm:$0xff]   ;;  %v1011_v27 = vld [vmem:[%s1144_s28 + $0x70] ss:$8 sps:$4 sm:$0xff]  }
  0x21   : > { %677 = vmatpush1.bf16.msra.mxu1 %v1020_v14  ;;  %v1042_v28 = vld [vmem:[%s1144_s28 + $0x154] ss:$8 sps:$4 sm:$0xff]   ;;  %v1015_v29 = vld [vmem:[%s1144_s28 + $0x84] ss:$8 sps:$4 sm:$0xff]   ;;  %v1044_v30 = vld [vmem:[%s1144_s28 + $0x150] ss:$8 sps:$4 sm:$0xff]  }
  0x22   : > { %638 = vmatpush1.bf16.msra.mxu0 %v996_v7  ;;  %678 = vmatprep.subr.bf16.mxu1 %v1024_v17  ;;  %v1017_v31 = vld [vmem:[%s1144_s28 + $0x80] ss:$8 sps:$4 sm:$0xff]   ;;  %v1048_v32 = vld [vmem:[%s1144_s28 + $0x164] ss:$8 sps:$4 sm:$0xff]   ;;  %v1021_v33 = vld [vmem:[%s1144_s28 + $0x94] ss:$8 sps:$4 sm:$0xff]  }
  0x23   : > { %639 = vmatprep.subr.bf16.mxu0 %v997_v8  ;;  %v332_v34 = vld [vmem:[%s1139_s24] sm:$0xff]  ;;  %v1023_v37 = vld [vmem:[%s1144_s28 + $0x90] ss:$8 sps:$4 sm:$0xff]   ;;  %v1054_v38 = vld [vmem:[%s1144_s28 + $0x174] ss:$8 sps:$4 sm:$0xff]   ;;  %v728_v5 = vshrl.u32 (!%p954_p7), %v727_v4, 7 }
  0x24   : > { %v904_v35 = vcombine.high %v332_v34, %v332_v34  ;;  %v1050_v36 = vld [vmem:[%s1144_s28 + $0x160] ss:$8 sps:$4 sm:$0xff]   ;;  %v1027_v39 = vld [vmem:[%s1144_s28 + $0xa4] ss:$8 sps:$4 sm:$0xff]   ;;  %v1056_v40 = vld [vmem:[%s1144_s28 + $0x170] ss:$8 sps:$4 sm:$0xff]   ;;  %v903_v53 = vcombine.low %v332_v34, %v332_v34 }
  0x25   : > { %679 = vmatpush1.bf16.msra.mxu1 %v1026_v18  ;;  %v1029_v41 = vld [vmem:[%s1144_s28 + $0xa0] ss:$8 sps:$4 sm:$0xff]   ;;  %v1033_v42 = vld [vmem:[%s1144_s28 + $0xb4] ss:$8 sps:$4 sm:$0xff]   ;;  %v1035_v44 = vld [vmem:[%s1144_s28 + $0xb0] ss:$8 sps:$4 sm:$0xff]  }
  0x26   : > { %640 = vmatpush1.bf16.msra.mxu0 %v999_v9  ;;  %680 = vmatprep.subr.bf16.mxu1 %v1030_v20  ;;  %v1060_v43 = vld [vmem:[%s1139_s24 + $0x8] ss:$0 sps:$4 sm:$0xff]   ;;  %v1039_v45 = vld [vmem:[%s1144_s28 + $0xc4] ss:$8 sps:$4 sm:$0xff]   ;;  %v1045_v47 = vld [vmem:[%s1144_s28 + $0xd4] ss:$8 sps:$4 sm:$0xff]  }
  0x27   : > { %641 = vmatprep.subr.bf16.mxu0 %v1000_v12  ;;  %665 = vmatprep.mubr.bf16.mxu0 %v904_v35  ;;  %v1041_v46 = vld [vmem:[%s1144_s28 + $0xc0] ss:$8 sps:$4 sm:$0xff]   ;;  %v1047_v48 = vld [vmem:[%s1144_s28 + $0xd0] ss:$8 sps:$4 sm:$0xff]   ;;  %v1051_v49 = vld [vmem:[%s1144_s28 + $0xe4] ss:$8 sps:$4 sm:$0xff]  }
  0x28   : > { %v1053_v50 = vld [vmem:[%s1144_s28 + $0xe0] ss:$8 sps:$4 sm:$0xff]   ;;  %v1057_v51 = vld [vmem:[%s1144_s28 + $0xf4] ss:$8 sps:$4 sm:$0xff]   ;;  %v1059_v52 = vld [vmem:[%s1144_s28 + $0xf0] ss:$8 sps:$4 sm:$0xff]  }
  0x29   : > { %681 = vmatpush1.bf16.msra.mxu1 %v1032_v22  ;;  %v330_v58 = vld [vmem:[#allocation2] sm:$0xff]  ;;  %v331_v61 = vld [vmem:[#allocation2 + $0x8] sm:$0xff]  ;;  %v729_v8 = vsub.s32 (!%p954_p7), 0, %v728_v5  ;;  %v733_v9 = vsub.s32 (!%p954_p7), 1, %v728_v5 }
  0x2a   : > { %642 = vmatpush1.bf16.msra.mxu0 %v1002_v15  ;;  %682 = vmatprep.subr.bf16.mxu1 %v1036_v24  ;;  %v725_v6 = vld [vmem:[%s1218_s2] sm:$0x3] (!%p954_p7) }
  0x2b   : > { %643 = vmatprep.subr.bf16.mxu0 %v1003_v16  ;;  %v739_v7 = vld [vmem:[%s1219_s3] sm:$0x3] (!%p954_p7)  ;;  %v730_v12 = vrot.slane (!%p954_p7), %v725_v6, %v729_v8  ;;  %v734_v13 = vrot.slane (!%p954_p7), %v725_v6, %v733_v9 }
  0x2c   : > { %v744_v14 = vrot.slane (!%p954_p7), %v739_v7, %v729_v8  ;;  %v748_v15 = vrot.slane (!%p954_p7), %v739_v7, %v733_v9 }
  0x2d   : > { %683 = vmatpush1.bf16.msra.mxu1 %v1038_v26 }
  0x2e   : > { %644 = vmatpush1.bf16.msra.mxu0 %v1005_v19  ;;  %684 = vmatprep.subr.bf16.mxu1 %v1042_v28 }
  0x2f   : > { %645 = vmatprep.subr.bf16.mxu0 %v1006_v21 }
  0x31   : > { %685 = vmatpush1.bf16.msra.mxu1 %v1044_v30 }
  0x32   : > { %646 = vmatpush1.bf16.msra.mxu0 %v1008_v23  ;;  %686 = vmatprep.subr.bf16.mxu1 %v1048_v32 }
  0x33   : > { %647 = vmatprep.subr.bf16.mxu0 %v1009_v25 }
  0x35   : > { %687 = vmatpush1.bf16.msra.mxu1 %v1050_v36 }
  0x36   : > { %648 = vmatpush1.bf16.msra.mxu0 %v1011_v27  ;;  %688 = vmatprep.subr.bf16.mxu1 %v1054_v38 }
  0x37   : > { %649 = vmatprep.subr.bf16.mxu0 %v1015_v29 }
  0x39   : > { %689 = vmatpush1.bf16.msra.mxu1 %v1056_v40 }
  0x3a   : > { %650 = vmatpush1.bf16.msra.mxu0 %v1017_v31 }
  0x3b   : > { %651 = vmatprep.subr.bf16.mxu0 %v1021_v33 }
  0x3c   : > { %707 = vmatmul.mubr.bf16.vlgmr.msra.gmra.mrb[0].mxu1 %v1060_v43 }
  0x3e   : > { %652 = vmatpush1.bf16.msra.mxu0 %v1023_v37 }
  0x3f   : > { %653 = vmatprep.subr.bf16.mxu0 %v1027_v39 }
  0x42   : > { %654 = vmatpush1.bf16.msra.mxu0 %v1029_v41 }
  0x43   : > { %655 = vmatprep.subr.bf16.mxu0 %v1033_v42 }
  0x46   : > { %656 = vmatpush1.bf16.msra.mxu0 %v1035_v44 }
  0x47   : > { %657 = vmatprep.subr.bf16.mxu0 %v1039_v45 }
  0x4a   : > { %658 = vmatpush1.bf16.msra.mxu0 %v1041_v46 }
  0x4b   : > { %659 = vmatprep.subr.bf16.mxu0 %v1045_v47 }
  0x4e   : > { %660 = vmatpush1.bf16.msra.mxu0 %v1047_v48 }
  0x4f   : > { %661 = vmatprep.subr.bf16.mxu0 %v1051_v49 }
  0x52   : > { %662 = vmatpush1.bf16.msra.mxu0 %v1053_v50 }
  0x53   : > { %663 = vmatprep.subr.bf16.mxu0 %v1057_v51 }
  0x56   : > { %664 = vmatpush1.bf16.msra.mxu0 %v1059_v52 }
  0x59   : > { %666 = vmatmul.mubr.bf16.vlgmr.msra.gmra.mrb[0].mxu0 %v903_v53 }
 0x10f   : > { %v708_v54 = vpop.f32.mrb[0].mxu1 }
 0x110   : > { %v710_v55 = vpop.f32.mrb[1].mxu1 }
 0x111   : > { %v712_v56 = vpop.f32.mrb[2].mxu1 }
 0x112   : > { %v713_v57 = vpop.f32.mrb[3].mxu1 }
 0x12c   : > { %v667_v59 = vpop.f32.mrb[0].mxu0  ;;  %722 = sbr.rel (%p954_p7) target bundleno = 323 (0x143), region = 44 }
 0x12d   : > { %v709_v60 = vadd.f32 %v708_v54, %v667_v59  ;;  %v669_v62 = vpop.f32.mrb[1].mxu0 }
 0x12e   : > { %v711_v63 = vadd.f32 %v710_v55, %v669_v62  ;;  %v671_v0 = vpop.f32.mrb[2].mxu0 }
 0x12f   : > { %v715_v1 = vadd.f32 %v709_v60, %v330_v58  ;;  %v672_v2 = vpop.f32.mrb[3].mxu0 }
 0x130   : > { %v716_v3 = vadd.f32 %v711_v63, %v331_v61 }
 0x131   : > { %717 = vst [vmem:[#allocation2] sm:$0xff] %v715_v1 }
 0x132   : > { %718 = vst [vmem:[#allocation2 + $0x8] sm:$0xff] %v716_v3 }
 0x138   : > { %v723_v10 = vld [vmem:[#allocation2] sm:$0xff] }
 0x139   : > { %v724_v11 = vld [vmem:[#allocation2 + $0x8] sm:$0xff]  ;;  %v737_v16 = vmul.f32 %v730_v12, %v723_v10 }
 0x13a   : > { %v738_v17 = vmul.f32 %v734_v13, %v724_v11 }
 0x13b   : > { %v751_v18 = vadd.f32 %v744_v14, %v737_v16 }
 0x13c   : > { %v752_v19 = vadd.f32 %v748_v15, %v738_v17 }
 0x13d   : > { %v753_v20 = vmax.f32 %v751_v18, 0.0 }
 0x13e   : > { %v754_v21 = vmax.f32 %v752_v19, 0.0 }
 0x140   : > { %v961_v22 = vpack.c.bf16 %v754_v21, %v753_v20 }
 0x142   : > { %763 = vst [vmem:[%s1220_s4] sm:$0xff] %v961_v22 }
 0x143 PF: > { %s14_s17 = sadd.s32 1, %s1085_s17   ;;  %s1221_s15 = smov %s1081_s16 }
 0x144   : > { %p11_p8 = scmp.ge.s32.totalorder %s14_s17, 5   ;;  %s1222_s16 = smov %s1224_s18 }
 0x146   :  { %13 = sbr.rel (!%p11_p8) target bundleno = 2 (0x2), region = 83 }

// kernel: _lambda_.18
= control target key start
LH: loop header
LB: loop body
LE: loop exit
PB: predicated region body
PF: predicated region fallthrough
CT: control target
= control target key end

     0   :  { %11 = vsyncpa [#allocation4], 0  ;;  %s1369_s18 = smov 0   ;;  %s1371_s19 = smov 0   ;;  %s1516_s0 = inlined_call_operand.vmem [shape: bf16[8,2560], index: 0, kind: input, shape index: {}]   ;;  %s1517_s1 = inlined_call_operand.vmem [shape: bf16[2560,256], index: 1, kind: input, shape index: {}]   ;;  %s1518_s2 = inlined_call_operand.vmem [shape: f32[1,256], index: 2, kind: input, shape index: {}]   ;;  %s1519_s3 = inlined_call_operand.vmem [shape: f32[1,256], index: 3, kind: input, shape index: {}]   ;;  %s1520_s4 = inlined_call_operand.hbm [shape: f32[8,256], index: 4, kind: output, shape index: {0}]   ;;  %s1521_s5 = inlined_call_operand.vmem [shape: bf16[8,256], index: 5, kind: output, shape index: {1}]  }
   0x1   :  { %s1373_s20 = smov 0  }
   0x2 LB: > { %s1061_s21 = sadd.s32 4294967295, %s1335_s20   ;;  %s29_s22 = sadd.s32 1, %s1331_s19  ;;  %s1335_s20 = sphi %s1373_s20, %s17_s20   ;;  %s1331_s19 = sphi %s1371_s19, %s1524_s19   ;;  %s1327_s18 = sphi %s1369_s18, %s1523_s18  }
   0x3   : > { %p30_p0 = scmp.ge.s32.totalorder %s29_s22, 5  ;;  %p1066_p1 = scmp.ge.s32.totalorder %s1335_s20, 1 }
   0x4   : > { %p260_p2 = scmp.lt.s32.totalorder %s1335_s20, 6 }
   0x5   : > { %s1526_s22 = smov (%p30_p0, %s29_s22), 0 }
   0x6   : > { %p261_p3 = pnand %p1066_p1, %p260_p2 }
   0x7   : > { %s1067_s23 = sshll.u32 (!%p261_p3), %s1327_s18, 2  ;;  %s1069_s24 = sshll.u32 (!%p261_p3), %s1327_s18, 6 }
   0x8   : > { %264 = sbr.rel (%p261_p3) target bundleno = 350 (0x15e), region = 36  ;;  %p317_p4 = scmp.lt.s32.totalorder (!%p261_p3), %s1067_s23, 19 }
   0x9   : > { %p326_p5 = scmp.lt.s32.totalorder (!%p261_p3), %s1069_s24, 319  ;;  %p1072_p6 = scmp.ne.s32.totalorder (!%p261_p3), %s1327_s18, 0 }
   0xf   : > { %s1528_s23 = smov (!%p317_p4, %s1067_s23), 19  ;;  %s1530_s24 = smov (!%p326_p5, %s1069_s24), 319 }
  0x10   : > { %s1068_s25 = sshll.u32 %s1528_s23, 2  ;;  %s1149_s29 = sshll.u32 %s1530_s24, 3  ;;  %v1337_v0 = vmov (!%p1072_p6), 0.0  }
  0x11   : > { %s1395_s28 = scalar_lea.vmem %s1516_s0, %s1068_s25  ;;  %s1400_s7 = scalar_lea.vmem %s1517_s1, %s1149_s29  ;;  %361 = vst [vmem:[#allocation2] sm:$0xff] (!%p1072_p6), %v1337_v0  ;;  %362 = vst [vmem:[#allocation2 + $0x8] sm:$0xff] (!%p1072_p6), %v1337_v0 }
  0x12   : > { %360 = sbr.rel (%p1072_p6) target bundleno = 25 (0x19), region = 40 }
  0x19 PF: > { %v1183_v1 = vld [vmem:[%s1400_s7 + $0x4] ss:$8 sps:$4 sm:$0xff]   ;;  %v1187_v3 = vld [vmem:[%s1400_s7] ss:$8 sps:$4 sm:$0xff]   ;;  %v1189_v5 = vld [vmem:[%s1400_s7 + $0x14] ss:$8 sps:$4 sm:$0xff]  }
  0x1a   : > { %v1185_v2 = vld [vmem:[%s1400_s7 + $0x104] ss:$8 sps:$4 sm:$0xff]   ;;  %765 = vmatprep.subr.bf16.mxu0 %v1183_v1  ;;  %v1188_v4 = vld [vmem:[%s1400_s7 + $0x100] ss:$8 sps:$4 sm:$0xff]   ;;  %v1191_v6 = vld [vmem:[%s1400_s7 + $0x114] ss:$8 sps:$4 sm:$0xff]  }
  0x1b   : > { %806 = vmatprep.subr.bf16.mxu1 %v1185_v2  ;;  %766 = vmatpush1.bf16.msra.mxu0 %v1187_v3  ;;  %v1193_v7 = vld [vmem:[%s1400_s7 + $0x10] ss:$8 sps:$4 sm:$0xff]   ;;  %v1195_v9 = vld [vmem:[%s1400_s7 + $0x24] ss:$8 sps:$4 sm:$0xff]   ;;  %v1199_v11 = vld [vmem:[%s1400_s7 + $0x20] ss:$8 sps:$4 sm:$0xff]  }
  0x1c   : > { %807 = vmatpush1.bf16.msra.mxu1 %v1188_v4  ;;  %767 = vmatprep.subr.bf16.mxu0 %v1189_v5  ;;  %v1194_v8 = vld [vmem:[%s1400_s7 + $0x110] ss:$8 sps:$4 sm:$0xff]   ;;  %v1197_v10 = vld [vmem:[%s1400_s7 + $0x124] ss:$8 sps:$4 sm:$0xff]   ;;  %v1200_v12 = vld [vmem:[%s1400_s7 + $0x120] ss:$8 sps:$4 sm:$0xff]  }
  0x1d   : > { %808 = vmatprep.subr.bf16.mxu1 %v1191_v6  ;;  %v1201_v13 = vld [vmem:[%s1400_s7 + $0x34] ss:$8 sps:$4 sm:$0xff]   ;;  %v1205_v15 = vld [vmem:[%s1400_s7 + $0x30] ss:$8 sps:$4 sm:$0xff]   ;;  %v1207_v17 = vld [vmem:[%s1400_s7 + $0x44] ss:$8 sps:$4 sm:$0xff]  }
  0x1e   : > { %v1203_v14 = vld [vmem:[%s1400_s7 + $0x134] ss:$8 sps:$4 sm:$0xff]   ;;  %v1206_v16 = vld [vmem:[%s1400_s7 + $0x130] ss:$8 sps:$4 sm:$0xff]   ;;  %v1209_v18 = vld [vmem:[%s1400_s7 + $0x144] ss:$8 sps:$4 sm:$0xff]  }
  0x1f   : > { %768 = vmatpush1.bf16.msra.mxu0 %v1193_v7  ;;  %v1211_v19 = vld [vmem:[%s1400_s7 + $0x40] ss:$8 sps:$4 sm:$0xff]   ;;  %v1213_v21 = vld [vmem:[%s1400_s7 + $0x54] ss:$8 sps:$4 sm:$0xff]   ;;  %v1217_v23 = vld [vmem:[%s1400_s7 + $0x50] ss:$8 sps:$4 sm:$0xff]  }
  0x20   : > { %809 = vmatpush1.bf16.msra.mxu1 %v1194_v8  ;;  %769 = vmatprep.subr.bf16.mxu0 %v1195_v9  ;;  %v1212_v20 = vld [vmem:[%s1400_s7 + $0x140] ss:$8 sps:$4 sm:$0xff]   ;;  %v1215_v22 = vld [vmem:[%s1400_s7 + $0x154] ss:$8 sps:$4 sm:$0xff]   ;;  %v1218_v24 = vld [vmem:[%s1400_s7 + $0x150] ss:$8 sps:$4 sm:$0xff]  }
  0x21   : > { %810 = vmatprep.subr.bf16.mxu1 %v1197_v10  ;;  %v1219_v25 = vld [vmem:[%s1400_s7 + $0x64] ss:$8 sps:$4 sm:$0xff]   ;;  %v1223_v27 = vld [vmem:[%s1400_s7 + $0x60] ss:$8 sps:$4 sm:$0xff]   ;;  %v1225_v29 = vld [vmem:[%s1400_s7 + $0x74] ss:$8 sps:$4 sm:$0xff]  }
  0x22   : > { %v1221_v26 = vld [vmem:[%s1400_s7 + $0x164] ss:$8 sps:$4 sm:$0xff]   ;;  %v1224_v28 = vld [vmem:[%s1400_s7 + $0x160] ss:$8 sps:$4 sm:$0xff]   ;;  %v1227_v30 = vld [vmem:[%s1400_s7 + $0x174] ss:$8 sps:$4 sm:$0xff]  }
  0x23   : > { %770 = vmatpush1.bf16.msra.mxu0 %v1199_v11  ;;  %v1229_v31 = vld [vmem:[%s1400_s7 + $0x70] ss:$8 sps:$4 sm:$0xff]   ;;  %v1231_v33 = vld [vmem:[%s1400_s7 + $0x84] ss:$8 sps:$4 sm:$0xff]   ;;  %v1235_v35 = vld [vmem:[%s1400_s7 + $0x80] ss:$8 sps:$4 sm:$0xff]  }
  0x24   : > { %811 = vmatpush1.bf16.msra.mxu1 %v1200_v12  ;;  %771 = vmatprep.subr.bf16.mxu0 %v1201_v13  ;;  %v1230_v32 = vld [vmem:[%s1400_s7 + $0x170] ss:$8 sps:$4 sm:$0xff]   ;;  %v1233_v34 = vld [vmem:[%s1400_s7 + $0x184] ss:$8 sps:$4 sm:$0xff]   ;;  %v1236_v36 = vld [vmem:[%s1400_s7 + $0x180] ss:$8 sps:$4 sm:$0xff]  }
  0x25   : > { %812 = vmatprep.subr.bf16.mxu1 %v1203_v14  ;;  %v1237_v37 = vld [vmem:[%s1400_s7 + $0x94] ss:$8 sps:$4 sm:$0xff]   ;;  %v1241_v39 = vld [vmem:[%s1400_s7 + $0x90] ss:$8 sps:$4 sm:$0xff]   ;;  %v1243_v41 = vld [vmem:[%s1400_s7 + $0xa4] ss:$8 sps:$4 sm:$0xff]  }
  0x26   : > { %v1239_v38 = vld [vmem:[%s1400_s7 + $0x194] ss:$8 sps:$4 sm:$0xff]   ;;  %v1242_v40 = vld [vmem:[%s1400_s7 + $0x190] ss:$8 sps:$4 sm:$0xff]   ;;  %v1245_v42 = vld [vmem:[%s1400_s7 + $0x1a4] ss:$8 sps:$4 sm:$0xff]  }
  0x27   : > { %772 = vmatpush1.bf16.msra.mxu0 %v1205_v15  ;;  %v1247_v43 = vld [vmem:[%s1400_s7 + $0xa0] ss:$8 sps:$4 sm:$0xff]   ;;  %v1249_v45 = vld [vmem:[%s1400_s7 + $0xb4] ss:$8 sps:$4 sm:$0xff]   ;;  %v1253_v50 = vld [vmem:[%s1400_s7 + $0xb0] ss:$8 sps:$4 sm:$0xff]  }
  0x28   : > { %813 = vmatpush1.bf16.msra.mxu1 %v1206_v16  ;;  %773 = vmatprep.subr.bf16.mxu0 %v1207_v17  ;;  %v1248_v44 = vld [vmem:[%s1400_s7 + $0x1a0] ss:$8 sps:$4 sm:$0xff]   ;;  %v1251_v46 = vld [vmem:[%s1400_s7 + $0x1b4] ss:$8 sps:$4 sm:$0xff]   ;;  %v1254_v51 = vld [vmem:[%s1400_s7 + $0x1b0] ss:$8 sps:$4 sm:$0xff]  }
  0x29   : > { %814 = vmatprep.subr.bf16.mxu1 %v1209_v18  ;;  %v365_v47 = vld [vmem:[%s1395_s28] sm:$0xff]  ;;  %v366_v49 = vld [vmem:[%s1395_s28 + $0x8] sm:$0xff]  ;;  %v1261_v57 = vld [vmem:[%s1400_s7 + $0xd4] ss:$8 sps:$4 sm:$0xff]   ;;  %p1141_p7 = scmp.ne.s32.totalorder %s1327_s18, 4 }
  0x2a   : > { %v1074_v48 = vcombine.high %v365_v47, %v365_v47  ;;  %v1076_v52 = vcombine.high %v366_v49, %v366_v49  ;;  %v1255_v53 = vld [vmem:[%s1400_s7 + $0xc4] ss:$8 sps:$4 sm:$0xff]   ;;  %v1259_v55 = vld [vmem:[%s1400_s7 + $0xc0] ss:$8 sps:$4 sm:$0xff]   ;;  %v1263_v58 = vld [vmem:[%s1400_s7 + $0x1d4] ss:$8 sps:$4 sm:$0xff]   ;;  %v1073_v5 = vcombine.low %v365_v47, %v365_v47  ;;  %v1075_v6 = vcombine.low %v366_v49, %v366_v49 }
  0x2b   : > { %774 = vmatpush1.bf16.msra.mxu0 %v1211_v19  ;;  %v1257_v54 = vld [vmem:[%s1400_s7 + $0x1c4] ss:$8 sps:$4 sm:$0xff]   ;;  %v1260_v56 = vld [vmem:[%s1400_s7 + $0x1c0] ss:$8 sps:$4 sm:$0xff]   ;;  %v1265_v59 = vld [vmem:[%s1400_s7 + $0xd0] ss:$8 sps:$4 sm:$0xff]  }
  0x2c   : > { %815 = vmatpush1.bf16.msra.mxu1 %v1212_v20  ;;  %775 = vmatprep.subr.bf16.mxu0 %v1213_v21  ;;  %v1266_v60 = vld [vmem:[%s1400_s7 + $0x1d0] ss:$8 sps:$4 sm:$0xff]   ;;  %v1267_v61 = vld [vmem:[%s1400_s7 + $0xe4] ss:$8 sps:$4 sm:$0xff]   ;;  %v1271_v63 = vld [vmem:[%s1400_s7 + $0xe0] ss:$8 sps:$4 sm:$0xff]  }
  0x2d   : > { %816 = vmatprep.subr.bf16.mxu1 %v1215_v22  ;;  %797 = vmatprep.mubr.bf16.mxu0 %v1074_v48  ;;  %v1269_v62 = vld [vmem:[%s1400_s7 + $0x1e4] ss:$8 sps:$4 sm:$0xff]   ;;  %v1272_v0 = vld [vmem:[%s1400_s7 + $0x1e0] ss:$8 sps:$4 sm:$0xff]   ;;  %v1273_v1 = vld [vmem:[%s1400_s7 + $0xf4] ss:$8 sps:$4 sm:$0xff]   ;;  %v861_v22 = vlaneseq (!%p1141_p7) }
  0x2e   : > { %838 = vmatprep.mubr.bf16.mxu1 %v1076_v52  ;;  %v1275_v2 = vld [vmem:[%s1400_s7 + $0x1f4] ss:$8 sps:$4 sm:$0xff]   ;;  %v1277_v3 = vld [vmem:[%s1400_s7 + $0xf0] ss:$8 sps:$4 sm:$0xff]   ;;  %v363_v8 = vld [vmem:[#allocation2] sm:$0xff] }
  0x2f   : > { %776 = vmatpush1.bf16.msra.mxu0 %v1217_v23  ;;  %v1278_v4 = vld [vmem:[%s1400_s7 + $0x1f0] ss:$8 sps:$4 sm:$0xff]   ;;  %v364_v12 = vld [vmem:[#allocation2 + $0x8] sm:$0xff] }
  0x30   : > { %817 = vmatpush1.bf16.msra.mxu1 %v1218_v24  ;;  %777 = vmatprep.subr.bf16.mxu0 %v1219_v25  ;;  %v862_v24 = vshrl.u32 (!%p1141_p7), %v861_v22, 7  ;;  %v859_v25 = vld [vmem:[%s1518_s2] sm:$0x3] (!%p1141_p7) }
  0x31   : > { %818 = vmatprep.subr.bf16.mxu1 %v1221_v26  ;;  %v873_v26 = vld [vmem:[%s1519_s3] sm:$0x3] (!%p1141_p7) }
  0x33   : > { %778 = vmatpush1.bf16.msra.mxu0 %v1223_v27  ;;  %v863_v27 = vsub.s32 (!%p1141_p7), 0, %v862_v24 }
  0x34   : > { %819 = vmatpush1.bf16.msra.mxu1 %v1224_v28  ;;  %779 = vmatprep.subr.bf16.mxu0 %v1225_v29  ;;  %v867_v28 = vsub.s32 (!%p1141_p7), 1, %v862_v24 }
  0x35   : > { %820 = vmatprep.subr.bf16.mxu1 %v1227_v30  ;;  %v864_v29 = vrot.slane (!%p1141_p7), %v859_v25, %v863_v27 }
  0x36   : > { %v868_v30 = vrot.slane (!%p1141_p7), %v859_v25, %v867_v28 }
  0x37   : > { %780 = vmatpush1.bf16.msra.mxu0 %v1229_v31  ;;  %v878_v31 = vrot.slane (!%p1141_p7), %v873_v26, %v863_v27 }
  0x38   : > { %821 = vmatpush1.bf16.msra.mxu1 %v1230_v32  ;;  %781 = vmatprep.subr.bf16.mxu0 %v1231_v33  ;;  %v882_v32 = vrot.slane (!%p1141_p7), %v873_v26, %v867_v28 }
  0x39   : > { %822 = vmatprep.subr.bf16.mxu1 %v1233_v34 }
  0x3b   : > { %782 = vmatpush1.bf16.msra.mxu0 %v1235_v35 }
  0x3c   : > { %823 = vmatpush1.bf16.msra.mxu1 %v1236_v36  ;;  %783 = vmatprep.subr.bf16.mxu0 %v1237_v37 }
  0x3d   : > { %824 = vmatprep.subr.bf16.mxu1 %v1239_v38 }
  0x3f   : > { %784 = vmatpush1.bf16.msra.mxu0 %v1241_v39 }
  0x40   : > { %825 = vmatpush1.bf16.msra.mxu1 %v1242_v40  ;;  %785 = vmatprep.subr.bf16.mxu0 %v1243_v41 }
  0x41   : > { %826 = vmatprep.subr.bf16.mxu1 %v1245_v42 }
  0x43   : > { %786 = vmatpush1.bf16.msra.mxu0 %v1247_v43 }
  0x44   : > { %827 = vmatpush1.bf16.msra.mxu1 %v1248_v44  ;;  %787 = vmatprep.subr.bf16.mxu0 %v1249_v45 }
  0x45   : > { %828 = vmatprep.subr.bf16.mxu1 %v1251_v46 }
  0x47   : > { %788 = vmatpush1.bf16.msra.mxu0 %v1253_v50 }
  0x48   : > { %829 = vmatpush1.bf16.msra.mxu1 %v1254_v51  ;;  %789 = vmatprep.subr.bf16.mxu0 %v1255_v53 }
  0x49   : > { %830 = vmatprep.subr.bf16.mxu1 %v1257_v54 }
  0x4b   : > { %790 = vmatpush1.bf16.msra.mxu0 %v1259_v55 }
  0x4c   : > { %831 = vmatpush1.bf16.msra.mxu1 %v1260_v56  ;;  %791 = vmatprep.subr.bf16.mxu0 %v1261_v57 }
  0x4d   : > { %832 = vmatprep.subr.bf16.mxu1 %v1263_v58 }
  0x4f   : > { %792 = vmatpush1.bf16.msra.mxu0 %v1265_v59 }
  0x50   : > { %833 = vmatpush1.bf16.msra.mxu1 %v1266_v60  ;;  %793 = vmatprep.subr.bf16.mxu0 %v1267_v61 }
  0x51   : > { %834 = vmatprep.subr.bf16.mxu1 %v1269_v62 }
  0x53   : > { %794 = vmatpush1.bf16.msra.mxu0 %v1271_v63 }
  0x54   : > { %835 = vmatpush1.bf16.msra.mxu1 %v1272_v0  ;;  %795 = vmatprep.subr.bf16.mxu0 %v1273_v1 }
  0x55   : > { %836 = vmatprep.subr.bf16.mxu1 %v1275_v2 }
  0x57   : > { %796 = vmatpush1.bf16.msra.mxu0 %v1277_v3 }
  0x58   : > { %837 = vmatpush1.bf16.msra.mxu1 %v1278_v4 }
  0x5a   : > { %798 = vmatmul.mubr.bf16.vlgmr.msra.gmra.mrb[0].mxu0 %v1073_v5 }
  0x5b   : > { %839 = vmatmul.mubr.bf16.vlgmr.msra.gmra.mrb[0].mxu1 %v1075_v6 }
 0x12d   : > { %v799_v7 = vpop.f32.mrb[0].mxu0 }
 0x12e   : > { %v840_v9 = vpop.f32.mrb[0].mxu1  ;;  %v801_v11 = vpop.f32.mrb[1].mxu0  ;;  %854 = sbr.rel (%p1141_p7) target bundleno = 325 (0x145), region = 44 }
 0x12f   : > { %v841_v10 = vadd.f32 %v840_v9, %v799_v7  ;;  %v842_v13 = vpop.f32.mrb[1].mxu1  ;;  %v803_v15 = vpop.f32.mrb[2].mxu0 }
 0x130   : > { %v843_v14 = vadd.f32 %v842_v13, %v801_v11  ;;  %v844_v16 = vpop.f32.mrb[2].mxu1  ;;  %v804_v18 = vpop.f32.mrb[3].mxu0 }
 0x131   : > { %v847_v17 = vadd.f32 %v841_v10, %v363_v8  ;;  %v845_v19 = vpop.f32.mrb[3].mxu1 }
 0x132   : > { %v848_v20 = vadd.f32 %v843_v14, %v364_v12 }
 0x133   : > { %849 = vst [vmem:[#allocation2] sm:$0xff] %v847_v17 }
 0x134   : > { %850 = vst [vmem:[#allocation2 + $0x8] sm:$0xff] %v848_v20 }
 0x13a   : > { %v855_v21 = vld [vmem:[#allocation2] sm:$0xff] }
 0x13b   : > { %v856_v23 = vld [vmem:[#allocation2 + $0x8] sm:$0xff]  ;;  %857 = vst [vmem:[#allocation3] sm:$0xff] %v855_v21  ;;  %v871_v33 = vmul.f32 %v864_v29, %v855_v21 }
 0x13c   : > { %858 = vst [vmem:[#allocation3 + $0x8] sm:$0xff] %v856_v23  ;;  %v872_v34 = vmul.f32 %v868_v30, %v856_v23 }
 0x13d   : > { %v885_v35 = vadd.f32 %v878_v31, %v871_v33 }
 0x13e   : > { %v886_v36 = vadd.f32 %v882_v32, %v872_v34 }
 0x13f   : > { %v887_v37 = vmax.f32 %v885_v35, 0.0 }
 0x140   : > { %v888_v38 = vmax.f32 %v886_v36, 0.0 }
 0x142   : > { %v1150_v39 = vpack.c.bf16 %v888_v38, %v887_v37 }
 0x144   : > { %897 = vst [vmem:[%s1521_s5] sm:$0xff] %v1150_v39 }
 0x145 PF: > { %p1481_p8 = scmp.eq.s32.totalorder %s1061_s21, 4  ;;  %s1338_s15 = smov [#allocation3]  }
 0x146   : > { %s919_s16 = sshll.u32 %s1338_s15, 4  ;;  %s920_s16 = int_to_ptr.vmem [resolvable:$true] %s919_s16 }
 0x147   : > { %s1283_s17 = scalar_lea.vmem %s920_s16, 256  ;;  %p1290_p12 = scmp.lt.s32.totalorder %s920_s16, %s920_s16 }
 0x148   : > { %p1284_p9 = scmp.ne.s32.totalorder %s920_s16, %s1283_s17  ;;  %p1291_p13 = scmp.lt.s32.totalorder %s1283_s17, %s1283_s17 }
 0x14a   : > { %p1285_p10 = pnand %p1284_p9, %p1481_p8  ;;  %p1292_p0 = por %p1291_p13, %p1290_p12 }
 0x14c   : > { %p1286_p11 = pneg %p1285_p10 }
 0x14e   : > { %p1293_p1 = pnand %p1292_p0, %p1286_p11 }
 0x150   : > { %1296 = shalt.err (!%p1293_p1)
}
 0x151   : > { %s1297_s21 = scalar_lea.hbm %s1520_s4, 256 }
 0x152   : > { %p1298_p2 = scmp.ne.s32.totalorder %s1520_s4, %s1297_s21  ;;  %p1303_p5 = scmp.lt.u32.totalorder %s1297_s21, %s1520_s4 }
 0x154   : > { %p1299_p3 = pnand %p1298_p2, %p1481_p8 }
 0x156   : > { %p1300_p4 = pneg %p1299_p3 }
 0x158   : > { %p1305_p6 = pnand %p1303_p5, %p1300_p4 }
 0x15a   : > { %1308 = shalt.err (!%p1305_p6)
}
 0x15b   : > { %1152 = dma.vmem_to_hbm [thread:$0]  (%p1481_p8), %s920_s16, 256, %s1520_s4, [#allocation4]  }
 0x15c   : > { %1322 = dma.done.wait (%p1481_p8), [#allocation4], 256  }
 0x15d   : > { %1324 = vsyncadd (%p1481_p8), [#allocation4], 4294967040 }
 0x15e PF: > { %s17_s20 = sadd.s32 1, %s1335_s20   ;;  %s1523_s18 = smov %s1331_s19 }
 0x15f   : > { %p14_p7 = scmp.ge.s32.totalorder %s17_s20, 7   ;;  %s1524_s19 = smov %s1526_s22 }
 0x161   :  { %16 = sbr.rel (!%p14_p7) target bundleno = 2 (0x2), region = 93 }
 0x168   :  { %948 = vsyncpa [#allocation4], 1 }
 0x169   :  { %950 = vsyncpa [#allocation4 + $0x1], 1 }

// kernel: _lambda_.19
= control target key start
LH: loop header
LB: loop body
LE: loop exit
PB: predicated region body
PF: predicated region fallthrough
CT: control target
= control target key end

     0   :  { %s1598_s15 = smov 0   ;;  %s1600_s16 = smov 0   ;;  %s1918_s0 = inlined_call_operand.vmem [shape: bf16[8,2560], index: 0, kind: input, shape index: {}]   ;;  %s1919_s1 = inlined_call_operand.vmem [shape: bf16[2560,512], index: 1, kind: input, shape index: {}]   ;;  %s1920_s2 = inlined_call_operand.vmem [shape: f32[1,512], index: 2, kind: input, shape index: {}]   ;;  %s1921_s3 = inlined_call_operand.vmem [shape: f32[1,512], index: 3, kind: input, shape index: {}]   ;;  %s1922_s4 = inlined_call_operand.vmem [shape: bf16[8,512], index: 4, kind: output, shape index: {}]  }
   0x1   :  { %s1602_s17 = smov 0   ;;  %s1604_s18 = smov 0  }
   0x2   :  { %s1606_s19 = smov 0   ;;  %s1608_s20 = smov 0  }
   0x3   :  { %s1610_s21 = smov 0  }
   0x4 LB: > { %s26_s22 = sadd.s32 1, %s1562_s19  ;;  %s29_s23 = sadd.s32 1, %s1566_s20  ;;  %s1570_s21 = sphi %s1610_s21, %s14_s21   ;;  %s1566_s20 = sphi %s1608_s20, %s1928_s20   ;;  %s1562_s19 = sphi %s1606_s19, %s1927_s19   ;;  %s1558_s18 = sphi %s1604_s18, %s1926_s18   ;;  %s1554_s17 = sphi %s1602_s17, %s1925_s17   ;;  %s1550_s16 = sphi %s1600_s16, %s1924_s16   ;;  %s1546_s15 = sphi %s1598_s15, %s1923_s15  }
   0x5   : > { %p27_p0 = scmp.ge.s32.totalorder %s26_s22, 5  ;;  %p77_p1 = scmp.ne.s32.totalorder %s1550_s16, %s1546_s15 }
   0x6   : > { %p78_p2 = scmp.eq.s32.totalorder %s1570_s21, 0  ;;  %s70_s27 = sadd.s32 1, %s1550_s16 }
   0x7   : > { %s1930_s22 = smov (%p27_p0, %s26_s22), 0  ;;  %s1932_s23 = smov (!%p27_p0, %s29_s23), %s1566_s20 }
   0x8   : > { %p79_p3 = por %p78_p2, %p77_p1  ;;  %p31_p4 = scmp.ge.s32.totalorder %s1932_s23, 2 }
   0x9   : > { %s65_s24 = ssub.s32 %s1562_s19, %s1930_s22  ;;  %p1270_p6 = scmp.ge.s32.totalorder %s1570_s21, 10 }
   0xa   : > { %s1934_s23 = smov (%p31_p4, %s1932_s23), 0 }
   0xb   : > { %s66_s25 = ssub.s32 %s1566_s20, %s1934_s23  ;;  %183 = sbr.rel (%p1270_p6) target bundleno = 57 (0x39), region = 16 }
   0xc   : > { %s67_s26 = sor.u32 %s66_s25, %s65_s24 }
   0xd   : > { %p68_p5 = scmp.eq.s32.totalorder %s67_s26, 0 }
   0xf   : > { %s1649_s28 = scalar_select %p68_p5, %s1550_s16, %s70_s27  }
  0x12   : > { %199 = sbr.rel (!%p79_p3) target bundleno = 57 (0x39), region = 24  ;;  %s201_s29 = sand.u32 (%p79_p3), 1, %s1550_s16  }
  0x13   : > { %s1273_s30 = sshll.u32 (%p79_p3), %s1566_s20, 1  ;;  %s1271_s5 = sshll.u32 (%p79_p3), %s201_s29, 9 }
  0x14   : > { %s1357_s6 = sshll.u32 (%p79_p3), %s1562_s19, 8  ;;  %s1663_s12 = scalar_lea.vmem (%p79_p3), [#allocation3], %s1271_s5 }
  0x15   : > { %s207_s7 = sadd.s32 (%p79_p3), %s1357_s6, %s1273_s30 }
  0x16   : > { %s1275_s8 = sshll.u32 (%p79_p3), %s207_s7, 2 }
  0x17   : > { %s1658_s11 = scalar_lea.vmem (%p79_p3), %s1919_s1, %s1275_s8 }
  0x18   : > { %v363_v0 = vld [vmem:[%s1658_s11] sm:$0xff] (%p79_p3)  ;;  %v365_v1 = vld [vmem:[%s1658_s11 + $0x10] sm:$0xff] (%p79_p3) }
  0x19   : > { %v367_v2 = vld [vmem:[%s1658_s11 + $0x20] sm:$0xff]  ;;  %364 = vst [vmem:[%s1663_s12] sm:$0xff] %v363_v0  ;;  %366 = vst [vmem:[%s1663_s12 + $0x8] sm:$0xff] %v365_v1  ;;  %v369_v3 = vld [vmem:[%s1658_s11 + $0x30] sm:$0xff] }
  0x1a   : > { %368 = vst [vmem:[%s1663_s12 + $0x10] sm:$0xff] %v367_v2  ;;  %v371_v4 = vld [vmem:[%s1658_s11 + $0x40] sm:$0xff]  ;;  %v373_v5 = vld [vmem:[%s1658_s11 + $0x50] sm:$0xff]  ;;  %370 = vst [vmem:[%s1663_s12 + $0x18] sm:$0xff] %v369_v3 }
  0x1b   : > { %372 = vst [vmem:[%s1663_s12 + $0x20] sm:$0xff] %v371_v4  ;;  %374 = vst [vmem:[%s1663_s12 + $0x28] sm:$0xff] %v373_v5  ;;  %v375_v6 = vld [vmem:[%s1658_s11 + $0x60] sm:$0xff]  ;;  %v377_v7 = vld [vmem:[%s1658_s11 + $0x70] sm:$0xff] }
  0x1c   : > { %v379_v8 = vld [vmem:[%s1658_s11 + $0x80] sm:$0xff]  ;;  %376 = vst [vmem:[%s1663_s12 + $0x30] sm:$0xff] %v375_v6  ;;  %378 = vst [vmem:[%s1663_s12 + $0x38] sm:$0xff] %v377_v7  ;;  %v381_v9 = vld [vmem:[%s1658_s11 + $0x90] sm:$0xff] }
  0x1d   : > { %380 = vst [vmem:[%s1663_s12 + $0x40] sm:$0xff] %v379_v8  ;;  %v383_v10 = vld [vmem:[%s1658_s11 + $0xa0] sm:$0xff]  ;;  %v385_v11 = vld [vmem:[%s1658_s11 + $0xb0] sm:$0xff]  ;;  %382 = vst [vmem:[%s1663_s12 + $0x48] sm:$0xff] %v381_v9 }
  0x1e   : > { %384 = vst [vmem:[%s1663_s12 + $0x50] sm:$0xff] %v383_v10  ;;  %386 = vst [vmem:[%s1663_s12 + $0x58] sm:$0xff] %v385_v11  ;;  %v387_v12 = vld [vmem:[%s1658_s11 + $0xc0] sm:$0xff]  ;;  %v389_v13 = vld [vmem:[%s1658_s11 + $0xd0] sm:$0xff] }
  0x1f   : > { %v391_v14 = vld [vmem:[%s1658_s11 + $0xe0] sm:$0xff]  ;;  %388 = vst [vmem:[%s1663_s12 + $0x60] sm:$0xff] %v387_v12  ;;  %390 = vst [vmem:[%s1663_s12 + $0x68] sm:$0xff] %v389_v13  ;;  %v393_v15 = vld [vmem:[%s1658_s11 + $0xf0] sm:$0xff] }
  0x20   : > { %392 = vst [vmem:[%s1663_s12 + $0x70] sm:$0xff] %v391_v14  ;;  %v395_v16 = vld [vmem:[%s1658_s11 + $0x100] sm:$0xff]  ;;  %v397_v17 = vld [vmem:[%s1658_s11 + $0x110] sm:$0xff]  ;;  %394 = vst [vmem:[%s1663_s12 + $0x78] sm:$0xff] %v393_v15 }
  0x21   : > { %396 = vst [vmem:[%s1663_s12 + $0x80] sm:$0xff] %v395_v16  ;;  %398 = vst [vmem:[%s1663_s12 + $0x88] sm:$0xff] %v397_v17  ;;  %v399_v18 = vld [vmem:[%s1658_s11 + $0x120] sm:$0xff]  ;;  %v401_v19 = vld [vmem:[%s1658_s11 + $0x130] sm:$0xff] }
  0x22   : > { %v403_v20 = vld [vmem:[%s1658_s11 + $0x140] sm:$0xff]  ;;  %400 = vst [vmem:[%s1663_s12 + $0x90] sm:$0xff] %v399_v18  ;;  %402 = vst [vmem:[%s1663_s12 + $0x98] sm:$0xff] %v401_v19  ;;  %v405_v21 = vld [vmem:[%s1658_s11 + $0x150] sm:$0xff] }
  0x23   : > { %404 = vst [vmem:[%s1663_s12 + $0xa0] sm:$0xff] %v403_v20  ;;  %v407_v22 = vld [vmem:[%s1658_s11 + $0x160] sm:$0xff]  ;;  %v409_v23 = vld [vmem:[%s1658_s11 + $0x170] sm:$0xff]  ;;  %406 = vst [vmem:[%s1663_s12 + $0xa8] sm:$0xff] %v405_v21 }
  0x24   : > { %408 = vst [vmem:[%s1663_s12 + $0xb0] sm:$0xff] %v407_v22  ;;  %410 = vst [vmem:[%s1663_s12 + $0xb8] sm:$0xff] %v409_v23  ;;  %v411_v24 = vld [vmem:[%s1658_s11 + $0x180] sm:$0xff]  ;;  %v413_v25 = vld [vmem:[%s1658_s11 + $0x190] sm:$0xff] }
  0x25   : > { %v415_v26 = vld [vmem:[%s1658_s11 + $0x1a0] sm:$0xff]  ;;  %412 = vst [vmem:[%s1663_s12 + $0xc0] sm:$0xff] %v411_v24  ;;  %414 = vst [vmem:[%s1663_s12 + $0xc8] sm:$0xff] %v413_v25  ;;  %v417_v27 = vld [vmem:[%s1658_s11 + $0x1b0] sm:$0xff] }
  0x26   : > { %416 = vst [vmem:[%s1663_s12 + $0xd0] sm:$0xff] %v415_v26  ;;  %v419_v28 = vld [vmem:[%s1658_s11 + $0x1c0] sm:$0xff]  ;;  %v421_v29 = vld [vmem:[%s1658_s11 + $0x1d0] sm:$0xff]  ;;  %418 = vst [vmem:[%s1663_s12 + $0xd8] sm:$0xff] %v417_v27 }
  0x27   : > { %420 = vst [vmem:[%s1663_s12 + $0xe0] sm:$0xff] %v419_v28  ;;  %422 = vst [vmem:[%s1663_s12 + $0xe8] sm:$0xff] %v421_v29  ;;  %v423_v30 = vld [vmem:[%s1658_s11 + $0x1e0] sm:$0xff]  ;;  %v425_v31 = vld [vmem:[%s1658_s11 + $0x1f0] sm:$0xff] }
  0x28   : > { %v427_v32 = vld [vmem:[%s1658_s11 + $0x200] sm:$0xff]  ;;  %424 = vst [vmem:[%s1663_s12 + $0xf0] sm:$0xff] %v423_v30  ;;  %426 = vst [vmem:[%s1663_s12 + $0xf8] sm:$0xff] %v425_v31  ;;  %v429_v33 = vld [vmem:[%s1658_s11 + $0x210] sm:$0xff] }
  0x29   : > { %428 = vst [vmem:[%s1663_s12 + $0x100] sm:$0xff] %v427_v32  ;;  %v431_v34 = vld [vmem:[%s1658_s11 + $0x220] sm:$0xff]  ;;  %v433_v35 = vld [vmem:[%s1658_s11 + $0x230] sm:$0xff]  ;;  %430 = vst [vmem:[%s1663_s12 + $0x108] sm:$0xff] %v429_v33 }
  0x2a   : > { %432 = vst [vmem:[%s1663_s12 + $0x110] sm:$0xff] %v431_v34  ;;  %434 = vst [vmem:[%s1663_s12 + $0x118] sm:$0xff] %v433_v35  ;;  %v435_v36 = vld [vmem:[%s1658_s11 + $0x240] sm:$0xff]  ;;  %v437_v37 = vld [vmem:[%s1658_s11 + $0x250] sm:$0xff] }
  0x2b   : > { %v439_v38 = vld [vmem:[%s1658_s11 + $0x260] sm:$0xff]  ;;  %436 = vst [vmem:[%s1663_s12 + $0x120] sm:$0xff] %v435_v36  ;;  %438 = vst [vmem:[%s1663_s12 + $0x128] sm:$0xff] %v437_v37  ;;  %v441_v39 = vld [vmem:[%s1658_s11 + $0x270] sm:$0xff] }
  0x2c   : > { %440 = vst [vmem:[%s1663_s12 + $0x130] sm:$0xff] %v439_v38  ;;  %v443_v40 = vld [vmem:[%s1658_s11 + $0x280] sm:$0xff]  ;;  %v445_v41 = vld [vmem:[%s1658_s11 + $0x290] sm:$0xff]  ;;  %442 = vst [vmem:[%s1663_s12 + $0x138] sm:$0xff] %v441_v39 }
  0x2d   : > { %444 = vst [vmem:[%s1663_s12 + $0x140] sm:$0xff] %v443_v40  ;;  %446 = vst [vmem:[%s1663_s12 + $0x148] sm:$0xff] %v445_v41  ;;  %v447_v42 = vld [vmem:[%s1658_s11 + $0x2a0] sm:$0xff]  ;;  %v449_v43 = vld [vmem:[%s1658_s11 + $0x2b0] sm:$0xff] }
  0x2e   : > { %v451_v44 = vld [vmem:[%s1658_s11 + $0x2c0] sm:$0xff]  ;;  %448 = vst [vmem:[%s1663_s12 + $0x150] sm:$0xff] %v447_v42  ;;  %450 = vst [vmem:[%s1663_s12 + $0x158] sm:$0xff] %v449_v43  ;;  %v453_v45 = vld [vmem:[%s1658_s11 + $0x2d0] sm:$0xff] }
  0x2f   : > { %452 = vst [vmem:[%s1663_s12 + $0x160] sm:$0xff] %v451_v44  ;;  %v455_v46 = vld [vmem:[%s1658_s11 + $0x2e0] sm:$0xff]  ;;  %v457_v47 = vld [vmem:[%s1658_s11 + $0x2f0] sm:$0xff]  ;;  %454 = vst [vmem:[%s1663_s12 + $0x168] sm:$0xff] %v453_v45 }
  0x30   : > { %456 = vst [vmem:[%s1663_s12 + $0x170] sm:$0xff] %v455_v46  ;;  %458 = vst [vmem:[%s1663_s12 + $0x178] sm:$0xff] %v457_v47  ;;  %v459_v48 = vld [vmem:[%s1658_s11 + $0x300] sm:$0xff]  ;;  %v461_v49 = vld [vmem:[%s1658_s11 + $0x310] sm:$0xff] }
  0x31   : > { %v463_v50 = vld [vmem:[%s1658_s11 + $0x320] sm:$0xff]  ;;  %460 = vst [vmem:[%s1663_s12 + $0x180] sm:$0xff] %v459_v48  ;;  %462 = vst [vmem:[%s1663_s12 + $0x188] sm:$0xff] %v461_v49  ;;  %v465_v51 = vld [vmem:[%s1658_s11 + $0x330] sm:$0xff] }
  0x32   : > { %464 = vst [vmem:[%s1663_s12 + $0x190] sm:$0xff] %v463_v50  ;;  %v467_v52 = vld [vmem:[%s1658_s11 + $0x340] sm:$0xff]  ;;  %v469_v53 = vld [vmem:[%s1658_s11 + $0x350] sm:$0xff]  ;;  %466 = vst [vmem:[%s1663_s12 + $0x198] sm:$0xff] %v465_v51 }
  0x33   : > { %468 = vst [vmem:[%s1663_s12 + $0x1a0] sm:$0xff] %v467_v52  ;;  %470 = vst [vmem:[%s1663_s12 + $0x1a8] sm:$0xff] %v469_v53  ;;  %v471_v54 = vld [vmem:[%s1658_s11 + $0x360] sm:$0xff]  ;;  %v473_v55 = vld [vmem:[%s1658_s11 + $0x370] sm:$0xff] }
  0x34   : > { %v475_v56 = vld [vmem:[%s1658_s11 + $0x380] sm:$0xff]  ;;  %472 = vst [vmem:[%s1663_s12 + $0x1b0] sm:$0xff] %v471_v54  ;;  %474 = vst [vmem:[%s1663_s12 + $0x1b8] sm:$0xff] %v473_v55  ;;  %v477_v57 = vld [vmem:[%s1658_s11 + $0x390] sm:$0xff] }
  0x35   : > { %476 = vst [vmem:[%s1663_s12 + $0x1c0] sm:$0xff] %v475_v56  ;;  %v479_v58 = vld [vmem:[%s1658_s11 + $0x3a0] sm:$0xff]  ;;  %v481_v59 = vld [vmem:[%s1658_s11 + $0x3b0] sm:$0xff]  ;;  %478 = vst [vmem:[%s1663_s12 + $0x1c8] sm:$0xff] %v477_v57 }
  0x36   : > { %480 = vst [vmem:[%s1663_s12 + $0x1d0] sm:$0xff] %v479_v58  ;;  %482 = vst [vmem:[%s1663_s12 + $0x1d8] sm:$0xff] %v481_v59  ;;  %v483_v60 = vld [vmem:[%s1658_s11 + $0x3c0] sm:$0xff]  ;;  %v485_v61 = vld [vmem:[%s1658_s11 + $0x3d0] sm:$0xff] }
  0x37   : > { %v487_v62 = vld [vmem:[%s1658_s11 + $0x3e0] sm:$0xff]  ;;  %484 = vst [vmem:[%s1663_s12 + $0x1e0] sm:$0xff] %v483_v60  ;;  %486 = vst [vmem:[%s1663_s12 + $0x1e8] sm:$0xff] %v485_v61  ;;  %v489_v63 = vld [vmem:[%s1658_s11 + $0x3f0] sm:$0xff] }
  0x38   : > { %488 = vst [vmem:[%s1663_s12 + $0x1f0] sm:$0xff] %v487_v62  ;;  %490 = vst [vmem:[%s1663_s12 + $0x1f8] sm:$0xff] %v489_v63 }
  0x39 PF: > { %p1276_p7 = scmp.ge.s32.totalorder %s1570_s21, 1  ;;  %p511_p8 = scmp.lt.s32.totalorder %s1570_s21, 11 }
  0x3b   : > { %p512_p9 = pnand %p1276_p7, %p511_p8 }
  0x3c   : > { %s518_s13 = sand.u32 (!%p512_p9), 1, %s1546_s15   ;;  %s1278_s14 = sshll.u32 (!%p512_p9), %s1554_s17, 2 }
  0x3d   : > { %515 = sbr.rel (%p512_p9) target bundleno = 378 (0x17a), region = 70  ;;  %s1277_s24 = sshll.u32 (!%p512_p9), %s518_s13, 9 }
  0x3e   : > { %p567_p10 = scmp.lt.s32.totalorder (!%p512_p9), %s1278_s14, 19  ;;  %s1280_s25 = sshll.u32 (!%p512_p9), %s1558_s18, 1 }
  0x3f   : > { %p577_p11 = scmp.lt.s32.totalorder (!%p512_p9), %s1280_s25, 3  ;;  %s1816_s13 = scalar_lea.vmem (!%p512_p9), [#allocation3], %s1277_s24 }
  0x40   : > { %p1284_p12 = scmp.ne.s32.totalorder (!%p512_p9), %s1554_s17, 0 }
  0x44   : > { %s1936_s14 = smov (!%p567_p10, %s1278_s14), 19  ;;  %s1938_s25 = smov (!%p577_p11, %s1280_s25), 3 }
  0x45   : > { %s1279_s26 = sshll.u32 %s1936_s14, 2  ;;  %s579_s15 = scalar_lea.vmem %s1920_s2, %s1938_s25  ;;  %v1572_v0 = vmov (!%p1284_p12), 0.0  }
  0x46   : > { %s1798_s30 = scalar_lea.vmem %s1918_s0, %s1279_s26  ;;  %s584_s18 = scalar_lea.vmem %s1921_s3, %s1938_s25  ;;  %600 = vst [vmem:[#allocation2] sm:$0xff] (!%p1284_p12), %v1572_v0  ;;  %601 = vst [vmem:[#allocation2 + $0x8] sm:$0xff] (!%p1284_p12), %v1572_v0 }
  0x47   : > { %s1283_s9 = sshll.u32 %s1938_s25, 2  ;;  %599 = sbr.rel (%p1284_p12) target bundleno = 78 (0x4e), region = 78 }
  0x48   : > { %s1814_s12 = scalar_lea.vmem %s1922_s4, %s1283_s9 }
  0x4e PF: > { %v1416_v1 = vld [vmem:[%s1816_s13 + $0x4] ss:$8 sps:$4 sm:$0xff]   ;;  %v1420_v3 = vld [vmem:[%s1816_s13] ss:$8 sps:$4 sm:$0xff]   ;;  %v1422_v5 = vld [vmem:[%s1816_s13 + $0x14] ss:$8 sps:$4 sm:$0xff]  }
  0x4f   : > { %v1418_v2 = vld [vmem:[%s1816_s13 + $0x104] ss:$8 sps:$4 sm:$0xff]   ;;  %1004 = vmatprep.subr.bf16.mxu0 %v1416_v1  ;;  %v1421_v4 = vld [vmem:[%s1816_s13 + $0x100] ss:$8 sps:$4 sm:$0xff]   ;;  %v1424_v6 = vld [vmem:[%s1816_s13 + $0x114] ss:$8 sps:$4 sm:$0xff]  }
  0x50   : > { %1045 = vmatprep.subr.bf16.mxu1 %v1418_v2  ;;  %1005 = vmatpush1.bf16.msra.mxu0 %v1420_v3  ;;  %v1426_v7 = vld [vmem:[%s1816_s13 + $0x10] ss:$8 sps:$4 sm:$0xff]   ;;  %v1428_v9 = vld [vmem:[%s1816_s13 + $0x24] ss:$8 sps:$4 sm:$0xff]   ;;  %v1432_v11 = vld [vmem:[%s1816_s13 + $0x20] ss:$8 sps:$4 sm:$0xff]  }
  0x51   : > { %1046 = vmatpush1.bf16.msra.mxu1 %v1421_v4  ;;  %1006 = vmatprep.subr.bf16.mxu0 %v1422_v5  ;;  %v1427_v8 = vld [vmem:[%s1816_s13 + $0x110] ss:$8 sps:$4 sm:$0xff]   ;;  %v1430_v10 = vld [vmem:[%s1816_s13 + $0x124] ss:$8 sps:$4 sm:$0xff]   ;;  %v1433_v12 = vld [vmem:[%s1816_s13 + $0x120] ss:$8 sps:$4 sm:$0xff]  }
  0x52   : > { %1047 = vmatprep.subr.bf16.mxu1 %v1424_v6  ;;  %v1434_v13 = vld [vmem:[%s1816_s13 + $0x34] ss:$8 sps:$4 sm:$0xff]   ;;  %v1438_v15 = vld [vmem:[%s1816_s13 + $0x30] ss:$8 sps:$4 sm:$0xff]   ;;  %v1440_v17 = vld [vmem:[%s1816_s13 + $0x44] ss:$8 sps:$4 sm:$0xff]  }
  0x53   : > { %v1436_v14 = vld [vmem:[%s1816_s13 + $0x134] ss:$8 sps:$4 sm:$0xff]   ;;  %v1439_v16 = vld [vmem:[%s1816_s13 + $0x130] ss:$8 sps:$4 sm:$0xff]   ;;  %v1442_v18 = vld [vmem:[%s1816_s13 + $0x144] ss:$8 sps:$4 sm:$0xff]  }
  0x54   : > { %1007 = vmatpush1.bf16.msra.mxu0 %v1426_v7  ;;  %v1444_v19 = vld [vmem:[%s1816_s13 + $0x40] ss:$8 sps:$4 sm:$0xff]   ;;  %v1446_v21 = vld [vmem:[%s1816_s13 + $0x54] ss:$8 sps:$4 sm:$0xff]   ;;  %v1450_v23 = vld [vmem:[%s1816_s13 + $0x50] ss:$8 sps:$4 sm:$0xff]  }
  0x55   : > { %1048 = vmatpush1.bf16.msra.mxu1 %v1427_v8  ;;  %1008 = vmatprep.subr.bf16.mxu0 %v1428_v9  ;;  %v1445_v20 = vld [vmem:[%s1816_s13 + $0x140] ss:$8 sps:$4 sm:$0xff]   ;;  %v1448_v22 = vld [vmem:[%s1816_s13 + $0x154] ss:$8 sps:$4 sm:$0xff]   ;;  %v1451_v24 = vld [vmem:[%s1816_s13 + $0x150] ss:$8 sps:$4 sm:$0xff]  }
  0x56   : > { %1049 = vmatprep.subr.bf16.mxu1 %v1430_v10  ;;  %v1452_v25 = vld [vmem:[%s1816_s13 + $0x64] ss:$8 sps:$4 sm:$0xff]   ;;  %v1456_v27 = vld [vmem:[%s1816_s13 + $0x60] ss:$8 sps:$4 sm:$0xff]   ;;  %v1458_v29 = vld [vmem:[%s1816_s13 + $0x74] ss:$8 sps:$4 sm:$0xff]  }
  0x57   : > { %v1454_v26 = vld [vmem:[%s1816_s13 + $0x164] ss:$8 sps:$4 sm:$0xff]   ;;  %v1457_v28 = vld [vmem:[%s1816_s13 + $0x160] ss:$8 sps:$4 sm:$0xff]   ;;  %v1460_v30 = vld [vmem:[%s1816_s13 + $0x174] ss:$8 sps:$4 sm:$0xff]  }
  0x58   : > { %1009 = vmatpush1.bf16.msra.mxu0 %v1432_v11  ;;  %v1462_v31 = vld [vmem:[%s1816_s13 + $0x70] ss:$8 sps:$4 sm:$0xff]   ;;  %v1464_v33 = vld [vmem:[%s1816_s13 + $0x84] ss:$8 sps:$4 sm:$0xff]   ;;  %v1468_v35 = vld [vmem:[%s1816_s13 + $0x80] ss:$8 sps:$4 sm:$0xff]  }
  0x59   : > { %1050 = vmatpush1.bf16.msra.mxu1 %v1433_v12  ;;  %1010 = vmatprep.subr.bf16.mxu0 %v1434_v13  ;;  %v1463_v32 = vld [vmem:[%s1816_s13 + $0x170] ss:$8 sps:$4 sm:$0xff]   ;;  %v1466_v34 = vld [vmem:[%s1816_s13 + $0x184] ss:$8 sps:$4 sm:$0xff]   ;;  %v1469_v36 = vld [vmem:[%s1816_s13 + $0x180] ss:$8 sps:$4 sm:$0xff]  }
  0x5a   : > { %1051 = vmatprep.subr.bf16.mxu1 %v1436_v14  ;;  %v1470_v37 = vld [vmem:[%s1816_s13 + $0x94] ss:$8 sps:$4 sm:$0xff]   ;;  %v1474_v39 = vld [vmem:[%s1816_s13 + $0x90] ss:$8 sps:$4 sm:$0xff]   ;;  %v1476_v41 = vld [vmem:[%s1816_s13 + $0xa4] ss:$8 sps:$4 sm:$0xff]  }
  0x5b   : > { %v1472_v38 = vld [vmem:[%s1816_s13 + $0x194] ss:$8 sps:$4 sm:$0xff]   ;;  %v1475_v40 = vld [vmem:[%s1816_s13 + $0x190] ss:$8 sps:$4 sm:$0xff]   ;;  %v1478_v42 = vld [vmem:[%s1816_s13 + $0x1a4] ss:$8 sps:$4 sm:$0xff]  }
  0x5c   : > { %1011 = vmatpush1.bf16.msra.mxu0 %v1438_v15  ;;  %v1480_v43 = vld [vmem:[%s1816_s13 + $0xa0] ss:$8 sps:$4 sm:$0xff]   ;;  %v1482_v45 = vld [vmem:[%s1816_s13 + $0xb4] ss:$8 sps:$4 sm:$0xff]   ;;  %v1486_v50 = vld [vmem:[%s1816_s13 + $0xb0] ss:$8 sps:$4 sm:$0xff]  }
  0x5d   : > { %1052 = vmatpush1.bf16.msra.mxu1 %v1439_v16  ;;  %1012 = vmatprep.subr.bf16.mxu0 %v1440_v17  ;;  %v1481_v44 = vld [vmem:[%s1816_s13 + $0x1a0] ss:$8 sps:$4 sm:$0xff]   ;;  %v1484_v46 = vld [vmem:[%s1816_s13 + $0x1b4] ss:$8 sps:$4 sm:$0xff]   ;;  %v1487_v51 = vld [vmem:[%s1816_s13 + $0x1b0] ss:$8 sps:$4 sm:$0xff]  }
  0x5e   : > { %1053 = vmatprep.subr.bf16.mxu1 %v1442_v18  ;;  %v604_v47 = vld [vmem:[%s1798_s30] sm:$0xff]  ;;  %v605_v49 = vld [vmem:[%s1798_s30 + $0x8] sm:$0xff]  ;;  %v1488_v53 = vld [vmem:[%s1816_s13 + $0xc4] ss:$8 sps:$4 sm:$0xff]   ;;  %p1353_p13 = scmp.ne.s32.totalorder %s1554_s17, 4 }
  0x5f   : > { %v1286_v48 = vcombine.high %v604_v47, %v604_v47  ;;  %v1288_v52 = vcombine.high %v605_v49, %v605_v49  ;;  %v1490_v54 = vld [vmem:[%s1816_s13 + $0x1c4] ss:$8 sps:$4 sm:$0xff]   ;;  %v1492_v55 = vld [vmem:[%s1816_s13 + $0xc0] ss:$8 sps:$4 sm:$0xff]   ;;  %v1494_v57 = vld [vmem:[%s1816_s13 + $0xd4] ss:$8 sps:$4 sm:$0xff]   ;;  %v1285_v5 = vcombine.low %v604_v47, %v604_v47  ;;  %v1287_v6 = vcombine.low %v605_v49, %v605_v49 }
  0x60   : > { %1013 = vmatpush1.bf16.msra.mxu0 %v1444_v19  ;;  %v1493_v56 = vld [vmem:[%s1816_s13 + $0x1c0] ss:$8 sps:$4 sm:$0xff]   ;;  %v1496_v58 = vld [vmem:[%s1816_s13 + $0x1d4] ss:$8 sps:$4 sm:$0xff]   ;;  %v1498_v59 = vld [vmem:[%s1816_s13 + $0xd0] ss:$8 sps:$4 sm:$0xff]  }
  0x61   : > { %1054 = vmatpush1.bf16.msra.mxu1 %v1445_v20  ;;  %1014 = vmatprep.subr.bf16.mxu0 %v1446_v21  ;;  %v1499_v60 = vld [vmem:[%s1816_s13 + $0x1d0] ss:$8 sps:$4 sm:$0xff]   ;;  %v1500_v61 = vld [vmem:[%s1816_s13 + $0xe4] ss:$8 sps:$4 sm:$0xff]   ;;  %v1504_v63 = vld [vmem:[%s1816_s13 + $0xe0] ss:$8 sps:$4 sm:$0xff]   ;;  %v1098_v21 = vlaneseq (!%p1353_p13) }
  0x62   : > { %1055 = vmatprep.subr.bf16.mxu1 %v1448_v22  ;;  %1036 = vmatprep.mubr.bf16.mxu0 %v1286_v48  ;;  %v1502_v62 = vld [vmem:[%s1816_s13 + $0x1e4] ss:$8 sps:$4 sm:$0xff]   ;;  %v1505_v0 = vld [vmem:[%s1816_s13 + $0x1e0] ss:$8 sps:$4 sm:$0xff]   ;;  %v1506_v1 = vld [vmem:[%s1816_s13 + $0xf4] ss:$8 sps:$4 sm:$0xff]  }
  0x63   : > { %1077 = vmatprep.mubr.bf16.mxu1 %v1288_v52  ;;  %v1508_v2 = vld [vmem:[%s1816_s13 + $0x1f4] ss:$8 sps:$4 sm:$0xff]   ;;  %v1510_v3 = vld [vmem:[%s1816_s13 + $0xf0] ss:$8 sps:$4 sm:$0xff]   ;;  %v1099_v22 = vshrl.u32 (!%p1353_p13), %v1098_v21, 7 }
  0x64   : > { %1015 = vmatpush1.bf16.msra.mxu0 %v1450_v23  ;;  %v1511_v4 = vld [vmem:[%s1816_s13 + $0x1f0] ss:$8 sps:$4 sm:$0xff]  }
  0x65   : > { %1056 = vmatpush1.bf16.msra.mxu1 %v1451_v24  ;;  %1016 = vmatprep.subr.bf16.mxu0 %v1452_v25  ;;  %v602_v8 = vld [vmem:[#allocation2] sm:$0xff]  ;;  %v603_v12 = vld [vmem:[#allocation2 + $0x8] sm:$0xff]  ;;  %v1100_v25 = vsub.s32 (!%p1353_p13), 0, %v1099_v22 }
  0x66   : > { %1057 = vmatprep.subr.bf16.mxu1 %v1454_v26  ;;  %v1096_v23 = vld [vmem:[%s579_s15] sm:$0x3] (!%p1353_p13)  ;;  %v1104_v26 = vsub.s32 (!%p1353_p13), 1, %v1099_v22 }
  0x67   : > { %v1110_v24 = vld [vmem:[%s584_s18] sm:$0x3] (!%p1353_p13) }
  0x68   : > { %1017 = vmatpush1.bf16.msra.mxu0 %v1456_v27 }
  0x69   : > { %1058 = vmatpush1.bf16.msra.mxu1 %v1457_v28  ;;  %1018 = vmatprep.subr.bf16.mxu0 %v1458_v29  ;;  %v1101_v29 = vrot.slane (!%p1353_p13), %v1096_v23, %v1100_v25 }
  0x6a   : > { %1059 = vmatprep.subr.bf16.mxu1 %v1460_v30  ;;  %v1105_v30 = vrot.slane (!%p1353_p13), %v1096_v23, %v1104_v26 }
  0x6c   : > { %1019 = vmatpush1.bf16.msra.mxu0 %v1462_v31  ;;  %v1115_v31 = vrot.slane (!%p1353_p13), %v1110_v24, %v1100_v25 }
  0x6d   : > { %1060 = vmatpush1.bf16.msra.mxu1 %v1463_v32  ;;  %1020 = vmatprep.subr.bf16.mxu0 %v1464_v33  ;;  %v1119_v32 = vrot.slane (!%p1353_p13), %v1110_v24, %v1104_v26 }
  0x6e   : > { %1061 = vmatprep.subr.bf16.mxu1 %v1466_v34 }
  0x70   : > { %1021 = vmatpush1.bf16.msra.mxu0 %v1468_v35 }
  0x71   : > { %1062 = vmatpush1.bf16.msra.mxu1 %v1469_v36  ;;  %1022 = vmatprep.subr.bf16.mxu0 %v1470_v37 }
  0x72   : > { %1063 = vmatprep.subr.bf16.mxu1 %v1472_v38 }
  0x74   : > { %1023 = vmatpush1.bf16.msra.mxu0 %v1474_v39 }
  0x75   : > { %1064 = vmatpush1.bf16.msra.mxu1 %v1475_v40  ;;  %1024 = vmatprep.subr.bf16.mxu0 %v1476_v41 }
  0x76   : > { %1065 = vmatprep.subr.bf16.mxu1 %v1478_v42 }
  0x78   : > { %1025 = vmatpush1.bf16.msra.mxu0 %v1480_v43 }
  0x79   : > { %1066 = vmatpush1.bf16.msra.mxu1 %v1481_v44  ;;  %1026 = vmatprep.subr.bf16.mxu0 %v1482_v45 }
  0x7a   : > { %1067 = vmatprep.subr.bf16.mxu1 %v1484_v46 }
  0x7c   : > { %1027 = vmatpush1.bf16.msra.mxu0 %v1486_v50 }
  0x7d   : > { %1068 = vmatpush1.bf16.msra.mxu1 %v1487_v51  ;;  %1028 = vmatprep.subr.bf16.mxu0 %v1488_v53 }
  0x7e   : > { %1069 = vmatprep.subr.bf16.mxu1 %v1490_v54 }
  0x80   : > { %1029 = vmatpush1.bf16.msra.mxu0 %v1492_v55 }
  0x81   : > { %1070 = vmatpush1.bf16.msra.mxu1 %v1493_v56  ;;  %1030 = vmatprep.subr.bf16.mxu0 %v1494_v57 }
  0x82   : > { %1071 = vmatprep.subr.bf16.mxu1 %v1496_v58 }
  0x84   : > { %1031 = vmatpush1.bf16.msra.mxu0 %v1498_v59 }
  0x85   : > { %1072 = vmatpush1.bf16.msra.mxu1 %v1499_v60  ;;  %1032 = vmatprep.subr.bf16.mxu0 %v1500_v61 }
  0x86   : > { %1073 = vmatprep.subr.bf16.mxu1 %v1502_v62 }
  0x88   : > { %1033 = vmatpush1.bf16.msra.mxu0 %v1504_v63 }
  0x89   : > { %1074 = vmatpush1.bf16.msra.mxu1 %v1505_v0  ;;  %1034 = vmatprep.subr.bf16.mxu0 %v1506_v1 }
  0x8a   : > { %1075 = vmatprep.subr.bf16.mxu1 %v1508_v2 }
  0x8c   : > { %1035 = vmatpush1.bf16.msra.mxu0 %v1510_v3 }
  0x8d   : > { %1076 = vmatpush1.bf16.msra.mxu1 %v1511_v4 }
  0x8f   : > { %1037 = vmatmul.mubr.bf16.vlgmr.msra.gmra.mrb[0].mxu0 %v1285_v5 }
  0x90   : > { %1078 = vmatmul.mubr.bf16.vlgmr.msra.gmra.mrb[0].mxu1 %v1287_v6 }
 0x162   : > { %v1038_v7 = vpop.f32.mrb[0].mxu0 }
 0x163   : > { %v1079_v9 = vpop.f32.mrb[0].mxu1  ;;  %v1040_v11 = vpop.f32.mrb[1].mxu0  ;;  %1093 = sbr.rel (%p1353_p13) target bundleno = 378 (0x17a), region = 82 }
 0x164   : > { %v1080_v10 = vadd.f32 %v1079_v9, %v1038_v7  ;;  %v1081_v13 = vpop.f32.mrb[1].mxu1  ;;  %v1042_v15 = vpop.f32.mrb[2].mxu0 }
 0x165   : > { %v1082_v14 = vadd.f32 %v1081_v13, %v1040_v11  ;;  %v1083_v16 = vpop.f32.mrb[2].mxu1  ;;  %v1043_v18 = vpop.f32.mrb[3].mxu0 }
 0x166   : > { %v1086_v17 = vadd.f32 %v1080_v10, %v602_v8  ;;  %v1084_v19 = vpop.f32.mrb[3].mxu1 }
 0x167   : > { %v1087_v20 = vadd.f32 %v1082_v14, %v603_v12 }
 0x168   : > { %1088 = vst [vmem:[#allocation2] sm:$0xff] %v1086_v17 }
 0x169   : > { %1089 = vst [vmem:[#allocation2 + $0x8] sm:$0xff] %v1087_v20 }
 0x16f   : > { %v1094_v27 = vld [vmem:[#allocation2] sm:$0xff] }
 0x170   : > { %v1095_v28 = vld [vmem:[#allocation2 + $0x8] sm:$0xff]  ;;  %v1108_v33 = vmul.f32 %v1101_v29, %v1094_v27 }
 0x171   : > { %v1109_v34 = vmul.f32 %v1105_v30, %v1095_v28 }
 0x172   : > { %v1122_v35 = vadd.f32 %v1115_v31, %v1108_v33 }
 0x173   : > { %v1123_v36 = vadd.f32 %v1119_v32, %v1109_v34 }
 0x174   : > { %v1124_v37 = vmax.f32 %v1122_v35, 0.0 }
 0x175   : > { %v1125_v38 = vmax.f32 %v1123_v36, 0.0 }
 0x177   : > { %v1358_v39 = vpack.c.bf16 %v1125_v38, %v1124_v37 }
 0x179   : > { %1134 = vst [vmem:[%s1814_s12] sm:$0xff] %v1358_v39 }
 0x17a PF: > { %s14_s21 = sadd.s32 1, %s1570_s21   ;;  %s1923_s15 = smov %s1550_s16 }
 0x17b   : > { %p11_p0 = scmp.ge.s32.totalorder %s14_s21, 12   ;;  %s1924_s16 = smov %s1649_s28 }
 0x17c   : > { %s1925_s17 = smov %s1562_s19  ;;  %s1926_s18 = smov %s1566_s20 }
 0x17d   : > { %s1927_s19 = smov %s1930_s22  ;;  %s1928_s20 = smov %s1934_s23 }
 0x17e   :  { %13 = sbr.rel (!%p11_p0) target bundleno = 4 (0x4), region = 126 }

// kernel: _lambda_.21
= control target key start
LH: loop header
LB: loop body
LE: loop exit
PB: predicated region body
PF: predicated region fallthrough
CT: control target
= control target key end

     0   :  { %s616_s1 = inlined_call_operand.vmem [shape: f32[512,128], index: 1, kind: input, shape index: {}]   ;;  %s617_s0 = inlined_call_operand.vmem [shape: f32[1,8,512], index: 0, kind: input, shape index: {}]   ;;  %s618_s2 = inlined_call_operand.vmem [shape: f32[1,128], index: 2, kind: input, shape index: {}]   ;;  %s619_s3 = inlined_call_operand.vmem [shape: f32[8,128], index: 3, kind: output, shape index: {}]  }
   0x1   :  { %v38_v0 = vld [vmem:[%s616_s1 + $0x80] sm:$0xff]  ;;  %v39_v1 = vld [vmem:[%s616_s1 + $0x88] sm:$0xff]  ;;  %v40_v11 = vld [vmem:[%s616_s1 + $0x90] sm:$0xff] }
   0x2   :  { %v22_v2 = vld [vmem:[%s616_s1] sm:$0xff]  ;;  %v318_v3 = vpack.c.bf16 %v39_v1, %v38_v0  ;;  %v23_v4 = vld [vmem:[%s616_s1 + $0x8] sm:$0xff]  ;;  %v41_v13 = vld [vmem:[%s616_s1 + $0x98] sm:$0xff] }
   0x3   :  { %v70_v5 = vld [vmem:[%s616_s1 + $0x180] sm:$0xff]  ;;  %v71_v6 = vld [vmem:[%s616_s1 + $0x188] sm:$0xff]  ;;  %v320_v7 = vpack.c.bf16 %v23_v4, %v22_v2  ;;  %v24_v14 = vld [vmem:[%s616_s1 + $0x10] sm:$0xff]  ;;  %v322_v16 = vpack.c.bf16 %v41_v13, %v40_v11 }
   0x4   :  { %v350_v8 = vpack.c.bf16 %v71_v6, %v70_v5  ;;  %v54_v9 = vld [vmem:[%s616_s1 + $0x100] sm:$0xff]  ;;  %v55_v10 = vld [vmem:[%s616_s1 + $0x108] sm:$0xff]  ;;  %319 = vmatprep.subr.bf16.mxu0 %v318_v3  ;;  %v25_v15 = vld [vmem:[%s616_s1 + $0x18] sm:$0xff] }
   0x5   :  { %v352_v12 = vpack.c.bf16 %v55_v10, %v54_v9  ;;  %321 = vmatpush3.bf16.msra.mxu0 %v320_v7  ;;  %v324_v17 = vpack.c.bf16 %v25_v15, %v24_v14  ;;  %v72_v18 = vld [vmem:[%s616_s1 + $0x190] sm:$0xff]  ;;  %v73_v19 = vld [vmem:[%s616_s1 + $0x198] sm:$0xff]  ;;  %v42_v23 = vld [vmem:[%s616_s1 + $0xa0] sm:$0xff] }
   0x6   :  { %351 = vmatprep.subr.bf16.mxu1 %v350_v8  ;;  %v56_v20 = vld [vmem:[%s616_s1 + $0x110] sm:$0xff]  ;;  %v354_v21 = vpack.c.bf16 %v73_v19, %v72_v18  ;;  %v57_v22 = vld [vmem:[%s616_s1 + $0x118] sm:$0xff]  ;;  %v43_v24 = vld [vmem:[%s616_s1 + $0xa8] sm:$0xff]  ;;  %323 = vmatprep.subr.bf16.mxu0 %v322_v16 }
   0x7   :  { %353 = vmatpush3.bf16.msra.mxu1 %v352_v12  ;;  %v356_v25 = vpack.c.bf16 %v57_v22, %v56_v20  ;;  %v326_v26 = vpack.c.bf16 %v43_v24, %v42_v23  ;;  %v26_v27 = vld [vmem:[%s616_s1 + $0x20] sm:$0xff]  ;;  %v27_v28 = vld [vmem:[%s616_s1 + $0x28] sm:$0xff]  ;;  %v44_v35 = vld [vmem:[%s616_s1 + $0xb0] sm:$0xff] }
   0x8   :  { %v74_v29 = vld [vmem:[%s616_s1 + $0x1a0] sm:$0xff]  ;;  %355 = vmatprep.subr.bf16.mxu1 %v354_v21  ;;  %v75_v30 = vld [vmem:[%s616_s1 + $0x1a8] sm:$0xff]  ;;  %v328_v33 = vpack.c.bf16 %v27_v28, %v26_v27  ;;  %v45_v36 = vld [vmem:[%s616_s1 + $0xb8] sm:$0xff] }
   0x9   :  { %v58_v31 = vld [vmem:[%s616_s1 + $0x120] sm:$0xff]  ;;  %v59_v32 = vld [vmem:[%s616_s1 + $0x128] sm:$0xff]  ;;  %325 = vmatpush3.bf16.msra.mxu0 %v324_v17  ;;  %v358_v34 = vpack.c.bf16 %v75_v30, %v74_v29  ;;  %v28_v37 = vld [vmem:[%s616_s1 + $0x30] sm:$0xff]  ;;  %v330_v39 = vpack.c.bf16 %v45_v36, %v44_v35 }
   0xa   :  { %327 = vmatprep.subr.bf16.mxu0 %v326_v26  ;;  %v360_v38 = vpack.c.bf16 %v59_v32, %v58_v31  ;;  %v29_v40 = vld [vmem:[%s616_s1 + $0x38] sm:$0xff]  ;;  %v76_v41 = vld [vmem:[%s616_s1 + $0x1b0] sm:$0xff]  ;;  %v46_v46 = vld [vmem:[%s616_s1 + $0xc0] sm:$0xff] }
   0xb   :  { %357 = vmatpush3.bf16.msra.mxu1 %v356_v25  ;;  %v77_v42 = vld [vmem:[%s616_s1 + $0x1b8] sm:$0xff]  ;;  %v60_v44 = vld [vmem:[%s616_s1 + $0x130] sm:$0xff]  ;;  %v47_v47 = vld [vmem:[%s616_s1 + $0xc8] sm:$0xff]  ;;  %v332_v48 = vpack.c.bf16 %v29_v40, %v28_v37 }
   0xc   :  { %359 = vmatprep.subr.bf16.mxu1 %v358_v34  ;;  %v362_v43 = vpack.c.bf16 %v77_v42, %v76_v41  ;;  %v61_v45 = vld [vmem:[%s616_s1 + $0x138] sm:$0xff]  ;;  %v78_v49 = vld [vmem:[%s616_s1 + $0x1c0] sm:$0xff]  ;;  %v79_v50 = vld [vmem:[%s616_s1 + $0x1c8] sm:$0xff]  ;;  %v334_v52 = vpack.c.bf16 %v47_v47, %v46_v46 }
   0xd   :  { %329 = vmatpush3.bf16.msra.mxu0 %v328_v33  ;;  %v364_v51 = vpack.c.bf16 %v61_v45, %v60_v44  ;;  %v30_v53 = vld [vmem:[%s616_s1 + $0x40] sm:$0xff]  ;;  %v31_v54 = vld [vmem:[%s616_s1 + $0x48] sm:$0xff]  ;;  %v366_v56 = vpack.c.bf16 %v79_v50, %v78_v49  ;;  %v48_v58 = vld [vmem:[%s616_s1 + $0xd0] sm:$0xff] }
   0xe   :  { %331 = vmatprep.subr.bf16.mxu0 %v330_v39  ;;  %v62_v55 = vld [vmem:[%s616_s1 + $0x140] sm:$0xff]  ;;  %v63_v57 = vld [vmem:[%s616_s1 + $0x148] sm:$0xff]  ;;  %v49_v59 = vld [vmem:[%s616_s1 + $0xd8] sm:$0xff]  ;;  %v336_v62 = vpack.c.bf16 %v31_v54, %v30_v53 }
   0xf   :  { %361 = vmatpush3.bf16.msra.mxu1 %v360_v38  ;;  %v80_v60 = vld [vmem:[%s616_s1 + $0x1d0] sm:$0xff]  ;;  %v81_v61 = vld [vmem:[%s616_s1 + $0x1d8] sm:$0xff]  ;;  %v368_v63 = vpack.c.bf16 %v63_v57, %v62_v55  ;;  %v338_v0 = vpack.c.bf16 %v49_v59, %v48_v58  ;;  %v50_v6 = vld [vmem:[%s616_s1 + $0xe0] sm:$0xff] }
  0x10   :  { %363 = vmatprep.subr.bf16.mxu1 %v362_v43  ;;  %v32_v1 = vld [vmem:[%s616_s1 + $0x50] sm:$0xff]  ;;  %v33_v2 = vld [vmem:[%s616_s1 + $0x58] sm:$0xff]  ;;  %v370_v4 = vpack.c.bf16 %v81_v61, %v80_v60  ;;  %v51_v7 = vld [vmem:[%s616_s1 + $0xe8] sm:$0xff] }
  0x11   :  { %333 = vmatpush3.bf16.msra.mxu0 %v332_v48  ;;  %v64_v3 = vld [vmem:[%s616_s1 + $0x150] sm:$0xff]  ;;  %v65_v5 = vld [vmem:[%s616_s1 + $0x158] sm:$0xff]  ;;  %v82_v8 = vld [vmem:[%s616_s1 + $0x1e0] sm:$0xff]  ;;  %v340_v10 = vpack.c.bf16 %v33_v2, %v32_v1  ;;  %v342_v14 = vpack.c.bf16 %v51_v7, %v50_v6 }
  0x12   :  { %335 = vmatprep.subr.bf16.mxu0 %v334_v52  ;;  %v83_v9 = vld [vmem:[%s616_s1 + $0x1e8] sm:$0xff]  ;;  %v34_v11 = vld [vmem:[%s616_s1 + $0x60] sm:$0xff]  ;;  %v372_v13 = vpack.c.bf16 %v65_v5, %v64_v3  ;;  %v52_v19 = vld [vmem:[%s616_s1 + $0xf0] sm:$0xff] }
  0x13   :  { %365 = vmatpush3.bf16.msra.mxu1 %v364_v51  ;;  %v35_v12 = vld [vmem:[%s616_s1 + $0x68] sm:$0xff]  ;;  %v66_v15 = vld [vmem:[%s616_s1 + $0x160] sm:$0xff]  ;;  %v374_v18 = vpack.c.bf16 %v83_v9, %v82_v8  ;;  %v53_v20 = vld [vmem:[%s616_s1 + $0xf8] sm:$0xff] }
  0x14   :  { %367 = vmatprep.subr.bf16.mxu1 %v366_v56  ;;  %v67_v16 = vld [vmem:[%s616_s1 + $0x168] sm:$0xff]  ;;  %v17_v21 = vld [vmem:[%s617_s0 + $0x18] sm:$0xff]  ;;  %v84_v22 = vld [vmem:[%s616_s1 + $0x1f0] sm:$0xff]  ;;  %v344_v24 = vpack.c.bf16 %v35_v12, %v34_v11  ;;  %v346_v26 = vpack.c.bf16 %v53_v20, %v52_v19 }
  0x15   :  { %337 = vmatpush3.bf16.msra.mxu0 %v336_v62  ;;  %v15_v17 = vld [vmem:[%s617_s0 + $0x8] sm:$0xff]  ;;  %v85_v23 = vld [vmem:[%s616_s1 + $0x1f8] sm:$0xff]  ;;  %227 = vmatprep.mubr.f32.mxu1 %v17_v21  ;;  %v376_v25 = vpack.c.bf16 %v67_v16, %v66_v15  ;;  %v36_v27 = vld [vmem:[%s616_s1 + $0x70] sm:$0xff] }
  0x16   :  { %339 = vmatprep.subr.bf16.mxu0 %v338_v0  ;;  %157 = vmatprep.mubr.f32.mxu0 %v15_v17  ;;  %v37_v28 = vld [vmem:[%s616_s1 + $0x78] sm:$0xff]  ;;  %v378_v29 = vpack.c.bf16 %v85_v23, %v84_v22  ;;  %v68_v30 = vld [vmem:[%s616_s1 + $0x170] sm:$0xff]  ;;  %v14_v34 = vld [vmem:[%s617_s0] sm:$0xff] }
  0x17   :  { %369 = vmatpush3.bf16.msra.mxu1 %v368_v63  ;;  %v69_v31 = vld [vmem:[%s616_s1 + $0x178] sm:$0xff]  ;;  %v348_v32 = vpack.c.bf16 %v37_v28, %v36_v27  ;;  %v16_v35 = vld [vmem:[%s617_s0 + $0x10] sm:$0xff]  ;;  %v247_v37 = vld [vmem:[%s618_s2] ss:$0 sm:$0xff] }
  0x18   :  { %371 = vmatprep.subr.bf16.mxu1 %v370_v4  ;;  %v380_v33 = vpack.c.bf16 %v69_v31, %v68_v30 }
  0x19   :  { %341 = vmatpush3.bf16.msra.mxu0 %v340_v10 }
  0x1a   :  { %343 = vmatprep.subr.bf16.mxu0 %v342_v14 }
  0x1b   :  { %373 = vmatpush3.bf16.msra.mxu1 %v372_v13 }
  0x1c   :  { %375 = vmatprep.subr.bf16.mxu1 %v374_v18 }
  0x1d   :  { %345 = vmatpush3.bf16.msra.mxu0 %v344_v24 }
  0x1e   :  { %347 = vmatprep.subr.bf16.mxu0 %v346_v26 }
  0x1f   :  { %377 = vmatpush3.bf16.msra.mxu1 %v376_v25 }
  0x20   :  { %379 = vmatprep.subr.bf16.mxu1 %v378_v29 }
  0x21   :  { %349 = vmatpush3.bf16.msra.mxu0 %v348_v32 }
  0x23   :  { %381 = vmatpush3.bf16.msra.mxu1 %v380_v33 }
  0x24   :  { %158 = vmatmul.mubr.f32.vlgmr.msra.gmra.mrb[0].mxu0 %v14_v34 }
  0x26   :  { %228 = vmatmul.mubr.f32.vlgmr.msra.gmra.mrb[0].mxu1 %v16_v35 }
  0xf7   :  { %v280_v36 = vpop.f32.mrb[0].mxu0 }
  0xf8   :  { %v281_v38 = vpop.f32.mrb[1].mxu0 }
  0xf9   :  { %v315_v39 = vpop.f32.mrb[0].mxu1  ;;  %v282_v40 = vadd.f32 %v281_v38, %v280_v36 }
  0xfa   :  { %v316_v41 = vpop.f32.mrb[1].mxu1 }
  0xfb   :  { %v317_v42 = vadd.f32 %v316_v41, %v315_v39  ;;  %v160_v43 = vadd.f32 %v282_v40, %v247_v37 }
  0xfd   :  { %v230_v44 = vadd.f32 %v317_v42, %v160_v43 }
  0xff   :  { %233 = vmax.xlane.f32.xlu0 %v230_v44 }
 0x18c   :  { %v234_v45 = vpop.xlane.xlu0 %233 }
 0x18d   :  { %v235_v46 = vsub.f32 %v230_v44, %v234_v45 }
 0x18f   :  { %v236_v47 = vmul.f32 1.442695, %v235_v46 }
 0x191   :  { %382 = vpow2.f32 %v236_v47 }
 0x19b   :  { %v383_v48 = vpop.eup %382 }
 0x19c   :  { %238 = vadd.xlane.f32.xlu0 %v383_v48 }
 0x229   :  { %v239_v49 = vpop.xlane.xlu0 %238 }
 0x22a   :  { %384 = vrcp.f32 %v239_v49 }
 0x234   :  { %v385_v50 = vpop.eup %384 }
 0x235   :  { %v241_v51 = vmul.f32 %v385_v50, %v383_v48 }
 0x237   :  { %242 = vst [vmem:[%s619_s3] sm:$0xff] %v241_v51 }

// kernel: _lambda_.20
= control target key start
LH: loop header
LB: loop body
LE: loop exit
PB: predicated region body
PF: predicated region fallthrough
CT: control target
= control target key end

     0   :  { %s1437_s9 = smov 0   ;;  %s1439_s10 = smov 0   ;;  %s1737_s0 = inlined_call_operand.vmem [shape: bf16[8,5120], index: 0, kind: input, shape index: {}]   ;;  %s1738_s1 = inlined_call_operand.vmem [shape: bf16[5120,512], index: 1, kind: input, shape index: {}]   ;;  %s1739_s2 = inlined_call_operand.vmem [shape: f32[8,512], index: 2, kind: output, shape index: {}]  }
   0x1   :  { %s1441_s11 = smov 0   ;;  %s1443_s12 = smov 0  }
   0x2   :  { %s1445_s13 = smov 0   ;;  %s1447_s14 = smov 0  }
   0x3   :  { %s1449_s15 = smov 0  }
   0x4 LB: > { %s24_s16 = sadd.s32 1, %s1411_s13  ;;  %s27_s17 = sadd.s32 1, %s1415_s14  ;;  %s1419_s15 = sphi %s1449_s15, %s12_s15   ;;  %s1415_s14 = sphi %s1447_s14, %s1745_s14   ;;  %s1411_s13 = sphi %s1445_s13, %s1744_s13   ;;  %s1407_s12 = sphi %s1443_s12, %s1743_s12   ;;  %s1403_s11 = sphi %s1441_s11, %s1742_s11   ;;  %s1399_s10 = sphi %s1439_s10, %s1741_s10   ;;  %s1395_s9 = sphi %s1437_s9, %s1740_s9  }
   0x5   : > { %p25_p0 = scmp.ge.s32.totalorder %s24_s16, 10  ;;  %p75_p1 = scmp.ne.s32.totalorder %s1399_s10, %s1395_s9 }
   0x6   : > { %p76_p2 = scmp.eq.s32.totalorder %s1419_s15, 0  ;;  %s68_s21 = sadd.s32 1, %s1399_s10 }
   0x7   : > { %s1747_s16 = smov (%p25_p0, %s24_s16), 0  ;;  %s1749_s17 = smov (!%p25_p0, %s27_s17), %s1415_s14 }
   0x8   : > { %p77_p3 = por %p76_p2, %p75_p1  ;;  %p29_p4 = scmp.ge.s32.totalorder %s1749_s17, 2 }
   0x9   : > { %s63_s18 = ssub.s32 %s1411_s13, %s1747_s16  ;;  %p1123_p6 = scmp.ge.s32.totalorder %s1419_s15, 20 }
   0xa   : > { %s1751_s17 = smov (%p29_p4, %s1749_s17), 0 }
   0xb   : > { %s64_s19 = ssub.s32 %s1415_s14, %s1751_s17  ;;  %129 = sbr.rel (%p1123_p6) target bundleno = 57 (0x39), region = 16 }
   0xc   : > { %s65_s20 = sor.u32 %s64_s19, %s63_s18 }
   0xd   : > { %p66_p5 = scmp.eq.s32.totalorder %s65_s20, 0 }
   0xf   : > { %s1488_s22 = scalar_select %p66_p5, %s1399_s10, %s68_s21  }
  0x12   : > { %145 = sbr.rel (!%p77_p3) target bundleno = 57 (0x39), region = 24  ;;  %s147_s23 = sand.u32 (%p77_p3), 1, %s1399_s10  }
  0x13   : > { %s1126_s24 = sshll.u32 (%p77_p3), %s1415_s14, 1  ;;  %s1124_s25 = sshll.u32 (%p77_p3), %s147_s23, 9 }
  0x14   : > { %s1207_s26 = sshll.u32 (%p77_p3), %s1411_s13, 8  ;;  %s1502_s4 = scalar_lea.vmem (%p77_p3), [#allocation3], %s1124_s25 }
  0x15   : > { %s153_s27 = sadd.s32 (%p77_p3), %s1207_s26, %s1126_s24 }
  0x16   : > { %s1128_s28 = sshll.u32 (%p77_p3), %s153_s27, 2 }
  0x17   : > { %s1497_s3 = scalar_lea.vmem (%p77_p3), %s1738_s1, %s1128_s28 }
  0x18   : > { %v309_v0 = vld [vmem:[%s1497_s3] sm:$0xff] (%p77_p3)  ;;  %v311_v1 = vld [vmem:[%s1497_s3 + $0x10] sm:$0xff] (%p77_p3) }
  0x19   : > { %v313_v2 = vld [vmem:[%s1497_s3 + $0x20] sm:$0xff]  ;;  %310 = vst [vmem:[%s1502_s4] sm:$0xff] %v309_v0  ;;  %312 = vst [vmem:[%s1502_s4 + $0x8] sm:$0xff] %v311_v1  ;;  %v315_v3 = vld [vmem:[%s1497_s3 + $0x30] sm:$0xff] }
  0x1a   : > { %314 = vst [vmem:[%s1502_s4 + $0x10] sm:$0xff] %v313_v2  ;;  %v317_v4 = vld [vmem:[%s1497_s3 + $0x40] sm:$0xff]  ;;  %v319_v5 = vld [vmem:[%s1497_s3 + $0x50] sm:$0xff]  ;;  %316 = vst [vmem:[%s1502_s4 + $0x18] sm:$0xff] %v315_v3 }
  0x1b   : > { %318 = vst [vmem:[%s1502_s4 + $0x20] sm:$0xff] %v317_v4  ;;  %320 = vst [vmem:[%s1502_s4 + $0x28] sm:$0xff] %v319_v5  ;;  %v321_v6 = vld [vmem:[%s1497_s3 + $0x60] sm:$0xff]  ;;  %v323_v7 = vld [vmem:[%s1497_s3 + $0x70] sm:$0xff] }
  0x1c   : > { %v325_v8 = vld [vmem:[%s1497_s3 + $0x80] sm:$0xff]  ;;  %322 = vst [vmem:[%s1502_s4 + $0x30] sm:$0xff] %v321_v6  ;;  %324 = vst [vmem:[%s1502_s4 + $0x38] sm:$0xff] %v323_v7  ;;  %v327_v9 = vld [vmem:[%s1497_s3 + $0x90] sm:$0xff] }
  0x1d   : > { %326 = vst [vmem:[%s1502_s4 + $0x40] sm:$0xff] %v325_v8  ;;  %v329_v10 = vld [vmem:[%s1497_s3 + $0xa0] sm:$0xff]  ;;  %v331_v11 = vld [vmem:[%s1497_s3 + $0xb0] sm:$0xff]  ;;  %328 = vst [vmem:[%s1502_s4 + $0x48] sm:$0xff] %v327_v9 }
  0x1e   : > { %330 = vst [vmem:[%s1502_s4 + $0x50] sm:$0xff] %v329_v10  ;;  %332 = vst [vmem:[%s1502_s4 + $0x58] sm:$0xff] %v331_v11  ;;  %v333_v12 = vld [vmem:[%s1497_s3 + $0xc0] sm:$0xff]  ;;  %v335_v13 = vld [vmem:[%s1497_s3 + $0xd0] sm:$0xff] }
  0x1f   : > { %v337_v14 = vld [vmem:[%s1497_s3 + $0xe0] sm:$0xff]  ;;  %334 = vst [vmem:[%s1502_s4 + $0x60] sm:$0xff] %v333_v12  ;;  %336 = vst [vmem:[%s1502_s4 + $0x68] sm:$0xff] %v335_v13  ;;  %v339_v15 = vld [vmem:[%s1497_s3 + $0xf0] sm:$0xff] }
  0x20   : > { %338 = vst [vmem:[%s1502_s4 + $0x70] sm:$0xff] %v337_v14  ;;  %v341_v16 = vld [vmem:[%s1497_s3 + $0x100] sm:$0xff]  ;;  %v343_v17 = vld [vmem:[%s1497_s3 + $0x110] sm:$0xff]  ;;  %340 = vst [vmem:[%s1502_s4 + $0x78] sm:$0xff] %v339_v15 }
  0x21   : > { %342 = vst [vmem:[%s1502_s4 + $0x80] sm:$0xff] %v341_v16  ;;  %344 = vst [vmem:[%s1502_s4 + $0x88] sm:$0xff] %v343_v17  ;;  %v345_v18 = vld [vmem:[%s1497_s3 + $0x120] sm:$0xff]  ;;  %v347_v19 = vld [vmem:[%s1497_s3 + $0x130] sm:$0xff] }
  0x22   : > { %v349_v20 = vld [vmem:[%s1497_s3 + $0x140] sm:$0xff]  ;;  %346 = vst [vmem:[%s1502_s4 + $0x90] sm:$0xff] %v345_v18  ;;  %348 = vst [vmem:[%s1502_s4 + $0x98] sm:$0xff] %v347_v19  ;;  %v351_v21 = vld [vmem:[%s1497_s3 + $0x150] sm:$0xff] }
  0x23   : > { %350 = vst [vmem:[%s1502_s4 + $0xa0] sm:$0xff] %v349_v20  ;;  %v353_v22 = vld [vmem:[%s1497_s3 + $0x160] sm:$0xff]  ;;  %v355_v23 = vld [vmem:[%s1497_s3 + $0x170] sm:$0xff]  ;;  %352 = vst [vmem:[%s1502_s4 + $0xa8] sm:$0xff] %v351_v21 }
  0x24   : > { %354 = vst [vmem:[%s1502_s4 + $0xb0] sm:$0xff] %v353_v22  ;;  %356 = vst [vmem:[%s1502_s4 + $0xb8] sm:$0xff] %v355_v23  ;;  %v357_v24 = vld [vmem:[%s1497_s3 + $0x180] sm:$0xff]  ;;  %v359_v25 = vld [vmem:[%s1497_s3 + $0x190] sm:$0xff] }
  0x25   : > { %v361_v26 = vld [vmem:[%s1497_s3 + $0x1a0] sm:$0xff]  ;;  %358 = vst [vmem:[%s1502_s4 + $0xc0] sm:$0xff] %v357_v24  ;;  %360 = vst [vmem:[%s1502_s4 + $0xc8] sm:$0xff] %v359_v25  ;;  %v363_v27 = vld [vmem:[%s1497_s3 + $0x1b0] sm:$0xff] }
  0x26   : > { %362 = vst [vmem:[%s1502_s4 + $0xd0] sm:$0xff] %v361_v26  ;;  %v365_v28 = vld [vmem:[%s1497_s3 + $0x1c0] sm:$0xff]  ;;  %v367_v29 = vld [vmem:[%s1497_s3 + $0x1d0] sm:$0xff]  ;;  %364 = vst [vmem:[%s1502_s4 + $0xd8] sm:$0xff] %v363_v27 }
  0x27   : > { %366 = vst [vmem:[%s1502_s4 + $0xe0] sm:$0xff] %v365_v28  ;;  %368 = vst [vmem:[%s1502_s4 + $0xe8] sm:$0xff] %v367_v29  ;;  %v369_v30 = vld [vmem:[%s1497_s3 + $0x1e0] sm:$0xff]  ;;  %v371_v31 = vld [vmem:[%s1497_s3 + $0x1f0] sm:$0xff] }
  0x28   : > { %v373_v32 = vld [vmem:[%s1497_s3 + $0x200] sm:$0xff]  ;;  %370 = vst [vmem:[%s1502_s4 + $0xf0] sm:$0xff] %v369_v30  ;;  %372 = vst [vmem:[%s1502_s4 + $0xf8] sm:$0xff] %v371_v31  ;;  %v375_v33 = vld [vmem:[%s1497_s3 + $0x210] sm:$0xff] }
  0x29   : > { %374 = vst [vmem:[%s1502_s4 + $0x100] sm:$0xff] %v373_v32  ;;  %v377_v34 = vld [vmem:[%s1497_s3 + $0x220] sm:$0xff]  ;;  %v379_v35 = vld [vmem:[%s1497_s3 + $0x230] sm:$0xff]  ;;  %376 = vst [vmem:[%s1502_s4 + $0x108] sm:$0xff] %v375_v33 }
  0x2a   : > { %378 = vst [vmem:[%s1502_s4 + $0x110] sm:$0xff] %v377_v34  ;;  %380 = vst [vmem:[%s1502_s4 + $0x118] sm:$0xff] %v379_v35  ;;  %v381_v36 = vld [vmem:[%s1497_s3 + $0x240] sm:$0xff]  ;;  %v383_v37 = vld [vmem:[%s1497_s3 + $0x250] sm:$0xff] }
  0x2b   : > { %v385_v38 = vld [vmem:[%s1497_s3 + $0x260] sm:$0xff]  ;;  %382 = vst [vmem:[%s1502_s4 + $0x120] sm:$0xff] %v381_v36  ;;  %384 = vst [vmem:[%s1502_s4 + $0x128] sm:$0xff] %v383_v37  ;;  %v387_v39 = vld [vmem:[%s1497_s3 + $0x270] sm:$0xff] }
  0x2c   : > { %386 = vst [vmem:[%s1502_s4 + $0x130] sm:$0xff] %v385_v38  ;;  %v389_v40 = vld [vmem:[%s1497_s3 + $0x280] sm:$0xff]  ;;  %v391_v41 = vld [vmem:[%s1497_s3 + $0x290] sm:$0xff]  ;;  %388 = vst [vmem:[%s1502_s4 + $0x138] sm:$0xff] %v387_v39 }
  0x2d   : > { %390 = vst [vmem:[%s1502_s4 + $0x140] sm:$0xff] %v389_v40  ;;  %392 = vst [vmem:[%s1502_s4 + $0x148] sm:$0xff] %v391_v41  ;;  %v393_v42 = vld [vmem:[%s1497_s3 + $0x2a0] sm:$0xff]  ;;  %v395_v43 = vld [vmem:[%s1497_s3 + $0x2b0] sm:$0xff] }
  0x2e   : > { %v397_v44 = vld [vmem:[%s1497_s3 + $0x2c0] sm:$0xff]  ;;  %394 = vst [vmem:[%s1502_s4 + $0x150] sm:$0xff] %v393_v42  ;;  %396 = vst [vmem:[%s1502_s4 + $0x158] sm:$0xff] %v395_v43  ;;  %v399_v45 = vld [vmem:[%s1497_s3 + $0x2d0] sm:$0xff] }
  0x2f   : > { %398 = vst [vmem:[%s1502_s4 + $0x160] sm:$0xff] %v397_v44  ;;  %v401_v46 = vld [vmem:[%s1497_s3 + $0x2e0] sm:$0xff]  ;;  %v403_v47 = vld [vmem:[%s1497_s3 + $0x2f0] sm:$0xff]  ;;  %400 = vst [vmem:[%s1502_s4 + $0x168] sm:$0xff] %v399_v45 }
  0x30   : > { %402 = vst [vmem:[%s1502_s4 + $0x170] sm:$0xff] %v401_v46  ;;  %404 = vst [vmem:[%s1502_s4 + $0x178] sm:$0xff] %v403_v47  ;;  %v405_v48 = vld [vmem:[%s1497_s3 + $0x300] sm:$0xff]  ;;  %v407_v49 = vld [vmem:[%s1497_s3 + $0x310] sm:$0xff] }
  0x31   : > { %v409_v50 = vld [vmem:[%s1497_s3 + $0x320] sm:$0xff]  ;;  %406 = vst [vmem:[%s1502_s4 + $0x180] sm:$0xff] %v405_v48  ;;  %408 = vst [vmem:[%s1502_s4 + $0x188] sm:$0xff] %v407_v49  ;;  %v411_v51 = vld [vmem:[%s1497_s3 + $0x330] sm:$0xff] }
  0x32   : > { %410 = vst [vmem:[%s1502_s4 + $0x190] sm:$0xff] %v409_v50  ;;  %v413_v52 = vld [vmem:[%s1497_s3 + $0x340] sm:$0xff]  ;;  %v415_v53 = vld [vmem:[%s1497_s3 + $0x350] sm:$0xff]  ;;  %412 = vst [vmem:[%s1502_s4 + $0x198] sm:$0xff] %v411_v51 }
  0x33   : > { %414 = vst [vmem:[%s1502_s4 + $0x1a0] sm:$0xff] %v413_v52  ;;  %416 = vst [vmem:[%s1502_s4 + $0x1a8] sm:$0xff] %v415_v53  ;;  %v417_v54 = vld [vmem:[%s1497_s3 + $0x360] sm:$0xff]  ;;  %v419_v55 = vld [vmem:[%s1497_s3 + $0x370] sm:$0xff] }
  0x34   : > { %v421_v56 = vld [vmem:[%s1497_s3 + $0x380] sm:$0xff]  ;;  %418 = vst [vmem:[%s1502_s4 + $0x1b0] sm:$0xff] %v417_v54  ;;  %420 = vst [vmem:[%s1502_s4 + $0x1b8] sm:$0xff] %v419_v55  ;;  %v423_v57 = vld [vmem:[%s1497_s3 + $0x390] sm:$0xff] }
  0x35   : > { %422 = vst [vmem:[%s1502_s4 + $0x1c0] sm:$0xff] %v421_v56  ;;  %v425_v58 = vld [vmem:[%s1497_s3 + $0x3a0] sm:$0xff]  ;;  %v427_v59 = vld [vmem:[%s1497_s3 + $0x3b0] sm:$0xff]  ;;  %424 = vst [vmem:[%s1502_s4 + $0x1c8] sm:$0xff] %v423_v57 }
  0x36   : > { %426 = vst [vmem:[%s1502_s4 + $0x1d0] sm:$0xff] %v425_v58  ;;  %428 = vst [vmem:[%s1502_s4 + $0x1d8] sm:$0xff] %v427_v59  ;;  %v429_v60 = vld [vmem:[%s1497_s3 + $0x3c0] sm:$0xff]  ;;  %v431_v61 = vld [vmem:[%s1497_s3 + $0x3d0] sm:$0xff] }
  0x37   : > { %v433_v62 = vld [vmem:[%s1497_s3 + $0x3e0] sm:$0xff]  ;;  %430 = vst [vmem:[%s1502_s4 + $0x1e0] sm:$0xff] %v429_v60  ;;  %432 = vst [vmem:[%s1502_s4 + $0x1e8] sm:$0xff] %v431_v61  ;;  %v435_v63 = vld [vmem:[%s1497_s3 + $0x3f0] sm:$0xff] }
  0x38   : > { %434 = vst [vmem:[%s1502_s4 + $0x1f0] sm:$0xff] %v433_v62  ;;  %436 = vst [vmem:[%s1502_s4 + $0x1f8] sm:$0xff] %v435_v63 }
  0x39 PF: > { %p1129_p7 = scmp.ge.s32.totalorder %s1419_s15, 1  ;;  %p441_p8 = scmp.lt.s32.totalorder %s1419_s15, 21 }
  0x3b   : > { %p442_p9 = pnand %p1129_p7, %p441_p8 }
  0x3c   : > { %s448_s5 = sand.u32 (!%p442_p9), 1, %s1395_s9   ;;  %s1131_s6 = sshll.u32 (!%p442_p9), %s1403_s11, 2 }
  0x3d   : > { %445 = sbr.rel (%p442_p9) target bundleno = 370 (0x172), region = 62  ;;  %s1130_s7 = sshll.u32 (!%p442_p9), %s448_s5, 9 }
  0x3e   : > { %p485_p10 = scmp.lt.s32.totalorder (!%p442_p9), %s1131_s6, 39  ;;  %s1133_s8 = sshll.u32 (!%p442_p9), %s1407_s12, 1 }
  0x3f   : > { %p497_p11 = scmp.lt.s32.totalorder (!%p442_p9), %s1133_s8, 3  ;;  %s1644_s9 = scalar_lea.vmem (!%p442_p9), [#allocation3], %s1130_s7 }
  0x40   : > { %p1135_p12 = scmp.ne.s32.totalorder (!%p442_p9), %s1403_s11, 0 }
  0x44   : > { %s1753_s6 = smov (!%p485_p10, %s1131_s6), 39  ;;  %s1755_s8 = smov (!%p497_p11, %s1133_s8), 3 }
  0x45   : > { %s1132_s18 = sshll.u32 %s1753_s6, 2  ;;  %s1134_s23 = sshll.u32 %s1755_s8, 3  ;;  %v1421_v0 = vmov (!%p1135_p12), 0.0  }
  0x46   : > { %s1637_s21 = scalar_lea.vmem %s1737_s0, %s1132_s18  ;;  %s1642_s26 = scalar_lea.vmem %s1739_s2, %s1134_s23  ;;  %508 = vst [vmem:[#allocation2] sm:$0xff] (!%p1135_p12), %v1421_v0  ;;  %509 = vst [vmem:[#allocation2 + $0x8] sm:$0xff] (!%p1135_p12), %v1421_v0 }
  0x47   : > { %507 = sbr.rel (%p1135_p12) target bundleno = 78 (0x4e), region = 70 }
  0x4e PF: > { %v1265_v1 = vld [vmem:[%s1644_s9 + $0x4] ss:$8 sps:$4 sm:$0xff]   ;;  %v1269_v3 = vld [vmem:[%s1644_s9] ss:$8 sps:$4 sm:$0xff]   ;;  %v1271_v5 = vld [vmem:[%s1644_s9 + $0x14] ss:$8 sps:$4 sm:$0xff]  }
  0x4f   : > { %v1267_v2 = vld [vmem:[%s1644_s9 + $0x104] ss:$8 sps:$4 sm:$0xff]   ;;  %912 = vmatprep.subr.bf16.mxu0 %v1265_v1  ;;  %v1270_v4 = vld [vmem:[%s1644_s9 + $0x100] ss:$8 sps:$4 sm:$0xff]   ;;  %v1273_v6 = vld [vmem:[%s1644_s9 + $0x114] ss:$8 sps:$4 sm:$0xff]  }
  0x50   : > { %953 = vmatprep.subr.bf16.mxu1 %v1267_v2  ;;  %913 = vmatpush1.bf16.msra.mxu0 %v1269_v3  ;;  %v1275_v7 = vld [vmem:[%s1644_s9 + $0x10] ss:$8 sps:$4 sm:$0xff]   ;;  %v1277_v9 = vld [vmem:[%s1644_s9 + $0x24] ss:$8 sps:$4 sm:$0xff]   ;;  %v1281_v11 = vld [vmem:[%s1644_s9 + $0x20] ss:$8 sps:$4 sm:$0xff]  }
  0x51   : > { %954 = vmatpush1.bf16.msra.mxu1 %v1270_v4  ;;  %914 = vmatprep.subr.bf16.mxu0 %v1271_v5  ;;  %v1276_v8 = vld [vmem:[%s1644_s9 + $0x110] ss:$8 sps:$4 sm:$0xff]   ;;  %v1279_v10 = vld [vmem:[%s1644_s9 + $0x124] ss:$8 sps:$4 sm:$0xff]   ;;  %v1282_v12 = vld [vmem:[%s1644_s9 + $0x120] ss:$8 sps:$4 sm:$0xff]  }
  0x52   : > { %955 = vmatprep.subr.bf16.mxu1 %v1273_v6  ;;  %v1283_v13 = vld [vmem:[%s1644_s9 + $0x34] ss:$8 sps:$4 sm:$0xff]   ;;  %v1287_v15 = vld [vmem:[%s1644_s9 + $0x30] ss:$8 sps:$4 sm:$0xff]   ;;  %v1289_v17 = vld [vmem:[%s1644_s9 + $0x44] ss:$8 sps:$4 sm:$0xff]  }
  0x53   : > { %v1285_v14 = vld [vmem:[%s1644_s9 + $0x134] ss:$8 sps:$4 sm:$0xff]   ;;  %v1288_v16 = vld [vmem:[%s1644_s9 + $0x130] ss:$8 sps:$4 sm:$0xff]   ;;  %v1291_v18 = vld [vmem:[%s1644_s9 + $0x144] ss:$8 sps:$4 sm:$0xff]  }
  0x54   : > { %915 = vmatpush1.bf16.msra.mxu0 %v1275_v7  ;;  %v1293_v19 = vld [vmem:[%s1644_s9 + $0x40] ss:$8 sps:$4 sm:$0xff]   ;;  %v1295_v21 = vld [vmem:[%s1644_s9 + $0x54] ss:$8 sps:$4 sm:$0xff]   ;;  %v1299_v23 = vld [vmem:[%s1644_s9 + $0x50] ss:$8 sps:$4 sm:$0xff]  }
  0x55   : > { %956 = vmatpush1.bf16.msra.mxu1 %v1276_v8  ;;  %916 = vmatprep.subr.bf16.mxu0 %v1277_v9  ;;  %v1294_v20 = vld [vmem:[%s1644_s9 + $0x140] ss:$8 sps:$4 sm:$0xff]   ;;  %v1297_v22 = vld [vmem:[%s1644_s9 + $0x154] ss:$8 sps:$4 sm:$0xff]   ;;  %v1300_v24 = vld [vmem:[%s1644_s9 + $0x150] ss:$8 sps:$4 sm:$0xff]  }
  0x56   : > { %957 = vmatprep.subr.bf16.mxu1 %v1279_v10  ;;  %v1301_v25 = vld [vmem:[%s1644_s9 + $0x64] ss:$8 sps:$4 sm:$0xff]   ;;  %v1305_v27 = vld [vmem:[%s1644_s9 + $0x60] ss:$8 sps:$4 sm:$0xff]   ;;  %v1307_v29 = vld [vmem:[%s1644_s9 + $0x74] ss:$8 sps:$4 sm:$0xff]  }
  0x57   : > { %v1303_v26 = vld [vmem:[%s1644_s9 + $0x164] ss:$8 sps:$4 sm:$0xff]   ;;  %v1306_v28 = vld [vmem:[%s1644_s9 + $0x160] ss:$8 sps:$4 sm:$0xff]   ;;  %v1309_v30 = vld [vmem:[%s1644_s9 + $0x174] ss:$8 sps:$4 sm:$0xff]  }
  0x58   : > { %917 = vmatpush1.bf16.msra.mxu0 %v1281_v11  ;;  %v1311_v31 = vld [vmem:[%s1644_s9 + $0x70] ss:$8 sps:$4 sm:$0xff]   ;;  %v1313_v33 = vld [vmem:[%s1644_s9 + $0x84] ss:$8 sps:$4 sm:$0xff]   ;;  %v1317_v35 = vld [vmem:[%s1644_s9 + $0x80] ss:$8 sps:$4 sm:$0xff]  }
  0x59   : > { %958 = vmatpush1.bf16.msra.mxu1 %v1282_v12  ;;  %918 = vmatprep.subr.bf16.mxu0 %v1283_v13  ;;  %v1312_v32 = vld [vmem:[%s1644_s9 + $0x170] ss:$8 sps:$4 sm:$0xff]   ;;  %v1315_v34 = vld [vmem:[%s1644_s9 + $0x184] ss:$8 sps:$4 sm:$0xff]   ;;  %v1318_v36 = vld [vmem:[%s1644_s9 + $0x180] ss:$8 sps:$4 sm:$0xff]  }
  0x5a   : > { %959 = vmatprep.subr.bf16.mxu1 %v1285_v14  ;;  %v1319_v37 = vld [vmem:[%s1644_s9 + $0x94] ss:$8 sps:$4 sm:$0xff]   ;;  %v1323_v39 = vld [vmem:[%s1644_s9 + $0x90] ss:$8 sps:$4 sm:$0xff]   ;;  %v1325_v41 = vld [vmem:[%s1644_s9 + $0xa4] ss:$8 sps:$4 sm:$0xff]  }
  0x5b   : > { %v1321_v38 = vld [vmem:[%s1644_s9 + $0x194] ss:$8 sps:$4 sm:$0xff]   ;;  %v1324_v40 = vld [vmem:[%s1644_s9 + $0x190] ss:$8 sps:$4 sm:$0xff]   ;;  %v1327_v42 = vld [vmem:[%s1644_s9 + $0x1a4] ss:$8 sps:$4 sm:$0xff]  }
  0x5c   : > { %919 = vmatpush1.bf16.msra.mxu0 %v1287_v15  ;;  %v1329_v43 = vld [vmem:[%s1644_s9 + $0xa0] ss:$8 sps:$4 sm:$0xff]   ;;  %v1331_v45 = vld [vmem:[%s1644_s9 + $0xb4] ss:$8 sps:$4 sm:$0xff]   ;;  %v1335_v50 = vld [vmem:[%s1644_s9 + $0xb0] ss:$8 sps:$4 sm:$0xff]  }
  0x5d   : > { %960 = vmatpush1.bf16.msra.mxu1 %v1288_v16  ;;  %920 = vmatprep.subr.bf16.mxu0 %v1289_v17  ;;  %v1330_v44 = vld [vmem:[%s1644_s9 + $0x1a0] ss:$8 sps:$4 sm:$0xff]   ;;  %v1333_v46 = vld [vmem:[%s1644_s9 + $0x1b4] ss:$8 sps:$4 sm:$0xff]   ;;  %v1336_v51 = vld [vmem:[%s1644_s9 + $0x1b0] ss:$8 sps:$4 sm:$0xff]  }
  0x5e   : > { %961 = vmatprep.subr.bf16.mxu1 %v1291_v18  ;;  %v512_v47 = vld [vmem:[%s1637_s21] sm:$0xff]  ;;  %v513_v49 = vld [vmem:[%s1637_s21 + $0x8] sm:$0xff]  ;;  %v1337_v53 = vld [vmem:[%s1644_s9 + $0xc4] ss:$8 sps:$4 sm:$0xff]   ;;  %p1204_p13 = scmp.ne.s32.totalorder %s1403_s11, 9 }
  0x5f   : > { %v1137_v48 = vcombine.high %v512_v47, %v512_v47  ;;  %v1139_v52 = vcombine.high %v513_v49, %v513_v49  ;;  %v1339_v54 = vld [vmem:[%s1644_s9 + $0x1c4] ss:$8 sps:$4 sm:$0xff]   ;;  %v1341_v55 = vld [vmem:[%s1644_s9 + $0xc0] ss:$8 sps:$4 sm:$0xff]   ;;  %v1343_v57 = vld [vmem:[%s1644_s9 + $0xd4] ss:$8 sps:$4 sm:$0xff]   ;;  %v1136_v5 = vcombine.low %v512_v47, %v512_v47  ;;  %v1138_v6 = vcombine.low %v513_v49, %v513_v49 }
  0x60   : > { %921 = vmatpush1.bf16.msra.mxu0 %v1293_v19  ;;  %v1342_v56 = vld [vmem:[%s1644_s9 + $0x1c0] ss:$8 sps:$4 sm:$0xff]   ;;  %v1345_v58 = vld [vmem:[%s1644_s9 + $0x1d4] ss:$8 sps:$4 sm:$0xff]   ;;  %v1347_v59 = vld [vmem:[%s1644_s9 + $0xd0] ss:$8 sps:$4 sm:$0xff]  }
  0x61   : > { %962 = vmatpush1.bf16.msra.mxu1 %v1294_v20  ;;  %922 = vmatprep.subr.bf16.mxu0 %v1295_v21  ;;  %v1348_v60 = vld [vmem:[%s1644_s9 + $0x1d0] ss:$8 sps:$4 sm:$0xff]   ;;  %v1349_v61 = vld [vmem:[%s1644_s9 + $0xe4] ss:$8 sps:$4 sm:$0xff]   ;;  %v1353_v63 = vld [vmem:[%s1644_s9 + $0xe0] ss:$8 sps:$4 sm:$0xff]  }
  0x62   : > { %963 = vmatprep.subr.bf16.mxu1 %v1297_v22  ;;  %944 = vmatprep.mubr.bf16.mxu0 %v1137_v48  ;;  %v1351_v62 = vld [vmem:[%s1644_s9 + $0x1e4] ss:$8 sps:$4 sm:$0xff]   ;;  %v1354_v0 = vld [vmem:[%s1644_s9 + $0x1e0] ss:$8 sps:$4 sm:$0xff]   ;;  %v1355_v1 = vld [vmem:[%s1644_s9 + $0xf4] ss:$8 sps:$4 sm:$0xff]  }
  0x63   : > { %985 = vmatprep.mubr.bf16.mxu1 %v1139_v52  ;;  %v1357_v2 = vld [vmem:[%s1644_s9 + $0x1f4] ss:$8 sps:$4 sm:$0xff]   ;;  %v1359_v3 = vld [vmem:[%s1644_s9 + $0xf0] ss:$8 sps:$4 sm:$0xff]  }
  0x64   : > { %923 = vmatpush1.bf16.msra.mxu0 %v1299_v23  ;;  %v1360_v4 = vld [vmem:[%s1644_s9 + $0x1f0] ss:$8 sps:$4 sm:$0xff]  }
  0x65   : > { %964 = vmatpush1.bf16.msra.mxu1 %v1300_v24  ;;  %924 = vmatprep.subr.bf16.mxu0 %v1301_v25  ;;  %v510_v8 = vld [vmem:[#allocation2] sm:$0xff]  ;;  %v511_v12 = vld [vmem:[#allocation2 + $0x8] sm:$0xff] }
  0x66   : > { %965 = vmatprep.subr.bf16.mxu1 %v1303_v26 }
  0x68   : > { %925 = vmatpush1.bf16.msra.mxu0 %v1305_v27 }
  0x69   : > { %966 = vmatpush1.bf16.msra.mxu1 %v1306_v28  ;;  %926 = vmatprep.subr.bf16.mxu0 %v1307_v29 }
  0x6a   : > { %967 = vmatprep.subr.bf16.mxu1 %v1309_v30 }
  0x6c   : > { %927 = vmatpush1.bf16.msra.mxu0 %v1311_v31 }
  0x6d   : > { %968 = vmatpush1.bf16.msra.mxu1 %v1312_v32  ;;  %928 = vmatprep.subr.bf16.mxu0 %v1313_v33 }
  0x6e   : > { %969 = vmatprep.subr.bf16.mxu1 %v1315_v34 }
  0x70   : > { %929 = vmatpush1.bf16.msra.mxu0 %v1317_v35 }
  0x71   : > { %970 = vmatpush1.bf16.msra.mxu1 %v1318_v36  ;;  %930 = vmatprep.subr.bf16.mxu0 %v1319_v37 }
  0x72   : > { %971 = vmatprep.subr.bf16.mxu1 %v1321_v38 }
  0x74   : > { %931 = vmatpush1.bf16.msra.mxu0 %v1323_v39 }
  0x75   : > { %972 = vmatpush1.bf16.msra.mxu1 %v1324_v40  ;;  %932 = vmatprep.subr.bf16.mxu0 %v1325_v41 }
  0x76   : > { %973 = vmatprep.subr.bf16.mxu1 %v1327_v42 }
  0x78   : > { %933 = vmatpush1.bf16.msra.mxu0 %v1329_v43 }
  0x79   : > { %974 = vmatpush1.bf16.msra.mxu1 %v1330_v44  ;;  %934 = vmatprep.subr.bf16.mxu0 %v1331_v45 }
  0x7a   : > { %975 = vmatprep.subr.bf16.mxu1 %v1333_v46 }
  0x7c   : > { %935 = vmatpush1.bf16.msra.mxu0 %v1335_v50 }
  0x7d   : > { %976 = vmatpush1.bf16.msra.mxu1 %v1336_v51  ;;  %936 = vmatprep.subr.bf16.mxu0 %v1337_v53 }
  0x7e   : > { %977 = vmatprep.subr.bf16.mxu1 %v1339_v54 }
  0x80   : > { %937 = vmatpush1.bf16.msra.mxu0 %v1341_v55 }
  0x81   : > { %978 = vmatpush1.bf16.msra.mxu1 %v1342_v56  ;;  %938 = vmatprep.subr.bf16.mxu0 %v1343_v57 }
  0x82   : > { %979 = vmatprep.subr.bf16.mxu1 %v1345_v58 }
  0x84   : > { %939 = vmatpush1.bf16.msra.mxu0 %v1347_v59 }
  0x85   : > { %980 = vmatpush1.bf16.msra.mxu1 %v1348_v60  ;;  %940 = vmatprep.subr.bf16.mxu0 %v1349_v61 }
  0x86   : > { %981 = vmatprep.subr.bf16.mxu1 %v1351_v62 }
  0x88   : > { %941 = vmatpush1.bf16.msra.mxu0 %v1353_v63 }
  0x89   : > { %982 = vmatpush1.bf16.msra.mxu1 %v1354_v0  ;;  %942 = vmatprep.subr.bf16.mxu0 %v1355_v1 }
  0x8a   : > { %983 = vmatprep.subr.bf16.mxu1 %v1357_v2 }
  0x8c   : > { %943 = vmatpush1.bf16.msra.mxu0 %v1359_v3 }
  0x8d   : > { %984 = vmatpush1.bf16.msra.mxu1 %v1360_v4 }
  0x8f   : > { %945 = vmatmul.mubr.bf16.vlgmr.msra.gmra.mrb[0].mxu0 %v1136_v5 }
  0x90   : > { %986 = vmatmul.mubr.bf16.vlgmr.msra.gmra.mrb[0].mxu1 %v1138_v6 }
 0x162   : > { %v946_v7 = vpop.f32.mrb[0].mxu0 }
 0x163   : > { %v987_v9 = vpop.f32.mrb[0].mxu1  ;;  %v948_v11 = vpop.f32.mrb[1].mxu0  ;;  %1001 = sbr.rel (%p1204_p13) target bundleno = 370 (0x172), region = 74 }
 0x164   : > { %v988_v10 = vadd.f32 %v987_v9, %v946_v7  ;;  %v989_v13 = vpop.f32.mrb[1].mxu1  ;;  %v950_v15 = vpop.f32.mrb[2].mxu0 }
 0x165   : > { %v990_v14 = vadd.f32 %v989_v13, %v948_v11  ;;  %v991_v16 = vpop.f32.mrb[2].mxu1  ;;  %v951_v18 = vpop.f32.mrb[3].mxu0 }
 0x166   : > { %v994_v17 = vadd.f32 %v988_v10, %v510_v8  ;;  %v992_v19 = vpop.f32.mrb[3].mxu1 }
 0x167   : > { %v995_v20 = vadd.f32 %v990_v14, %v511_v12 }
 0x168   : > { %996 = vst [vmem:[#allocation2] sm:$0xff] %v994_v17 }
 0x169   : > { %997 = vst [vmem:[#allocation2 + $0x8] sm:$0xff] %v995_v20 }
 0x16f   : > { %v1002_v21 = vld [vmem:[#allocation2] sm:$0xff] }
 0x170   : > { %v1003_v22 = vld [vmem:[#allocation2 + $0x8] sm:$0xff]  ;;  %1004 = vst [vmem:[%s1642_s26] sm:$0xff] %v1002_v21 }
 0x171   : > { %1005 = vst [vmem:[%s1642_s26 + $0x8] sm:$0xff] %v1003_v22 }
 0x172 PF: > { %s12_s15 = sadd.s32 1, %s1419_s15   ;;  %s1740_s9 = smov %s1399_s10 }
 0x173   : > { %p9_p0 = scmp.ge.s32.totalorder %s12_s15, 22   ;;  %s1741_s10 = smov %s1488_s22 }
 0x174   : > { %s1742_s11 = smov %s1411_s13  ;;  %s1743_s12 = smov %s1415_s14 }
 0x175   : > { %s1744_s13 = smov %s1747_s16  ;;  %s1745_s14 = smov %s1751_s17 }
 0x176   :  { %11 = sbr.rel (!%p9_p0) target bundleno = 4 (0x4), region = 112 }

</bundles_post_ra>
